<compile_context>
chip_gen: v7x
topology: tpu7x:2x2x1
jax: 0.10.0
libtpu: 0.0.40
codegen_flags: <defaults>
</compile_context>

<pallas_src>
import functools

import jax
import jax.numpy as jnp
from jax.experimental import pallas as pl
from jax.experimental.pallas import tpu as pltpu


def _round_up(x, m):
    return -(-x // m) * m


# ----------------------------- in-kernel helpers -----------------------------

def _col_index(W, S):
    s = jax.lax.broadcasted_iota(jnp.int32, (S, 1), 0)
    return s % W


def _spatial_taps(x, H, W, w_idx):
    """x: (H*W, C) f32 activation, flattened row-major (s = h*W + w).

    Returns the nine zero-padded 3x3 taps [(kh, kw) row-major], each (H*W, C):
        tap[s] = x[(h+kh-1)*W + (w+kw-1)]  if in bounds else 0.
    Built from one sublane-aligned zero-pad concat + static slices + column masks;
    no strided access and no reshapes of tiled dims.
    """
    S, C = H * W, x.shape[1]
    pad = _round_up(W + 1, 8)                       # 8-aligned pad blocks
    zeros = jnp.zeros((pad, C), x.dtype)
    xp = jnp.concatenate([zeros, x, zeros], axis=0)  # (S + 2*pad, C)
    taps = []
    for oh in (-1, 0, 1):
        for ow in (-1, 0, 1):
            off = oh * W + ow
            t = jax.lax.slice_in_dim(xp, pad + off, pad + off + S, axis=0)
            # Row (h) overflow lands in the zero padding; only the column (w)
            # wrap-around into a neighbouring row needs masking.
            if ow > 0:
                t = jnp.where(w_idx < W - ow, t, 0.0)
            elif ow < 0:
                t = jnp.where(w_idx >= -ow, t, 0.0)
            taps.append(t)
    return taps


# ----------------------------- fused kernel -----------------------------

def _make_fused_kernel(net):
    blocks = net["blocks"]

    def kernel(*refs):
        *in_refs, o_ref = refs
        it = iter(in_refs)
        x_ref = next(it)
        w1_ref, b1_ref = next(it), next(it)
        blk_refs = []
        for blk in blocks:
            kdw_ref, bdw_ref = next(it), next(it)
            p_ref = next(it) if blk["stride"] == 2 else None
            wpw_ref, bpw_ref = next(it), next(it)
            blk_refs.append((kdw_ref, bdw_ref, p_ref, wpw_ref, bpw_ref))
        wl_ref, bl_ref = next(it), next(it)

        # ---- stem: 3x3 conv (stride 1, pad 1) + folded BN + ReLU ----
        H, W = net["H0"], net["W0"]
        w_idx = _col_index(W, H * W)
        x = x_ref[0].astype(jnp.float32)              # (S0, c_in_pad)
        taps = _spatial_taps(x, H, W, w_idx)
        acc = jnp.zeros((H * W, net["C0"]), jnp.float32)
        for t, tap in enumerate(taps):
            acc = acc + jnp.dot(tap.astype(jnp.bfloat16), w1_ref[t],
                                preferred_element_type=jnp.float32)
        a = jnp.maximum(acc + b1_ref[...], 0.0)       # (S0, C0) f32

        # ---- depthwise-separable blocks ----
        for blk, (kdw_ref, bdw_ref, p_ref, wpw_ref, bpw_ref) in zip(blocks, blk_refs):
            Hb, Wb = blk["H"], blk["W"]               # input spatial dims of this block
            if (Hb, Wb) != (H, W):
                H, W = Hb, Wb
                w_idx = _col_index(W, H * W)
            # 3x3 depthwise at stride 1 on the VPU (9 MACs, folded BN scale in kdw).
            taps = _spatial_taps(a, H, W, w_idx)
            d = jnp.zeros_like(a)
            for t, tap in enumerate(taps):
                d = d + tap * kdw_ref[t]
            dw = jnp.maximum(d + bdw_ref[...], 0.0).astype(jnp.bfloat16)
            if p_ref is not None:
                # stride 2: select rows (2i, 2j) of the full-resolution result with an
                # exact 0/1 selection matrix (small MXU matmul, no strided access).
                dw = jnp.dot(p_ref[...], dw,
                             preferred_element_type=jnp.float32).astype(jnp.bfloat16)
            # 1x1 pointwise conv (folded BN) + ReLU on the MXU.
            a = jnp.maximum(
                jnp.dot(dw, wpw_ref[...], preferred_element_type=jnp.float32)
                + bpw_ref[...], 0.0)

        # ---- head: global average pool + linear + log_softmax (all f32) ----
        feat = jnp.mean(a, axis=0, keepdims=True)     # (1, C_last)
        logits = jnp.dot(feat, wl_ref[...],
                         preferred_element_type=jnp.float32) + bl_ref[...]
        z = logits - jnp.max(logits, axis=-1, keepdims=True)
        o_ref[0] = z - jnp.log(jnp.sum(jnp.exp(z), axis=-1, keepdims=True))

    return kernel


def _const_spec(shape):
    nd = len(shape)
    return pl.BlockSpec(shape, lambda i, _nd=nd: (0,) * _nd)


def mblnetv1_forward(x_nchw, flat_params, *, net):
    n = x_nchw.shape[0]
    s0 = net["H0"] * net["W0"]
    ncls = net["num_classes"]
    x = jnp.transpose(x_nchw, (0, 2, 3, 1)).astype(jnp.float32)   # NCHW -> NHWC
    x = x.reshape(n, s0, net["c_in"])
    if net["c_in_pad"] != net["c_in"]:
        x = jnp.pad(x, ((0, 0), (0, 0), (0, net["c_in_pad"] - net["c_in"])))

    out = pl.pallas_call(
        _make_fused_kernel(net),
        out_shape=jax.ShapeDtypeStruct((n, 1, ncls), jnp.float32),
        grid_spec=pltpu.PrefetchScalarGridSpec(
            num_scalar_prefetch=0,
            grid=(n,),
            in_specs=[pl.BlockSpec((1, s0, net["c_in_pad"]), lambda i: (i, 0, 0))]
                     + [_const_spec(p.shape) for p in flat_params],
            out_specs=pl.BlockSpec((1, 1, ncls), lambda i: (i, 0, 0))),
        compiler_params=pltpu.CompilerParams(dimension_semantics=("parallel",)),
    )(x, *flat_params)
    return out.reshape(n, ncls)


# ----------------------------- parameter init / prep -----------------------------

def init_params(key, inc_list=(32, 64, 128, 128), inc_scale=4,
                num_blocks_list=(1, 1, 1), stride_list=(1, 2, 2),
                num_classes=2, hw=16):
    """Deterministic pseudo-trained parameters mirroring the PyTorch module."""
    inc1 = [c // inc_scale for c in inc_list]                 # [8, 16, 32, 32]
    in_planes = inc1[0]
    keys = iter(jax.random.split(key, 128))

    def bn(c):  # folded inference-mode BN -> (scale, bias)
        g = 1.0 + 0.1 * jax.random.normal(next(keys), (c,), jnp.float32)
        b = 0.1 * jax.random.normal(next(keys), (c,), jnp.float32)
        m = 0.05 * jax.random.normal(next(keys), (c,), jnp.float32)
        v = 1.0 + 0.1 * jax.random.uniform(next(keys), (c,), jnp.float32)
        s = g / jnp.sqrt(v + 1e-5)
        return s, b - m * s

    raw = {"hw": hw, "num_classes": num_classes}
    raw["conv1_w"] = jax.random.normal(next(keys), (3, 3, 3, in_planes),
                                       jnp.float32) * (2.0 / 27.0) ** 0.5
    raw["bn1"] = bn(in_planes)

    blocks = []
    h = w = hw
    for planes, nb, stride in zip(inc1[1:], num_blocks_list, stride_list):
        for s in [stride] + [1] * (nb - 1):
            cin, cout = in_planes, planes
            blocks.append(dict(
                h=h, w=w, stride=s, cin=cin, cout=cout,
                w_dw=jax.random.normal(next(keys), (3, 3, cin),
                                       jnp.float32) * (2.0 / 9.0) ** 0.5,
                bn_dw=bn(cin),
                w_pw=jax.random.normal(next(keys), (cin, cout),
                                       jnp.float32) * (2.0 / cin) ** 0.5,
                bn_pw=bn(cout),
            ))
            if s == 2:
                h = (h - 1) // 2 + 1
                w = (w - 1) // 2 + 1
            in_planes = planes
    raw["blocks"] = blocks
    raw["lin_w"] = jax.random.normal(next(keys), (in_planes, num_classes),
                                     jnp.float32) * (1.0 / in_planes) ** 0.5
    raw["lin_b"] = 0.01 * jax.random.normal(next(keys), (1, num_classes), jnp.float32)
    return raw


def _subsample_matrix(h, w, dtype=jnp.bfloat16):
    """0/1 matrix selecting rows (2i, 2j) of an (h*w, C) flattened activation."""
    ho = (h - 1) // 2 + 1
    wo = (w - 1) // 2 + 1
    rows = (2 * jnp.arange(ho)[:, None] * w + 2 * jnp.arange(wo)[None, :]).reshape(-1)
    return jax.nn.one_hot(rows, h * w, dtype=dtype)


def prepare_params(raw):
    """Fold BN, pad the stem input channels to a sublane multiple, build the
    stride-2 selection matrices, cast MXU operands to bf16, flatten to one list."""
    hw = raw["hw"]
    c0 = raw["conv1_w"].shape[-1]
    c_in = raw["conv1_w"].shape[2]
    c_in_pad = _round_up(c_in, 8)
    s1, b1 = raw["bn1"]

    net = dict(H0=hw, W0=hw, C0=c0, c_in=c_in, c_in_pad=c_in_pad,
               num_classes=raw["num_classes"], blocks=[])
    flat = []
    w1 = jnp.pad(raw["conv1_w"] * s1, ((0, 0), (0, 0), (0, c_in_pad - c_in), (0, 0)))
    flat.append(w1.reshape(9, c_in_pad, c0).astype(jnp.bfloat16))   # (9, c_in_pad, C0)
    flat.append(b1.reshape(1, c0).astype(jnp.float32))

    for blk in raw["blocks"]:
        sdw, bdw = blk["bn_dw"]
        spw, bpw = blk["bn_pw"]
        net["blocks"].append(dict(H=blk["h"], W=blk["w"], stride=blk["stride"],
                                  cin=blk["cin"], cout=blk["cout"]))
        flat.append((blk["w_dw"] * sdw).reshape(9, 1, blk["cin"]).astype(jnp.float32))
        flat.append(bdw.reshape(1, blk["cin"]).astype(jnp.float32))
        if blk["stride"] == 2:
            flat.append(_subsample_matrix(blk["h"], blk["w"]))
        flat.append((blk["w_pw"] * spw).astype(jnp.bfloat16))
        flat.append(bpw.reshape(1, blk["cout"]).astype(jnp.float32))

    flat.append(raw["lin_w"].astype(jnp.float32))
    flat.append(raw["lin_b"].astype(jnp.float32))
    return net, flat


# ----------------------------- pure-XLA reference (correctness check) -----------------------------

def _reference_forward(x_nchw, raw):
    def q(w):  # match the kernel's bf16 weight storage
        return w.astype(jnp.bfloat16).astype(jnp.float32)

    x = jnp.transpose(x_nchw, (0, 2, 3, 1)).astype(jnp.float32)
    s1, b1 = raw["bn1"]
    y = jax.lax.conv_general_dilated(x, q(raw["conv1_w"] * s1), (1, 1), ((1, 1), (1, 1)),
                                     dimension_numbers=("NHWC", "HWIO", "NHWC"))
    y = jnp.maximum(y + b1, 0.0)
    for blk in raw["blocks"]:
        sdw, bdw = blk["bn_dw"]
        spw, bpw = blk["bn_pw"]
        wdw = (blk["w_dw"] * sdw).reshape(3, 3, 1, blk["cin"])
        d = jax.lax.conv_general_dilated(y, wdw, (blk["stride"],) * 2, ((1, 1), (1, 1)),
                                         dimension_numbers=("NHWC", "HWIO", "NHWC"),
                                         feature_group_count=blk["cin"])
        d = jnp.maximum(d + bdw, 0.0)
        y = jnp.maximum(jnp.einsum("nhwc,co->nhwo", d, q(blk["w_pw"] * spw)) + bpw, 0.0)
    feat = jnp.mean(y, axis=(1, 2))
    logits = feat @ raw["lin_w"] + raw["lin_b"]
    return jax.nn.log_softmax(logits, axis=-1)


# ----------------------------- main -----------------------------

if __name__ == "__main__":
    key = jax.random.PRNGKey(0)
    pkey, xkey = jax.random.split(key)
    raw = init_params(pkey)
    net, flat = prepare_params(raw)

    fwd = jax.jit(functools.partial(mblnetv1_forward, net=net))

    x = jax.random.normal(xkey, (2, 3, 16, 16), jnp.float32)      # NCHW like PyTorch
    out = jax.block_until_ready(fwd(x, flat))

    assert out.shape == (2, net["num_classes"])
    assert bool(jnp.all(jnp.isfinite(out)))
    # log_softmax rows must exponentiate-sum to 1
    assert bool(jnp.all(jnp.abs(jnp.exp(out).sum(axis=-1) - 1.0) < 1e-3))
    # cross-check against a pure-XLA reference (bf16 weight quantization matched)
    ref = _reference_forward(x, raw)
    max_diff = float(jnp.max(jnp.abs(out - ref)))
    assert max_diff < 0.1, f"kernel vs reference mismatch: {max_diff}"
    print("KERNEL_OK")
</pallas_src>

<mosaic_0001>
module attributes {stable_mosaic.version = 11 : i64} {
  func.func @kernel(%arg0: i32, %arg1: memref<1x256x8xf32, #tpu.memory_space<vmem>>, %arg2: memref<9x8x8xbf16, #tpu.memory_space<vmem>>, %arg3: memref<1x8xf32, #tpu.memory_space<vmem>>, %arg4: memref<9x1x8xf32, #tpu.memory_space<vmem>>, %arg5: memref<1x8xf32, #tpu.memory_space<vmem>>, %arg6: memref<8x16xbf16, #tpu.memory_space<vmem>>, %arg7: memref<1x16xf32, #tpu.memory_space<vmem>>, %arg8: memref<9x1x16xf32, #tpu.memory_space<vmem>>, %arg9: memref<1x16xf32, #tpu.memory_space<vmem>>, %arg10: memref<64x256xbf16, #tpu.memory_space<vmem>>, %arg11: memref<16x32xbf16, #tpu.memory_space<vmem>>, %arg12: memref<1x32xf32, #tpu.memory_space<vmem>>, %arg13: memref<9x1x32xf32, #tpu.memory_space<vmem>>, %arg14: memref<1x32xf32, #tpu.memory_space<vmem>>, %arg15: memref<16x64xbf16, #tpu.memory_space<vmem>>, %arg16: memref<32x32xbf16, #tpu.memory_space<vmem>>, %arg17: memref<1x32xf32, #tpu.memory_space<vmem>>, %arg18: memref<32x2xf32, #tpu.memory_space<vmem>>, %arg19: memref<1x2xf32, #tpu.memory_space<vmem>>, %arg20: memref<1x1x2xf32, #tpu.memory_space<vmem>>) attributes {dimension_semantics = [#tpu.dimension_semantics<parallel>], iteration_bounds = array<i64: 2>, scalar_prefetch = 0 : i64, scratch_operands = 0 : i64, tpu.core_type = #tpu.core_type<tc>, window_params = [{transform_indices = @transform_0, window_bounds = array<i64: 1, 256, 8>}, {pipeline_mode = #tpu.pipeline_mode<synchronous>, transform_indices = @transform_1, window_bounds = array<i64: 9, 8, 8>}, {pipeline_mode = #tpu.pipeline_mode<synchronous>, transform_indices = @transform_2, window_bounds = array<i64: 1, 8>}, {pipeline_mode = #tpu.pipeline_mode<synchronous>, transform_indices = @transform_3, window_bounds = array<i64: 9, 1, 8>}, {pipeline_mode = #tpu.pipeline_mode<synchronous>, transform_indices = @transform_4, window_bounds = array<i64: 1, 8>}, {pipeline_mode = #tpu.pipeline_mode<synchronous>, transform_indices = @transform_5, window_bounds = array<i64: 8, 16>}, {pipeline_mode = #tpu.pipeline_mode<synchronous>, transform_indices = @transform_6, window_bounds = array<i64: 1, 16>}, {pipeline_mode = #tpu.pipeline_mode<synchronous>, transform_indices = @transform_7, window_bounds = array<i64: 9, 1, 16>}, {pipeline_mode = #tpu.pipeline_mode<synchronous>, transform_indices = @transform_8, window_bounds = array<i64: 1, 16>}, {pipeline_mode = #tpu.pipeline_mode<synchronous>, transform_indices = @transform_9, window_bounds = array<i64: 64, 256>}, {pipeline_mode = #tpu.pipeline_mode<synchronous>, transform_indices = @transform_10, window_bounds = array<i64: 16, 32>}, {pipeline_mode = #tpu.pipeline_mode<synchronous>, transform_indices = @transform_11, window_bounds = array<i64: 1, 32>}, {pipeline_mode = #tpu.pipeline_mode<synchronous>, transform_indices = @transform_12, window_bounds = array<i64: 9, 1, 32>}, {pipeline_mode = #tpu.pipeline_mode<synchronous>, transform_indices = @transform_13, window_bounds = array<i64: 1, 32>}, {pipeline_mode = #tpu.pipeline_mode<synchronous>, transform_indices = @transform_14, window_bounds = array<i64: 16, 64>}, {pipeline_mode = #tpu.pipeline_mode<synchronous>, transform_indices = @transform_15, window_bounds = array<i64: 32, 32>}, {pipeline_mode = #tpu.pipeline_mode<synchronous>, transform_indices = @transform_16, window_bounds = array<i64: 1, 32>}, {pipeline_mode = #tpu.pipeline_mode<synchronous>, transform_indices = @transform_17, window_bounds = array<i64: 32, 2>}, {pipeline_mode = #tpu.pipeline_mode<synchronous>, transform_indices = @transform_18, window_bounds = array<i64: 1, 2>}, {transform_indices = @transform_19, window_bounds = array<i64: 1, 1, 2>}]} {
    %0 = tpu.iota {dimensions = array<i32: 0>} : vector<256x1xi32>
    %c16_i32 = arith.constant 16 : i32
    %c0_i32 = arith.constant 0 : i32
    %1 = arith.cmpi eq, %c16_i32, %c0_i32 : i32
    %c1_i32 = arith.constant 1 : i32
    %2 = arith.select %1, %c1_i32, %c16_i32 : i32
    %3 = vector.broadcast %2 : i32 to vector<256x1xi32>
    %4 = arith.remsi %0, %3 : vector<256x1xi32>
    %c0_i32_0 = arith.constant 0 : i32
    %5 = vector.broadcast %c0_i32_0 : i32 to vector<256x1xi32>
    %6 = arith.cmpi ne, %4, %5 : vector<256x1xi32>
    %c0_i32_1 = arith.constant 0 : i32
    %7 = vector.broadcast %c0_i32_1 : i32 to vector<256x1xi32>
    %8 = arith.cmpi slt, %4, %7 : vector<256x1xi32>
    %c0_i32_2 = arith.constant 0 : i32
    %9 = arith.cmpi slt, %2, %c0_i32_2 : i32
    %10 = vector.broadcast %9 : i1 to vector<256x1xi1>
    %11 = vector.broadcast %10 : vector<256x1xi1> to vector<256x1xi1>
    %12 = arith.xori %8, %11 : vector<256x1xi1>
    %13 = arith.andi %12, %6 : vector<256x1xi1>
    %14 = vector.broadcast %2 : i32 to vector<256x1xi32>
    %15 = arith.addi %4, %14 : vector<256x1xi32>
    %16 = arith.select %13, %15, %4 : vector<256x1xi1>, vector<256x1xi32>
    %c0 = arith.constant 0 : index
    %c0_3 = arith.constant 0 : index
    %c0_4 = arith.constant 0 : index
    %17 = vector.load %arg1[%c0, %c0_3, %c0_4] : memref<1x256x8xf32, #tpu.memory_space<vmem>>, vector<1x256x8xf32>
    %18 = vector.shape_cast %17 : vector<1x256x8xf32> to vector<256x8xf32>
    %cst = arith.constant 0.000000e+00 : f32
    %19 = vector.broadcast %cst : f32 to vector<24x8xf32>
    %20 = tpu.concatenate %19, %18, %19 in 0 : vector<24x8xf32>, vector<256x8xf32>, vector<24x8xf32> -> vector<304x8xf32>
    %21 = vector.extract_strided_slice %20 {offsets = [7, 0], sizes = [256, 8], strides = [1, 1]} : vector<304x8xf32> to vector<256x8xf32>
    %c1_i32_5 = arith.constant 1 : i32
    %22 = vector.broadcast %c1_i32_5 : i32 to vector<256x1xi32>
    %23 = arith.cmpi sge, %16, %22 : vector<256x1xi32>
    %cst_6 = arith.constant 0.000000e+00 : f32
    %24 = vector.shape_cast %23 : vector<256x1xi1> to vector<256x1xi1>
    %25 = vector.broadcast %24 : vector<256x1xi1> to vector<256x8xi1>
    %26 = vector.broadcast %cst_6 : f32 to vector<256x8xf32>
    %27 = arith.select %25, %21, %26 : vector<256x8xi1>, vector<256x8xf32>
    %28 = vector.extract_strided_slice %20 {offsets = [8, 0], sizes = [256, 8], strides = [1, 1]} : vector<304x8xf32> to vector<256x8xf32>
    %29 = vector.extract_strided_slice %20 {offsets = [9, 0], sizes = [256, 8], strides = [1, 1]} : vector<304x8xf32> to vector<256x8xf32>
    %c15_i32 = arith.constant 15 : i32
    %30 = vector.broadcast %c15_i32 : i32 to vector<256x1xi32>
    %31 = arith.cmpi slt, %16, %30 : vector<256x1xi32>
    %cst_7 = arith.constant 0.000000e+00 : f32
    %32 = vector.shape_cast %31 : vector<256x1xi1> to vector<256x1xi1>
    %33 = vector.broadcast %32 : vector<256x1xi1> to vector<256x8xi1>
    %34 = vector.broadcast %cst_7 : f32 to vector<256x8xf32>
    %35 = arith.select %33, %29, %34 : vector<256x8xi1>, vector<256x8xf32>
    %36 = vector.extract_strided_slice %20 {offsets = [23, 0], sizes = [256, 8], strides = [1, 1]} : vector<304x8xf32> to vector<256x8xf32>
    %c1_i32_8 = arith.constant 1 : i32
    %37 = vector.broadcast %c1_i32_8 : i32 to vector<256x1xi32>
    %38 = arith.cmpi sge, %16, %37 : vector<256x1xi32>
    %cst_9 = arith.constant 0.000000e+00 : f32
    %39 = vector.shape_cast %38 : vector<256x1xi1> to vector<256x1xi1>
    %40 = vector.broadcast %39 : vector<256x1xi1> to vector<256x8xi1>
    %41 = vector.broadcast %cst_9 : f32 to vector<256x8xf32>
    %42 = arith.select %40, %36, %41 : vector<256x8xi1>, vector<256x8xf32>
    %43 = vector.extract_strided_slice %20 {offsets = [24, 0], sizes = [256, 8], strides = [1, 1]} : vector<304x8xf32> to vector<256x8xf32>
    %44 = vector.extract_strided_slice %20 {offsets = [25, 0], sizes = [256, 8], strides = [1, 1]} : vector<304x8xf32> to vector<256x8xf32>
    %c15_i32_10 = arith.constant 15 : i32
    %45 = vector.broadcast %c15_i32_10 : i32 to vector<256x1xi32>
    %46 = arith.cmpi slt, %16, %45 : vector<256x1xi32>
    %cst_11 = arith.constant 0.000000e+00 : f32
    %47 = vector.shape_cast %46 : vector<256x1xi1> to vector<256x1xi1>
    %48 = vector.broadcast %47 : vector<256x1xi1> to vector<256x8xi1>
    %49 = vector.broadcast %cst_11 : f32 to vector<256x8xf32>
    %50 = arith.select %48, %44, %49 : vector<256x8xi1>, vector<256x8xf32>
    %51 = vector.extract_strided_slice %20 {offsets = [39, 0], sizes = [256, 8], strides = [1, 1]} : vector<304x8xf32> to vector<256x8xf32>
    %c1_i32_12 = arith.constant 1 : i32
    %52 = vector.broadcast %c1_i32_12 : i32 to vector<256x1xi32>
    %53 = arith.cmpi sge, %16, %52 : vector<256x1xi32>
    %cst_13 = arith.constant 0.000000e+00 : f32
    %54 = vector.shape_cast %53 : vector<256x1xi1> to vector<256x1xi1>
    %55 = vector.broadcast %54 : vector<256x1xi1> to vector<256x8xi1>
    %56 = vector.broadcast %cst_13 : f32 to vector<256x8xf32>
    %57 = arith.select %55, %51, %56 : vector<256x8xi1>, vector<256x8xf32>
    %58 = vector.extract_strided_slice %20 {offsets = [40, 0], sizes = [256, 8], strides = [1, 1]} : vector<304x8xf32> to vector<256x8xf32>
    %59 = vector.extract_strided_slice %20 {offsets = [41, 0], sizes = [256, 8], strides = [1, 1]} : vector<304x8xf32> to vector<256x8xf32>
    %c15_i32_14 = arith.constant 15 : i32
    %60 = vector.broadcast %c15_i32_14 : i32 to vector<256x1xi32>
    %61 = arith.cmpi slt, %16, %60 : vector<256x1xi32>
    %cst_15 = arith.constant 0.000000e+00 : f32
    %62 = vector.shape_cast %61 : vector<256x1xi1> to vector<256x1xi1>
    %63 = vector.broadcast %62 : vector<256x1xi1> to vector<256x8xi1>
    %64 = vector.broadcast %cst_15 : f32 to vector<256x8xf32>
    %65 = arith.select %63, %59, %64 : vector<256x8xi1>, vector<256x8xf32>
    %cst_16 = arith.constant 0.000000e+00 : f32
    %66 = vector.broadcast %cst_16 : f32 to vector<256x8xf32>
    %67 = arith.truncf %27 : vector<256x8xf32> to vector<256x8xbf16>
    %c0_17 = arith.constant 0 : index
    %c0_18 = arith.constant 0 : index
    %c0_19 = arith.constant 0 : index
    %68 = vector.load %arg2[%c0_17, %c0_18, %c0_19] : memref<9x8x8xbf16, #tpu.memory_space<vmem>>, vector<1x8x8xbf16>
    %69 = vector.shape_cast %68 : vector<1x8x8xbf16> to vector<8x8xbf16>
    %cst_20 = arith.constant dense<0.000000e+00> : vector<256x8xf32>
    %70 = tpu.matmul %67, %69, %cst_20 {dimension_numbers = #tpu.dot_dimension_numbers<[1], [0], [0], [1], [0, 0, 1, 1], [], []>} : vector<256x8xbf16>, vector<8x8xbf16>, vector<256x8xf32> -> vector<256x8xf32>
    %71 = arith.addf %66, %70 : vector<256x8xf32>
    %72 = arith.truncf %28 : vector<256x8xf32> to vector<256x8xbf16>
    %c1 = arith.constant 1 : index
    %c0_21 = arith.constant 0 : index
    %c0_22 = arith.constant 0 : index
    %73 = vector.load %arg2[%c1, %c0_21, %c0_22] : memref<9x8x8xbf16, #tpu.memory_space<vmem>>, vector<1x8x8xbf16>
    %74 = vector.shape_cast %73 : vector<1x8x8xbf16> to vector<8x8xbf16>
    %cst_23 = arith.constant dense<0.000000e+00> : vector<256x8xf32>
    %75 = tpu.matmul %72, %74, %cst_23 {dimension_numbers = #tpu.dot_dimension_numbers<[1], [0], [0], [1], [0, 0, 1, 1], [], []>} : vector<256x8xbf16>, vector<8x8xbf16>, vector<256x8xf32> -> vector<256x8xf32>
    %76 = arith.addf %71, %75 : vector<256x8xf32>
    %77 = arith.truncf %35 : vector<256x8xf32> to vector<256x8xbf16>
    %c2 = arith.constant 2 : index
    %c0_24 = arith.constant 0 : index
    %c0_25 = arith.constant 0 : index
    %78 = vector.load %arg2[%c2, %c0_24, %c0_25] : memref<9x8x8xbf16, #tpu.memory_space<vmem>>, vector<1x8x8xbf16>
    %79 = vector.shape_cast %78 : vector<1x8x8xbf16> to vector<8x8xbf16>
    %cst_26 = arith.constant dense<0.000000e+00> : vector<256x8xf32>
    %80 = tpu.matmul %77, %79, %cst_26 {dimension_numbers = #tpu.dot_dimension_numbers<[1], [0], [0], [1], [0, 0, 1, 1], [], []>} : vector<256x8xbf16>, vector<8x8xbf16>, vector<256x8xf32> -> vector<256x8xf32>
    %81 = arith.addf %76, %80 : vector<256x8xf32>
    %82 = arith.truncf %42 : vector<256x8xf32> to vector<256x8xbf16>
    %c3 = arith.constant 3 : index
    %c0_27 = arith.constant 0 : index
    %c0_28 = arith.constant 0 : index
    %83 = vector.load %arg2[%c3, %c0_27, %c0_28] : memref<9x8x8xbf16, #tpu.memory_space<vmem>>, vector<1x8x8xbf16>
    %84 = vector.shape_cast %83 : vector<1x8x8xbf16> to vector<8x8xbf16>
    %cst_29 = arith.constant dense<0.000000e+00> : vector<256x8xf32>
    %85 = tpu.matmul %82, %84, %cst_29 {dimension_numbers = #tpu.dot_dimension_numbers<[1], [0], [0], [1], [0, 0, 1, 1], [], []>} : vector<256x8xbf16>, vector<8x8xbf16>, vector<256x8xf32> -> vector<256x8xf32>
    %86 = arith.addf %81, %85 : vector<256x8xf32>
    %87 = arith.truncf %43 : vector<256x8xf32> to vector<256x8xbf16>
    %c4 = arith.constant 4 : index
    %c0_30 = arith.constant 0 : index
    %c0_31 = arith.constant 0 : index
    %88 = vector.load %arg2[%c4, %c0_30, %c0_31] : memref<9x8x8xbf16, #tpu.memory_space<vmem>>, vector<1x8x8xbf16>
    %89 = vector.shape_cast %88 : vector<1x8x8xbf16> to vector<8x8xbf16>
    %cst_32 = arith.constant dense<0.000000e+00> : vector<256x8xf32>
    %90 = tpu.matmul %87, %89, %cst_32 {dimension_numbers = #tpu.dot_dimension_numbers<[1], [0], [0], [1], [0, 0, 1, 1], [], []>} : vector<256x8xbf16>, vector<8x8xbf16>, vector<256x8xf32> -> vector<256x8xf32>
    %91 = arith.addf %86, %90 : vector<256x8xf32>
    %92 = arith.truncf %50 : vector<256x8xf32> to vector<256x8xbf16>
    %c5 = arith.constant 5 : index
    %c0_33 = arith.constant 0 : index
    %c0_34 = arith.constant 0 : index
    %93 = vector.load %arg2[%c5, %c0_33, %c0_34] : memref<9x8x8xbf16, #tpu.memory_space<vmem>>, vector<1x8x8xbf16>
    %94 = vector.shape_cast %93 : vector<1x8x8xbf16> to vector<8x8xbf16>
    %cst_35 = arith.constant dense<0.000000e+00> : vector<256x8xf32>
    %95 = tpu.matmul %92, %94, %cst_35 {dimension_numbers = #tpu.dot_dimension_numbers<[1], [0], [0], [1], [0, 0, 1, 1], [], []>} : vector<256x8xbf16>, vector<8x8xbf16>, vector<256x8xf32> -> vector<256x8xf32>
    %96 = arith.addf %91, %95 : vector<256x8xf32>
    %97 = arith.truncf %57 : vector<256x8xf32> to vector<256x8xbf16>
    %c6 = arith.constant 6 : index
    %c0_36 = arith.constant 0 : index
    %c0_37 = arith.constant 0 : index
    %98 = vector.load %arg2[%c6, %c0_36, %c0_37] : memref<9x8x8xbf16, #tpu.memory_space<vmem>>, vector<1x8x8xbf16>
    %99 = vector.shape_cast %98 : vector<1x8x8xbf16> to vector<8x8xbf16>
    %cst_38 = arith.constant dense<0.000000e+00> : vector<256x8xf32>
    %100 = tpu.matmul %97, %99, %cst_38 {dimension_numbers = #tpu.dot_dimension_numbers<[1], [0], [0], [1], [0, 0, 1, 1], [], []>} : vector<256x8xbf16>, vector<8x8xbf16>, vector<256x8xf32> -> vector<256x8xf32>
    %101 = arith.addf %96, %100 : vector<256x8xf32>
    %102 = arith.truncf %58 : vector<256x8xf32> to vector<256x8xbf16>
    %c7 = arith.constant 7 : index
    %c0_39 = arith.constant 0 : index
    %c0_40 = arith.constant 0 : index
    %103 = vector.load %arg2[%c7, %c0_39, %c0_40] : memref<9x8x8xbf16, #tpu.memory_space<vmem>>, vector<1x8x8xbf16>
    %104 = vector.shape_cast %103 : vector<1x8x8xbf16> to vector<8x8xbf16>
    %cst_41 = arith.constant dense<0.000000e+00> : vector<256x8xf32>
    %105 = tpu.matmul %102, %104, %cst_41 {dimension_numbers = #tpu.dot_dimension_numbers<[1], [0], [0], [1], [0, 0, 1, 1], [], []>} : vector<256x8xbf16>, vector<8x8xbf16>, vector<256x8xf32> -> vector<256x8xf32>
    %106 = arith.addf %101, %105 : vector<256x8xf32>
    %107 = arith.truncf %65 : vector<256x8xf32> to vector<256x8xbf16>
    %c8 = arith.constant 8 : index
    %c0_42 = arith.constant 0 : index
    %c0_43 = arith.constant 0 : index
    %108 = vector.load %arg2[%c8, %c0_42, %c0_43] : memref<9x8x8xbf16, #tpu.memory_space<vmem>>, vector<1x8x8xbf16>
    %109 = vector.shape_cast %108 : vector<1x8x8xbf16> to vector<8x8xbf16>
    %cst_44 = arith.constant dense<0.000000e+00> : vector<256x8xf32>
    %110 = tpu.matmul %107, %109, %cst_44 {dimension_numbers = #tpu.dot_dimension_numbers<[1], [0], [0], [1], [0, 0, 1, 1], [], []>} : vector<256x8xbf16>, vector<8x8xbf16>, vector<256x8xf32> -> vector<256x8xf32>
    %111 = arith.addf %106, %110 : vector<256x8xf32>
    %c0_45 = arith.constant 0 : index
    %c0_46 = arith.constant 0 : index
    %112 = vector.load %arg3[%c0_45, %c0_46] : memref<1x8xf32, #tpu.memory_space<vmem>>, vector<1x8xf32>
    %113 = vector.broadcast %112 : vector<1x8xf32> to vector<256x8xf32>
    %114 = arith.addf %111, %113 : vector<256x8xf32>
    %cst_47 = arith.constant 0.000000e+00 : f32
    %115 = vector.broadcast %cst_47 : f32 to vector<256x8xf32>
    %116 = arith.maximumf %114, %115 : vector<256x8xf32>
    %cst_48 = arith.constant 0.000000e+00 : f32
    %117 = vector.broadcast %cst_48 : f32 to vector<24x8xf32>
    %118 = tpu.concatenate %117, %116, %117 in 0 : vector<24x8xf32>, vector<256x8xf32>, vector<24x8xf32> -> vector<304x8xf32>
    %119 = vector.extract_strided_slice %118 {offsets = [7, 0], sizes = [256, 8], strides = [1, 1]} : vector<304x8xf32> to vector<256x8xf32>
    %c1_i32_49 = arith.constant 1 : i32
    %120 = vector.broadcast %c1_i32_49 : i32 to vector<256x1xi32>
    %121 = arith.cmpi sge, %16, %120 : vector<256x1xi32>
    %cst_50 = arith.constant 0.000000e+00 : f32
    %122 = vector.shape_cast %121 : vector<256x1xi1> to vector<256x1xi1>
    %123 = vector.broadcast %122 : vector<256x1xi1> to vector<256x8xi1>
    %124 = vector.broadcast %cst_50 : f32 to vector<256x8xf32>
    %125 = arith.select %123, %119, %124 : vector<256x8xi1>, vector<256x8xf32>
    %126 = vector.extract_strided_slice %118 {offsets = [8, 0], sizes = [256, 8], strides = [1, 1]} : vector<304x8xf32> to vector<256x8xf32>
    %127 = vector.extract_strided_slice %118 {offsets = [9, 0], sizes = [256, 8], strides = [1, 1]} : vector<304x8xf32> to vector<256x8xf32>
    %c15_i32_51 = arith.constant 15 : i32
    %128 = vector.broadcast %c15_i32_51 : i32 to vector<256x1xi32>
    %129 = arith.cmpi slt, %16, %128 : vector<256x1xi32>
    %cst_52 = arith.constant 0.000000e+00 : f32
    %130 = vector.shape_cast %129 : vector<256x1xi1> to vector<256x1xi1>
    %131 = vector.broadcast %130 : vector<256x1xi1> to vector<256x8xi1>
    %132 = vector.broadcast %cst_52 : f32 to vector<256x8xf32>
    %133 = arith.select %131, %127, %132 : vector<256x8xi1>, vector<256x8xf32>
    %134 = vector.extract_strided_slice %118 {offsets = [23, 0], sizes = [256, 8], strides = [1, 1]} : vector<304x8xf32> to vector<256x8xf32>
    %c1_i32_53 = arith.constant 1 : i32
    %135 = vector.broadcast %c1_i32_53 : i32 to vector<256x1xi32>
    %136 = arith.cmpi sge, %16, %135 : vector<256x1xi32>
    %cst_54 = arith.constant 0.000000e+00 : f32
    %137 = vector.shape_cast %136 : vector<256x1xi1> to vector<256x1xi1>
    %138 = vector.broadcast %137 : vector<256x1xi1> to vector<256x8xi1>
    %139 = vector.broadcast %cst_54 : f32 to vector<256x8xf32>
    %140 = arith.select %138, %134, %139 : vector<256x8xi1>, vector<256x8xf32>
    %141 = vector.extract_strided_slice %118 {offsets = [24, 0], sizes = [256, 8], strides = [1, 1]} : vector<304x8xf32> to vector<256x8xf32>
    %142 = vector.extract_strided_slice %118 {offsets = [25, 0], sizes = [256, 8], strides = [1, 1]} : vector<304x8xf32> to vector<256x8xf32>
    %c15_i32_55 = arith.constant 15 : i32
    %143 = vector.broadcast %c15_i32_55 : i32 to vector<256x1xi32>
    %144 = arith.cmpi slt, %16, %143 : vector<256x1xi32>
    %cst_56 = arith.constant 0.000000e+00 : f32
    %145 = vector.shape_cast %144 : vector<256x1xi1> to vector<256x1xi1>
    %146 = vector.broadcast %145 : vector<256x1xi1> to vector<256x8xi1>
    %147 = vector.broadcast %cst_56 : f32 to vector<256x8xf32>
    %148 = arith.select %146, %142, %147 : vector<256x8xi1>, vector<256x8xf32>
    %149 = vector.extract_strided_slice %118 {offsets = [39, 0], sizes = [256, 8], strides = [1, 1]} : vector<304x8xf32> to vector<256x8xf32>
    %c1_i32_57 = arith.constant 1 : i32
    %150 = vector.broadcast %c1_i32_57 : i32 to vector<256x1xi32>
    %151 = arith.cmpi sge, %16, %150 : vector<256x1xi32>
    %cst_58 = arith.constant 0.000000e+00 : f32
    %152 = vector.shape_cast %151 : vector<256x1xi1> to vector<256x1xi1>
    %153 = vector.broadcast %152 : vector<256x1xi1> to vector<256x8xi1>
    %154 = vector.broadcast %cst_58 : f32 to vector<256x8xf32>
    %155 = arith.select %153, %149, %154 : vector<256x8xi1>, vector<256x8xf32>
    %156 = vector.extract_strided_slice %118 {offsets = [40, 0], sizes = [256, 8], strides = [1, 1]} : vector<304x8xf32> to vector<256x8xf32>
    %157 = vector.extract_strided_slice %118 {offsets = [41, 0], sizes = [256, 8], strides = [1, 1]} : vector<304x8xf32> to vector<256x8xf32>
    %c15_i32_59 = arith.constant 15 : i32
    %158 = vector.broadcast %c15_i32_59 : i32 to vector<256x1xi32>
    %159 = arith.cmpi slt, %16, %158 : vector<256x1xi32>
    %cst_60 = arith.constant 0.000000e+00 : f32
    %160 = vector.shape_cast %159 : vector<256x1xi1> to vector<256x1xi1>
    %161 = vector.broadcast %160 : vector<256x1xi1> to vector<256x8xi1>
    %162 = vector.broadcast %cst_60 : f32 to vector<256x8xf32>
    %163 = arith.select %161, %157, %162 : vector<256x8xi1>, vector<256x8xf32>
    %cst_61 = arith.constant 0.000000e+00 : f32
    %164 = vector.broadcast %cst_61 : f32 to vector<256x8xf32>
    %c0_62 = arith.constant 0 : index
    %c0_63 = arith.constant 0 : index
    %c0_64 = arith.constant 0 : index
    %165 = vector.load %arg4[%c0_62, %c0_63, %c0_64] : memref<9x1x8xf32, #tpu.memory_space<vmem>>, vector<1x1x8xf32>
    %166 = vector.shape_cast %165 : vector<1x1x8xf32> to vector<1x8xf32>
    %167 = vector.broadcast %166 : vector<1x8xf32> to vector<256x8xf32>
    %168 = arith.mulf %125, %167 : vector<256x8xf32>
    %169 = arith.addf %164, %168 : vector<256x8xf32>
    %c1_65 = arith.constant 1 : index
    %c0_66 = arith.constant 0 : index
    %c0_67 = arith.constant 0 : index
    %170 = vector.load %arg4[%c1_65, %c0_66, %c0_67] : memref<9x1x8xf32, #tpu.memory_space<vmem>>, vector<1x1x8xf32>
    %171 = vector.shape_cast %170 : vector<1x1x8xf32> to vector<1x8xf32>
    %172 = vector.broadcast %171 : vector<1x8xf32> to vector<256x8xf32>
    %173 = arith.mulf %126, %172 : vector<256x8xf32>
    %174 = arith.addf %169, %173 : vector<256x8xf32>
    %c2_68 = arith.constant 2 : index
    %c0_69 = arith.constant 0 : index
    %c0_70 = arith.constant 0 : index
    %175 = vector.load %arg4[%c2_68, %c0_69, %c0_70] : memref<9x1x8xf32, #tpu.memory_space<vmem>>, vector<1x1x8xf32>
    %176 = vector.shape_cast %175 : vector<1x1x8xf32> to vector<1x8xf32>
    %177 = vector.broadcast %176 : vector<1x8xf32> to vector<256x8xf32>
    %178 = arith.mulf %133, %177 : vector<256x8xf32>
    %179 = arith.addf %174, %178 : vector<256x8xf32>
    %c3_71 = arith.constant 3 : index
    %c0_72 = arith.constant 0 : index
    %c0_73 = arith.constant 0 : index
    %180 = vector.load %arg4[%c3_71, %c0_72, %c0_73] : memref<9x1x8xf32, #tpu.memory_space<vmem>>, vector<1x1x8xf32>
    %181 = vector.shape_cast %180 : vector<1x1x8xf32> to vector<1x8xf32>
    %182 = vector.broadcast %181 : vector<1x8xf32> to vector<256x8xf32>
    %183 = arith.mulf %140, %182 : vector<256x8xf32>
    %184 = arith.addf %179, %183 : vector<256x8xf32>
    %c4_74 = arith.constant 4 : index
    %c0_75 = arith.constant 0 : index
    %c0_76 = arith.constant 0 : index
    %185 = vector.load %arg4[%c4_74, %c0_75, %c0_76] : memref<9x1x8xf32, #tpu.memory_space<vmem>>, vector<1x1x8xf32>
    %186 = vector.shape_cast %185 : vector<1x1x8xf32> to vector<1x8xf32>
    %187 = vector.broadcast %186 : vector<1x8xf32> to vector<256x8xf32>
    %188 = arith.mulf %141, %187 : vector<256x8xf32>
    %189 = arith.addf %184, %188 : vector<256x8xf32>
    %c5_77 = arith.constant 5 : index
    %c0_78 = arith.constant 0 : index
    %c0_79 = arith.constant 0 : index
    %190 = vector.load %arg4[%c5_77, %c0_78, %c0_79] : memref<9x1x8xf32, #tpu.memory_space<vmem>>, vector<1x1x8xf32>
    %191 = vector.shape_cast %190 : vector<1x1x8xf32> to vector<1x8xf32>
    %192 = vector.broadcast %191 : vector<1x8xf32> to vector<256x8xf32>
    %193 = arith.mulf %148, %192 : vector<256x8xf32>
    %194 = arith.addf %189, %193 : vector<256x8xf32>
    %c6_80 = arith.constant 6 : index
    %c0_81 = arith.constant 0 : index
    %c0_82 = arith.constant 0 : index
    %195 = vector.load %arg4[%c6_80, %c0_81, %c0_82] : memref<9x1x8xf32, #tpu.memory_space<vmem>>, vector<1x1x8xf32>
    %196 = vector.shape_cast %195 : vector<1x1x8xf32> to vector<1x8xf32>
    %197 = vector.broadcast %196 : vector<1x8xf32> to vector<256x8xf32>
    %198 = arith.mulf %155, %197 : vector<256x8xf32>
    %199 = arith.addf %194, %198 : vector<256x8xf32>
    %c7_83 = arith.constant 7 : index
    %c0_84 = arith.constant 0 : index
    %c0_85 = arith.constant 0 : index
    %200 = vector.load %arg4[%c7_83, %c0_84, %c0_85] : memref<9x1x8xf32, #tpu.memory_space<vmem>>, vector<1x1x8xf32>
    %201 = vector.shape_cast %200 : vector<1x1x8xf32> to vector<1x8xf32>
    %202 = vector.broadcast %201 : vector<1x8xf32> to vector<256x8xf32>
    %203 = arith.mulf %156, %202 : vector<256x8xf32>
    %204 = arith.addf %199, %203 : vector<256x8xf32>
    %c8_86 = arith.constant 8 : index
    %c0_87 = arith.constant 0 : index
    %c0_88 = arith.constant 0 : index
    %205 = vector.load %arg4[%c8_86, %c0_87, %c0_88] : memref<9x1x8xf32, #tpu.memory_space<vmem>>, vector<1x1x8xf32>
    %206 = vector.shape_cast %205 : vector<1x1x8xf32> to vector<1x8xf32>
    %207 = vector.broadcast %206 : vector<1x8xf32> to vector<256x8xf32>
    %208 = arith.mulf %163, %207 : vector<256x8xf32>
    %209 = arith.addf %204, %208 : vector<256x8xf32>
    %c0_89 = arith.constant 0 : index
    %c0_90 = arith.constant 0 : index
    %210 = vector.load %arg5[%c0_89, %c0_90] : memref<1x8xf32, #tpu.memory_space<vmem>>, vector<1x8xf32>
    %211 = vector.broadcast %210 : vector<1x8xf32> to vector<256x8xf32>
    %212 = arith.addf %209, %211 : vector<256x8xf32>
    %cst_91 = arith.constant 0.000000e+00 : f32
    %213 = vector.broadcast %cst_91 : f32 to vector<256x8xf32>
    %214 = arith.maximumf %212, %213 : vector<256x8xf32>
    %215 = arith.truncf %214 : vector<256x8xf32> to vector<256x8xbf16>
    %c0_92 = arith.constant 0 : index
    %c0_93 = arith.constant 0 : index
    %216 = vector.load %arg6[%c0_92, %c0_93] : memref<8x16xbf16, #tpu.memory_space<vmem>>, vector<8x16xbf16>
    %cst_94 = arith.constant dense<0.000000e+00> : vector<256x16xf32>
    %217 = tpu.matmul %215, %216, %cst_94 {dimension_numbers = #tpu.dot_dimension_numbers<[1], [0], [0], [1], [0, 0, 1, 1], [], []>} : vector<256x8xbf16>, vector<8x16xbf16>, vector<256x16xf32> -> vector<256x16xf32>
    %c0_95 = arith.constant 0 : index
    %c0_96 = arith.constant 0 : index
    %218 = vector.load %arg7[%c0_95, %c0_96] : memref<1x16xf32, #tpu.memory_space<vmem>>, vector<1x16xf32>
    %219 = vector.broadcast %218 : vector<1x16xf32> to vector<256x16xf32>
    %220 = arith.addf %217, %219 : vector<256x16xf32>
    %cst_97 = arith.constant 0.000000e+00 : f32
    %221 = vector.broadcast %cst_97 : f32 to vector<256x16xf32>
    %222 = arith.maximumf %220, %221 : vector<256x16xf32>
    %cst_98 = arith.constant 0.000000e+00 : f32
    %223 = vector.broadcast %cst_98 : f32 to vector<24x16xf32>
    %224 = tpu.concatenate %223, %222, %223 in 0 : vector<24x16xf32>, vector<256x16xf32>, vector<24x16xf32> -> vector<304x16xf32>
    %225 = vector.extract_strided_slice %224 {offsets = [7, 0], sizes = [256, 16], strides = [1, 1]} : vector<304x16xf32> to vector<256x16xf32>
    %c1_i32_99 = arith.constant 1 : i32
    %226 = vector.broadcast %c1_i32_99 : i32 to vector<256x1xi32>
    %227 = arith.cmpi sge, %16, %226 : vector<256x1xi32>
    %cst_100 = arith.constant 0.000000e+00 : f32
    %228 = vector.shape_cast %227 : vector<256x1xi1> to vector<256x1xi1>
    %229 = vector.broadcast %228 : vector<256x1xi1> to vector<256x16xi1>
    %230 = vector.broadcast %cst_100 : f32 to vector<256x16xf32>
    %231 = arith.select %229, %225, %230 : vector<256x16xi1>, vector<256x16xf32>
    %232 = vector.extract_strided_slice %224 {offsets = [8, 0], sizes = [256, 16], strides = [1, 1]} : vector<304x16xf32> to vector<256x16xf32>
    %233 = vector.extract_strided_slice %224 {offsets = [9, 0], sizes = [256, 16], strides = [1, 1]} : vector<304x16xf32> to vector<256x16xf32>
    %c15_i32_101 = arith.constant 15 : i32
    %234 = vector.broadcast %c15_i32_101 : i32 to vector<256x1xi32>
    %235 = arith.cmpi slt, %16, %234 : vector<256x1xi32>
    %cst_102 = arith.constant 0.000000e+00 : f32
    %236 = vector.shape_cast %235 : vector<256x1xi1> to vector<256x1xi1>
    %237 = vector.broadcast %236 : vector<256x1xi1> to vector<256x16xi1>
    %238 = vector.broadcast %cst_102 : f32 to vector<256x16xf32>
    %239 = arith.select %237, %233, %238 : vector<256x16xi1>, vector<256x16xf32>
    %240 = vector.extract_strided_slice %224 {offsets = [23, 0], sizes = [256, 16], strides = [1, 1]} : vector<304x16xf32> to vector<256x16xf32>
    %c1_i32_103 = arith.constant 1 : i32
    %241 = vector.broadcast %c1_i32_103 : i32 to vector<256x1xi32>
    %242 = arith.cmpi sge, %16, %241 : vector<256x1xi32>
    %cst_104 = arith.constant 0.000000e+00 : f32
    %243 = vector.shape_cast %242 : vector<256x1xi1> to vector<256x1xi1>
    %244 = vector.broadcast %243 : vector<256x1xi1> to vector<256x16xi1>
    %245 = vector.broadcast %cst_104 : f32 to vector<256x16xf32>
    %246 = arith.select %244, %240, %245 : vector<256x16xi1>, vector<256x16xf32>
    %247 = vector.extract_strided_slice %224 {offsets = [24, 0], sizes = [256, 16], strides = [1, 1]} : vector<304x16xf32> to vector<256x16xf32>
    %248 = vector.extract_strided_slice %224 {offsets = [25, 0], sizes = [256, 16], strides = [1, 1]} : vector<304x16xf32> to vector<256x16xf32>
    %c15_i32_105 = arith.constant 15 : i32
    %249 = vector.broadcast %c15_i32_105 : i32 to vector<256x1xi32>
    %250 = arith.cmpi slt, %16, %249 : vector<256x1xi32>
    %cst_106 = arith.constant 0.000000e+00 : f32
    %251 = vector.shape_cast %250 : vector<256x1xi1> to vector<256x1xi1>
    %252 = vector.broadcast %251 : vector<256x1xi1> to vector<256x16xi1>
    %253 = vector.broadcast %cst_106 : f32 to vector<256x16xf32>
    %254 = arith.select %252, %248, %253 : vector<256x16xi1>, vector<256x16xf32>
    %255 = vector.extract_strided_slice %224 {offsets = [39, 0], sizes = [256, 16], strides = [1, 1]} : vector<304x16xf32> to vector<256x16xf32>
    %c1_i32_107 = arith.constant 1 : i32
    %256 = vector.broadcast %c1_i32_107 : i32 to vector<256x1xi32>
    %257 = arith.cmpi sge, %16, %256 : vector<256x1xi32>
    %cst_108 = arith.constant 0.000000e+00 : f32
    %258 = vector.shape_cast %257 : vector<256x1xi1> to vector<256x1xi1>
    %259 = vector.broadcast %258 : vector<256x1xi1> to vector<256x16xi1>
    %260 = vector.broadcast %cst_108 : f32 to vector<256x16xf32>
    %261 = arith.select %259, %255, %260 : vector<256x16xi1>, vector<256x16xf32>
    %262 = vector.extract_strided_slice %224 {offsets = [40, 0], sizes = [256, 16], strides = [1, 1]} : vector<304x16xf32> to vector<256x16xf32>
    %263 = vector.extract_strided_slice %224 {offsets = [41, 0], sizes = [256, 16], strides = [1, 1]} : vector<304x16xf32> to vector<256x16xf32>
    %c15_i32_109 = arith.constant 15 : i32
    %264 = vector.broadcast %c15_i32_109 : i32 to vector<256x1xi32>
    %265 = arith.cmpi slt, %16, %264 : vector<256x1xi32>
    %cst_110 = arith.constant 0.000000e+00 : f32
    %266 = vector.shape_cast %265 : vector<256x1xi1> to vector<256x1xi1>
    %267 = vector.broadcast %266 : vector<256x1xi1> to vector<256x16xi1>
    %268 = vector.broadcast %cst_110 : f32 to vector<256x16xf32>
    %269 = arith.select %267, %263, %268 : vector<256x16xi1>, vector<256x16xf32>
    %cst_111 = arith.constant 0.000000e+00 : f32
    %270 = vector.broadcast %cst_111 : f32 to vector<256x16xf32>
    %c0_112 = arith.constant 0 : index
    %c0_113 = arith.constant 0 : index
    %c0_114 = arith.constant 0 : index
    %271 = vector.load %arg8[%c0_112, %c0_113, %c0_114] : memref<9x1x16xf32, #tpu.memory_space<vmem>>, vector<1x1x16xf32>
    %272 = vector.shape_cast %271 : vector<1x1x16xf32> to vector<1x16xf32>
    %273 = vector.broadcast %272 : vector<1x16xf32> to vector<256x16xf32>
    %274 = arith.mulf %231, %273 : vector<256x16xf32>
    %275 = arith.addf %270, %274 : vector<256x16xf32>
    %c1_115 = arith.constant 1 : index
    %c0_116 = arith.constant 0 : index
    %c0_117 = arith.constant 0 : index
    %276 = vector.load %arg8[%c1_115, %c0_116, %c0_117] : memref<9x1x16xf32, #tpu.memory_space<vmem>>, vector<1x1x16xf32>
    %277 = vector.shape_cast %276 : vector<1x1x16xf32> to vector<1x16xf32>
    %278 = vector.broadcast %277 : vector<1x16xf32> to vector<256x16xf32>
    %279 = arith.mulf %232, %278 : vector<256x16xf32>
    %280 = arith.addf %275, %279 : vector<256x16xf32>
    %c2_118 = arith.constant 2 : index
    %c0_119 = arith.constant 0 : index
    %c0_120 = arith.constant 0 : index
    %281 = vector.load %arg8[%c2_118, %c0_119, %c0_120] : memref<9x1x16xf32, #tpu.memory_space<vmem>>, vector<1x1x16xf32>
    %282 = vector.shape_cast %281 : vector<1x1x16xf32> to vector<1x16xf32>
    %283 = vector.broadcast %282 : vector<1x16xf32> to vector<256x16xf32>
    %284 = arith.mulf %239, %283 : vector<256x16xf32>
    %285 = arith.addf %280, %284 : vector<256x16xf32>
    %c3_121 = arith.constant 3 : index
    %c0_122 = arith.constant 0 : index
    %c0_123 = arith.constant 0 : index
    %286 = vector.load %arg8[%c3_121, %c0_122, %c0_123] : memref<9x1x16xf32, #tpu.memory_space<vmem>>, vector<1x1x16xf32>
    %287 = vector.shape_cast %286 : vector<1x1x16xf32> to vector<1x16xf32>
    %288 = vector.broadcast %287 : vector<1x16xf32> to vector<256x16xf32>
    %289 = arith.mulf %246, %288 : vector<256x16xf32>
    %290 = arith.addf %285, %289 : vector<256x16xf32>
    %c4_124 = arith.constant 4 : index
    %c0_125 = arith.constant 0 : index
    %c0_126 = arith.constant 0 : index
    %291 = vector.load %arg8[%c4_124, %c0_125, %c0_126] : memref<9x1x16xf32, #tpu.memory_space<vmem>>, vector<1x1x16xf32>
    %292 = vector.shape_cast %291 : vector<1x1x16xf32> to vector<1x16xf32>
    %293 = vector.broadcast %292 : vector<1x16xf32> to vector<256x16xf32>
    %294 = arith.mulf %247, %293 : vector<256x16xf32>
    %295 = arith.addf %290, %294 : vector<256x16xf32>
    %c5_127 = arith.constant 5 : index
    %c0_128 = arith.constant 0 : index
    %c0_129 = arith.constant 0 : index
    %296 = vector.load %arg8[%c5_127, %c0_128, %c0_129] : memref<9x1x16xf32, #tpu.memory_space<vmem>>, vector<1x1x16xf32>
    %297 = vector.shape_cast %296 : vector<1x1x16xf32> to vector<1x16xf32>
    %298 = vector.broadcast %297 : vector<1x16xf32> to vector<256x16xf32>
    %299 = arith.mulf %254, %298 : vector<256x16xf32>
    %300 = arith.addf %295, %299 : vector<256x16xf32>
    %c6_130 = arith.constant 6 : index
    %c0_131 = arith.constant 0 : index
    %c0_132 = arith.constant 0 : index
    %301 = vector.load %arg8[%c6_130, %c0_131, %c0_132] : memref<9x1x16xf32, #tpu.memory_space<vmem>>, vector<1x1x16xf32>
    %302 = vector.shape_cast %301 : vector<1x1x16xf32> to vector<1x16xf32>
    %303 = vector.broadcast %302 : vector<1x16xf32> to vector<256x16xf32>
    %304 = arith.mulf %261, %303 : vector<256x16xf32>
    %305 = arith.addf %300, %304 : vector<256x16xf32>
    %c7_133 = arith.constant 7 : index
    %c0_134 = arith.constant 0 : index
    %c0_135 = arith.constant 0 : index
    %306 = vector.load %arg8[%c7_133, %c0_134, %c0_135] : memref<9x1x16xf32, #tpu.memory_space<vmem>>, vector<1x1x16xf32>
    %307 = vector.shape_cast %306 : vector<1x1x16xf32> to vector<1x16xf32>
    %308 = vector.broadcast %307 : vector<1x16xf32> to vector<256x16xf32>
    %309 = arith.mulf %262, %308 : vector<256x16xf32>
    %310 = arith.addf %305, %309 : vector<256x16xf32>
    %c8_136 = arith.constant 8 : index
    %c0_137 = arith.constant 0 : index
    %c0_138 = arith.constant 0 : index
    %311 = vector.load %arg8[%c8_136, %c0_137, %c0_138] : memref<9x1x16xf32, #tpu.memory_space<vmem>>, vector<1x1x16xf32>
    %312 = vector.shape_cast %311 : vector<1x1x16xf32> to vector<1x16xf32>
    %313 = vector.broadcast %312 : vector<1x16xf32> to vector<256x16xf32>
    %314 = arith.mulf %269, %313 : vector<256x16xf32>
    %315 = arith.addf %310, %314 : vector<256x16xf32>
    %c0_139 = arith.constant 0 : index
    %c0_140 = arith.constant 0 : index
    %316 = vector.load %arg9[%c0_139, %c0_140] : memref<1x16xf32, #tpu.memory_space<vmem>>, vector<1x16xf32>
    %317 = vector.broadcast %316 : vector<1x16xf32> to vector<256x16xf32>
    %318 = arith.addf %315, %317 : vector<256x16xf32>
    %cst_141 = arith.constant 0.000000e+00 : f32
    %319 = vector.broadcast %cst_141 : f32 to vector<256x16xf32>
    %320 = arith.maximumf %318, %319 : vector<256x16xf32>
    %321 = arith.truncf %320 : vector<256x16xf32> to vector<256x16xbf16>
    %c0_142 = arith.constant 0 : index
    %c0_143 = arith.constant 0 : index
    %322 = vector.load %arg10[%c0_142, %c0_143] : memref<64x256xbf16, #tpu.memory_space<vmem>>, vector<64x256xbf16>
    %cst_144 = arith.constant dense<0.000000e+00> : vector<64x16xf32>
    %323 = tpu.matmul %322, %321, %cst_144 {dimension_numbers = #tpu.dot_dimension_numbers<[1], [0], [0], [1], [0, 0, 1, 1], [], []>} : vector<64x256xbf16>, vector<256x16xbf16>, vector<64x16xf32> -> vector<64x16xf32>
    %324 = arith.truncf %323 : vector<64x16xf32> to vector<64x16xbf16>
    %c0_145 = arith.constant 0 : index
    %c0_146 = arith.constant 0 : index
    %325 = vector.load %arg11[%c0_145, %c0_146] : memref<16x32xbf16, #tpu.memory_space<vmem>>, vector<16x32xbf16>
    %cst_147 = arith.constant dense<0.000000e+00> : vector<64x32xf32>
    %326 = tpu.matmul %324, %325, %cst_147 {dimension_numbers = #tpu.dot_dimension_numbers<[1], [0], [0], [1], [0, 0, 1, 1], [], []>} : vector<64x16xbf16>, vector<16x32xbf16>, vector<64x32xf32> -> vector<64x32xf32>
    %c0_148 = arith.constant 0 : index
    %c0_149 = arith.constant 0 : index
    %327 = vector.load %arg12[%c0_148, %c0_149] : memref<1x32xf32, #tpu.memory_space<vmem>>, vector<1x32xf32>
    %328 = vector.broadcast %327 : vector<1x32xf32> to vector<64x32xf32>
    %329 = arith.addf %326, %328 : vector<64x32xf32>
    %cst_150 = arith.constant 0.000000e+00 : f32
    %330 = vector.broadcast %cst_150 : f32 to vector<64x32xf32>
    %331 = arith.maximumf %329, %330 : vector<64x32xf32>
    %332 = tpu.iota {dimensions = array<i32: 0>} : vector<64x1xi32>
    %c8_i32 = arith.constant 8 : i32
    %c0_i32_151 = arith.constant 0 : i32
    %333 = arith.cmpi eq, %c8_i32, %c0_i32_151 : i32
    %c1_i32_152 = arith.constant 1 : i32
    %334 = arith.select %333, %c1_i32_152, %c8_i32 : i32
    %335 = vector.broadcast %334 : i32 to vector<64x1xi32>
    %336 = arith.remsi %332, %335 : vector<64x1xi32>
    %c0_i32_153 = arith.constant 0 : i32
    %337 = vector.broadcast %c0_i32_153 : i32 to vector<64x1xi32>
    %338 = arith.cmpi ne, %336, %337 : vector<64x1xi32>
    %c0_i32_154 = arith.constant 0 : i32
    %339 = vector.broadcast %c0_i32_154 : i32 to vector<64x1xi32>
    %340 = arith.cmpi slt, %336, %339 : vector<64x1xi32>
    %c0_i32_155 = arith.constant 0 : i32
    %341 = arith.cmpi slt, %334, %c0_i32_155 : i32
    %342 = vector.broadcast %341 : i1 to vector<64x1xi1>
    %343 = vector.broadcast %342 : vector<64x1xi1> to vector<64x1xi1>
    %344 = arith.xori %340, %343 : vector<64x1xi1>
    %345 = arith.andi %344, %338 : vector<64x1xi1>
    %346 = vector.broadcast %334 : i32 to vector<64x1xi32>
    %347 = arith.addi %336, %346 : vector<64x1xi32>
    %348 = arith.select %345, %347, %336 : vector<64x1xi1>, vector<64x1xi32>
    %cst_156 = arith.constant 0.000000e+00 : f32
    %349 = vector.broadcast %cst_156 : f32 to vector<16x32xf32>
    %350 = tpu.concatenate %349, %331, %349 in 0 : vector<16x32xf32>, vector<64x32xf32>, vector<16x32xf32> -> vector<96x32xf32>
    %351 = vector.extract_strided_slice %350 {offsets = [7, 0], sizes = [64, 32], strides = [1, 1]} : vector<96x32xf32> to vector<64x32xf32>
    %c1_i32_157 = arith.constant 1 : i32
    %352 = vector.broadcast %c1_i32_157 : i32 to vector<64x1xi32>
    %353 = arith.cmpi sge, %348, %352 : vector<64x1xi32>
    %cst_158 = arith.constant 0.000000e+00 : f32
    %354 = vector.shape_cast %353 : vector<64x1xi1> to vector<64x1xi1>
    %355 = vector.broadcast %354 : vector<64x1xi1> to vector<64x32xi1>
    %356 = vector.broadcast %cst_158 : f32 to vector<64x32xf32>
    %357 = arith.select %355, %351, %356 : vector<64x32xi1>, vector<64x32xf32>
    %358 = vector.extract_strided_slice %350 {offsets = [8, 0], sizes = [64, 32], strides = [1, 1]} : vector<96x32xf32> to vector<64x32xf32>
    %359 = vector.extract_strided_slice %350 {offsets = [9, 0], sizes = [64, 32], strides = [1, 1]} : vector<96x32xf32> to vector<64x32xf32>
    %c7_i32 = arith.constant 7 : i32
    %360 = vector.broadcast %c7_i32 : i32 to vector<64x1xi32>
    %361 = arith.cmpi slt, %348, %360 : vector<64x1xi32>
    %cst_159 = arith.constant 0.000000e+00 : f32
    %362 = vector.shape_cast %361 : vector<64x1xi1> to vector<64x1xi1>
    %363 = vector.broadcast %362 : vector<64x1xi1> to vector<64x32xi1>
    %364 = vector.broadcast %cst_159 : f32 to vector<64x32xf32>
    %365 = arith.select %363, %359, %364 : vector<64x32xi1>, vector<64x32xf32>
    %366 = vector.extract_strided_slice %350 {offsets = [15, 0], sizes = [64, 32], strides = [1, 1]} : vector<96x32xf32> to vector<64x32xf32>
    %c1_i32_160 = arith.constant 1 : i32
    %367 = vector.broadcast %c1_i32_160 : i32 to vector<64x1xi32>
    %368 = arith.cmpi sge, %348, %367 : vector<64x1xi32>
    %cst_161 = arith.constant 0.000000e+00 : f32
    %369 = vector.shape_cast %368 : vector<64x1xi1> to vector<64x1xi1>
    %370 = vector.broadcast %369 : vector<64x1xi1> to vector<64x32xi1>
    %371 = vector.broadcast %cst_161 : f32 to vector<64x32xf32>
    %372 = arith.select %370, %366, %371 : vector<64x32xi1>, vector<64x32xf32>
    %373 = vector.extract_strided_slice %350 {offsets = [16, 0], sizes = [64, 32], strides = [1, 1]} : vector<96x32xf32> to vector<64x32xf32>
    %374 = vector.extract_strided_slice %350 {offsets = [17, 0], sizes = [64, 32], strides = [1, 1]} : vector<96x32xf32> to vector<64x32xf32>
    %c7_i32_162 = arith.constant 7 : i32
    %375 = vector.broadcast %c7_i32_162 : i32 to vector<64x1xi32>
    %376 = arith.cmpi slt, %348, %375 : vector<64x1xi32>
    %cst_163 = arith.constant 0.000000e+00 : f32
    %377 = vector.shape_cast %376 : vector<64x1xi1> to vector<64x1xi1>
    %378 = vector.broadcast %377 : vector<64x1xi1> to vector<64x32xi1>
    %379 = vector.broadcast %cst_163 : f32 to vector<64x32xf32>
    %380 = arith.select %378, %374, %379 : vector<64x32xi1>, vector<64x32xf32>
    %381 = vector.extract_strided_slice %350 {offsets = [23, 0], sizes = [64, 32], strides = [1, 1]} : vector<96x32xf32> to vector<64x32xf32>
    %c1_i32_164 = arith.constant 1 : i32
    %382 = vector.broadcast %c1_i32_164 : i32 to vector<64x1xi32>
    %383 = arith.cmpi sge, %348, %382 : vector<64x1xi32>
    %cst_165 = arith.constant 0.000000e+00 : f32
    %384 = vector.shape_cast %383 : vector<64x1xi1> to vector<64x1xi1>
    %385 = vector.broadcast %384 : vector<64x1xi1> to vector<64x32xi1>
    %386 = vector.broadcast %cst_165 : f32 to vector<64x32xf32>
    %387 = arith.select %385, %381, %386 : vector<64x32xi1>, vector<64x32xf32>
    %388 = vector.extract_strided_slice %350 {offsets = [24, 0], sizes = [64, 32], strides = [1, 1]} : vector<96x32xf32> to vector<64x32xf32>
    %389 = vector.extract_strided_slice %350 {offsets = [25, 0], sizes = [64, 32], strides = [1, 1]} : vector<96x32xf32> to vector<64x32xf32>
    %c7_i32_166 = arith.constant 7 : i32
    %390 = vector.broadcast %c7_i32_166 : i32 to vector<64x1xi32>
    %391 = arith.cmpi slt, %348, %390 : vector<64x1xi32>
    %cst_167 = arith.constant 0.000000e+00 : f32
    %392 = vector.shape_cast %391 : vector<64x1xi1> to vector<64x1xi1>
    %393 = vector.broadcast %392 : vector<64x1xi1> to vector<64x32xi1>
    %394 = vector.broadcast %cst_167 : f32 to vector<64x32xf32>
    %395 = arith.select %393, %389, %394 : vector<64x32xi1>, vector<64x32xf32>
    %cst_168 = arith.constant 0.000000e+00 : f32
    %396 = vector.broadcast %cst_168 : f32 to vector<64x32xf32>
    %c0_169 = arith.constant 0 : index
    %c0_170 = arith.constant 0 : index
    %c0_171 = arith.constant 0 : index
    %397 = vector.load %arg13[%c0_169, %c0_170, %c0_171] : memref<9x1x32xf32, #tpu.memory_space<vmem>>, vector<1x1x32xf32>
    %398 = vector.shape_cast %397 : vector<1x1x32xf32> to vector<1x32xf32>
    %399 = vector.broadcast %398 : vector<1x32xf32> to vector<64x32xf32>
    %400 = arith.mulf %357, %399 : vector<64x32xf32>
    %401 = arith.addf %396, %400 : vector<64x32xf32>
    %c1_172 = arith.constant 1 : index
    %c0_173 = arith.constant 0 : index
    %c0_174 = arith.constant 0 : index
    %402 = vector.load %arg13[%c1_172, %c0_173, %c0_174] : memref<9x1x32xf32, #tpu.memory_space<vmem>>, vector<1x1x32xf32>
    %403 = vector.shape_cast %402 : vector<1x1x32xf32> to vector<1x32xf32>
    %404 = vector.broadcast %403 : vector<1x32xf32> to vector<64x32xf32>
    %405 = arith.mulf %358, %404 : vector<64x32xf32>
    %406 = arith.addf %401, %405 : vector<64x32xf32>
    %c2_175 = arith.constant 2 : index
    %c0_176 = arith.constant 0 : index
    %c0_177 = arith.constant 0 : index
    %407 = vector.load %arg13[%c2_175, %c0_176, %c0_177] : memref<9x1x32xf32, #tpu.memory_space<vmem>>, vector<1x1x32xf32>
    %408 = vector.shape_cast %407 : vector<1x1x32xf32> to vector<1x32xf32>
    %409 = vector.broadcast %408 : vector<1x32xf32> to vector<64x32xf32>
    %410 = arith.mulf %365, %409 : vector<64x32xf32>
    %411 = arith.addf %406, %410 : vector<64x32xf32>
    %c3_178 = arith.constant 3 : index
    %c0_179 = arith.constant 0 : index
    %c0_180 = arith.constant 0 : index
    %412 = vector.load %arg13[%c3_178, %c0_179, %c0_180] : memref<9x1x32xf32, #tpu.memory_space<vmem>>, vector<1x1x32xf32>
    %413 = vector.shape_cast %412 : vector<1x1x32xf32> to vector<1x32xf32>
    %414 = vector.broadcast %413 : vector<1x32xf32> to vector<64x32xf32>
    %415 = arith.mulf %372, %414 : vector<64x32xf32>
    %416 = arith.addf %411, %415 : vector<64x32xf32>
    %c4_181 = arith.constant 4 : index
    %c0_182 = arith.constant 0 : index
    %c0_183 = arith.constant 0 : index
    %417 = vector.load %arg13[%c4_181, %c0_182, %c0_183] : memref<9x1x32xf32, #tpu.memory_space<vmem>>, vector<1x1x32xf32>
    %418 = vector.shape_cast %417 : vector<1x1x32xf32> to vector<1x32xf32>
    %419 = vector.broadcast %418 : vector<1x32xf32> to vector<64x32xf32>
    %420 = arith.mulf %373, %419 : vector<64x32xf32>
    %421 = arith.addf %416, %420 : vector<64x32xf32>
    %c5_184 = arith.constant 5 : index
    %c0_185 = arith.constant 0 : index
    %c0_186 = arith.constant 0 : index
    %422 = vector.load %arg13[%c5_184, %c0_185, %c0_186] : memref<9x1x32xf32, #tpu.memory_space<vmem>>, vector<1x1x32xf32>
    %423 = vector.shape_cast %422 : vector<1x1x32xf32> to vector<1x32xf32>
    %424 = vector.broadcast %423 : vector<1x32xf32> to vector<64x32xf32>
    %425 = arith.mulf %380, %424 : vector<64x32xf32>
    %426 = arith.addf %421, %425 : vector<64x32xf32>
    %c6_187 = arith.constant 6 : index
    %c0_188 = arith.constant 0 : index
    %c0_189 = arith.constant 0 : index
    %427 = vector.load %arg13[%c6_187, %c0_188, %c0_189] : memref<9x1x32xf32, #tpu.memory_space<vmem>>, vector<1x1x32xf32>
    %428 = vector.shape_cast %427 : vector<1x1x32xf32> to vector<1x32xf32>
    %429 = vector.broadcast %428 : vector<1x32xf32> to vector<64x32xf32>
    %430 = arith.mulf %387, %429 : vector<64x32xf32>
    %431 = arith.addf %426, %430 : vector<64x32xf32>
    %c7_190 = arith.constant 7 : index
    %c0_191 = arith.constant 0 : index
    %c0_192 = arith.constant 0 : index
    %432 = vector.load %arg13[%c7_190, %c0_191, %c0_192] : memref<9x1x32xf32, #tpu.memory_space<vmem>>, vector<1x1x32xf32>
    %433 = vector.shape_cast %432 : vector<1x1x32xf32> to vector<1x32xf32>
    %434 = vector.broadcast %433 : vector<1x32xf32> to vector<64x32xf32>
    %435 = arith.mulf %388, %434 : vector<64x32xf32>
    %436 = arith.addf %431, %435 : vector<64x32xf32>
    %c8_193 = arith.constant 8 : index
    %c0_194 = arith.constant 0 : index
    %c0_195 = arith.constant 0 : index
    %437 = vector.load %arg13[%c8_193, %c0_194, %c0_195] : memref<9x1x32xf32, #tpu.memory_space<vmem>>, vector<1x1x32xf32>
    %438 = vector.shape_cast %437 : vector<1x1x32xf32> to vector<1x32xf32>
    %439 = vector.broadcast %438 : vector<1x32xf32> to vector<64x32xf32>
    %440 = arith.mulf %395, %439 : vector<64x32xf32>
    %441 = arith.addf %436, %440 : vector<64x32xf32>
    %c0_196 = arith.constant 0 : index
    %c0_197 = arith.constant 0 : index
    %442 = vector.load %arg14[%c0_196, %c0_197] : memref<1x32xf32, #tpu.memory_space<vmem>>, vector<1x32xf32>
    %443 = vector.broadcast %442 : vector<1x32xf32> to vector<64x32xf32>
    %444 = arith.addf %441, %443 : vector<64x32xf32>
    %cst_198 = arith.constant 0.000000e+00 : f32
    %445 = vector.broadcast %cst_198 : f32 to vector<64x32xf32>
    %446 = arith.maximumf %444, %445 : vector<64x32xf32>
    %447 = arith.truncf %446 : vector<64x32xf32> to vector<64x32xbf16>
    %c0_199 = arith.constant 0 : index
    %c0_200 = arith.constant 0 : index
    %448 = vector.load %arg15[%c0_199, %c0_200] : memref<16x64xbf16, #tpu.memory_space<vmem>>, vector<16x64xbf16>
    %cst_201 = arith.constant dense<0.000000e+00> : vector<16x32xf32>
    %449 = tpu.matmul %448, %447, %cst_201 {dimension_numbers = #tpu.dot_dimension_numbers<[1], [0], [0], [1], [0, 0, 1, 1], [], []>} : vector<16x64xbf16>, vector<64x32xbf16>, vector<16x32xf32> -> vector<16x32xf32>
    %450 = arith.truncf %449 : vector<16x32xf32> to vector<16x32xbf16>
    %c0_202 = arith.constant 0 : index
    %c0_203 = arith.constant 0 : index
    %451 = vector.load %arg16[%c0_202, %c0_203] : memref<32x32xbf16, #tpu.memory_space<vmem>>, vector<32x32xbf16>
    %cst_204 = arith.constant dense<0.000000e+00> : vector<16x32xf32>
    %452 = tpu.matmul %450, %451, %cst_204 {dimension_numbers = #tpu.dot_dimension_numbers<[1], [0], [0], [1], [0, 0, 1, 1], [], []>} : vector<16x32xbf16>, vector<32x32xbf16>, vector<16x32xf32> -> vector<16x32xf32>
    %c0_205 = arith.constant 0 : index
    %c0_206 = arith.constant 0 : index
    %453 = vector.load %arg17[%c0_205, %c0_206] : memref<1x32xf32, #tpu.memory_space<vmem>>, vector<1x32xf32>
    %454 = vector.broadcast %453 : vector<1x32xf32> to vector<16x32xf32>
    %455 = arith.addf %452, %454 : vector<16x32xf32>
    %cst_207 = arith.constant 0.000000e+00 : f32
    %456 = vector.broadcast %cst_207 : f32 to vector<16x32xf32>
    %457 = arith.maximumf %455, %456 : vector<16x32xf32>
    %cst_208 = arith.constant dense<0.000000e+00> : vector<32xf32>
    %458 = vector.multi_reduction <add>, %457, %cst_208 [0] : vector<16x32xf32> to vector<32xf32>
    %459 = vector.shape_cast %458 : vector<32xf32> to vector<1x32xf32>
    %cst_209 = arith.constant 1.600000e+01 : f32
    %460 = vector.broadcast %cst_209 : f32 to vector<1x32xf32>
    %461 = arith.divf %459, %460 : vector<1x32xf32>
    %c0_210 = arith.constant 0 : index
    %c0_211 = arith.constant 0 : index
    %462 = vector.load %arg18[%c0_210, %c0_211] : memref<32x2xf32, #tpu.memory_space<vmem>>, vector<32x2xf32>
    %cst_212 = arith.constant dense<0.000000e+00> : vector<1x2xf32>
    %463 = tpu.matmul %461, %462, %cst_212 {dimension_numbers = #tpu.dot_dimension_numbers<[1], [0], [0], [1], [0, 0, 1, 1], [], []>} : vector<1x32xf32>, vector<32x2xf32>, vector<1x2xf32> -> vector<1x2xf32>
    %c0_213 = arith.constant 0 : index
    %c0_214 = arith.constant 0 : index
    %464 = vector.load %arg19[%c0_213, %c0_214] : memref<1x2xf32, #tpu.memory_space<vmem>>, vector<1x2xf32>
    %465 = arith.addf %463, %464 : vector<1x2xf32>
    %cst_215 = arith.constant dense<0xFF800000> : vector<1xf32>
    %466 = vector.multi_reduction <maximumf>, %465, %cst_215 [1] : vector<1x2xf32> to vector<1xf32>
    %467 = vector.shape_cast %466 : vector<1xf32> to vector<1x1xf32>
    %468 = vector.broadcast %467 : vector<1x1xf32> to vector<1x2xf32>
    %469 = arith.subf %465, %468 : vector<1x2xf32>
    %470 = math.exp %469 : vector<1x2xf32>
    %cst_216 = arith.constant dense<0.000000e+00> : vector<1xf32>
    %471 = vector.multi_reduction <add>, %470, %cst_216 [1] : vector<1x2xf32> to vector<1xf32>
    %472 = vector.shape_cast %471 : vector<1xf32> to vector<1x1xf32>
    %473 = math.log %472 : vector<1x1xf32>
    %474 = vector.broadcast %473 : vector<1x1xf32> to vector<1x2xf32>
    %475 = arith.subf %469, %474 : vector<1x2xf32>
    %c0_217 = arith.constant 0 : index
    %c0_218 = arith.constant 0 : index
    %c0_219 = arith.constant 0 : index
    %476 = vector.load %arg20[%c0_217, %c0_218, %c0_219] : memref<1x1x2xf32, #tpu.memory_space<vmem>>, vector<1x1x2xf32>
    %477 = vector.shape_cast %476 : vector<1x1x2xf32> to vector<1x2xf32>
    %478 = vector.shape_cast %475 : vector<1x2xf32> to vector<1x1x2xf32>
    tpu.vector_store %arg20[%c0_217, %c0_218, %c0_219], %478 {strides = array<i32>} : memref<1x1x2xf32, #tpu.memory_space<vmem>>, vector<1x1x2xf32>,
    return
  }
  func.func @transform_0(%arg0: i32) -> (i32, i32, i32) {
    %c0_i32 = arith.constant 0 : i32
    %c0_i32_0 = arith.constant 0 : i32
    %c0_i32_1 = arith.constant 0 : i32
    return %arg0, %c0_i32, %c0_i32_0 : i32, i32, i32
  }
  func.func @transform_1(%arg0: i32) -> (i32, i32, i32) {
    %c0_i32 = arith.constant 0 : i32
    %c0_i32_0 = arith.constant 0 : i32
    %c0_i32_1 = arith.constant 0 : i32
    %c0_i32_2 = arith.constant 0 : i32
    return %c0_i32, %c0_i32_0, %c0_i32_1 : i32, i32, i32
  }
  func.func @transform_2(%arg0: i32) -> (i32, i32) {
    %c0_i32 = arith.constant 0 : i32
    %c0_i32_0 = arith.constant 0 : i32
    %c0_i32_1 = arith.constant 0 : i32
    return %c0_i32, %c0_i32_0 : i32, i32
  }
  func.func @transform_3(%arg0: i32) -> (i32, i32, i32) {
    %c0_i32 = arith.constant 0 : i32
    %c0_i32_0 = arith.constant 0 : i32
    %c0_i32_1 = arith.constant 0 : i32
    %c0_i32_2 = arith.constant 0 : i32
    return %c0_i32, %c0_i32_0, %c0_i32_1 : i32, i32, i32
  }
  func.func @transform_4(%arg0: i32) -> (i32, i32) {
    %c0_i32 = arith.constant 0 : i32
    %c0_i32_0 = arith.constant 0 : i32
    %c0_i32_1 = arith.constant 0 : i32
    return %c0_i32, %c0_i32_0 : i32, i32
  }
  func.func @transform_5(%arg0: i32) -> (i32, i32) {
    %c0_i32 = arith.constant 0 : i32
    %c0_i32_0 = arith.constant 0 : i32
    %c0_i32_1 = arith.constant 0 : i32
    return %c0_i32, %c0_i32_0 : i32, i32
  }
  func.func @transform_6(%arg0: i32) -> (i32, i32) {
    %c0_i32 = arith.constant 0 : i32
    %c0_i32_0 = arith.constant 0 : i32
    %c0_i32_1 = arith.constant 0 : i32
    return %c0_i32, %c0_i32_0 : i32, i32
  }
  func.func @transform_7(%arg0: i32) -> (i32, i32, i32) {
    %c0_i32 = arith.constant 0 : i32
    %c0_i32_0 = arith.constant 0 : i32
    %c0_i32_1 = arith.constant 0 : i32
    %c0_i32_2 = arith.constant 0 : i32
    return %c0_i32, %c0_i32_0, %c0_i32_1 : i32, i32, i32
  }
  func.func @transform_8(%arg0: i32) -> (i32, i32) {
    %c0_i32 = arith.constant 0 : i32
    %c0_i32_0 = arith.constant 0 : i32
    %c0_i32_1 = arith.constant 0 : i32
    return %c0_i32, %c0_i32_0 : i32, i32
  }
  func.func @transform_9(%arg0: i32) -> (i32, i32) {
    %c0_i32 = arith.constant 0 : i32
    %c0_i32_0 = arith.constant 0 : i32
    %c0_i32_1 = arith.constant 0 : i32
    return %c0_i32, %c0_i32_0 : i32, i32
  }
  func.func @transform_10(%arg0: i32) -> (i32, i32) {
    %c0_i32 = arith.constant 0 : i32
    %c0_i32_0 = arith.constant 0 : i32
    %c0_i32_1 = arith.constant 0 : i32
    return %c0_i32, %c0_i32_0 : i32, i32
  }
  func.func @transform_11(%arg0: i32) -> (i32, i32) {
    %c0_i32 = arith.constant 0 : i32
    %c0_i32_0 = arith.constant 0 : i32
    %c0_i32_1 = arith.constant 0 : i32
    return %c0_i32, %c0_i32_0 : i32, i32
  }
  func.func @transform_12(%arg0: i32) -> (i32, i32, i32) {
    %c0_i32 = arith.constant 0 : i32
    %c0_i32_0 = arith.constant 0 : i32
    %c0_i32_1 = arith.constant 0 : i32
    %c0_i32_2 = arith.constant 0 : i32
    return %c0_i32, %c0_i32_0, %c0_i32_1 : i32, i32, i32
  }
  func.func @transform_13(%arg0: i32) -> (i32, i32) {
    %c0_i32 = arith.constant 0 : i32
    %c0_i32_0 = arith.constant 0 : i32
    %c0_i32_1 = arith.constant 0 : i32
    return %c0_i32, %c0_i32_0 : i32, i32
  }
  func.func @transform_14(%arg0: i32) -> (i32, i32) {
    %c0_i32 = arith.constant 0 : i32
    %c0_i32_0 = arith.constant 0 : i32
    %c0_i32_1 = arith.constant 0 : i32
    return %c0_i32, %c0_i32_0 : i32, i32
  }
  func.func @transform_15(%arg0: i32) -> (i32, i32) {
    %c0_i32 = arith.constant 0 : i32
    %c0_i32_0 = arith.constant 0 : i32
    %c0_i32_1 = arith.constant 0 : i32
    return %c0_i32, %c0_i32_0 : i32, i32
  }
  func.func @transform_16(%arg0: i32) -> (i32, i32) {
    %c0_i32 = arith.constant 0 : i32
    %c0_i32_0 = arith.constant 0 : i32
    %c0_i32_1 = arith.constant 0 : i32
    return %c0_i32, %c0_i32_0 : i32, i32
  }
  func.func @transform_17(%arg0: i32) -> (i32, i32) {
    %c0_i32 = arith.constant 0 : i32
    %c0_i32_0 = arith.constant 0 : i32
    %c0_i32_1 = arith.constant 0 : i32
    return %c0_i32, %c0_i32_0 : i32, i32
  }
  func.func @transform_18(%arg0: i32) -> (i32, i32) {
    %c0_i32 = arith.constant 0 : i32
    %c0_i32_0 = arith.constant 0 : i32
    %c0_i32_1 = arith.constant 0 : i32
    return %c0_i32, %c0_i32_0 : i32, i32
  }
  func.func @transform_19(%arg0: i32) -> (i32, i32, i32) {
    %c0_i32 = arith.constant 0 : i32
    %c0_i32_0 = arith.constant 0 : i32
    %c0_i32_1 = arith.constant 0 : i32
    return %arg0, %c0_i32, %c0_i32_0 : i32, i32, i32
  }
}

</mosaic_0001>

<bundles_post_ra>
// kernel: mblnetv1_forward.1
= control target key start
LH: loop header
LB: loop body
LE: loop exit
PB: predicated region body
PF: predicated region fallthrough
CT: control target
= control target key end

     0   :  { %s14340_s0 = inlined_call_operand.vmem [shape: f32[2,256,8], index: 0, kind: input, shape index: {}]   ;;  %s14341_s1 = inlined_call_operand.vmem [shape: bf16[9,8,8], index: 1, kind: input, shape index: {}]   ;;  %s14342_s2 = inlined_call_operand.vmem [shape: f32[1,8], index: 2, kind: input, shape index: {}]   ;;  %s14343_s3 = inlined_call_operand.vmem [shape: f32[9,1,8], index: 3, kind: input, shape index: {}]   ;;  %s14344_s4 = inlined_call_operand.vmem [shape: f32[1,8], index: 4, kind: input, shape index: {}]   ;;  %s14345_s5 = inlined_call_operand.vmem [shape: bf16[8,16], index: 5, kind: input, shape index: {}]   ;;  %s14346_s6 = inlined_call_operand.vmem [shape: f32[1,16], index: 6, kind: input, shape index: {}]   ;;  %s14347_s7 = inlined_call_operand.vmem [shape: f32[9,1,16], index: 7, kind: input, shape index: {}]   ;;  %s14348_s8 = inlined_call_operand.vmem [shape: f32[1,16], index: 8, kind: input, shape index: {}]   ;;  %s14349_s9 = inlined_call_operand.vmem [shape: bf16[64,256], index: 9, kind: input, shape index: {}]   ;;  %s14350_s10 = inlined_call_operand.vmem [shape: bf16[16,32], index: 10, kind: input, shape index: {}]   ;;  %s14351_s11 = inlined_call_operand.vmem [shape: f32[1,32], index: 11, kind: input, shape index: {}]   ;;  %s14352_s12 = inlined_call_operand.vmem [shape: f32[9,1,32], index: 12, kind: input, shape index: {}]   ;;  %s14353_s13 = inlined_call_operand.vmem [shape: f32[1,32], index: 13, kind: input, shape index: {}]   ;;  %s14354_s14 = inlined_call_operand.vmem [shape: bf16[16,64], index: 14, kind: input, shape index: {}]   ;;  %s14355_s15 = inlined_call_operand.vmem [shape: bf16[32,32], index: 15, kind: input, shape index: {}]   ;;  %s14356_s16 = inlined_call_operand.vmem [shape: f32[1,32], index: 16, kind: input, shape index: {}]   ;;  %s14357_s17 = inlined_call_operand.vmem [shape: f32[32,2], index: 17, kind: input, shape index: {}]   ;;  %s14358_s18 = inlined_call_operand.vmem [shape: f32[1,2], index: 18, kind: input, shape index: {}]   ;;  %s14359_s19 = inlined_call_operand.hbm [shape: f32[2,1,2], index: 19, kind: output, shape index: {}]  }
   0x1   :  { %14752 = sst [smem:[#allocation153_spill]] %s14340_s0 }
   0x2   :  { %14753 = sst [smem:[#allocation154_spill]] %s14341_s1 }
   0x3   :  { %14754 = sst [smem:[#allocation155_spill]] %s14342_s2 }
   0x4   :  { %14755 = sst [smem:[#allocation156_spill]] %s14343_s3 }
   0x5   :  { %14756 = sst [smem:[#allocation157_spill]] %s14344_s4 }
   0x6   :  { %14757 = sst [smem:[#allocation158_spill]] %s14345_s5 }
   0x7   :  { %14758 = sst [smem:[#allocation159_spill]] %s14346_s6 }
   0x8   :  { %14759 = sst [smem:[#allocation160_spill]] %s14347_s7 }
   0x9   :  { %24 = vsyncpa [#allocation3], 0 }
   0xa   :  { %26 = vsyncpa [#allocation3 + $0x1], 0  ;;  %s8852_s0 = smov 0   ;;  %s8854_s30 = smov 0  }
   0xb   :  { %s8856_s20 = smov 0   ;;  %s8858_s21 = smov 0  }
   0xc LB: > { %14760 = sst [smem:[#allocation5_spill]] %s8742_s20  ;;  %s8873_s1 = sadd.s32 4294967295, %s8746_s21   ;;  %s8746_s21 = sphi %s8858_s21, %s16105_s21   ;;  %s8742_s20 = sphi %s8856_s20, %s16107_s20   ;;  %s8738_s30 = sphi %s8854_s30, %s16109_s30   ;;  %s8734_s0 = sphi %s8852_s0, %s16108_s0  }
   0xd   : > { %s7463_s22 = sadd.s32 4294967294, %s8746_s21   ;;  %s8877_s2 = sadd.s32 1, %s8746_s21  }
   0xe   : > { %14761 = sst [smem:[#allocation6_spill]] %s8877_s2  ;;  %s443_s23 = sadd.s32 1, %s8742_s20 }
   0xf   : > { %s440_s24 = ssub.s32 %s8746_s21, %s8877_s2  ;;  %p453_p0 = scmp.ne.s32.totalorder %s8742_s20, %s8738_s30 }
  0x10   : > { %p441_p1 = scmp.eq.s32.totalorder %s440_s24, 0  ;;  %p454_p2 = scmp.eq.s32.totalorder %s8873_s1, 1 }
  0x11   : > { %p459_p3 = scmp.ne.s32.totalorder %s8738_s30, %s8734_s0  ;;  %p460_p4 = scmp.eq.s32.totalorder %s7463_s22, 1 }
  0x12   : > { %s8888_s25 = scalar_select %p441_p1, %s8742_s20, %s443_s23  }
  0x13   : > { %p8890_p5 = por %p454_p2, %p453_p0  ;;  %p8894_p6 = por %p460_p4, %p459_p3 }
  0x14   : > { %14762 = sst [smem:[#allocation7_spill]] %s8888_s25  ;;  %p7466_p7 = scmp.ge.s32.totalorder %s8746_s21, 1 }
  0x15   : > { %p540_p8 = scmp.lt.s32.totalorder %s8746_s21, 3 }
  0x17   : > { %p541_p9 = pnand %p7466_p7, %p540_p8 }
  0x19   : > { %544 = sbr.rel (%p541_p9) target bundleno = 2667 (0xa6b), region = 96 }
  0x20   : > { %s14765_s29 = sld [smem:[#allocation154_spill]]  ;;  %vm14434_vm0 = vcmask 1043456   ;;  %p595_p10 = scmp.lt.s32.totalorder %s8873_s1, 1  ;;  %v601_v1 = vlaneseq  ;;  %v14366_v3 = vmov 0.0|0.0   ;;  %vm14436_vm1 = vcmask 64512  }
  0x21   : > { %7946 = vmatprep.mubr.bf16.mxu1 %v14366_v3  ;;  %s14769_s20 = sld [smem:[#allocation153_spill]]  ;;  %vm14430_vm2 = vcmask 1040384   ;;  %v14368_v11 = vmov 0.0   ;;  %vm14426_vm3 = vcmask 1046528   ;;  %v14773_v20 = vmov 0  ;;  %s15173_s5 = sld [smem:[#allocation158_spill]] }
  0x22   : > { %s596_s24 = scalar_select %p595_p10, %s8873_s1, 1  ;;  %v8919_v6 = vshrl.u32 %v601_v1, 7  ;;  %v8943_v12 = vrot.slane %v14368_v11, 7  ;;  %v14777_v25 = vmov 0  ;;  %v14784_v48 = vmov 0 }
  0x23   : > { %v14789_v60 = vmov 0  ;;  %s15178_s27 = sld [smem:[#allocation155_spill]]  ;;  %s15326_s4 = sld [smem:[#allocation157_spill]] }
  0x24   : > { %14767 = vst [vmem:[#allocation9_spill] sm:$0xff] %v8919_v6  ;;  %s7715_s25 = sshll.u32 %s596_s24, 8  ;;  %v8931_v9 = vadd.s32 16, %v8919_v6  ;;  %v638_v10 = vand.u32 15, %v8919_v6  ;;  %14770 = vst [vmem:[#allocation11_spill] sm:$0xff] %v8943_v12  ;;  %v8946_v13 = vadd.s32 32, %v8919_v6 }
  0x25   : > { %v8975_v24 = vadd.s32 48, %v8919_v6  ;;  %v610_v41 = vadd.s32 64, %v8919_v6  ;;  %v612_v46 = vadd.s32 80, %v8919_v6  ;;  %s15701_s7 = sld [smem:[#allocation160_spill]]  ;;  %s15703_s6 = sld [smem:[#allocation159_spill]] }
  0x26   : > { %v7469_v0 = vld [vmem:[%s14765_s29 + $0x4] sm:$0xf]  ;;  %v8910_v4 = vld [vmem:[%s14765_s29 + $0xc] sm:$0xf]  ;;  %v7535_v7 = vld [vmem:[%s14765_s29 + $0x10] sm:$0xf] }
  0x27   : > { %8589 = vmatprep.subr.msk.bf16.mxu1 %vm14434_vm0, %v7469_v0  ;;  %v1757_v2 = vsel %vm14434_vm0, %v7469_v0, 0  ;;  %8592 = vmatprep.subr.msk.bf16.mxu0 %vm14434_vm0, %v8910_v4  ;;  %v8917_v5 = vsel %vm14434_vm0, %v8910_v4, 0  ;;  %v8928_v8 = vld [vmem:[%s14765_s29] sm:$0xf]  ;;  %14768 = vst [vmem:[#allocation10_spill] sm:$0xff] %v8931_v9  ;;  %s8940_s2 = scalar_lea.vmem %s14769_s20, %s7715_s25  ;;  %14771 = vst [vmem:[#allocation12_spill] sm:$0xff] %v8946_v13 }
  0x28   : > { %7945 = vmatpush3.bf16.msra.mxu1 %v1757_v2  ;;  %14766 = vst [vmem:[#allocation8_spill] sm:$0xff] %v8917_v5  ;;  %8047 = vmatpush3.bf16.msra.mxu0 %v8917_v5  ;;  %v8949_v14 = vld [vmem:[%s8940_s2] sm:$0xff]  ;;  %v8952_v15 = vld [vmem:[%s8940_s2 + $0x8] sm:$0xff]  ;;  %v652_v16 = vand.u32 15, %v8931_v9  ;;  %v8956_v17 = vld [vmem:[%s8940_s2 + $0x10] sm:$0xff]  ;;  %v2663_v18 = vsel %vm14434_vm0, %v7535_v7, 0 }
  0x29   : > { %8594 = vmatprep.subr.msk.bf16.mxu0 %vm14434_vm0, %v7535_v7  ;;  %8590 = vmatprep.subr.msk.bf16.mxu1 %vm14434_vm0, %v8928_v8  ;;  %14772 = vst [vmem:[#allocation13_spill] sm:$0xff] %v8949_v14  ;;  %v8961_v19 = vpack.c.bf16 %v8952_v15, %v8949_v14  ;;  %vm8963_vm4 = vcmp.ge.s32.totalorder %v638_v10, 1  ;;  %v1180_v21 = vrot.slane %v8949_v14, 7  ;;  %v8969_v22 = vld [vmem:[%s8940_s2 + $0x18] sm:$0xff]  ;;  %v8972_v23 = vld [vmem:[%s8940_s2 + $0x20] sm:$0xff]  ;;  %14776 = vst [vmem:[#allocation15_spill] sm:$0xff] %v8975_v24 }
  0x2a   : > { %v14774_v20 = vsel %vm8963_vm4, 4294967295, %v14773_v20  ;;  %vm8977_vm5 = vcmp.ge.s32.totalorder %v652_v16, 1  ;;  %v1182_v26 = vrot.slane %v8952_v15, 7  ;;  %v1184_v27 = vrot.slane %v8956_v17, 7  ;;  %v8995_v31 = vld [vmem:[%s8940_s2 + $0x28] sm:$0xff]  ;;  %v9023_v45 = vld [vmem:[%s8940_s2 + $0x30] sm:$0xff] }
  0x2b   : > { %14775 = vst [vmem:[#allocation14_spill] sm:$0xff] %v14774_v20  ;;  %v14778_v25 = vsel %vm8977_vm5, 4294967295, %v14777_v25  ;;  %v1186_v28 = vrot.slane %v8969_v22, 7  ;;  %7947 = vmatmul.mubr.msk.bf16.vlgmr.msra.gmra.mrb[0].mxu1 %vm14436_vm1, %v8961_v19  ;;  %v8988_v29 = vsel %vm14430_vm2, %v8943_v12, %v1180_v21  ;;  %v8992_v30 = vpack.c.bf16 %v8969_v22, %v8956_v17  ;;  %v9040_v51 = vld [vmem:[%s8940_s2 + $0x38] sm:$0xff]  ;;  %v9043_v52 = vld [vmem:[%s8940_s2 + $0x40] sm:$0xff]  ;;  %v9046_v53 = vld [vmem:[%s8940_s2 + $0x48] sm:$0xff] }
  0x2c   : > { %14779 = vst [vmem:[#allocation16_spill] sm:$0xff] %v14778_v25  ;;  %v1188_v32 = vrot.slane %v8972_v23, 7  ;;  %v666_v33 = vand.u32 15, %v8946_v13  ;;  %v9000_v34 = vsel %vm14430_vm2, %v1180_v21, %v1182_v26  ;;  %v1536_v35 = vsel %vm8963_vm4, %v8988_v29, 0.0  ;;  %v9082_v2 = vld [vmem:[%s8940_s2 + $0x50] sm:$0xff]  ;;  %v9091_v10 = vld [vmem:[%s8940_s2 + $0x58] sm:$0xff] }
  0x2d   : > { %14780 = vst [vmem:[#allocation17_spill] sm:$0xff] %v8992_v30  ;;  %v9006_v36 = vsel %vm14430_vm2, %v1182_v26, %v1184_v27  ;;  %v14371_v37 = vrot.slane %v8969_v22, 1  ;;  %v2394_v38 = vpack.c.bf16 %v9000_v34, %v1536_v35  ;;  %v9011_v39 = vsel %vm14430_vm2, %v1184_v27, %v1186_v28  ;;  %7950 = vmatprep.mubr.msk.bf16.mxu1 %vm14436_vm1, %v8992_v30  ;;  %v9094_v16 = vld [vmem:[%s8940_s2 + $0x60] sm:$0xff]  ;;  %v9115_v35 = vld [vmem:[%s14765_s29 + $0x14] sm:$0xf] }
  0x2e   : > { %14781 = vst [vmem:[#allocation18_spill] sm:$0xff] %v9006_v36  ;;  %14782 = vst [vmem:[#allocation19_spill] sm:$0xff] %v9011_v39  ;;  %v1538_v40 = vsel %vm8977_vm5, %v9006_v36, 0.0  ;;  %v1190_v43 = vrot.slane %v8995_v31, 7  ;;  %v14370_v44 = vrot.slane %v8972_v23, 1  ;;  %v9029_v47 = vpack.c.bf16 %v8995_v31, %v8972_v23  ;;  %v9158_v3 = vld [vmem:[%s8940_s2 + $0x80] sm:$0xff] }
  0x2f   : > { %v2395_v42 = vpack.c.bf16 %v9011_v39, %v1538_v40  ;;  %8048 = vmatprep.mubr.msk.bf16.mxu0 %vm14436_vm1, %v2394_v38  ;;  %vm9031_vm6 = vcmp.ge.s32.totalorder %v666_v33, 1  ;;  %v9036_v49 = vsel %vm14430_vm2, %v1186_v28, %v1188_v32  ;;  %v680_v50 = vand.u32 15, %v8975_v24  ;;  %v9110_v33 = vld [vmem:[%s8940_s2 + $0x68] sm:$0xff] }
  0x30   : > { %14783 = vst [vmem:[#allocation20_spill] sm:$0xff] %v9029_v47  ;;  %v14785_v48 = vsel %vm9031_vm6, 4294967295, %v14784_v48  ;;  %v9054_v54 = vsel %vm14426_vm3, %v14371_v37, %v14370_v44  ;;  %v9057_v55 = vsel %vm14430_vm2, %v1188_v32, %v1190_v43  ;;  %v1540_v56 = vsel %vm9031_vm6, %v9036_v49, 0.0 }
  0x31   : > { %14786 = vst [vmem:[#allocation21_spill] sm:$0xff] %v14785_v48  ;;  %8049 = vmatmul.mubr.msk.bf16.vlgmr.msra.gmra.mrb[0].mxu0 %vm14436_vm1, %v2395_v42  ;;  %14787 = vst [vmem:[#allocation22_spill] sm:$0xff] %v9054_v54  ;;  %v1609_v57 = vsel %vm8977_vm5, %v9036_v49, 0.0  ;;  %v2396_v58 = vpack.c.bf16 %v9057_v55, %v1540_v56  ;;  %vm9069_vm7 = vcmp.ge.s32.totalorder %v680_v50, 1  ;;  %v1192_v61 = vrot.slane %v9023_v45, 7  ;;  %v9207_v54 = vld [vmem:[%s8940_s2 + $0x90] sm:$0xff] }
  0x32   : > { %v9067_v59 = vpack.c.bf16 %v9057_v55, %v1609_v57  ;;  %v14790_v60 = vsel %vm9069_vm7, 4294967295, %v14789_v60  ;;  %8081 = vmatpush3.bf16.msra.mxu0 %v2663_v18  ;;  %v1194_v62 = vrot.slane %v9040_v51, 7  ;;  %v9077_v63 = vpack.c.bf16 %v9040_v51, %v9023_v45 }
  0x33   : > { %14791 = vst [vmem:[#allocation24_spill] sm:$0xff] %v14790_v60  ;;  %v1196_v0 = vrot.slane %v9043_v52, 7  ;;  %v1198_v1 = vrot.slane %v9046_v53, 7  ;;  %7951 = vmatmul.mubr.msk.bf16.gmra.mrb[4].mxu1 %vm14436_vm1, %v9029_v47  ;;  %8052 = vmatprep.mubr.msk.bf16.mxu0 %vm14436_vm1, %v2396_v58  ;;  %v9088_v7 = vsel %vm14430_vm2, %v1190_v43, %v1192_v61  ;;  %v614_v18 = vadd.s32 96, %v8919_v6  ;;  %v9300_v60 = vld [vmem:[%s8940_s2 + $0xb8] sm:$0xff] }
  0x34   : > { %14788 = vst [vmem:[#allocation23_spill] sm:$0xff] %v9067_v59  ;;  %14792 = vst [vmem:[#allocation25_spill] sm:$0xff] %v9077_v63  ;;  %v616_v21 = vadd.s32 112, %v8919_v6  ;;  %v9099_v26 = vsel %vm14430_vm2, %v1192_v61, %v1194_v62  ;;  %v1542_v27 = vsel %vm9069_vm7, %v9088_v7, 0.0  ;;  %7954 = vmatprep.mubr.msk.bf16.mxu1 %vm14436_vm1, %v9077_v63  ;;  %v694_v28 = vand.u32 15, %v610_v41  ;;  %8595 = vmatprep.subr.msk.bf16.mxu0 %vm14434_vm0, %v9115_v35 }
  0x35   : > { %14793 = vst [vmem:[#allocation26_spill] sm:$0xff] %v9088_v7  ;;  %14794 = vst [vmem:[#allocation27_spill] sm:$0xff] %v9099_v26  ;;  %v9107_v32 = vsel %vm14430_vm2, %v1194_v62, %v1196_v0  ;;  %v2397_v38 = vpack.c.bf16 %v9099_v26, %v1542_v27  ;;  %v9119_v40 = vsel %vm14430_vm2, %v1196_v0, %v1198_v1  ;;  %v708_v42 = vand.u32 15, %v612_v46  ;;  %v9146_v0 = vld [vmem:[%s8940_s2 + $0x70] sm:$0xff] }
  0x36   : > { %14795 = vst [vmem:[#allocation28_spill] sm:$0xff] %v9107_v32  ;;  %14796 = vst [vmem:[#allocation29_spill] sm:$0xff] %v9119_v40  ;;  %v1200_v41 = vrot.slane %v9082_v2, 7  ;;  %v9126_v43 = vpack.c.bf16 %v9046_v53, %v9043_v52  ;;  %vm9128_vm8 = vcmp.ge.s32.totalorder %v694_v28, 1  ;;  %v14798_v50 = vmov 0 }
  0x37   : > { %v14799_v50 = vsel %vm9128_vm8, 4294967295, %v14798_v50  ;;  %v1202_v56 = vrot.slane %v9091_v10, 7  ;;  %v1204_v57 = vrot.slane %v9094_v16, 7  ;;  %v1544_v46 = vsel %vm9128_vm8, %v9107_v32, 0.0 }
  0x38   : > { %14797 = vst [vmem:[#allocation30_spill] sm:$0xff] %v9126_v43  ;;  %14800 = vst [vmem:[#allocation31_spill] sm:$0xff] %v14799_v50  ;;  %vm9137_vm9 = vcmp.ge.s32.totalorder %v708_v42, 1  ;;  %v14801_v58 = vmov 0  ;;  %v9142_v61 = vsel %vm14430_vm2, %v1198_v1, %v1200_v41  ;;  %v1206_v62 = vrot.slane %v9110_v33, 7  ;;  %v9155_v42 = vld [vmem:[%s8940_s2 + $0x78] sm:$0xff] }
  0x39   : > { %v14802_v58 = vsel %vm9137_vm9, 4294967295, %v14801_v58  ;;  %14804 = vst [vmem:[#allocation33_spill] sm:$0xff] %v9142_v61  ;;  %8053 = vmatmul.mubr.msk.bf16.gmra.mrb[4].mxu0 %vm14436_vm1, %v2397_v38  ;;  %v2398_v27 = vpack.c.bf16 %v9119_v40, %v1544_v46  ;;  %v9152_v28 = vpack.c.bf16 %v9091_v10, %v9082_v2  ;;  %v9161_v1 = vsel %vm14430_vm2, %v1200_v41, %v1202_v56  ;;  %v9586_v50 = vld [vmem:[%s8940_s2 + $0xf0] sm:$0xff] }
  0x3a   : > { %14803 = vst [vmem:[#allocation32_spill] sm:$0xff] %v14802_v58  ;;  %14806 = vst [vmem:[#allocation35_spill] sm:$0xff] %v9161_v1  ;;  %v1546_v11 = vsel %vm9137_vm9, %v9142_v61, 0.0  ;;  %v722_v44 = vand.u32 15, %v614_v18  ;;  %v9168_v38 = vsel %vm14430_vm2, %v1202_v56, %v1204_v57  ;;  %v9171_v46 = vsel %vm14430_vm2, %v1204_v57, %v1206_v62  ;;  %v9181_v18 = vld [vmem:[%s8940_s2 + $0x88] sm:$0xff] }
  0x3b   : > { %14805 = vst [vmem:[#allocation34_spill] sm:$0xff] %v9152_v28  ;;  %8056 = vmatprep.mubr.msk.bf16.mxu0 %vm14436_vm1, %v2398_v27  ;;  %14807 = vst [vmem:[#allocation36_spill] sm:$0xff] %v9168_v38  ;;  %v736_v37 = vand.u32 15, %v616_v21  ;;  %v1208_v24 = vrot.slane %v9146_v0, 7  ;;  %7955 = vmatmul.mubr.msk.bf16.gmra.mrb[8].mxu1 %vm14436_vm1, %v9126_v43  ;;  %v14809_v41 = vmov 0  ;;  %v2399_v27 = vpack.c.bf16 %v9161_v1, %v1546_v11 }
  0x3c   : > { %14808 = vst [vmem:[#allocation37_spill] sm:$0xff] %v9171_v46  ;;  %vm9176_vm10 = vcmp.ge.s32.totalorder %v722_v44, 1  ;;  %7958 = vmatprep.mubr.msk.bf16.mxu1 %vm14436_vm1, %v9152_v28  ;;  %v1212_v56 = vrot.slane %v9158_v3, 7  ;;  %v1210_v44 = vrot.slane %v9155_v42, 7  ;;  %v14812_v9 = vmov 0  ;;  %14897 = vst [vmem:[#allocation74_spill] sm:$0xff] %v9586_v50 }
  0x3d   : > { %v14810_v41 = vsel %vm9176_vm10, 4294967295, %v14809_v41  ;;  %v1548_v21 = vsel %vm9176_vm10, %v9168_v38, 0.0  ;;  %vm9192_vm11 = vcmp.ge.s32.totalorder %v736_v37, 1  ;;  %v9197_v13 = vsel %vm14430_vm2, %v1206_v62, %v1208_v24 }
  0x3e   : > { %14811 = vst [vmem:[#allocation38_spill] sm:$0xff] %v14810_v41  ;;  %v2400_v57 = vpack.c.bf16 %v9171_v46, %v1548_v21  ;;  %v14813_v9 = vsel %vm9192_vm11, 4294967295, %v14812_v9  ;;  %14815 = vst [vmem:[#allocation40_spill] sm:$0xff] %v9197_v13  ;;  %v1214_v11 = vrot.slane %v9181_v18, 7  ;;  %v618_v59 = vadd.s32 128, %v8919_v6  ;;  %v9232_v41 = vld [vmem:[%s8940_s2 + $0x98] sm:$0xff] }
  0x3f   : > { %14814 = vst [vmem:[#allocation39_spill] sm:$0xff] %v14813_v9  ;;  %v9203_v5 = vpack.c.bf16 %v9110_v33, %v9094_v16  ;;  %v620_v21 = vadd.s32 144, %v8919_v6  ;;  %v9212_v37 = vpack.c.bf16 %v9155_v42, %v9146_v0  ;;  %v9215_v46 = vsel %vm14430_vm2, %v1210_v44, %v1212_v56  ;;  %v9339_v9 = vld [vmem:[%s8940_s2 + $0xd0] sm:$0xff] }
  0x40   : > { %v750_v62 = vand.u32 15, %v618_v59  ;;  %14818 = vst [vmem:[#allocation43_spill] sm:$0xff] %v9215_v46  ;;  %v9219_v38 = vsel %vm14430_vm2, %v1208_v24, %v1210_v44  ;;  %v1550_v1 = vsel %vm9192_vm11, %v9197_v13, 0.0  ;;  %v14820_v40 = vmov 0 }
  0x41   : > { %14816 = vst [vmem:[#allocation41_spill] sm:$0xff] %v9203_v5  ;;  %8057 = vmatmul.mubr.msk.bf16.gmra.mrb[8].mxu0 %vm14436_vm1, %v2399_v27  ;;  %14817 = vst [vmem:[#allocation42_spill] sm:$0xff] %v9212_v37  ;;  %v9229_v27 = vsel %vm14430_vm2, %v1212_v56, %v1214_v11  ;;  %v764_v59 = vand.u32 15, %v620_v21  ;;  %v1216_v61 = vrot.slane %v9207_v54, 7  ;;  %v14393_v44 = vrot.slane %v9232_v41, 7 }
  0x42   : > { %8060 = vmatprep.mubr.msk.bf16.mxu0 %vm14436_vm1, %v2400_v57  ;;  %14819 = vst [vmem:[#allocation44_spill] sm:$0xff] %v9219_v38  ;;  %vm9224_vm12 = vcmp.ge.s32.totalorder %v750_v62, 1  ;;  %14823 = vst [vmem:[#allocation46_spill] sm:$0xff] %v9229_v27  ;;  %v2401_v57 = vpack.c.bf16 %v9219_v38, %v1550_v1  ;;  %v14824_v21 = vmov 0  ;;  %v9259_v1 = vpack.c.bf16 %v9232_v41, %v9207_v54 }
  0x43   : > { %v14821_v40 = vsel %vm9224_vm12, 4294967295, %v14820_v40  ;;  %7959 = vmatmul.mubr.msk.bf16.gmra.mrb[12].mxu1 %vm14436_vm1, %v9203_v5  ;;  %v1552_v24 = vsel %vm9224_vm12, %v9215_v46, 0.0  ;;  %vm9245_vm13 = vcmp.ge.s32.totalorder %v764_v59, 1  ;;  %v9250_v62 = vsel %vm14430_vm2, %v1214_v11, %v1216_v61  ;;  %v9264_v59 = vld [vmem:[%s14765_s29 + $0x8] sm:$0xf] }
  0x44   : > { %14822 = vst [vmem:[#allocation45_spill] sm:$0xff] %v14821_v40  ;;  %7962 = vmatprep.mubr.msk.bf16.mxu1 %vm14436_vm1, %v9212_v37  ;;  %v2402_v56 = vpack.c.bf16 %v9229_v27, %v1552_v24  ;;  %v14825_v21 = vsel %vm9245_vm13, 4294967295, %v14824_v21  ;;  %14827 = vst [vmem:[#allocation48_spill] sm:$0xff] %v9250_v62  ;;  %v9254_v46 = vpack.c.bf16 %v9181_v18, %v9158_v3  ;;  %v1554_v24 = vsel %vm9245_vm13, %v9250_v62, 0.0  ;;  %v9291_v27 = vld [vmem:[%s8940_s2 + $0xa8] sm:$0xff] }
  0x45   : > { %14826 = vst [vmem:[#allocation47_spill] sm:$0xff] %v14825_v21  ;;  %14829 = vst [vmem:[#allocation50_spill] sm:$0xff] %v9259_v1  ;;  %v9270_v11 = vsel %vm14430_vm2, %v1216_v61, %v14393_v44  ;;  %v9288_v44 = vld [vmem:[%s8940_s2 + $0xa0] sm:$0xff]  ;;  %v1407_v21 = vrot.slane %v8956_v17, 1  ;;  %v9335_v40 = vld [vmem:[%s8940_s2 + $0xc8] sm:$0xff]  ;;  %v2925_v32 = vsel %vm14434_vm0, %v9115_v35, 0 }
  0x46   : > { %14828 = vst [vmem:[#allocation49_spill] sm:$0xff] %v9254_v46  ;;  %14830 = vst [vmem:[#allocation51_spill] sm:$0xff] %v9270_v11  ;;  %v2403_v61 = vpack.c.bf16 %v9270_v11, %v1554_v24  ;;  %v1405_v24 = vrot.slane %v8952_v15, 1  ;;  %v9306_v11 = vpack.c.bf16 %v9291_v27, %v9288_v44  ;;  %v9322_v15 = vadd.s32 24, %v8919_v6 }
  0x47   : > { %v1413_v35 = vrot.slane %v8995_v31, 1  ;;  %v14846_v31 = vmov 0  ;;  %v14925_v20 = vld [vmem:[#allocation43_spill] sm:$0xff] }
  0x48   : > { %14831 = vst [vmem:[#allocation52_spill] sm:$0xff] %v9306_v11  ;;  %14834 = vst [vmem:[#allocation55_spill] sm:$0xff] %v9322_v15  ;;  %v1408_v17 = vsel %vm14426_vm3, %v1405_v24, %v1407_v21 }
  0x49   : > { %8061 = vmatmul.mubr.msk.bf16.gmra.mrb[12].mxu0 %vm14436_vm1, %v2401_v57  ;;  %v1969_v57 = vsel %vm14434_vm0, %v8928_v8, 0 }
  0x4a   : > { %8064 = vmatprep.mubr.msk.bf16.mxu0 %vm14436_vm1, %v2402_v56  ;;  %7979 = vmatpush3.bf16.msra.mxu1 %v1969_v57  ;;  %v1277_v56 = vsel %vm9069_vm7, %v9036_v49, 0.0  ;;  %v9297_v57 = vld [vmem:[%s8940_s2 + $0xb0] sm:$0xff]  ;;  %v9317_v49 = vadd.s32 8, %v8919_v6  ;;  %vm14862_vm7 = vcmask 64512  }
  0x4b   : > { %7963 = vmatmul.mubr.msk.bf16.gmra.mrb[16].mxu1 %vm14436_vm1, %v9254_v46  ;;  %8591 = vmatprep.subr.msk.bf16.mxu1 %vm14434_vm0, %v9264_v59  ;;  %v9294_v8 = vpack.c.bf16 %v9057_v55, %v1277_v56  ;;  %v9311_v55 = vpack.c.bf16 %v9300_v60, %v9297_v57  ;;  %v624_v56 = vadd.s32 176, %v8919_v6  ;;  %v1224_v38 = vrot.slane %v9297_v57, 7 }
  0x4c   : > { %7966 = vmatprep.mubr.msk.bf16.mxu1 %vm14436_vm1, %v9259_v1  ;;  %14833 = vst [vmem:[#allocation54_spill] sm:$0xff] %v9317_v49  ;;  %v645_v13 = vand.u32 15, %v9317_v49  ;;  %v14836_v1 = vrot.slane %v8969_v22, 1  ;;  %v14838_v49 = vmov 0  ;;  %v14842_v22 = vmov 0 }
  0x4d   : > { %14832 = vst [vmem:[#allocation53_spill] sm:$0xff] %v9311_v55 }
  0x4e   : > { %v9349_v58 = vsel %vm14426_vm3, %v1407_v21, %v14836_v1  ;;  %vm9354_vm14 = vcmp.lt.s32.totalorder %v645_v13, 15  ;;  %v9372_v13 = vld [vmem:[%s14765_s29 + $0x18] sm:$0xf] }
  0x4f   : > { %14837 = vst [vmem:[#allocation56_spill] sm:$0xff] %v9349_v58  ;;  %v14839_v49 = vsel %vm9354_vm14, 4294967295, %v14838_v49  ;;  %v1574_v21 = vsel %vm9354_vm14, %v1408_v17, 0.0  ;;  %14845 = vst [vmem:[#allocation60_spill] sm:$0xff] %v9372_v13  ;;  %v14902_v48 = vld [vmem:[#allocation52_spill] sm:$0xff] }
  0x50   : > { %14840 = vst [vmem:[#allocation57_spill] sm:$0xff] %v14839_v49  ;;  %v14850_v49 = vrot.slane %v9300_v60, 7 }
  0x51   : > { %8065 = vmatmul.mubr.msk.bf16.gmra.mrb[16].mxu0 %vm14436_vm1, %v2403_v61  ;;  %v14835_v61 = vrot.slane %v8949_v14, 1  ;;  %v792_v14 = vand.u32 15, %v624_v56  ;;  %v14431_v56 = vrot.slane %v9291_v27, 7 }
  0x52   : > { %8082 = vmatprep.mubr.msk.bf16.mxu0 %vm14436_vm1, %v8961_v19  ;;  %v9332_v19 = vld [vmem:[%s8940_s2 + $0xc0] sm:$0xff] }
  0x53   : > { %7967 = vmatmul.mubr.msk.bf16.gmra.mrb[20].mxu1 %vm14436_vm1, %v9306_v11  ;;  %v1406_v62 = vsel %vm14426_vm3, %v14835_v61, %v1405_v24  ;;  %v9342_v11 = vld [vmem:[%s8940_s2 + $0xd8] sm:$0xff]  ;;  %v659_v61 = vand.u32 15, %v9322_v15  ;;  %v9361_v15 = vpack.c.bf16 %v9335_v40, %v9332_v19  ;;  %vm9387_vm3 = vcmp.ge.s32.totalorder %v792_v14, 1 }
  0x54   : > { %7970 = vmatprep.mubr.msk.bf16.mxu1 %vm14436_vm1, %v9311_v55  ;;  %v9379_v1 = vpack.c.bf16 %v9342_v11, %v9339_v9  ;;  %v14847_v31 = vsel %vm9387_vm3, 4294967295, %v14846_v31 }
  0x55   : > { %14841 = vst [vmem:[#allocation58_spill] sm:$0xff] %v9361_v15  ;;  %vm9363_vm15 = vcmp.lt.s32.totalorder %v659_v61, 15  ;;  %v9383_v61 = vpack.c.bf16 %v1574_v21, %v1406_v62  ;;  %14848 = vst [vmem:[#allocation61_spill] sm:$0xff] %v14847_v31  ;;  %v14853_v21 = vrot.slane %v8972_v23, 1 }
  0x56   : > { %v14843_v22 = vsel %vm9363_vm15, 4294967295, %v14842_v22  ;;  %v1500_v24 = vsel %vm9363_vm15, %v1408_v17, 0.0  ;;  %v9401_v17 = vsel %vm14430_vm2, %v1224_v38, %v14850_v49  ;;  %v9422_v49 = vld [vmem:[%s8940_s2 + $0xe8] sm:$0xff] }
  0x57   : > { %14844 = vst [vmem:[#allocation59_spill] sm:$0xff] %v14843_v22  ;;  %v9391_v55 = vpack.c.bf16 %v1500_v24, %v1406_v62  ;;  %v9414_v62 = vadd.s32 40, %v8919_v6 }
  0x59   : > { %8083 = vmatmul.mubr.msk.bf16.vlgmr.msra.gmra.mrb[0].mxu0 %vm14436_vm1, %v8992_v30  ;;  %14849 = vst [vmem:[#allocation62_spill] sm:$0xff] %v9391_v55  ;;  %v9396_v30 = vsel %vm14430_vm2, %v14431_v56, %v1224_v38  ;;  %14852 = vst [vmem:[#allocation64_spill] sm:$0xff] %v9414_v62  ;;  %v9419_v38 = vld [vmem:[%s8940_s2 + $0xe0] sm:$0xff]  ;;  %vm14854_vm2 = vcmask 1046528   ;;  %v1415_v56 = vrot.slane %v9023_v45, 1  ;;  %v1417_v55 = vrot.slane %v9040_v51, 1 }
  0x5a   : > { %8086 = vmatprep.mubr.msk.bf16.mxu0 %vm14436_vm1, %v9029_v47  ;;  %8115 = vmatpush3.bf16.msra.mxu0 %v2925_v32  ;;  %v1558_v32 = vsel %vm9387_vm3, %v9396_v30, 0.0  ;;  %v1414_v24 = vsel %vm14854_vm2, %v14853_v21, %v1413_v35  ;;  %v1419_v47 = vrot.slane %v9043_v52, 1  ;;  %v9440_v23 = vpack.c.bf16 %v9422_v49, %v9419_v38 }
  0x5b   : > { %8596 = vmatprep.subr.msk.bf16.mxu0 %vm14434_vm0, %v9372_v13  ;;  %7971 = vmatmul.mubr.msk.bf16.gmra.mrb[24].mxu1 %vm14436_vm1, %v9361_v15  ;;  %v9411_v14 = vpack.c.bf16 %v9401_v17, %v1558_v32  ;;  %v9432_v32 = vsel %vm8963_vm4, %v8943_v12, 0.0  ;;  %v1421_v13 = vrot.slane %v9046_v53, 1  ;;  %vm14856_vm0 = vmmov %vm14854_vm2  ;;  %v14858_v45 = vmov 0 }
  0x5c   : > { %7974 = vmatprep.mubr.msk.bf16.mxu1 %vm14436_vm1, %v9379_v1  ;;  %14855 = vst [vmem:[#allocation65_spill] sm:$0xff] %v9432_v32  ;;  %v1416_v58 = vsel %vm14856_vm0, %v1413_v35, %v1415_v56  ;;  %14857 = vst [vmem:[#allocation66_spill] sm:$0xff] %v9440_v23  ;;  %v1671_v51 = vpack.c.bf16 %v8943_v12, %v9432_v32  ;;  %v1459_v25 = vrot.slane %v9419_v38, 1 }
  0x5d   : > { %14851 = vst [vmem:[#allocation63_spill] sm:$0xff] %v9411_v14  ;;  %v673_v14 = vand.u32 15, %v9414_v62  ;;  %v1642_v52 = vsel %vm9363_vm15, %v1416_v58, 0.0  ;;  %vm14861_vm1 = vmmov %vm14856_vm0 }
  0x5e   : > { %v9449_v21 = vsel %vm14861_vm1, %v1415_v56, %v1417_v55  ;;  %v9457_v35 = vpack.c.bf16 %v1642_v52, %v1414_v24  ;;  %vm14864_vm0 = vmmov %vm14862_vm7  ;;  %v9467_v56 = vadd.s32 56, %v8919_v6  ;;  %v1273_v52 = vsel %vm8977_vm5, %v8988_v29, 0.0 }
  0x5f   : > { %vm9442_vm2 = vcmp.lt.s32.totalorder %v673_v14, 15  ;;  %vm14865_vm4 = vmmov %vm14861_vm1  ;;  %v1672_v29 = vpack.c.bf16 %v9000_v34, %v1273_v52  ;;  %v14876_v52 = vmov 0 }
  0x60   : > { %v14859_v45 = vsel %vm9442_vm2, 4294967295, %v14858_v45  ;;  %v1578_v53 = vsel %vm9442_vm2, %v1416_v58, 0.0  ;;  %14863 = vst [vmem:[#allocation68_spill] sm:$0xff] %v9457_v35  ;;  %v9464_v62 = vsel %vm14865_vm4, %v1417_v55, %v1419_v47  ;;  %14866 = vst [vmem:[#allocation69_spill] sm:$0xff] %v9467_v56  ;;  %v1427_v35 = vrot.slane %v9094_v16, 1 }
  0x61   : > { %14860 = vst [vmem:[#allocation67_spill] sm:$0xff] %v14859_v45  ;;  %8087 = vmatmul.mubr.msk.bf16.gmra.mrb[4].mxu0 %vm14862_vm7, %v9077_v63  ;;  %v9461_v14 = vpack.c.bf16 %v1578_v53, %v1414_v24  ;;  %vm14867_vm1 = vmmov %vm14864_vm0  ;;  %v1423_v55 = vrot.slane %v9082_v2, 1  ;;  %v1429_v53 = vrot.slane %v9110_v33, 1  ;;  %v1425_v63 = vrot.slane %v9091_v10, 1 }
  0x62   : > { %8090 = vmatprep.mubr.msk.bf16.mxu0 %vm14864_vm0, %v9126_v43  ;;  %vm14868_vm7 = vmmov %vm14865_vm4  ;;  %v1275_v43 = vsel %vm9031_vm6, %v9006_v36, 0.0  ;;  %v1435_v2 = vrot.slane %v9158_v3, 1  ;;  %v1437_v3 = vrot.slane %v9181_v18, 1  ;;  %v1289_v36 = vsel %vm9245_vm13, %v14925_v20, 0.0 }
  0x63   : > { %7975 = vmatmul.mubr.msk.bf16.gmra.mrb[28].mxu1 %vm14867_vm1, %v9440_v23  ;;  %v9472_v32 = vsel %vm14868_vm7, %v1419_v47, %v1421_v13  ;;  %v687_v47 = vand.u32 15, %v9467_v56  ;;  %v9487_v12 = vsel %vm14865_vm4, %v1421_v13, %v1423_v55  ;;  %vm14869_vm1 = vmmov %vm14865_vm4  ;;  %v1673_v33 = vpack.c.bf16 %v9011_v39, %v1275_v43  ;;  %v14922_v39 = vld [vmem:[#allocation53_spill] sm:$0xff] }
  0x64   : > { %7980 = vmatprep.mubr.msk.bf16.mxu1 %vm14864_vm0, %v1671_v51  ;;  %v9491_v16 = vsel %vm14869_vm1, %v1423_v55, %v1425_v63  ;;  %vm14870_vm7 = vmmov %vm14864_vm0  ;;  %vm14873_vm4 = vcmask 1043456   ;;  %v1431_v13 = vrot.slane %v9146_v0, 1  ;;  %v1234_v20 = vrot.slane %v9342_v11, 7 }
  0x65   : > { %vm14871_vm0 = vmmov %vm14869_vm1  ;;  %v2199_v10 = vsel %vm14873_vm4, %v9264_v59, 0  ;;  %vm9509_vm1 = vcmp.lt.s32.totalorder %v687_v47, 15  ;;  %v1445_v47 = vrot.slane %v9291_v27, 1 }
  0x66   : > { %v9498_v51 = vsel %vm14871_vm0, %v1425_v63, %v1427_v35  ;;  %vm14872_vm5 = vmmov %vm14870_vm7  ;;  %v14877_v52 = vsel %vm9509_vm1, 4294967295, %v14876_v52  ;;  %v1433_v63 = vrot.slane %v9155_v42, 1  ;;  %v9516_v43 = vsel %vm14871_vm0, %v1429_v53, %v1431_v13 }
  0x67   : > { %vm14874_vm6 = vmmov %vm14871_vm0  ;;  %14878 = vst [vmem:[#allocation71_spill] sm:$0xff] %v14877_v52  ;;  %v1504_v59 = vsel %vm9509_vm1, %v1416_v58, 0.0  ;;  %v1279_v42 = vsel %vm9128_vm8, %v9088_v7, 0.0  ;;  %v9536_v58 = vsel %vm14871_vm0, %v1435_v2, %v1437_v3  ;;  %v1230_v7 = vrot.slane %v9335_v40, 7 }
  0x68   : > { %v9505_v34 = vsel %vm14874_vm6, %v1427_v35, %v1429_v53  ;;  %vm14880_vm6 = vmmov %vm14871_vm0  ;;  %v1443_v35 = vrot.slane %v9288_v44, 1  ;;  %v9531_v55 = vpack.c.bf16 %v1504_v59, %v1414_v24  ;;  %v1439_v53 = vrot.slane %v9207_v54, 1 }
  0x69   : > { %8091 = vmatmul.mubr.msk.bf16.gmra.mrb[8].mxu0 %vm14870_vm7, %v9152_v28  ;;  %14875 = vst [vmem:[#allocation70_spill] sm:$0xff] %v9505_v34  ;;  %vm14879_vm7 = vmmov %vm14872_vm5  ;;  %v9522_v0 = vsel %vm14880_vm6, %v1431_v13, %v1433_v63  ;;  %v1675_v24 = vpack.c.bf16 %v9099_v26, %v1279_v42  ;;  %v1453_v13 = vrot.slane %v9335_v40, 1  ;;  %v1457_v59 = vrot.slane %v9342_v11, 1  ;;  %v14890_v42 = vld [vmem:[#allocation28_spill] sm:$0xff]  ;;  %v14896_v28 = vld [vmem:[#allocation29_spill] sm:$0xff] }
  0x6a   : > { %8094 = vmatprep.mubr.msk.bf16.mxu0 %vm14872_vm5, %v9203_v5  ;;  %14881 = vst [vmem:[#allocation72_spill] sm:$0xff] %v9522_v0  ;;  %vm14882_vm4 = vmmov %vm14871_vm0  ;;  %v1281_v56 = vsel %vm9137_vm9, %v14890_v42, 0.0  ;;  %v1461_v42 = vrot.slane %v9422_v49, 1  ;;  %v14899_v26 = vld [vmem:[#allocation50_spill] sm:$0xff]  ;;  %v14928_v40 = vld [vmem:[#allocation48_spill] sm:$0xff] }
  0x6b   : > { %7981 = vmatmul.mubr.msk.bf16.vlgmr.msra.gmra.mrb[0].mxu1 %vm14879_vm7, %v1672_v29  ;;  %v9525_v18 = vsel %vm14882_vm4, %v1433_v63, %v1435_v2  ;;  %vm14883_vm7 = vcmask 1043456   ;;  %v1441_v29 = vrot.slane %v9232_v41, 1  ;;  %vm14884_vm6 = vmmov %vm14871_vm0  ;;  %v1451_v2 = vrot.slane %v9332_v19, 1  ;;  %v14934_v11 = vld [vmem:[#allocation51_spill] sm:$0xff] }
  0x6c   : > { %7984 = vmatprep.mubr.msk.bf16.mxu1 %vm14872_vm5, %v1673_v33  ;;  %8013 = vmatpush3.bf16.msra.mxu1 %v2199_v10  ;;  %v1447_v33 = vrot.slane %v9297_v57, 1  ;;  %v9546_v10 = vsel %vm14884_vm6, %v1437_v3, %v1439_v53  ;;  %vm14885_vm4 = vmmov %vm14872_vm5  ;;  %v1455_v63 = vrot.slane %v9339_v9, 1 }
  0x6d   : > { %8593 = vmatprep.subr.msk.bf16.mxu1 %vm14883_vm7, %v8910_v4  ;;  %v1449_v4 = vrot.slane %v9300_v60, 1  ;;  %vm14886_vm7 = vmmov %vm14871_vm0  ;;  %v9556_v57 = vsel %vm14871_vm0, %v1441_v29, %v1443_v35 }
  0x6e   : > { %v9553_v54 = vsel %vm14886_vm7, %v1439_v53, %v1441_v29  ;;  %14887 = vst [vmem:[#allocation73_spill] sm:$0xff] %v9556_v57  ;;  %vm14889_vm6 = vmmov %vm14871_vm0  ;;  %v1676_v53 = vpack.c.bf16 %v14896_v28, %v1281_v56 }
  0x6f   : > { %v9562_v3 = vsel %vm14889_vm6, %v1443_v35, %v1445_v47  ;;  %vm14892_vm7 = vmmov %vm14871_vm0 }
  0x70   : > { %v9571_v29 = vsel %vm14892_vm7, %v1445_v47, %v1447_v33  ;;  %vm14898_vm6 = vmmov %vm14871_vm0 }
  0x71   : > { %8095 = vmatmul.mubr.msk.bf16.gmra.mrb[12].mxu0 %vm14872_vm5, %v9212_v37  ;;  %vm14888_vm5 = vmmov %vm14885_vm4  ;;  %v9578_v37 = vsel %vm14871_vm0, %v1447_v33, %v1449_v4  ;;  %v9589_v47 = vsel %vm14898_vm6, %v1451_v2, %v1453_v13 }
  0x72   : > { %8098 = vmatprep.mubr.msk.bf16.mxu0 %vm14885_vm4, %v9254_v46  ;;  %v14893_v46 = vld [vmem:[#allocation33_spill] sm:$0xff]  ;;  %vm14901_vm7 = vmmov %vm14871_vm0 }
  0x73   : > { %7985 = vmatmul.mubr.msk.bf16.gmra.mrb[4].mxu1 %vm14888_vm5, %v9294_v8  ;;  %v1283_v35 = vsel %vm9176_vm10, %v14893_v46, 0.0  ;;  %vm14895_vm5 = vmmov %vm14871_vm0  ;;  %v14900_v8 = vld [vmem:[#allocation35_spill] sm:$0xff] }
  0x74   : > { %7988 = vmatprep.mubr.msk.bf16.mxu1 %vm14885_vm4, %v1675_v24  ;;  %v9581_v5 = vsel %vm14895_vm5, %v1449_v4, %v1451_v2  ;;  %v622_v24 = vadd.s32 160, %v8919_v6  ;;  %v1677_v33 = vpack.c.bf16 %v14900_v8, %v1283_v35  ;;  %v9597_v4 = vsel %vm14901_vm7, %v1453_v13, %v1455_v63  ;;  %vm14903_vm0 = vmmov %vm14885_vm4  ;;  %v14909_v35 = vld [vmem:[#allocation36_spill] sm:$0xff] }
  0x75   : > { %v9602_v56 = vsel %vm14895_vm5, %v1455_v63, %v1457_v59  ;;  %vm14905_vm6 = vmmov %vm14895_vm5  ;;  %v1285_v13 = vsel %vm9192_vm11, %v14909_v35, 0.0  ;;  %v1228_v35 = vrot.slane %v9332_v19, 7  ;;  %v14924_v8 = vld [vmem:[#allocation44_spill] sm:$0xff]  ;;  %v14929_v19 = vrot.slane %v9232_v41, 7 }
  0x76   : > { %14904 = vst [vmem:[#allocation75_spill] sm:$0xff] %v9602_v56  ;;  %v9605_v2 = vsel %vm14905_vm6, %v1457_v59, %v1459_v25  ;;  %v778_v28 = vand.u32 15, %v622_v24  ;;  %vm14907_vm10 = vmmov %vm14903_vm0  ;;  %v1220_v59 = vrot.slane %v9288_v44, 7  ;;  %v14916_v24 = vld [vmem:[#allocation40_spill] sm:$0xff]  ;;  %v1232_v44 = vrot.slane %v9339_v9, 7 }
  0x77   : > { %14906 = vst [vmem:[#allocation76_spill] sm:$0xff] %v9605_v2  ;;  %vm14911_vm7 = vmmov %vm14895_vm5  ;;  %v630_v56 = vadd.s32 224, %v8919_v6  ;;  %v14940_v41 = vrot.slane %v9300_v60, 7 }
  0x78   : > { %v9613_v46 = vsel %vm14911_vm7, %v1459_v25, %v1461_v42  ;;  %v628_v25 = vadd.s32 208, %v8919_v6 }
  0x79   : > { %8099 = vmatmul.mubr.msk.bf16.gmra.mrb[16].mxu0 %vm14885_vm4, %v14899_v26  ;;  %vm14908_vm4 = vmmov %vm14903_vm0  ;;  %14912 = vst [vmem:[#allocation77_spill] sm:$0xff] %v9613_v46  ;;  %v14918_v26 = vmov 0  ;;  %v9641_v46 = vld [vmem:[%s8940_s2 + $0xf8] sm:$0xff]  ;;  %s15176_s2 = sld [smem:[#allocation156_spill]] }
  0x7a   : > { %8102 = vmatprep.mubr.msk.bf16.mxu0 %vm14903_vm0, %v14902_v48  ;;  %v14913_v48 = vrot.slane %v9586_v50, 1  ;;  %vm14914_vm0 = vmmov %vm14895_vm5 }
  0x7b   : > { %7989 = vmatmul.mubr.msk.bf16.gmra.mrb[8].mxu1 %vm14907_vm10, %v1676_v53  ;;  %v1287_v53 = vsel %vm9224_vm12, %v14916_v24, 0.0  ;;  %vm9625_vm10 = vcmp.ge.s32.totalorder %v778_v28, 1  ;;  %vm14923_vm5 = vmmov %vm14908_vm4 }
  0x7c   : > { %7992 = vmatprep.mubr.msk.bf16.mxu1 %vm14908_vm4, %v1677_v33  ;;  %v9618_v63 = vsel %vm14914_vm0, %v1461_v42, %v14913_v48  ;;  %v626_v33 = vadd.s32 192, %v8919_v6  ;;  %v14919_v26 = vsel %vm9625_vm10, 4294967295, %v14918_v26  ;;  %v14921_v48 = vld [vmem:[#allocation37_spill] sm:$0xff]  ;;  %v1679_v24 = vpack.c.bf16 %v14924_v8, %v1287_v53  ;;  %vm14927_vm6 = vmmov %vm14908_vm4 }
  0x7d   : > { %14915 = vst [vmem:[#allocation78_spill] sm:$0xff] %v9618_v63  ;;  %14920 = vst [vmem:[#allocation79_spill] sm:$0xff] %v14919_v26  ;;  %v1678_v42 = vpack.c.bf16 %v14921_v48, %v1285_v13  ;;  %v1291_v9 = vsel %vm9625_vm10, %v14928_v40, 0.0  ;;  %vm14930_vm4 = vcmask 1040384   ;;  %v1236_v8 = vrot.slane %v9419_v38, 7 }
  0x7e   : > { %v1221_v13 = vsel %vm14930_vm4, %v14929_v19, %v1220_v59  ;;  %v806_v53 = vand.u32 15, %v626_v33  ;;  %v1238_v48 = vrot.slane %v9422_v49, 7  ;;  %v820_v63 = vand.u32 15, %v628_v25  ;;  %vm14931_vm7 = vmmov %vm14923_vm5 }
  0x7f   : > { %v1530_v40 = vrot.slane %v9586_v50, 7  ;;  %v9662_v33 = vpack.c.bf16 %v9641_v46, %v9586_v50  ;;  %vm14933_vm0 = vmmov %vm14923_vm5  ;;  %v1681_v19 = vpack.c.bf16 %v14934_v11, %v1291_v9  ;;  %v14935_v38 = vrot.slane %v9291_v27, 7 }
  0x80   : > { %v1293_v25 = vsel %vm9387_vm3, %v1221_v13, 0.0  ;;  %v14942_v9 = vmov 0  ;;  %vm14946_vm12 = vmmov %vm14930_vm4 }
  0x81   : > { %8103 = vmatmul.mubr.msk.bf16.gmra.mrb[20].mxu0 %vm14923_vm5, %v14922_v39  ;;  %v632_v39 = vadd.s32 240, %v8919_v6  ;;  %vm14936_vm5 = vmmov %vm14930_vm4 }
  0x82   : > { %8106 = vmatprep.mubr.msk.bf16.mxu0 %vm14927_vm6, %v9361_v15  ;;  %v14932_v15 = vld [vmem:[#allocation46_spill] sm:$0xff]  ;;  %v1223_v49 = vsel %vm14936_vm5, %v1220_v59, %v14935_v38  ;;  %vm9671_vm6 = vcmp.ge.s32.totalorder %v806_v53, 1  ;;  %vm14945_vm5 = vmmov %vm14930_vm4  ;;  %v1235_v53 = vsel %vm14946_vm12, %v1232_v44, %v1234_v20 }
  0x83   : > { %7993 = vmatmul.mubr.msk.bf16.gmra.mrb[12].mxu1 %vm14931_vm7, %v1678_v42  ;;  %v1680_v2 = vpack.c.bf16 %v14932_v15, %v1289_v36  ;;  %v834_v36 = vand.u32 15, %v630_v56  ;;  %v14937_v42 = vmov 0  ;;  %v1229_v15 = vsel %vm14930_vm4, %v14940_v41, %v1228_v35  ;;  %vm14941_vm7 = vmmov %vm14930_vm4 }
  0x84   : > { %7996 = vmatprep.mubr.msk.bf16.mxu1 %vm14933_vm0, %v1679_v24  ;;  %v14938_v42 = vsel %vm9671_vm6, 4294967295, %v14937_v42  ;;  %v1231_v24 = vsel %vm14941_vm7, %v1228_v35, %v1230_v7  ;;  %v848_v50 = vand.u32 15, %v632_v39  ;;  %vm9679_vm0 = vcmp.ge.s32.totalorder %v820_v63, 1  ;;  %vm14947_vm11 = vmmov %vm14930_vm4 }
  0x85   : > { %14939 = vst [vmem:[#allocation51_spill] sm:$0xff] %v14938_v42  ;;  %v14943_v9 = vsel %vm9679_vm0, 4294967295, %v14942_v9  ;;  %v1233_v27 = vsel %vm14945_vm5, %v1230_v7, %v1232_v44  ;;  %v1556_v56 = vsel %vm9625_vm10, %v1221_v13, 0.0  ;;  %v1560_v59 = vsel %vm9671_vm6, %v1229_v15, 0.0  ;;  %v14967_v42 = vld [vmem:[#allocation60_spill] sm:$0xff] }
  0x86   : > { %14944 = vst [vmem:[#allocation80_spill] sm:$0xff] %v14943_v9  ;;  %v9690_v60 = vsel %vm14947_vm11, %v1234_v20, %v1236_v8  ;;  %v9692_v41 = vpack.c.bf16 %v1223_v49, %v1556_v56  ;;  %v9694_v39 = vpack.c.bf16 %v1231_v24, %v1560_v59  ;;  %vm14948_vm4 = vcmask 64512  }
  0x87   : > { %vm9698_vm7 = vcmp.ge.s32.totalorder %v834_v36, 1  ;;  %v14949_v7 = vmov 0  ;;  %v9703_v35 = vsel %vm14945_vm5, %v1236_v8, %v1238_v48  ;;  %v1562_v63 = vsel %vm9679_vm0, %v1233_v27, 0.0  ;;  %vm14952_vm11 = vmmov %vm14948_vm4 }
  0x88   : > { %v14950_v7 = vsel %vm9698_vm7, 4294967295, %v14949_v7  ;;  %v1625_v20 = vsel %vm9245_vm13, %v1221_v13, 0.0  ;;  %vm9711_vm12 = vcmp.ge.s32.totalorder %v848_v50, 1  ;;  %v14953_v44 = vmov 0 }
  0x89   : > { %8107 = vmatmul.mubr.msk.bf16.gmra.mrb[24].mxu0 %vm14948_vm4, %v9379_v1  ;;  %14951 = vst [vmem:[#allocation81_spill] sm:$0xff] %v14950_v7  ;;  %v14954_v44 = vsel %vm9711_vm12, 4294967295, %v14953_v44  ;;  %v9715_v38 = vpack.c.bf16 %v1235_v53, %v1562_v63  ;;  %v9717_v36 = vpack.c.bf16 %v1223_v49, %v1625_v20  ;;  %v1564_v8 = vsel %vm9698_vm7, %v9690_v60, 0.0  ;;  %vm14956_vm4 = vmmov %vm14945_vm5 }
  0x8a   : > { %8110 = vmatprep.mubr.msk.bf16.mxu0 %vm14952_vm11, %v9440_v23  ;;  %14955 = vst [vmem:[#allocation82_spill] sm:$0xff] %v14954_v44  ;;  %v9723_v56 = vpack.c.bf16 %v9703_v35, %v1564_v8  ;;  %v1531_v13 = vsel %vm14956_vm4, %v1238_v48, %v1530_v40  ;;  %v14957_v59 = vrot.slane %v9641_v46, 7  ;;  %vm14958_vm5 = vmmov %vm14956_vm4  ;;  %v1627_v63 = vsel %vm9625_vm10, %v9396_v30, 0.0 }
  0x8b   : > { %7997 = vmatmul.mubr.msk.bf16.gmra.mrb[16].mxu1 %vm14952_vm11, %v1680_v2  ;;  %v1566_v20 = vsel %vm9711_vm12, %v1531_v13, 0.0  ;;  %v9736_v28 = vpack.c.bf16 %v9401_v17, %v1627_v63  ;;  %v1629_v8 = vsel %vm9387_vm3, %v1229_v15, 0.0  ;;  %v1631_v48 = vsel %vm9671_vm6, %v1233_v27, 0.0  ;;  %vm14959_vm4 = vmmov %vm14952_vm11 }
  0x8c   : > { %v1533_v50 = vsel %vm14958_vm5, %v1530_v40, %v14957_v59  ;;  %8000 = vmatprep.mubr.msk.bf16.mxu1 %vm14959_vm4, %v1681_v19  ;;  %v9745_v59 = vpack.c.bf16 %v1231_v24, %v1629_v8  ;;  %v9747_v26 = vpack.c.bf16 %v1235_v53, %v1631_v48  ;;  %v1633_v2 = vsel %vm9679_vm0, %v9690_v60, 0.0  ;;  %vm14960_vm5 = vmmov %vm14959_vm4 }
  0x8d   : > { %v9743_v40 = vpack.c.bf16 %v1533_v50, %v1566_v20  ;;  %v1295_v63 = vsel %vm9671_vm6, %v9396_v30, 0.0  ;;  %v9756_v31 = vpack.c.bf16 %v9703_v35, %v1633_v2  ;;  %v1635_v19 = vsel %vm9698_vm7, %v1531_v13, 0.0  ;;  %vm14961_vm11 = vmmov %vm14959_vm4  ;;  %v14962_v30 = vld [vmem:[#allocation22_spill] sm:$0xff] }
  0x8e   : > { %v9760_v20 = vpack.c.bf16 %v1533_v50, %v1635_v19  ;;  %v1682_v8 = vpack.c.bf16 %v1223_v49, %v1293_v25  ;;  %v611_v48 = vadd.s32 72, %v8919_v6  ;;  %v1683_v23 = vpack.c.bf16 %v9401_v17, %v1295_v63  ;;  %v14963_v50 = vld [vmem:[#allocation56_spill] sm:$0xff]  ;;  %vm14964_vm6 = vmmov %vm14959_vm4 }
  0x8f   : > { %v1576_v2 = vsel %vm9363_vm15, %v14962_v30, 0.0  ;;  %v1297_v49 = vsel %vm9679_vm0, %v1229_v15, 0.0  ;;  %v1299_v17 = vsel %vm9698_vm7, %v1233_v27, 0.0  ;;  %v14965_v25 = vmov 0.0   ;;  %v9792_v15 = vld [vmem:[%s14765_s29 + $0x1c] sm:$0xf]  ;;  %vm14977_vm7 = vmmov %vm14959_vm4 }
  0x90   : > { %v701_v13 = vand.u32 15, %v611_v48  ;;  %v2859_v19 = vpack.c.bf16 %v1576_v2, %v14963_v50  ;;  %v9779_v63 = vrot.slane %v14965_v25, 1  ;;  %v14969_v48 = vmov 0  ;;  %vm14986_vm0 = vmmov %vm14959_vm4 }
  0x91   : > { %8111 = vmatmul.mubr.msk.bf16.gmra.mrb[28].mxu0 %vm14960_vm5, %v9662_v33  ;;  %vm14968_vm5 = vcmask 1043456   ;;  %v1685_v27 = vpack.c.bf16 %v1235_v53, %v1299_v17  ;;  %vm14987_vm3 = vmmov %vm14986_vm0  ;;  %v14998_v7 = vmov 0 }
  0x92   : > { %8116 = vmatprep.mubr.msk.bf16.mxu0 %vm14961_vm11, %v9383_v61  ;;  %14966 = vst [vmem:[#allocation22_spill] sm:$0xff] %v9779_v63  ;;  %v613_v61 = vadd.s32 88, %v8919_v6  ;;  %v3187_v22 = vsel %vm14968_vm5, %v14967_v42, 0  ;;  %vm9784_vm11 = vcmp.lt.s32.totalorder %v701_v13, 15  ;;  %v1580_v42 = vsel %vm9509_vm1, %v9464_v62, 0.0  ;;  %v14973_v13 = vld [vmem:[#allocation13_spill] sm:$0xff]  ;;  %vm14996_vm10 = vmmov %vm14986_vm0 }
  0x93   : > { %8001 = vmatmul.mubr.msk.bf16.gmra.mrb[20].mxu1 %vm14959_vm4, %v1682_v8  ;;  %v1684_v8 = vpack.c.bf16 %v1231_v24, %v1297_v49  ;;  %v14970_v48 = vsel %vm9784_vm11, 4294967295, %v14969_v48  ;;  %v1582_v24 = vsel %vm9784_vm11, %v9487_v12, 0.0  ;;  %v14974_v49 = vrot.slane %v14973_v13, 1  ;;  %vm15004_vm13 = vmmov %vm14986_vm0 }
  0x94   : > { %8004 = vmatprep.mubr.msk.bf16.mxu1 %vm14964_vm6, %v1683_v23  ;;  %14971 = vst [vmem:[#allocation56_spill] sm:$0xff] %v14970_v48  ;;  %v615_v23 = vadd.s32 104, %v8919_v6  ;;  %vm14972_vm6 = vmmov %vm14959_vm4  ;;  %v715_v2 = vand.u32 15, %v613_v61  ;;  %vm14975_vm5 = vcmask 1046528   ;;  %v2861_v53 = vpack.c.bf16 %v1580_v42, %v9449_v21 }
  0x95   : > { %v1404_v25 = vsel %vm14975_vm5, %v9779_v63, %v14974_v49  ;;  %v14979_v13 = vmov 0  ;;  %v14982_v42 = vmov 0  ;;  %vm15005_vm15 = vmmov %vm14986_vm0 }
  0x96   : > { %v1498_v61 = vsel %vm9354_vm14, %v1404_v25, 0.0  ;;  %vm9818_vm5 = vcmp.lt.s32.totalorder %v715_v2, 15 }
  0x97   : > { %v14980_v13 = vsel %vm9818_vm5, 4294967295, %v14979_v13  ;;  %v1584_v25 = vsel %vm9818_vm5, %v9498_v51, 0.0 }
  0x98   : > { %14981 = vst [vmem:[#allocation60_spill] sm:$0xff] %v14980_v13  ;;  %v2863_v49 = vpack.c.bf16 %v1584_v25, %v9491_v16  ;;  %v15015_v13 = vmov 0 }
  0x99   : > { %8117 = vmatmul.mubr.msk.bf16.vlgmr.msra.gmra.mrb[0].mxu0 %vm14972_vm6, %v2859_v19  ;;  %vm14976_vm6 = vcmask 1043456   ;;  %v2862_v19 = vpack.c.bf16 %v1582_v24, %v9472_v32 }
  0x9a   : > { %8120 = vmatprep.mubr.msk.bf16.mxu0 %vm14959_vm4, %v9461_v14  ;;  %8149 = vmatpush3.bf16.msra.mxu0 %v3187_v22  ;;  %v729_v14 = vand.u32 15, %v615_v23  ;;  %v1301_v22 = vsel %vm9711_vm12, %v9690_v60, 0.0  ;;  %v2132_v60 = vpack.c.bf16 %v1498_v61, %v9779_v63  ;;  %v14991_v61 = vmov 0 }
  0x9b   : > { %8597 = vmatprep.subr.msk.bf16.mxu0 %vm14976_vm6, %v9792_v15  ;;  %8005 = vmatmul.mubr.msk.bf16.gmra.mrb[24].mxu1 %vm14977_vm7, %v1684_v8  ;;  %v617_v8 = vadd.s32 120, %v8919_v6  ;;  %v1686_v23 = vpack.c.bf16 %v9703_v35, %v1301_v22  ;;  %vm14985_vm6 = vmmov %vm14959_vm4  ;;  %v14988_v22 = vmov 0 }
  0x9c   : > { %8008 = vmatprep.mubr.msk.bf16.mxu1 %vm14959_vm4, %v1685_v27  ;;  %vm9824_vm7 = vcmp.lt.s32.totalorder %v729_v14, 15  ;;  %v619_v27 = vadd.s32 136, %v8919_v6 }
  0x9d   : > { %v14983_v42 = vsel %vm9824_vm7, 4294967295, %v14982_v42  ;;  %v1586_v35 = vsel %vm9824_vm7, %v9516_v43, 0.0  ;;  %v743_v24 = vand.u32 15, %v617_v8  ;;  %v623_v8 = vadd.s32 168, %v8919_v6 }
  0x9e   : > { %14984 = vst [vmem:[#allocation13_spill] sm:$0xff] %v14983_v42  ;;  %v757_v2 = vand.u32 15, %v619_v27  ;;  %v2864_v14 = vpack.c.bf16 %v1586_v35, %v9505_v34  ;;  %v14995_v35 = vld [vmem:[#allocation62_spill] sm:$0xff] }
  0xa1   : > { %8121 = vmatmul.mubr.msk.bf16.gmra.mrb[4].mxu0 %vm14985_vm6, %v2861_v53  ;;  %v1502_v53 = vsel %vm9442_vm2, %v14962_v30, 0.0  ;;  %vm9845_vm6 = vcmp.lt.s32.totalorder %v743_v24, 15  ;;  %v785_v24 = vand.u32 15, %v623_v8  ;;  %v15001_v8 = vmov 0 }
  0xa2   : > { %8124 = vmatprep.mubr.msk.bf16.mxu0 %vm14959_vm4, %v2862_v19  ;;  %v14989_v22 = vsel %vm9845_vm6, 4294967295, %v14988_v22  ;;  %v621_v19 = vadd.s32 152, %v8919_v6  ;;  %vm9850_vm4 = vcmp.lt.s32.totalorder %v757_v2, 15  ;;  %v1588_v27 = vsel %vm9845_vm6, %v9525_v18, 0.0 }
  0xa3   : > { %8009 = vmatmul.mubr.msk.bf16.gmra.mrb[28].mxu1 %vm14986_vm0, %v1686_v23  ;;  %14990 = vst [vmem:[#allocation83_spill] sm:$0xff] %v14989_v22  ;;  %v14992_v61 = vsel %vm9850_vm4, 4294967295, %v14991_v61  ;;  %v2134_v23 = vpack.c.bf16 %v1502_v53, %v14963_v50  ;;  %v2865_v2 = vpack.c.bf16 %v1588_v27, %v9522_v0  ;;  %v1506_v53 = vsel %vm9784_vm11, %v9464_v62, 0.0  ;;  %vm15014_vm11 = vmmov %vm14986_vm0 }
  0xa4   : > { %8014 = vmatprep.mubr.msk.bf16.mxu1 %vm14987_vm3, %v2132_v60  ;;  %14993 = vst [vmem:[#allocation84_spill] sm:$0xff] %v14992_v61  ;;  %vm14994_vm3 = vmmov %vm14986_vm0  ;;  %v1590_v60 = vsel %vm9850_vm4, %v9546_v10, 0.0  ;;  %v771_v25 = vand.u32 15, %v621_v19  ;;  %v625_v19 = vadd.s32 184, %v8919_v6  ;;  %v2136_v27 = vpack.c.bf16 %v1506_v53, %v9449_v21  ;;  %v15023_v61 = vld [vmem:[#allocation78_spill] sm:$0xff] }
  0xa5   : > { %v1510_v53 = vsel %vm9824_vm7, %v9498_v51, 0.0  ;;  %vm15013_vm7 = vmmov %vm14986_vm0 }
  0xa9   : > { %8125 = vmatmul.mubr.msk.bf16.gmra.mrb[8].mxu0 %vm14986_vm0, %v2863_v49  ;;  %v14997_v49 = vld [vmem:[#allocation8_spill] sm:$0xff] }
  0xaa   : > { %8128 = vmatprep.mubr.msk.bf16.mxu0 %vm14994_vm3, %v2864_v14  ;;  %v2866_v14 = vpack.c.bf16 %v1590_v60, %v9536_v58  ;;  %vm9873_vm3 = vcmp.lt.s32.totalorder %v771_v25, 15 }
  0xab   : > { %8015 = vmatmul.mubr.msk.bf16.vlgmr.msra.gmra.mrb[0].mxu1 %vm14996_vm10, %v14995_v35  ;;  %v14999_v7 = vsel %vm9873_vm3, 4294967295, %v14998_v7  ;;  %vm9878_vm10 = vcmp.lt.s32.totalorder %v785_v24, 15  ;;  %v1592_v60 = vsel %vm9873_vm3, %v9556_v57, 0.0  ;;  %v799_v35 = vand.u32 15, %v625_v19 }
  0xac   : > { %8018 = vmatprep.mubr.msk.bf16.mxu1 %vm14986_vm0, %v2134_v23  ;;  %8332 = vmatpush3.bf16.msra.mxu1 %v14997_v49  ;;  %15000 = vst [vmem:[#allocation62_spill] sm:$0xff] %v14999_v7  ;;  %v15002_v8 = vsel %vm9878_vm10, 4294967295, %v15001_v8  ;;  %v627_v23 = vadd.s32 200, %v8919_v6  ;;  %v1594_v25 = vsel %vm9878_vm10, %v9571_v29, 0.0  ;;  %v2867_v49 = vpack.c.bf16 %v1592_v60, %v9553_v54  ;;  %v15037_v7 = vld [vmem:[#allocation18_spill] sm:$0xff] }
  0xad   : > { %15003 = vst [vmem:[#allocation8_spill] sm:$0xff] %v15002_v8  ;;  %v15006_v19 = vmov 0  ;;  %v631_v60 = vadd.s32 232, %v8919_v6 }
  0xae   : > { %v813_v24 = vand.u32 15, %v627_v23 }
  0xaf   : > { %v841_v9 = vand.u32 15, %v631_v60  ;;  %v15018_v60 = vmov 0 }
  0xb1   : > { %8129 = vmatmul.mubr.msk.bf16.gmra.mrb[12].mxu0 %vm14986_vm0, %v2865_v2  ;;  %v1508_v2 = vsel %vm9818_vm5, %v9487_v12, 0.0  ;;  %vm15012_vm5 = vmmov %vm14986_vm0 }
  0xb2   : > { %8132 = vmatprep.mubr.msk.bf16.mxu0 %vm15004_vm13, %v2866_v14  ;;  %v2868_v14 = vpack.c.bf16 %v1594_v25, %v9562_v3  ;;  %vm9903_vm13 = vcmp.lt.s32.totalorder %v799_v35, 15  ;;  %v2137_v23 = vpack.c.bf16 %v1508_v2, %v9472_v32  ;;  %v2138_v25 = vpack.c.bf16 %v1510_v53, %v9491_v16 }
  0xb3   : > { %8019 = vmatmul.mubr.msk.bf16.gmra.mrb[4].mxu1 %vm15005_vm15, %v9531_v55  ;;  %v15007_v19 = vsel %vm9903_vm13, 4294967295, %v15006_v19  ;;  %v629_v55 = vadd.s32 216, %v8919_v6  ;;  %vm9909_vm15 = vcmp.lt.s32.totalorder %v813_v24, 15  ;;  %v1596_v35 = vsel %vm9903_vm13, %v9581_v5, 0.0 }
  0xb4   : > { %8022 = vmatprep.mubr.msk.bf16.mxu1 %vm14986_vm0, %v2136_v27  ;;  %15008 = vst [vmem:[#allocation85_spill] sm:$0xff] %v15007_v19  ;;  %v15009_v27 = vmov 0  ;;  %v1598_v2 = vsel %vm9909_vm15, %v9597_v4, 0.0  ;;  %v2869_v42 = vpack.c.bf16 %v1596_v35, %v9578_v37  ;;  %v1514_v53 = vsel %vm9850_vm4, %v9525_v18, 0.0  ;;  %v15022_v35 = vld [vmem:[#allocation76_spill] sm:$0xff]  ;;  %vm15024_vm4 = vmmov %vm14986_vm0 }
  0xb5   : > { %v15010_v27 = vsel %vm9909_vm15, 4294967295, %v15009_v27  ;;  %v827_v24 = vand.u32 15, %v629_v55  ;;  %v633_v55 = vadd.s32 248, %v8919_v6  ;;  %v15025_v6 = vld [vmem:[#allocation75_spill] sm:$0xff] }
  0xb6   : > { %15011 = vst [vmem:[#allocation86_spill] sm:$0xff] %v15010_v27 }
  0xb9   : > { %8133 = vmatmul.mubr.msk.bf16.gmra.mrb[16].mxu0 %vm14986_vm0, %v2867_v49  ;;  %v1512_v49 = vsel %vm9845_vm6, %v9516_v43, 0.0 }
  0xba   : > { %8136 = vmatprep.mubr.msk.bf16.mxu0 %vm15012_vm5, %v2868_v14  ;;  %v2870_v14 = vpack.c.bf16 %v1598_v2, %v9589_v47  ;;  %vm9933_vm5 = vcmp.lt.s32.totalorder %v827_v24, 15  ;;  %v1568_v24 = vrot.slane %v9641_v46, 1 }
  0xbb   : > { %8023 = vmatmul.mubr.msk.bf16.gmra.mrb[8].mxu1 %vm15013_vm7, %v2137_v23  ;;  %v15016_v13 = vsel %vm9933_vm5, 4294967295, %v15015_v13  ;;  %v2139_v23 = vpack.c.bf16 %v1512_v49, %v9505_v34  ;;  %vm9939_vm7 = vcmp.lt.s32.totalorder %v841_v9, 15  ;;  %v1600_v2 = vsel %vm9933_vm5, %v15022_v35, 0.0 }
  0xbc   : > { %8026 = vmatprep.mubr.msk.bf16.mxu1 %vm15014_vm11, %v2138_v25  ;;  %15017 = vst [vmem:[#allocation87_spill] sm:$0xff] %v15016_v13  ;;  %v15019_v60 = vsel %vm9939_vm7, 4294967295, %v15018_v60  ;;  %vm15021_vm11 = vmmov %vm14986_vm0  ;;  %v2140_v25 = vpack.c.bf16 %v1514_v53, %v9522_v0  ;;  %v1602_v49 = vsel %vm9939_vm7, %v15023_v61, 0.0  ;;  %v855_v9 = vand.u32 15, %v633_v55 }
  0xbd   : > { %15020 = vst [vmem:[#allocation88_spill] sm:$0xff] %v15019_v60  ;;  %v2871_v22 = vpack.c.bf16 %v1600_v2, %v15025_v6  ;;  %v1518_v0 = vsel %vm9878_vm10, %v9556_v57, 0.0  ;;  %v15028_v34 = vmov 0  ;;  %v15033_v2 = vld [vmem:[#allocation74_spill] sm:$0xff] }
  0xc1   : > { %8137 = vmatmul.mubr.msk.bf16.gmra.mrb[20].mxu0 %vm15021_vm11, %v2869_v42  ;;  %vm15026_vm11 = vmmov %vm14986_vm0  ;;  %v1516_v42 = vsel %vm9873_vm3, %v9546_v10, 0.0 }
  0xc2   : > { %8140 = vmatprep.mubr.msk.bf16.mxu0 %vm14986_vm0, %v2870_v14  ;;  %v15027_v14 = vld [vmem:[#allocation77_spill] sm:$0xff]  ;;  %vm9963_vm0 = vcmp.lt.s32.totalorder %v855_v9, 15  ;;  %vm15032_vm3 = vmmov %vm15026_vm11 }
  0xc3   : > { %8027 = vmatmul.mubr.msk.bf16.gmra.mrb[12].mxu1 %vm15024_vm4, %v2139_v23  ;;  %v2872_v53 = vpack.c.bf16 %v1602_v49, %v15027_v14  ;;  %v15029_v34 = vsel %vm9963_vm0, 4294967295, %v15028_v34  ;;  %vm15031_vm4 = vcmask 1046528   ;;  %v2141_v23 = vpack.c.bf16 %v1516_v42, %v9536_v58  ;;  %vm15040_vm10 = vmmov %vm15032_vm3 }
  0xc4   : > { %8030 = vmatprep.mubr.msk.bf16.mxu1 %vm15026_vm11, %v2140_v25  ;;  %15030 = vst [vmem:[#allocation76_spill] sm:$0xff] %v15029_v34  ;;  %v9969_v55 = vsel %vm15031_vm4, %v1568_v24, %v9779_v63  ;;  %v2142_v25 = vpack.c.bf16 %v1518_v0, %v9553_v54  ;;  %v15034_v49 = vrot.slane %v15033_v2, 1  ;;  %vm15035_vm6 = vmmov %vm15031_vm4  ;;  %v15038_v63 = vld [vmem:[#allocation14_spill] sm:$0xff]  ;;  %v1520_v0 = vsel %vm9903_vm13, %v9571_v29, 0.0 }
  0xc5   : > { %v1604_v9 = vsel %vm9963_vm0, %v9969_v55, 0.0  ;;  %vm15039_vm4 = vnez %v15038_v63  ;;  %v2143_v2 = vpack.c.bf16 %v1520_v0, %v9562_v3  ;;  %v15059_v63 = vld [vmem:[#allocation29_spill] sm:$0xff] }
  0xc6   : > { %v9978_v8 = vsel %vm15035_vm6, %v15034_v49, %v1568_v24  ;;  %v1607_v57 = vsel %vm15039_vm4, %v15037_v7, 0.0  ;;  %v15042_v24 = vld [vmem:[#allocation19_spill] sm:$0xff]  ;;  %vm15043_vm6 = vmmov %vm15032_vm3 }
  0xc7   : > { %15036 = vst [vmem:[#allocation78_spill] sm:$0xff] %v9978_v8  ;;  %v3120_v42 = vpack.c.bf16 %v15042_v24, %v1607_v57  ;;  %vm15048_vm4 = vmmov %vm15032_vm3  ;;  %v1524_v57 = vsel %vm9933_vm5, %v9597_v4, 0.0 }
  0xc9   : > { %8141 = vmatmul.mubr.msk.bf16.gmra.mrb[24].mxu0 %vm15026_vm11, %v2871_v22  ;;  %v2873_v22 = vpack.c.bf16 %v1604_v9, %v9978_v8  ;;  %vm15041_vm11 = vmmov %vm15032_vm3  ;;  %v15049_v9 = vld [vmem:[#allocation27_spill] sm:$0xff] }
  0xca   : > { %8144 = vmatprep.mubr.msk.bf16.mxu0 %vm15032_vm3, %v2872_v53  ;;  %v1522_v53 = vsel %vm9909_vm15, %v9581_v5, 0.0 }
  0xcb   : > { %8031 = vmatmul.mubr.msk.bf16.gmra.mrb[16].mxu1 %vm15040_vm10, %v2141_v23  ;;  %v2144_v7 = vpack.c.bf16 %v1522_v53, %v9578_v37  ;;  %v15044_v23 = vld [vmem:[#allocation26_spill] sm:$0xff]  ;;  %v7602_v53 = vld [vmem:[%s14765_s29 + $0x20] sm:$0xf] }
  0xcc   : > { %8034 = vmatprep.mubr.msk.bf16.mxu1 %vm15041_vm11, %v2142_v25  ;;  %v15045_v25 = vld [vmem:[#allocation21_spill] sm:$0xff]  ;;  %vm15047_vm11 = vmmov %vm15032_vm3 }
  0xcd   : > { %vm15046_vm10 = vnez %v15045_v25  ;;  %v15056_v25 = vld [vmem:[#allocation33_spill] sm:$0xff] }
  0xce   : > { %v1611_v49 = vsel %vm15046_vm10, %v15044_v23, 0.0  ;;  %v15053_v23 = vld [vmem:[#allocation28_spill] sm:$0xff]  ;;  %vm15058_vm10 = vmmov %vm15032_vm3 }
  0xcf   : > { %v3122_v0 = vpack.c.bf16 %v15049_v9, %v1611_v49  ;;  %v15054_v49 = vld [vmem:[#allocation24_spill] sm:$0xff] }
  0xd1   : > { %8145 = vmatmul.mubr.msk.bf16.gmra.mrb[28].mxu0 %vm15043_vm6, %v2873_v22  ;;  %v1526_v22 = vsel %vm9939_vm7, %v15022_v35, 0.0  ;;  %vm15050_vm6 = vcmask 1043456  }
  0xd2   : > { %8150 = vmatprep.mubr.msk.bf16.mxu0 %vm15032_vm3, %v3120_v42  ;;  %v3385_v24 = vsel %vm15050_vm6, %v9792_v15, 0  ;;  %v2145_v42 = vpack.c.bf16 %v1524_v57, %v9589_v47  ;;  %v1615_v57 = vsel %vm9128_vm8, %v15056_v25, 0.0  ;;  %v15063_v25 = vld [vmem:[#allocation36_spill] sm:$0xff]  ;;  %vm15085_vm8 = vmmov %vm15032_vm3 }
  0xd3   : > { %8035 = vmatmul.mubr.msk.bf16.gmra.mrb[20].mxu1 %vm15047_vm11, %v2143_v2  ;;  %v15051_v2 = vld [vmem:[#allocation23_spill] sm:$0xff]  ;;  %vm15055_vm11 = vnez %v15054_v49  ;;  %v15065_v15 = vld [vmem:[#allocation40_spill] sm:$0xff] }
  0xd4   : > { %8038 = vmatprep.mubr.msk.bf16.mxu1 %vm15048_vm4, %v2144_v7  ;;  %vm15052_vm4 = vmmov %vm15032_vm3  ;;  %v2146_v7 = vpack.c.bf16 %v1526_v22, %v15025_v6  ;;  %v1613_v9 = vsel %vm15055_vm11, %v15053_v23, 0.0  ;;  %v15061_v22 = vld [vmem:[#allocation35_spill] sm:$0xff]  ;;  %v15064_v23 = vld [vmem:[#allocation32_spill] sm:$0xff] }
  0xd5   : > { %v3123_v8 = vpack.c.bf16 %v15059_v63, %v1613_v9  ;;  %vm15062_vm11 = vmmov %vm15032_vm3  ;;  %v15066_v63 = vld [vmem:[#allocation38_spill] sm:$0xff]  ;;  %v15069_v9 = vld [vmem:[#allocation37_spill] sm:$0xff] }
  0xd9   : > { %8151 = vmatmul.mubr.msk.bf16.vlgmr.msra.gmra.mrb[0].mxu0 %vm15052_vm4, %v15051_v2  ;;  %vm15060_vm4 = vmmov %vm15032_vm3  ;;  %v3124_v2 = vpack.c.bf16 %v15061_v22, %v1615_v57  ;;  %v15071_v57 = vld [vmem:[#allocation44_spill] sm:$0xff]  ;;  %v15074_v22 = vld [vmem:[#allocation39_spill] sm:$0xff] }
  0xda   : > { %8154 = vmatprep.mubr.msk.bf16.mxu0 %vm15032_vm3, %v3122_v0  ;;  %8183 = vmatpush3.bf16.msra.mxu0 %v3385_v24  ;;  %v1528_v0 = vsel %vm9963_vm0, %v15023_v61, 0.0  ;;  %vm15089_vm0 = vmmov %vm15032_vm3 }
  0xdb   : > { %8598 = vmatprep.subr.msk.bf16.mxu0 %vm15050_vm6, %v7602_v53  ;;  %8039 = vmatmul.mubr.msk.bf16.gmra.mrb[24].mxu1 %vm15058_vm10, %v2145_v42  ;;  %v2147_v24 = vpack.c.bf16 %v1528_v0, %v15027_v14  ;;  %v1617_v42 = vsel %vm9137_vm9, %v15063_v25, 0.0  ;;  %vm15067_vm10 = vnez %v15066_v63  ;;  %vm15068_vm6 = vmmov %vm15032_vm3  ;;  %vm15075_vm9 = vnez %v15074_v22  ;;  %v15076_v25 = vld [vmem:[#allocation48_spill] sm:$0xff]  ;;  %v15077_v63 = vld [vmem:[#allocation45_spill] sm:$0xff] }
  0xdc   : > { %8042 = vmatprep.mubr.msk.bf16.mxu1 %vm15060_vm4, %v2146_v7  ;;  %v1619_v7 = vsel %vm15067_vm10, %v15065_v15, 0.0  ;;  %v3125_v49 = vpack.c.bf16 %v15069_v9, %v1617_v42  ;;  %vm15070_vm4 = vmmov %vm15032_vm3  ;;  %vm15078_vm10 = vnez %v15077_v63  ;;  %v15081_v42 = vld [vmem:[#allocation46_spill] sm:$0xff] }
  0xdd   : > { %v3126_v0 = vpack.c.bf16 %v15071_v57, %v1619_v7  ;;  %v1623_v15 = vsel %vm15078_vm10, %v15076_v25, 0.0  ;;  %vm15086_vm10 = vmmov %vm15032_vm3  ;;  %v15112_v7 = vld [vmem:[#allocation50_spill] sm:$0xff]  ;;  %v15114_v57 = vld [vmem:[#allocation52_spill] sm:$0xff]  ;;  %v1640_v25 = vsel %vm9354_vm14, %v14962_v30, 0.0 }
  0xe1   : > { %8155 = vmatmul.mubr.msk.bf16.gmra.mrb[4].mxu0 %vm15032_vm3, %v3123_v8  ;;  %v15073_v8 = vld [vmem:[#allocation43_spill] sm:$0xff] }
  0xe2   : > { %8158 = vmatprep.mubr.msk.bf16.mxu0 %vm15062_vm11, %v3124_v2  ;;  %vm15072_vm11 = vmmov %vm15032_vm3  ;;  %v1621_v2 = vsel %vm15075_vm9, %v15073_v8, 0.0  ;;  %v15118_v8 = vld [vmem:[#allocation58_spill] sm:$0xff] }
  0xe3   : > { %8043 = vmatmul.mubr.msk.bf16.gmra.mrb[28].mxu1 %vm15068_vm6, %v2147_v24  ;;  %v15079_v24 = vld [vmem:[#allocation63_spill] sm:$0xff]  ;;  %vm15080_vm6 = vmmov %vm15032_vm3  ;;  %v3127_v9 = vpack.c.bf16 %v15081_v42, %v1621_v2  ;;  %v15121_v2 = vld [vmem:[#allocation66_spill] sm:$0xff] }
  0xe4   : > { %8068 = vmatprep.mubr.msk.bf16.mxu1 %vm15070_vm4, %v9692_v41  ;;  %vm15082_vm4 = vmmov %vm15032_vm3  ;;  %v3128_v41 = vpack.c.bf16 %v14934_v11, %v1623_v15  ;;  %v15091_v11 = vld [vmem:[#allocation11_spill] sm:$0xff]  ;;  %v3580_v15 = vpack.c.bf16 %v1640_v25, %v14963_v50 }
  0xe5   : > { %vm15084_vm9 = vmmov %vm15032_vm3 }
  0xe9   : > { %8159 = vmatmul.mubr.msk.bf16.gmra.mrb[8].mxu0 %vm15032_vm3, %v3125_v49  ;;  %v15109_v49 = vld [vmem:[#allocation42_spill] sm:$0xff] }
  0xea   : > { %8162 = vmatprep.mubr.msk.bf16.mxu0 %vm15072_vm11, %v3126_v0  ;;  %vm15083_vm11 = vmmov %vm15032_vm3  ;;  %v15116_v0 = vld [vmem:[#allocation53_spill] sm:$0xff] }
  0xeb   : > { %8069 = vmatmul.mubr.msk.bf16.vlgmr.msra.gmra.mrb[20].mxu1 %vm15080_vm6, %v15079_v24  ;;  %vm15087_vm6 = vmmov %vm15032_vm3  ;;  %v15123_v24 = vmov 0.0|0.0  }
  0xec   : > { %8072 = vmatprep.mubr.msk.bf16.mxu1 %vm15082_vm4, %v9694_v39  ;;  %vm15088_vm4 = vmmov %vm15032_vm3  ;;  %v15092_v39 = vrot.slane %v9641_v46, 7  ;;  %v15099_v46 = vld [vmem:[#allocation20_spill] sm:$0xff] }
  0xf1   : > { %8163 = vmatmul.mubr.msk.bf16.gmra.mrb[12].mxu0 %vm15032_vm3, %v3127_v9  ;;  %vm15090_vm3 = vmmov %vm15089_vm0  ;;  %v15125_v9 = vld [vmem:[#allocation68_spill] sm:$0xff] }
  0xf2   : > { %8166 = vmatprep.mubr.msk.bf16.mxu0 %vm15083_vm11, %v3128_v41  ;;  %vm15097_vm11 = vmmov %vm15089_vm0 }
  0xf3   : > { %8073 = vmatmul.mubr.msk.bf16.gmra.mrb[24].mxu1 %vm15084_vm9, %v9715_v38  ;;  %vm15093_vm9 = vcmask 1040384  }
  0xf4   : > { %8076 = vmatprep.mubr.msk.bf16.mxu1 %vm15085_vm8, %v9723_v56  ;;  %v1605_v38 = vsel %vm15093_vm9, %v15092_v39, %v15091_v11  ;;  %vm15094_vm8 = vmmov %vm15089_vm0  ;;  %v15096_v56 = vld [vmem:[#allocation17_spill] sm:$0xff] }
  0xf5   : > { %vm15104_vm9 = vmmov %vm15089_vm0  ;;  %v15133_v39 = vld [vmem:[#allocation13_spill] sm:$0xff] }
  0xf9   : > { %8167 = vmatmul.mubr.msk.bf16.gmra.mrb[16].mxu0 %vm15086_vm10, %v9717_v36  ;;  %vm15095_vm10 = vmmov %vm15089_vm0 }
  0xfa   : > { %8170 = vmatprep.mubr.msk.bf16.mxu0 %vm15087_vm6, %v9736_v28  ;;  %v1637_v28 = vsel %vm9711_vm12, %v1605_v38, 0.0  ;;  %vm15098_vm6 = vcmask 1043456   ;;  %v15135_v38 = vld [vmem:[#allocation70_spill] sm:$0xff] }
  0xfb   : > { %8077 = vmatmul.mubr.msk.bf16.gmra.mrb[28].mxu1 %vm15088_vm4, %v9743_v40  ;;  %v3135_v36 = vpack.c.bf16 %v15091_v11, %v1637_v28  ;;  %vm15100_vm4 = vmmov %vm15089_vm0  ;;  %v15101_v40 = vld [vmem:[#allocation25_spill] sm:$0xff] }
 0x101   : > { %8171 = vmatmul.mubr.msk.bf16.gmra.mrb[20].mxu0 %vm15089_vm0, %v9745_v59  ;;  %v15105_v59 = vld [vmem:[#allocation34_spill] sm:$0xff] }
 0x102   : > { %8174 = vmatprep.mubr.msk.bf16.mxu0 %vm15090_vm3, %v9747_v26  ;;  %v3647_v26 = vsel %vm15098_vm6, %v7602_v53, 0  ;;  %vm15102_vm3 = vmmov %vm15089_vm0  ;;  %v15110_v53 = vld [vmem:[#allocation49_spill] sm:$0xff] }
 0x103   : > { %vm15113_vm6 = vmmov %vm15089_vm0 }
 0x109   : > { %8175 = vmatmul.mubr.msk.bf16.gmra.mrb[24].mxu0 %vm15094_vm8, %v9756_v31  ;;  %v15103_v31 = vld [vmem:[#allocation30_spill] sm:$0xff]  ;;  %vm15106_vm8 = vmmov %vm15089_vm0 }
 0x10a   : > { %8178 = vmatprep.mubr.msk.bf16.mxu0 %vm15095_vm10, %v9760_v20  ;;  %v15107_v20 = vld [vmem:[#allocation41_spill] sm:$0xff]  ;;  %vm15108_vm10 = vmmov %vm15089_vm0 }
 0x111   : > { %8179 = vmatmul.mubr.msk.bf16.gmra.mrb[28].mxu0 %vm15089_vm0, %v3135_v36  ;;  %v15136_v36 = vld [vmem:[#allocation72_spill] sm:$0xff] }
 0x112   : > { %8184 = vmatprep.mubr.msk.bf16.mxu0 %vm15097_vm11, %v15096_v56  ;;  %vm15111_vm11 = vmmov %vm15089_vm0  ;;  %v15141_v56 = vld [vmem:[#allocation73_spill] sm:$0xff] }
 0x119   : > { %8185 = vmatmul.mubr.msk.bf16.vlgmr.msra.gmra.mrb[0].mxu0 %vm15100_vm4, %v15099_v46  ;;  %vm15115_vm4 = vmmov %vm15089_vm0 }
 0x11a   : > { %8188 = vmatprep.mubr.msk.bf16.mxu0 %vm15102_vm3, %v15101_v40  ;;  %8217 = vmatpush3.bf16.msra.mxu0 %v3647_v26  ;;  %vm15117_vm3 = vmmov %vm15089_vm0  ;;  %v15142_v26 = vld [vmem:[#allocation84_spill] sm:$0xff]  ;;  %v15146_v40 = vld [vmem:[#allocation62_spill] sm:$0xff] }
 0x121   : > { %8189 = vmatmul.mubr.msk.bf16.gmra.mrb[4].mxu0 %vm15104_vm9, %v15103_v31  ;;  %vm15119_vm9 = vmmov %vm15089_vm0 }
 0x122   : > { %8192 = vmatprep.mubr.msk.bf16.mxu0 %vm15106_vm8, %v15105_v59  ;;  %vm15120_vm8 = vmmov %vm15089_vm0  ;;  %v15148_v59 = vld [vmem:[#allocation8_spill] sm:$0xff] }
 0x129   : > { %8193 = vmatmul.mubr.msk.bf16.gmra.mrb[8].mxu0 %vm15108_vm10, %v15107_v20  ;;  %vm15122_vm10 = vmmov %vm15089_vm0 }
 0x12a   : > { %8196 = vmatprep.mubr.msk.bf16.mxu0 %vm15089_vm0, %v15109_v49 }
 0x131   : > { %8197 = vmatmul.mubr.msk.bf16.gmra.mrb[12].mxu0 %vm15111_vm11, %v15110_v53  ;;  %vm15124_vm11 = vmmov %vm15089_vm0 }
 0x132   : > { %8200 = vmatprep.mubr.msk.bf16.mxu0 %vm15113_vm6, %v15112_v7  ;;  %vm15126_vm6 = vmmov %vm15089_vm0  ;;  %v1666_v7 = vsel %vm9933_vm5, %v15023_v61, 0.0  ;;  %v15156_v61 = vld [vmem:[#allocation22_spill] sm:$0xff] }
 0x139   : > { %8201 = vmatmul.mubr.msk.bf16.gmra.mrb[16].mxu0 %vm15115_vm4, %v15114_v57  ;;  %vm15127_vm4 = vmmov %vm15089_vm0  ;;  %v15154_v57 = vld [vmem:[#allocation78_spill] sm:$0xff] }
 0x13a   : > { %8204 = vmatprep.mubr.msk.bf16.mxu0 %vm15117_vm3, %v15116_v0  ;;  %vm15128_vm3 = vnez %v14970_v48 }
 0x13b   : > { %v1648_v30 = vsel %vm15128_vm3, %v9498_v51, 0.0 }
 0x13c   : > { %v3584_v41 = vpack.c.bf16 %v1648_v30, %v9491_v16 }
 0x141   : > { %8205 = vmatmul.mubr.msk.bf16.gmra.mrb[20].mxu0 %vm15119_vm9, %v15118_v8  ;;  %vm15129_vm9 = vmmov %vm15089_vm0 }
 0x142   : > { %8208 = vmatprep.mubr.msk.bf16.mxu0 %vm15120_vm8, %v9379_v1  ;;  %v1644_v1 = vsel %vm9442_vm2, %v9464_v62, 0.0  ;;  %vm15130_vm8 = vmmov %vm15089_vm0  ;;  %v15131_v62 = vld [vmem:[#allocation60_spill] sm:$0xff] }
 0x143   : > { %v3582_v42 = vpack.c.bf16 %v1644_v1, %v9449_v21 }
 0x149   : > { %8209 = vmatmul.mubr.msk.bf16.gmra.mrb[24].mxu0 %vm15122_vm10, %v15121_v2  ;;  %vm15132_vm10 = vnez %v15131_v62 }
 0x14a   : > { %8212 = vmatprep.mubr.msk.bf16.mxu0 %vm15089_vm0, %v9662_v33  ;;  %v1646_v33 = vsel %vm9509_vm1, %v9487_v12, 0.0  ;;  %v1650_v21 = vsel %vm15132_vm10, %v9516_v43, 0.0  ;;  %vm15134_vm0 = vnez %v15133_v39 }
 0x14b   : > { %v3583_v50 = vpack.c.bf16 %v1646_v33, %v9472_v32  ;;  %v1652_v12 = vsel %vm15134_vm0, %v9525_v18, 0.0  ;;  %v3585_v28 = vpack.c.bf16 %v1650_v21, %v15135_v38  ;;  %v15139_v32 = vld [vmem:[#allocation83_spill] sm:$0xff] }
 0x14c   : > { %v3586_v51 = vpack.c.bf16 %v1652_v12, %v15136_v36 }
 0x151   : > { %8213 = vmatmul.mubr.bf16.gmra.mrb[28].mxu0 %v15123_v24 }
 0x152   : > { %8218 = vmatprep.mubr.msk.bf16.mxu0 %vm15124_vm11, %v3580_v15  ;;  %vm15137_vm11 = vmmov %vm15127_vm4 }
 0x159   : > { %8219 = vmatmul.mubr.msk.bf16.vlgmr.msra.gmra.mrb[0].mxu0 %vm15126_vm6, %v15125_v9  ;;  %vm15138_vm6 = vmmov %vm15127_vm4 }
 0x15a   : > { %8222 = vmatprep.mubr.msk.bf16.mxu0 %vm15127_vm4, %v3582_v42  ;;  %vm15140_vm4 = vnez %v15139_v32  ;;  %vm15145_vm12 = vmmov %vm15138_vm6 }
 0x15b   : > { %v1654_v16 = vsel %vm15140_vm4, %v9546_v10, 0.0 }
 0x15c   : > { %v3587_v46 = vpack.c.bf16 %v1654_v16, %v9536_v58  ;;  %v1662_v58 = vsel %vm9903_vm13, %v9597_v4, 0.0 }
 0x161   : > { %8223 = vmatmul.mubr.msk.bf16.gmra.mrb[4].mxu0 %vm15129_vm9, %v3583_v50  ;;  %vm15143_vm9 = vnez %v15142_v26 }
 0x162   : > { %8226 = vmatprep.mubr.msk.bf16.mxu0 %vm15130_vm8, %v3584_v41  ;;  %v1656_v43 = vsel %vm15143_vm9, %v15141_v56, 0.0  ;;  %vm15144_vm8 = vmmov %vm15138_vm6 }
 0x163   : > { %v3588_v18 = vpack.c.bf16 %v1656_v43, %v9553_v54  ;;  %vm15150_vm9 = vmmov %vm15144_vm8  ;;  %v1664_v54 = vsel %vm9909_vm15, %v15022_v35, 0.0  ;;  %v1668_v35 = vsel %vm9939_vm7, %v9969_v55, 0.0  ;;  %vm15195_vm15 = vcmask 1046528  }
 0x164   : > { %vm15151_vm4 = vmmov %vm15144_vm8 }
 0x165   : > { %vm15197_vm13 = vmmov %vm15195_vm15 }
 0x169   : > { %8227 = vmatmul.mubr.msk.bf16.gmra.mrb[8].mxu0 %vm15137_vm11, %v3585_v28  ;;  %vm15147_vm11 = vnez %v15146_v40 }
 0x16a   : > { %8230 = vmatprep.mubr.msk.bf16.mxu0 %vm15138_vm6, %v3586_v51  ;;  %v1658_v31 = vsel %vm15147_vm11, %v9571_v29, 0.0  ;;  %vm15149_vm6 = vnez %v15148_v59  ;;  %v3591_v29 = vpack.c.bf16 %v1662_v58, %v9589_v47  ;;  %v3593_v47 = vpack.c.bf16 %v1666_v7, %v15027_v14  ;;  %v10273_v7 = vld [vmem:[%s15176_s2 + $0x1] ss:$0 sm:$0xff] }
 0x16b   : > { %v1660_v10 = vsel %vm15149_vm6, %v9581_v5, 0.0  ;;  %v3589_v20 = vpack.c.bf16 %v1658_v31, %v9562_v3  ;;  %v3592_v5 = vpack.c.bf16 %v1664_v54, %v15025_v6  ;;  %v3594_v6 = vpack.c.bf16 %v1668_v35, %v15154_v57  ;;  %v5059_v54 = vld [vmem:[%s15173_s5] sm:$0xf]  ;;  %v15177_v35 = vld [vmem:[#allocation65_spill] sm:$0xff]  ;;  %s593_s5 = sand.u32 1, %s8738_s30  }
 0x16c   : > { %v3590_v49 = vpack.c.bf16 %v1660_v10, %v9578_v37  ;;  %v4406_v57 = vmul.f32 0.0, %v10273_v7  ;;  %vm15221_vm6 = vcmask 1046528   ;;  %s594_s20 = scalar_lea.vmem [#allocation2], %s593_s5  ;;  %s7396_s28 = scalar_lea.sflag [#allocation3], %s593_s5 }
 0x16d   : > { %vm15224_vm11 = vmmov %vm15221_vm6  ;;  %s7408_s25 = sshll.u32 %s594_s20, 4  ;;  %s14299_s25 = int_to_ptr.vmem [resolvable:$true] %s7408_s25 }
 0x171   : > { %8231 = vmatmul.mubr.msk.bf16.gmra.mrb[12].mxu0 %vm15144_vm8, %v3587_v46  ;;  %vm15155_vm8 = vmmov %vm15151_vm4 }
 0x172   : > { %8234 = vmatprep.mubr.msk.bf16.mxu0 %vm15145_vm12, %v3588_v18  ;;  %vm15152_vm12 = vmmov %vm15151_vm4 }
 0x179   : > { %8235 = vmatmul.mubr.msk.bf16.gmra.mrb[16].mxu0 %vm15150_vm9, %v3589_v20  ;;  %vm15153_vm9 = vmmov %vm15151_vm4 }
 0x17a   : > { %8238 = vmatprep.mubr.msk.bf16.mxu0 %vm15151_vm4, %v3590_v49 }
 0x17e   : > { %v8016_v53 = vpop.f32.mrb[0].mxu1 }
 0x17f   : > { %v2235_v3 = vpop.f32.mrb[1].mxu1 }
 0x180   : > { %v8017_v37 = vpop.f32.mrb[2].mxu1 }
 0x181   : > { %8239 = vmatmul.mubr.msk.bf16.gmra.mrb[20].mxu0 %vm15152_vm12, %v3591_v29  ;;  %v2238_v4 = vpop.f32.mrb[3].mxu1  ;;  %vm15157_vm12 = vnez %v15029_v34 }
 0x182   : > { %8242 = vmatprep.mubr.msk.bf16.mxu0 %vm15153_vm9, %v3592_v5  ;;  %v10205_v25 = vsel %vm15157_vm12, %v15156_v61, 0.0  ;;  %vm15159_vm9 = vmmov %vm15151_vm4  ;;  %v10268_v5 = vld [vmem:[%s15176_s2] ss:$0 sm:$0xff] }
 0x183   : > { %15158 = vst [vmem:[#allocation75_spill] sm:$0xff] %v10205_v25  ;;  %v3595_v14 = vpack.c.bf16 %v10205_v25, %v15156_v61  ;;  %v4335_v25 = vmul.f32 %v10268_v5, %v15091_v11 }
 0x186   : > { %v10194_v0 = vpop.f32.mrb[4].mxu1 }
 0x187   : > { %v10196_v8 = vpop.f32.mrb[5].mxu1 }
 0x188   : > { %v10199_v2 = vpop.f32.mrb[6].mxu1 }
 0x189   : > { %8243 = vmatmul.mubr.msk.bf16.gmra.mrb[24].mxu0 %vm15151_vm4, %v3593_v47  ;;  %v10207_v55 = vpop.f32.mrb[7].mxu1  ;;  %vm15174_vm4 = vcmask 1043456   ;;  %v4334_v47 = vmul.f32 %v10268_v5, %v15177_v35 }
 0x18a   : > { %8246 = vmatprep.mubr.msk.bf16.mxu0 %vm15155_vm8, %v3594_v6  ;;  %8599 = vmatprep.subr.msk.bf16.mxu1 %vm15174_vm4, %v5059_v54  ;;  %vm15175_vm8 = vmmov %vm15174_vm4  ;;  %v10281_v6 = vld [vmem:[%s15176_s2 + $0x2] ss:$0 sm:$0xff]  ;;  %vm15182_vm4 = vcmask 1046528  }
 0x18b   : > { %v5116_v29 = vsel %vm15175_vm8, %v5059_v54, 0  ;;  %v10286_v54 = vld [vmem:[%s15178_s27] ss:$0 sm:$0xff]  ;;  %v4437_v13 = vadd.f32 %v4406_v57, %v4334_v47  ;;  %v4477_v27 = vmul.f32 %v10281_v6, %v15156_v61 }
 0x18c   : > { %8251 = vmatpush3.bf16.msra.mxu1 %v5116_v29 }
 0x18d   : > { %v4509_v26 = vadd.f32 %v4477_v27, %v4437_v13  ;;  %v10319_v13 = vld [vmem:[%s15176_s2 + $0x3] ss:$0 sm:$0xff] }
 0x18e   : > { %v10211_v15 = vpop.f32.mrb[8].mxu1 }
 0x18f   : > { %v10213_v1 = vpop.f32.mrb[9].mxu1 }
 0x190   : > { %v10216_v42 = vpop.f32.mrb[10].mxu1 }
 0x191   : > { %8247 = vmatmul.mubr.msk.bf16.gmra.mrb[28].mxu0 %vm15159_vm9, %v3595_v14  ;;  %v10218_v9 = vpop.f32.mrb[11].mxu1  ;;  %vm15181_vm9 = vcmask 1040384  }
 0x196   : > { %v10220_v33 = vpop.f32.mrb[12].mxu1 }
 0x197   : > { %v10222_v30 = vpop.f32.mrb[13].mxu1 }
 0x198   : > { %v10224_v50 = vpop.f32.mrb[14].mxu1 }
 0x199   : > { %v10226_v41 = vpop.f32.mrb[15].mxu1 }
 0x19e   : > { %v10228_v21 = vpop.f32.mrb[16].mxu1 }
 0x19f   : > { %v10230_v12 = vpop.f32.mrb[17].mxu1 }
 0x1a0   : > { %v10232_v38 = vpop.f32.mrb[18].mxu1 }
 0x1a1   : > { %v10234_v28 = vpop.f32.mrb[19].mxu1 }
 0x1a2   : > { %15160 = vst [vmem:[#allocation77_spill] sm:$0xff] %v10234_v28 }
 0x1be   : > { %v10236_v36 = vpop.f32.mrb[20].mxu1 }
 0x1bf   : > { %15161 = vst [vmem:[#allocation74_spill] sm:$0xff] %v10236_v36  ;;  %v10238_v51 = vpop.f32.mrb[21].mxu1 }
 0x1c0   : > { %15162 = vst [vmem:[#allocation18_spill] sm:$0xff] %v10238_v51  ;;  %v10240_v16 = vpop.f32.mrb[22].mxu1 }
 0x1c1   : > { %15163 = vst [vmem:[#allocation19_spill] sm:$0xff] %v10240_v16  ;;  %v10242_v56 = vpop.f32.mrb[23].mxu1 }
 0x1c2   : > { %15164 = vst [vmem:[#allocation26_spill] sm:$0xff] %v10242_v56 }
 0x1c6   : > { %v10244_v43 = vpop.f32.mrb[24].mxu1 }
 0x1c7   : > { %15165 = vst [vmem:[#allocation27_spill] sm:$0xff] %v10244_v43  ;;  %v10246_v46 = vpop.f32.mrb[25].mxu1 }
 0x1c8   : > { %15166 = vst [vmem:[#allocation23_spill] sm:$0xff] %v10246_v46  ;;  %v10248_v18 = vpop.f32.mrb[26].mxu1 }
 0x1c9   : > { %15167 = vst [vmem:[#allocation28_spill] sm:$0xff] %v10248_v18  ;;  %v10250_v31 = vpop.f32.mrb[27].mxu1 }
 0x1ca   : > { %15168 = vst [vmem:[#allocation33_spill] sm:$0xff] %v10250_v31  ;;  %v15185_v31 = vld [vmem:[#allocation14_spill] sm:$0xff] }
 0x1cb   : > { %vm15186_vm7 = vnez %v15185_v31 }
 0x1ce   : > { %v10252_v10 = vpop.f32.mrb[28].mxu1 }
 0x1cf   : > { %15169 = vst [vmem:[#allocation29_spill] sm:$0xff] %v10252_v10  ;;  %v10254_v20 = vpop.f32.mrb[29].mxu1  ;;  %v15183_v10 = vld [vmem:[#allocation16_spill] sm:$0xff] }
 0x1d0   : > { %15170 = vst [vmem:[#allocation35_spill] sm:$0xff] %v10254_v20  ;;  %v10256_v49 = vpop.f32.mrb[30].mxu1  ;;  %vm15184_vm8 = vnez %v15183_v10 }
 0x1d1   : > { %15171 = vst [vmem:[#allocation36_spill] sm:$0xff] %v10256_v49  ;;  %v10258_v58 = vpop.f32.mrb[31].mxu1 }
 0x1d2   : > { %15172 = vst [vmem:[#allocation40_spill] sm:$0xff] %v10258_v58 }
 0x22c   : > { %v8220_v14 = vpop.f32.mrb[0].mxu0 }
 0x22d   : > { %v8333_v29 = vadd.f32 %v8220_v14, %v8016_v53  ;;  %v3683_v24 = vpop.f32.mrb[1].mxu0  ;;  %v4438_v14 = vadd.f32 %v4406_v57, %v4335_v25 }
 0x22e   : > { %v8334_v60 = vadd.f32 %v3683_v24, %v2235_v3  ;;  %v8221_v35 = vpop.f32.mrb[2].mxu0  ;;  %v10300_v24 = vld [vmem:[%s15176_s2 + $0x4] ss:$0 sm:$0xff] }
 0x22f   : > { %v3851_v19 = vadd.f32 %v8333_v29, %v10286_v54  ;;  %v8335_v59 = vadd.f32 %v8221_v35, %v8017_v37  ;;  %v3686_v40 = vpop.f32.mrb[3].mxu0 }
 0x230   : > { %v3849_v58 = vadd.f32 %v8334_v60, %v10286_v54  ;;  %v8336_v34 = vadd.f32 %v3686_v40, %v2238_v4 }
 0x231   : > { %v10294_v44 = vmax.f32 %v3851_v19, 0.0  ;;  %v3852_v53 = vadd.f32 %v8335_v59, %v10286_v54 }
 0x232   : > { %v3881_v3 = vmax.f32 %v3849_v58, 0.0  ;;  %v3850_v47 = vadd.f32 %v8336_v34, %v10286_v54  ;;  %v10314_v34 = vld [vmem:[%s15176_s2 + $0x7] ss:$0 sm:$0xff] }
 0x233   : > { %15179 = vst [vmem:[#allocation37_spill] sm:$0xff] %v10294_v44  ;;  %v3947_v37 = vrot.slane %v10294_v44, 7  ;;  %v4409_v59 = vmul.f32 %v10273_v7, %v10294_v44  ;;  %v10309_v4 = vmul.f32 %v10300_v24, %v10294_v44  ;;  %v10321_v27 = vmax.f32 %v3852_v53, 0.0 }
 0x234   : > { %v3943_v60 = vrot.slane %v3881_v3, 7  ;;  %v4064_v40 = vrot.slane %v3881_v3, 1  ;;  %v8224_v19 = vpop.f32.mrb[4].mxu0  ;;  %v3882_v35 = vmax.f32 %v3850_v47, 0.0 }
 0x235   : > { %15180 = vst [vmem:[#allocation44_spill] sm:$0xff] %v10309_v4  ;;  %v8337_v25 = vadd.f32 %v8224_v19, %v10194_v0  ;;  %v3699_v58 = vpop.f32.mrb[5].mxu0  ;;  %v14572_v19 = vrot.slane %v10321_v27, 7  ;;  %v4624_v62 = vmul.f32 %v10300_v24, %v10321_v27 }
 0x236   : > { %v3944_v57 = vsel %vm15181_vm9, %v15091_v11, %v3943_v60  ;;  %v4065_v29 = vsel %vm15182_vm4, %v15156_v61, %v4064_v40  ;;  %v8338_v49 = vadd.f32 %v3699_v58, %v10196_v8  ;;  %v8225_v20 = vpop.f32.mrb[6].mxu0  ;;  %v10338_v11 = vmul.f32 %v10314_v34, %v10294_v44  ;;  %vm15191_vm4 = vmmov %vm15181_vm9 }
 0x237   : > { %v4033_v32 = vsel %vm15184_vm8, %v3944_v57, 0.0  ;;  %v4157_v53 = vsel %vm9354_vm14, %v4065_v29, 0.0  ;;  %v4195_v0 = vsel %vm15186_vm7, %v3944_v57, 0.0  ;;  %v3702_v39 = vpop.f32.mrb[7].mxu0  ;;  %v4407_v61 = vmul.f32 %v10273_v7, %v3881_v3 }
 0x238   : > { %15187 = vst [vmem:[#allocation43_spill] sm:$0xff] %v10338_v11  ;;  %v4336_v47 = vmul.f32 %v10268_v5, %v4033_v32  ;;  %v4478_v8 = vmul.f32 %v10281_v6, %v4157_v53  ;;  %v4549_v58 = vmul.f32 %v10319_v13, %v4195_v0  ;;  %v4621_v29 = vmul.f32 %v10300_v24, %v3881_v3  ;;  %v15193_v11 = vld [vmem:[#allocation21_spill] sm:$0xff] }
 0x239   : > { %v10348_v57 = vsel %vm15181_vm9, %v3947_v37, %v14572_v19  ;;  %v4410_v32 = vmul.f32 %v10273_v7, %v10321_v27  ;;  %v3945_v53 = vrot.slane %v3882_v35, 7  ;;  %v4066_v3 = vrot.slane %v3882_v35, 1  ;;  %vm15192_vm9 = vmmov %vm15191_vm4 }
 0x23a   : > { %15188 = vst [vmem:[#allocation48_spill] sm:$0xff] %v10348_v57  ;;  %v4581_v46 = vadd.f32 %v4549_v58, %v4509_v26  ;;  %v4339_v43 = vmul.f32 %v10268_v5, %v10348_v57  ;;  %v4439_v0 = vadd.f32 %v4407_v61, %v4336_v47  ;;  %v4510_v56 = vadd.f32 %v4478_v8, %v4438_v14  ;;  %vm15281_vm12 = vmmov %vm15192_vm9 }
 0x23b   : > { %v3946_v18 = vsel %vm15191_vm4, %v3943_v60, %v3945_v53  ;;  %v10363_v26 = vsel %vm15192_vm9, %v3945_v53, %v3947_v37  ;;  %vm15194_vm5 = vnez %v15193_v11  ;;  %v4067_v61 = vsel %vm15195_vm15, %v4064_v40, %v4066_v3  ;;  %v15198_v60 = vld [vmem:[#allocation59_spill] sm:$0xff] }
 0x23c   : > { %v10357_v48 = vadd.f32 %v4621_v29, %v4581_v46  ;;  %v10359_v19 = vadd.f32 %v4410_v32, %v4339_v43  ;;  %v8228_v58 = vpop.f32.mrb[8].mxu0  ;;  %v4035_v16 = vsel %vm15194_vm5, %v10363_v26, 0.0  ;;  %v15196_v47 = vrot.slane %v10294_v44, 1 }
 0x23d   : > { %v4197_v43 = vsel %vm15184_vm8, %v10363_v26, 0.0  ;;  %v3715_v46 = vpop.f32.mrb[9].mxu0  ;;  %vm15199_vm4 = vnez %v15198_v60  ;;  %v4337_v29 = vmul.f32 %v10268_v5, %v3946_v18  ;;  %v4408_v32 = vmul.f32 %v10273_v7, %v3882_v35 }
 0x23e   : > { %15189 = vst [vmem:[#allocation63_spill] sm:$0xff] %v10357_v48  ;;  %15190 = vst [vmem:[#allocation46_spill] sm:$0xff] %v10359_v19  ;;  %v4069_v14 = vsel %vm15197_vm13, %v4066_v3, %v15196_v47  ;;  %v10381_v40 = vpop.f32.mrb[10].mxu0  ;;  %v4338_v53 = vmul.f32 %v10268_v5, %v4035_v16  ;;  %v4479_v3 = vmul.f32 %v10281_v6, %v4067_v61  ;;  %v10396_v16 = vld [vmem:[%s15176_s2 + $0x5] ss:$0 sm:$0xff] }
 0x23f   : > { %v4159_v37 = vsel %vm15199_vm4, %v4069_v14, 0.0  ;;  %v4233_v8 = vsel %vm9354_vm14, %v4069_v14, 0.0  ;;  %v4550_v51 = vmul.f32 %v10319_v13, %v3946_v18  ;;  %v10387_v36 = vpop.f32.mrb[11].mxu0  ;;  %v4440_v28 = vadd.f32 %v4408_v32, %v4337_v29  ;;  %vm15205_vm13 = vmmov %vm15192_vm9 }
 0x240   : > { %v4480_v47 = vmul.f32 %v10281_v6, %v4159_v37  ;;  %v4551_v48 = vmul.f32 %v10319_v13, %v4197_v43  ;;  %v4552_v14 = vmul.f32 %v10319_v13, %v10348_v57  ;;  %v4622_v19 = vmul.f32 %v10300_v24, %v3882_v35 }
 0x241   : > { %v10398_v4 = vadd.f32 %v4409_v59, %v4338_v53  ;;  %v4511_v37 = vadd.f32 %v4479_v3, %v4439_v0  ;;  %v4582_v17 = vadd.f32 %v4550_v51, %v4510_v56  ;;  %v4694_v18 = vmul.f32 %v10396_v16, %v4233_v8 }
 0x242   : > { %v4512_v45 = vadd.f32 %v4480_v47, %v4440_v28  ;;  %v3855_v29 = vadd.f32 %v8337_v25, %v10286_v54  ;;  %v3853_v43 = vadd.f32 %v8338_v49, %v10286_v54  ;;  %v8339_v32 = vadd.f32 %v8225_v20, %v10199_v2 }
 0x243   : > { %v10404_v57 = vadd.f32 %v4551_v48, %v4511_v37  ;;  %v4654_v35 = vadd.f32 %v4622_v19, %v4582_v17  ;;  %v8340_v63 = vadd.f32 %v3702_v39, %v10207_v55  ;;  %v8341_v44 = vadd.f32 %v8228_v58, %v10211_v15 }
 0x244   : > { %v4584_v59 = vadd.f32 %v4552_v14, %v4512_v45  ;;  %v10408_v53 = vmax.f32 %v3855_v29, 0.0  ;;  %v10410_v51 = vmax.f32 %v3853_v43, 0.0  ;;  %v3856_v28 = vadd.f32 %v8339_v32, %v10286_v54  ;;  %v10413_v56 = vpop.f32.mrb[12].mxu0 }
 0x245   : > { %v10417_v49 = vmul.f32 %v10314_v34, %v10321_v27  ;;  %v10419_v48 = vadd.f32 %v4694_v18, %v4654_v35  ;;  %v3854_v17 = vadd.f32 %v8340_v63, %v10286_v54  ;;  %v8342_v39 = vadd.f32 %v3715_v46, %v10213_v1  ;;  %v10423_v2 = vpop.f32.mrb[13].mxu0  ;;  %v15207_v18 = vld [vmem:[#allocation24_spill] sm:$0xff] }
 0x246   : > { %15200 = vst [vmem:[#allocation17_spill] sm:$0xff] %v10408_v53  ;;  %v10428_v55 = vadd.f32 %v4624_v62, %v4584_v59  ;;  %v10431_v15 = vmul.f32 %v10396_v16, %v4067_v61  ;;  %v3859_v20 = vadd.f32 %v8341_v44, %v10286_v54  ;;  %v10434_v25 = vpop.f32.mrb[14].mxu0  ;;  %v3955_v19 = vrot.slane %v10408_v53, 7 }
 0x247   : > { %v10440_v1 = vmul.f32 %v10273_v7, %v10408_v53  ;;  %v3951_v0 = vrot.slane %v10410_v51, 7  ;;  %v10443_v58 = vpop.f32.mrb[15].mxu0  ;;  %v10447_v62 = vmul.f32 %v10300_v24, %v10408_v53  ;;  %v10451_v44 = vmul.f32 %v10314_v34, %v10408_v53 }
 0x248   : > { %v10454_v46 = vmax.f32 %v3856_v28, 0.0  ;;  %v15204_v8 = vrot.slane %v10321_v27, 7  ;;  %v4411_v47 = vmul.f32 %v10273_v7, %v10410_v51  ;;  %v10463_v14 = vmul.f32 %v10300_v24, %v10410_v51  ;;  %v10476_v28 = vld [vmem:[%s15176_s2 + $0x6] ss:$0 sm:$0xff] }
 0x249   : > { %15201 = vst [vmem:[#allocation20_spill] sm:$0xff] %v10440_v1  ;;  %15202 = vst [vmem:[#allocation25_spill] sm:$0xff] %v10447_v62  ;;  %v3886_v37 = vmax.f32 %v3854_v17, 0.0  ;;  %vm15208_vm15 = vnez %v15207_v18  ;;  %v10480_v17 = vmul.f32 %v10314_v34, %v10410_v51  ;;  %v3857_v45 = vadd.f32 %v8342_v39, %v10286_v54 }
 0x24a   : > { %15203 = vst [vmem:[#allocation30_spill] sm:$0xff] %v10451_v44  ;;  %v3952_v3 = vsel %vm15205_vm13, %v15204_v8, %v3951_v0  ;;  %15206 = vst [vmem:[#allocation34_spill] sm:$0xff] %v10463_v14  ;;  %v14585_v35 = vrot.slane %v10454_v46, 7  ;;  %v10482_v8 = vmax.f32 %v3859_v20, 0.0  ;;  %v4414_v20 = vmul.f32 %v10273_v7, %v10454_v46 }
 0x24b   : > { %v4037_v29 = vsel %vm15208_vm15, %v3952_v3, 0.0  ;;  %v4199_v43 = vsel %vm15194_vm5, %v3952_v3, 0.0  ;;  %v4268_v32 = vsel %vm15184_vm8, %v3952_v3, 0.0  ;;  %15209 = vst [vmem:[#allocation41_spill] sm:$0xff] %v10480_v17  ;;  %vm15216_vm13 = vmmov %vm15192_vm9  ;;  %v10559_v18 = vmul.f32 %v10314_v34, %v3886_v37 }
 0x24c   : > { %v4340_v59 = vmul.f32 %v10268_v5, %v4037_v29  ;;  %v10486_v63 = vmul.f32 %v10319_v13, %v4199_v43  ;;  %v10489_v3 = vmul.f32 %v10476_v28, %v4268_v32  ;;  %v10494_v29 = vsel %vm15192_vm9, %v3955_v19, %v14585_v35  ;;  %v10497_v10 = vpop.f32.mrb[16].mxu0 }
 0x24d   : > { %15211 = vst [vmem:[#allocation49_spill] sm:$0xff] %v10494_v29  ;;  %v4343_v39 = vmul.f32 %v10268_v5, %v10494_v29  ;;  %v3953_v43 = vrot.slane %v3886_v37, 7  ;;  %v10505_v32 = vpop.f32.mrb[17].mxu0  ;;  %v4556_v44 = vmul.f32 %v10319_v13, %v10494_v29  ;;  %v10511_v35 = vmul.f32 %v10300_v24, %v10454_v46  ;;  %15228 = vst [vmem:[#allocation78_spill] sm:$0xff] %v10559_v18 }
 0x24e   : > { %15210 = vst [vmem:[#allocation42_spill] sm:$0xff] %v10486_v63  ;;  %v10499_v62 = vadd.f32 %v4411_v47, %v4340_v59  ;;  %v10515_v47 = vmul.f32 %v10314_v34, %v10454_v46  ;;  %v4074_v59 = vrot.slane %v3886_v37, 1  ;;  %v10517_v61 = vpop.f32.mrb[18].mxu0  ;;  %v4412_v29 = vmul.f32 %v10273_v7, %v3886_v37 }
 0x24f   : > { %15213 = vst [vmem:[#allocation52_spill] sm:$0xff] %v10511_v35  ;;  %v3954_v14 = vsel %vm15216_vm13, %v3951_v0, %v3953_v43  ;;  %v10523_v63 = vsel %vm15192_vm9, %v3953_v43, %v3955_v19  ;;  %v10526_v1 = vpop.f32.mrb[19].mxu0  ;;  %v15218_v35 = vld [vmem:[#allocation31_spill] sm:$0xff]  ;;  %v3963_v52 = vrot.slane %v10482_v8, 7  ;;  %v10590_v18 = vmax.f32 %v3857_v45, 0.0  ;;  %vm15246_vm13 = vmmov %vm15192_vm9 }
 0x250   : > { %15212 = vst [vmem:[#allocation50_spill] sm:$0xff] %v10499_v62  ;;  %15214 = vst [vmem:[#allocation53_spill] sm:$0xff] %v10515_v47  ;;  %v10519_v62 = vadd.f32 %v4414_v20, %v4343_v39  ;;  %vm15219_vm8 = vnez %v15218_v35  ;;  %v15220_v47 = vrot.slane %v10410_v51, 1  ;;  %v15223_v39 = vrot.slane %v10408_v53, 1 }
 0x251   : > { %15217 = vst [vmem:[#allocation66_spill] sm:$0xff] %v10523_v63  ;;  %v4039_v11 = vsel %vm15219_vm8, %v10523_v63, 0.0  ;;  %v4201_v19 = vsel %vm15208_vm15, %v10523_v63, 0.0  ;;  %v10565_v63 = vld [vmem:[%s15176_s2 + $0x8] ss:$0 sm:$0xff]  ;;  %v8348_v45 = vadd.f32 %v10443_v58, %v10226_v41 }
 0x252   : > { %15215 = vst [vmem:[#allocation58_spill] sm:$0xff] %v10519_v62  ;;  %v10534_v17 = vsel %vm15221_vm6, %v15220_v47, %v4074_v59  ;;  %v10539_v0 = vsel %vm15224_vm11, %v4074_v59, %v15223_v39  ;;  %v4341_v47 = vmul.f32 %v10268_v5, %v3954_v14  ;;  %v10552_v62 = vmul.f32 %v10300_v24, %v3886_v37  ;;  %vm15235_vm11 = vmmov %vm15192_vm9 }
 0x253   : > { %15222 = vst [vmem:[#allocation68_spill] sm:$0xff] %v10534_v17  ;;  %15225 = vst [vmem:[#allocation70_spill] sm:$0xff] %v10539_v0  ;;  %v4163_v20 = vsel %vm9509_vm1, %v10539_v0, 0.0  ;;  %v4300_v43 = vsel %vm15199_vm4, %v10539_v0, 0.0  ;;  %v10555_v59 = vmul.f32 %v10268_v5, %v4039_v11  ;;  %v10569_v53 = vmul.f32 %v10281_v6, %v10534_v17 }
 0x254   : > { %15226 = vst [vmem:[#allocation72_spill] sm:$0xff] %v10552_v62  ;;  %v4484_v39 = vmul.f32 %v10281_v6, %v4163_v20  ;;  %v4444_v0 = vadd.f32 %v4412_v29, %v4341_v47  ;;  %v10572_v11 = vmul.f32 %v10319_v13, %v3954_v14  ;;  %v10575_v20 = vmul.f32 %v10319_v13, %v4201_v19  ;;  %v10588_v47 = vpop.f32.mrb[20].mxu0 }
 0x255   : > { %15227 = vst [vmem:[#allocation73_spill] sm:$0xff] %v10555_v59  ;;  %15229 = vst [vmem:[#allocation89_spill] sm:$0xff] %v10569_v53  ;;  %v10578_v37 = vmul.f32 %v10476_v28, %v3954_v14  ;;  %v10582_v62 = vmul.f32 %v10565_v63, %v10534_v17  ;;  %v10585_v59 = vmul.f32 %v10565_v63, %v4300_v43  ;;  %vm15237_vm6 = vnez %v15064_v23 }
 0x256   : > { %15230 = vst [vmem:[#allocation90_spill] sm:$0xff] %v10575_v20  ;;  %v4516_v53 = vadd.f32 %v4484_v39, %v4444_v0  ;;  %v8343_v19 = vadd.f32 %v10381_v40, %v10216_v42  ;;  %v8344_v14 = vadd.f32 %v10387_v36, %v10218_v9  ;;  %v10596_v20 = vpop.f32.mrb[21].mxu0  ;;  %v8345_v17 = vadd.f32 %v10413_v56, %v10220_v33 }
 0x257   : > { %v8346_v43 = vadd.f32 %v10423_v2, %v10222_v30  ;;  %v8347_v29 = vadd.f32 %v10434_v25, %v10224_v50  ;;  %v10606_v0 = vpop.f32.mrb[22].mxu0  ;;  %v10612_v9 = vmul.f32 %v10273_v7, %v10482_v8  ;;  %v10616_v33 = vmul.f32 %v10300_v24, %v10482_v8 }
 0x258   : > { %v10608_v42 = vadd.f32 %v4556_v44, %v4516_v53  ;;  %v3959_v30 = vrot.slane %v10590_v18, 7  ;;  %v10619_v36 = vpop.f32.mrb[23].mxu0  ;;  %v10623_v50 = vmul.f32 %v10314_v34, %v10482_v8  ;;  %v3860_v40 = vadd.f32 %v8343_v19, %v10286_v54 }
 0x259   : > { %15231 = vst [vmem:[#allocation91_spill] sm:$0xff] %v10612_v9  ;;  %15232 = vst [vmem:[#allocation92_spill] sm:$0xff] %v10616_v33  ;;  %v3858_v53 = vadd.f32 %v8344_v14, %v10286_v54  ;;  %v15234_v56 = vrot.slane %v10454_v46, 7  ;;  %v4415_v25 = vmul.f32 %v10273_v7, %v10590_v18  ;;  %v3863_v58 = vadd.f32 %v8345_v17, %v10286_v54 }
 0x25a   : > { %15233 = vst [vmem:[#allocation93_spill] sm:$0xff] %v10623_v50  ;;  %v3861_v44 = vadd.f32 %v8346_v43, %v10286_v54  ;;  %v10643_v14 = vmax.f32 %v3860_v40, 0.0  ;;  %v10650_v33 = vmul.f32 %v10300_v24, %v10590_v18  ;;  %v10654_v17 = vmul.f32 %v10314_v34, %v10590_v18 }
 0x25b   : > { %v10631_v2 = vsel %vm15235_vm11, %v15234_v56, %v3959_v30  ;;  %v10645_v41 = vmax.f32 %v3858_v53, 0.0  ;;  %v3864_v43 = vadd.f32 %v8347_v29, %v10286_v54  ;;  %v10661_v9 = vmax.f32 %v3863_v58, 0.0  ;;  %vm15251_vm11 = vmmov %vm15192_vm9 }
 0x25c   : > { %15236 = vst [vmem:[#allocation94_spill] sm:$0xff] %v10631_v2  ;;  %v4041_v39 = vsel %vm15237_vm6, %v10631_v2, 0.0  ;;  %v4203_v19 = vsel %vm15219_vm8, %v10631_v2, 0.0  ;;  %15238 = vst [vmem:[#allocation95_spill] sm:$0xff] %v10643_v14  ;;  %v3965_v40 = vrot.slane %v10643_v14, 7  ;;  %v10663_v53 = vmax.f32 %v3861_v44, 0.0 }
 0x25d   : > { %v4344_v56 = vmul.f32 %v10268_v5, %v4041_v39  ;;  %15239 = vst [vmem:[#allocation96_spill] sm:$0xff] %v10650_v33  ;;  %15240 = vst [vmem:[#allocation97_spill] sm:$0xff] %v10654_v17  ;;  %v10658_v50 = vmul.f32 %v10319_v13, %v4203_v19  ;;  %v10665_v39 = vpop.f32.mrb[24].mxu0  ;;  %v4418_v17 = vmul.f32 %v10273_v7, %v10643_v14  ;;  %v3961_v29 = vrot.slane %v10645_v41, 7 }
 0x25e   : > { %15242 = vst [vmem:[#allocation99_spill] sm:$0xff] %v10661_v9  ;;  %15243 = vst [vmem:[#allocation100_spill] sm:$0xff] %v10665_v39  ;;  %v10673_v2 = vpop.f32.mrb[25].mxu0  ;;  %v10676_v19 = vsel %vm15246_vm13, %v3963_v52, %v3965_v40  ;;  %v10680_v58 = vmul.f32 %v10300_v24, %v10643_v14  ;;  %v10725_v23 = vmul.f32 %v10314_v34, %v10645_v41 }
 0x25f   : > { %15241 = vst [vmem:[#allocation98_spill] sm:$0xff] %v10658_v50  ;;  %v10667_v35 = vadd.f32 %v4415_v25, %v4344_v56  ;;  %15245 = vst [vmem:[#allocation102_spill] sm:$0xff] %v10673_v2  ;;  %v10684_v25 = vmul.f32 %v10314_v34, %v10643_v14  ;;  %v10687_v56 = vpop.f32.mrb[26].mxu0  ;;  %v4347_v33 = vmul.f32 %v10268_v5, %v10676_v19 }
 0x260   : > { %15247 = vst [vmem:[#allocation103_spill] sm:$0xff] %v10676_v19  ;;  %15248 = vst [vmem:[#allocation104_spill] sm:$0xff] %v10680_v58  ;;  %v10692_v50 = vsel %vm15192_vm9, %v3959_v30, %v3961_v29  ;;  %v10695_v2 = vsel %vm15251_vm11, %v3961_v29, %v3963_v52  ;;  %v4416_v58 = vmul.f32 %v10273_v7, %v10645_v41  ;;  %v10699_v39 = vpop.f32.mrb[27].mxu0  ;;  %vm15267_vm11 = vnez %v15074_v22 }
 0x261   : > { %15244 = vst [vmem:[#allocation101_spill] sm:$0xff] %v10667_v35  ;;  %15249 = vst [vmem:[#allocation105_spill] sm:$0xff] %v10684_v25  ;;  %v15254_v25 = vld [vmem:[#allocation38_spill] sm:$0xff]  ;;  %v4205_v14 = vsel %vm15237_vm6, %v10695_v2, 0.0  ;;  %v4345_v30 = vmul.f32 %v10268_v5, %v10692_v50  ;;  %v10711_v52 = vmul.f32 %v10300_v24, %v10645_v41  ;;  %v10713_v29 = vadd.f32 %v4418_v17, %v4347_v33 }
 0x262   : > { %15250 = vst [vmem:[#allocation106_spill] sm:$0xff] %v10687_v56  ;;  %15252 = vst [vmem:[#allocation107_spill] sm:$0xff] %v10695_v2  ;;  %vm15255_vm13 = vnez %v15254_v25  ;;  %v10721_v56 = vmul.f32 %v10319_v13, %v10692_v50  ;;  %v10733_v33 = vmul.f32 %v10319_v13, %v4205_v14  ;;  %v3971_v17 = vrot.slane %v10661_v9, 7 }
 0x263   : > { %15253 = vst [vmem:[#allocation108_spill] sm:$0xff] %v10699_v39  ;;  %v4043_v44 = vsel %vm15255_vm13, %v10695_v2, 0.0  ;;  %15256 = vst [vmem:[#allocation109_spill] sm:$0xff] %v10711_v52  ;;  %v10717_v39 = vmul.f32 %v10319_v13, %v10676_v19  ;;  %v10730_v35 = vadd.f32 %v4416_v58, %v4345_v30  ;;  %v10739_v19 = vmul.f32 %v10273_v7, %v10661_v9 }
 0x264   : > { %15257 = vst [vmem:[#allocation110_spill] sm:$0xff] %v10713_v29  ;;  %v10728_v2 = vmul.f32 %v10268_v5, %v4043_v44  ;;  %15259 = vst [vmem:[#allocation112_spill] sm:$0xff] %v10733_v33  ;;  %v10743_v52 = vmul.f32 %v10300_v24, %v10661_v9  ;;  %v3967_v44 = vrot.slane %v10663_v53, 7  ;;  %v10748_v58 = vmul.f32 %v10314_v34, %v10661_v9  ;;  %v10754_v33 = vpop.f32.mrb[28].mxu0 }
 0x265   : > { %15258 = vst [vmem:[#allocation111_spill] sm:$0xff] %v10717_v39  ;;  %15260 = vst [vmem:[#allocation113_spill] sm:$0xff] %v10739_v19  ;;  %v10751_v30 = vmax.f32 %v3864_v43, 0.0  ;;  %v3862_v39 = vadd.f32 %v8348_v45, %v10286_v54  ;;  %v8350_v29 = vadd.f32 %v10505_v32, %v10230_v12  ;;  %v10765_v9 = vpop.f32.mrb[29].mxu0 }
 0x266   : > { %15261 = vst [vmem:[#allocation114_spill] sm:$0xff] %v10743_v52  ;;  %15262 = vst [vmem:[#allocation115_spill] sm:$0xff] %v10748_v58  ;;  %v10757_v19 = vsel %vm15192_vm9, %v3965_v40, %v3967_v44  ;;  %v8349_v52 = vadd.f32 %v10497_v10, %v10228_v21  ;;  %v8351_v58 = vadd.f32 %v10517_v61, %v10232_v38  ;;  %v10776_v10 = vpop.f32.mrb[30].mxu0 }
 0x267   : > { %15263 = vst [vmem:[#allocation116_spill] sm:$0xff] %v10751_v30  ;;  %15264 = vst [vmem:[#allocation117_spill] sm:$0xff] %v10754_v33  ;;  %v4045_v45 = vsel %vm15267_vm11, %v10757_v19, 0.0  ;;  %v4207_v43 = vsel %vm15255_vm13, %v10757_v19, 0.0  ;;  %v4419_v40 = vmul.f32 %v10273_v7, %v10663_v53  ;;  %v3973_v21 = vrot.slane %v10751_v30, 7  ;;  %v10788_v14 = vpop.f32.mrb[31].mxu0 }
 0x268   : > { %15265 = vst [vmem:[#allocation118_spill] sm:$0xff] %v10757_v19  ;;  %15266 = vst [vmem:[#allocation119_spill] sm:$0xff] %v10765_v9  ;;  %v4348_v12 = vmul.f32 %v10268_v5, %v4045_v45  ;;  %v10781_v38 = vmul.f32 %v10300_v24, %v10663_v53  ;;  %v10785_v61 = vmul.f32 %v10314_v34, %v10663_v53  ;;  %vm15286_vm13 = vcmask 1046528  }
 0x269   : > { %15268 = vst [vmem:[#allocation120_spill] sm:$0xff] %v10776_v10  ;;  %15271 = vst [vmem:[#allocation123_spill] sm:$0xff] %v10788_v14  ;;  %v10791_v25 = vmul.f32 %v10319_v13, %v4207_v43  ;;  %v10794_v9 = vsel %vm15192_vm9, %v3971_v17, %v3973_v21  ;;  %v10796_v10 = vmax.f32 %v3862_v39, 0.0  ;;  %v3867_v45 = vadd.f32 %v8349_v52, %v10286_v54 }
 0x26a   : > { %15269 = vst [vmem:[#allocation121_spill] sm:$0xff] %v10781_v38  ;;  %15270 = vst [vmem:[#allocation122_spill] sm:$0xff] %v10785_v61  ;;  %v10799_v33 = vadd.f32 %v4419_v40, %v4348_v12  ;;  %v4351_v38 = vmul.f32 %v10268_v5, %v10794_v9  ;;  %v4422_v32 = vmul.f32 %v10273_v7, %v10751_v30 }
 0x26b   : > { %15272 = vst [vmem:[#allocation124_spill] sm:$0xff] %v10791_v25  ;;  %15273 = vst [vmem:[#allocation125_spill] sm:$0xff] %v10794_v9  ;;  %v3865_v14 = vadd.f32 %v8350_v29, %v10286_v54  ;;  %v10808_v43 = vmul.f32 %v10319_v13, %v10794_v9  ;;  %v10812_v39 = vmul.f32 %v10300_v24, %v10751_v30  ;;  %v3969_v40 = vrot.slane %v10796_v10, 7  ;;  %v15287_v25 = vld [vmem:[#allocation45_spill] sm:$0xff] }
 0x26c   : > { %15274 = vst [vmem:[#allocation126_spill] sm:$0xff] %v10796_v10  ;;  %15275 = vst [vmem:[#allocation127_spill] sm:$0xff] %v10799_v33  ;;  %v10816_v52 = vmul.f32 %v10314_v34, %v10751_v30  ;;  %v10819_v12 = vadd.f32 %v4422_v32, %v4351_v38  ;;  %v4420_v29 = vmul.f32 %v10273_v7, %v10796_v10  ;;  %v10824_v61 = vmax.f32 %v3867_v45, 0.0  ;;  %v15284_v30 = vld [vmem:[#allocation37_spill] sm:$0xff] }
 0x26d   : > { %15276 = vst [vmem:[#allocation128_spill] sm:$0xff] %v10808_v43  ;;  %15277 = vst [vmem:[#allocation129_spill] sm:$0xff] %v10812_v39  ;;  %v10827_v43 = vsel %vm15192_vm9, %v3967_v44, %v3969_v40  ;;  %v10830_v39 = vsel %vm15281_vm12, %v3969_v40, %v3971_v17  ;;  %v10832_v9 = vmax.f32 %v3865_v14, 0.0  ;;  %v15285_v38 = vrot.slane %v15284_v30, 1 }
 0x26e   : > { %15278 = vst [vmem:[#allocation130_spill] sm:$0xff] %v10816_v52  ;;  %15279 = vst [vmem:[#allocation131_spill] sm:$0xff] %v10819_v12  ;;  %v15283_v52 = vrot.slane %v10321_v27, 1  ;;  %vm15288_vm6 = vnez %v15287_v25  ;;  %v4209_v44 = vsel %vm15267_vm11, %v10830_v39, 0.0  ;;  %v4349_v17 = vmul.f32 %v10268_v5, %v10827_v43 }
 0x26f   : > { %15280 = vst [vmem:[#allocation132_spill] sm:$0xff] %v10827_v43  ;;  %15282 = vst [vmem:[#allocation133_spill] sm:$0xff] %v10830_v39  ;;  %v4047_v12 = vsel %vm15288_vm6, %v10830_v39, 0.0  ;;  %v3868_v14 = vadd.f32 %v8351_v58, %v10286_v54  ;;  %v10853_v30 = vmul.f32 %v10319_v13, %v10827_v43  ;;  %v10861_v40 = vmul.f32 %v10314_v34, %v10796_v10 }
 0x270   : > { %v4071_v32 = vsel %vm15286_vm13, %v15285_v38, %v15283_v52  ;;  %v10849_v45 = vmul.f32 %v10268_v5, %v4047_v12  ;;  %v10857_v52 = vmul.f32 %v10300_v24, %v10796_v10  ;;  %v10863_v38 = vadd.f32 %v4420_v29, %v4349_v17  ;;  %vm15300_vm12 = vmmov %vm15286_vm13  ;;  %v15320_v10 = vld [vmem:[#allocation77_spill] sm:$0xff] }
 0x271   : > { %15290 = vst [vmem:[#allocation134_spill] sm:$0xff] %v10853_v30  ;;  %15292 = vst [vmem:[#allocation136_spill] sm:$0xff] %v10861_v40  ;;  %v10866_v22 = vmul.f32 %v10319_v13, %v4209_v44  ;;  %v10872_v30 = vmul.f32 %v10273_v7, %v10824_v61  ;;  %v10880_v39 = vmul.f32 %v10314_v34, %v10824_v61  ;;  %v14613_v29 = vrot.slane %v10832_v9, 7  ;;  %v15314_v40 = vld [vmem:[#allocation44_spill] sm:$0xff] }
 0x272   : > { %15289 = vst [vmem:[#allocation37_spill] sm:$0xff] %v10849_v45  ;;  %15291 = vst [vmem:[#allocation135_spill] sm:$0xff] %v10857_v52  ;;  %v10876_v52 = vmul.f32 %v10300_v24, %v10824_v61  ;;  %v4423_v17 = vmul.f32 %v10273_v7, %v10832_v9  ;;  %v10886_v12 = vmax.f32 %v3868_v14, 0.0  ;;  %v15298_v58 = vrot.slane %v10410_v51, 1 }
 0x273   : > { %15293 = vst [vmem:[#allocation137_spill] sm:$0xff] %v10863_v38  ;;  %15294 = vst [vmem:[#allocation138_spill] sm:$0xff] %v10866_v22  ;;  %v10904_v44 = vmul.f32 %v10314_v34, %v10832_v9  ;;  %v15310_v25 = vrot.slane %v10824_v61, 7  ;;  %v15315_v38 = vld [vmem:[#allocation46_spill] sm:$0xff] }
 0x274   : > { %15295 = vst [vmem:[#allocation139_spill] sm:$0xff] %v10872_v30  ;;  %15296 = vst [vmem:[#allocation140_spill] sm:$0xff] %v10876_v52  ;;  %v15299_v30 = vrot.slane %v10321_v27, 1  ;;  %v15306_v27 = vld [vmem:[#allocation47_spill] sm:$0xff] }
 0x275   : > { %15297 = vst [vmem:[#allocation141_spill] sm:$0xff] %v10880_v39  ;;  %vm15301_vm13 = vmmov %vm15192_vm9  ;;  %v10900_v39 = vmul.f32 %v10300_v24, %v10832_v9  ;;  %vm15307_vm9 = vnez %v15306_v27  ;;  %v15370_v27 = vld [vmem:[#allocation42_spill] sm:$0xff] }
 0x276   : > { %v4073_v22 = vsel %vm15300_vm12, %v15299_v30, %v15298_v58  ;;  %v10896_v52 = vsel %vm15301_vm13, %v3973_v21, %v14613_v29  ;;  %15304 = vst [vmem:[#allocation144_spill] sm:$0xff] %v10904_v44  ;;  %v14619_v58 = vrot.slane %v10886_v12, 7  ;;  %v4481_v29 = vmul.f32 %v10281_v6, %v4071_v32  ;;  %vm15311_vm12 = vmmov %vm15301_vm13 }
 0x277   : > { %15302 = vst [vmem:[#allocation142_spill] sm:$0xff] %v10896_v52  ;;  %15303 = vst [vmem:[#allocation143_spill] sm:$0xff] %v10900_v39  ;;  %v4161_v51 = vsel %vm9442_vm2, %v4073_v22, 0.0  ;;  %v4049_v30 = vsel %vm15307_vm9, %v10896_v52, 0.0  ;;  %v4211_v21 = vsel %vm15288_vm6, %v10896_v52, 0.0  ;;  %v4235_v44 = vsel %vm15199_vm4, %v4073_v22, 0.0 }
 0x278   : > { %v4352_v39 = vmul.f32 %v10268_v5, %v4049_v30  ;;  %v4298_v43 = vsel %vm9354_vm14, %v4073_v22, 0.0  ;;  %v10923_v19 = vmul.f32 %v10319_v13, %v4211_v21  ;;  %v10930_v52 = vsel %vm15311_vm12, %v15310_v25, %v14619_v58  ;;  %vm15332_vm13 = vmmov %vm15311_vm12 }
 0x279   : > { %15312 = vst [vmem:[#allocation146_spill] sm:$0xff] %v10930_v52  ;;  %v4482_v30 = vmul.f32 %v10281_v6, %v4161_v51  ;;  %v10934_v45 = vadd.f32 %v4481_v29, %v10398_v4  ;;  %v4355_v22 = vmul.f32 %v10268_v5, %v10930_v52  ;;  %v4426_v21 = vmul.f32 %v10273_v7, %v10886_v12  ;;  %v15316_v4 = vld [vmem:[#allocation63_spill] sm:$0xff] }
 0x27a   : > { %15309 = vst [vmem:[#allocation145_spill] sm:$0xff] %v10923_v19  ;;  %v10936_v60 = vadd.f32 %v4423_v17, %v4352_v39  ;;  %v4655_v19 = vadd.f32 %v15314_v40, %v10404_v57  ;;  %v4695_v25 = vmul.f32 %v10396_v16, %v4071_v32  ;;  %v4696_v51 = vmul.f32 %v10396_v16, %v4235_v44 }
 0x27b   : > { %v10945_v33 = vadd.f32 %v4482_v30, %v15315_v38  ;;  %v4725_v39 = vadd.f32 %v10431_v15, %v15316_v4  ;;  %v10951_v29 = vadd.f32 %v4426_v21, %v4355_v22  ;;  %v15318_v17 = vsel %vm15186_vm7, %v10363_v26, 0.0  ;;  %v15321_v4 = vld [vmem:[#allocation74_spill] sm:$0xff] }
 0x27c   : > { %15313 = vst [vmem:[#allocation147_spill] sm:$0xff] %v10936_v60  ;;  %v4765_v58 = vmul.f32 %v10476_v28, %v15318_v17  ;;  %v15319_v60 = vld [vmem:[#allocation48_spill] sm:$0xff]  ;;  %v4908_v40 = vmul.f32 %v10565_v63, %v4071_v32  ;;  %v4727_v38 = vadd.f32 %v4695_v25, %v4655_v19  ;;  %v4728_v30 = vadd.f32 %v4696_v51, %v10428_v55  ;;  %v15322_v17 = vld [vmem:[#allocation18_spill] sm:$0xff]  ;;  %v15323_v32 = vld [vmem:[#allocation19_spill] sm:$0xff] }
 0x27d   : > { %15317 = vst [vmem:[#allocation44_spill] sm:$0xff] %v10951_v29  ;;  %v4766_v57 = vmul.f32 %v10476_v28, %v15319_v60  ;;  %v4909_v44 = vmul.f32 %v10565_v63, %v4298_v43  ;;  %v8352_v15 = vadd.f32 %v10526_v1, %v15320_v10  ;;  %v8353_v26 = vadd.f32 %v10588_v47, %v15321_v4  ;;  %v15324_v25 = vld [vmem:[#allocation43_spill] sm:$0xff]  ;;  %v15328_v51 = vld [vmem:[#allocation78_spill] sm:$0xff]  ;;  %v15389_v29 = vld [vmem:[#allocation53_spill] sm:$0xff] }
 0x27e   : > { %v4797_v22 = vadd.f32 %v4765_v58, %v4725_v39  ;;  %v8354_v31 = vadd.f32 %v10596_v20, %v15322_v17  ;;  %v4799_v60 = vadd.f32 %v10489_v3, %v4727_v38  ;;  %v4800_v19 = vadd.f32 %v10578_v37, %v4728_v30  ;;  %v10986_v3 = vld [vmem:[%s15326_s4] ss:$0 sm:$0xff] }
 0x27f   : > { %v4798_v21 = vadd.f32 %v4766_v57, %v10419_v48  ;;  %v3866_v55 = vadd.f32 %v8352_v15, %v10286_v54  ;;  %v8355_v43 = vadd.f32 %v10606_v0, %v15323_v32  ;;  %v3871_v48 = vadd.f32 %v8353_v26, %v10286_v54  ;;  %v15327_v0 = vld [vmem:[#allocation41_spill] sm:$0xff] }
 0x280   : > { %v4868_v1 = vadd.f32 %v15324_v25, %v4797_v22  ;;  %v3869_v47 = vadd.f32 %v8354_v31, %v10286_v54  ;;  %v10981_v20 = vmul.f32 %v10300_v24, %v10886_v12  ;;  %v4870_v58 = vadd.f32 %v15327_v0, %v4799_v60 }
 0x281   : > { %v4869_v10 = vadd.f32 %v10417_v49, %v4798_v21  ;;  %v10988_v37 = vmax.f32 %v3866_v55, 0.0  ;;  %v4871_v39 = vadd.f32 %v15328_v51, %v4800_v19  ;;  %v10994_v49 = vmul.f32 %v10319_v13, %v10930_v52 }
 0x282   : > { %15325 = vst [vmem:[#allocation46_spill] sm:$0xff] %v10981_v20  ;;  %v10998_v31 = vmul.f32 %v10314_v34, %v10886_v12  ;;  %v4940_v57 = vadd.f32 %v4908_v40, %v4868_v1  ;;  %v11001_v15 = vmax.f32 %v3871_v48, 0.0  ;;  %v11003_v22 = vmax.f32 %v3869_v47, 0.0 }
 0x283   : > { %15329 = vst [vmem:[#allocation63_spill] sm:$0xff] %v10994_v49  ;;  %v4941_v38 = vadd.f32 %v4909_v44, %v4869_v10  ;;  %v3977_v30 = vrot.slane %v10988_v37, 7  ;;  %v3872_v21 = vadd.f32 %v8355_v43, %v10286_v54  ;;  %v4942_v60 = vadd.f32 %v10582_v62, %v4870_v58  ;;  %v15334_v10 = vld [vmem:[#allocation79_spill] sm:$0xff] }
 0x284   : > { %15330 = vst [vmem:[#allocation48_spill] sm:$0xff] %v10998_v31  ;;  %v4979_v4 = vadd.f32 %v10986_v3, %v4940_v57  ;;  %v15331_v19 = vrot.slane %v10832_v9, 7  ;;  %v15333_v44 = vrot.slane %v10824_v61, 7  ;;  %v4424_v32 = vmul.f32 %v10273_v7, %v10988_v37 }
 0x285   : > { %v4980_v26 = vadd.f32 %v10986_v3, %v4941_v38  ;;  %v4943_v43 = vadd.f32 %v10585_v59, %v4871_v39  ;;  %vm15335_vm4 = vnez %v15334_v10  ;;  %v11033_v0 = vmul.f32 %v10300_v24, %v10988_v37 }
 0x286   : > { %v11013_v40 = vsel %vm15332_vm13, %v15331_v19, %v3977_v30  ;;  %v11018_v55 = vsel %vm15311_vm12, %v3977_v30, %v15333_v44  ;;  %v5011_v25 = vmax.f32 %v4979_v4, 0.0  ;;  %v11037_v59 = vmul.f32 %v10314_v34, %v10988_v37  ;;  %v15345_v19 = vld [vmem:[#allocation17_spill] sm:$0xff] }
 0x287   : > { %v5012_v1 = vmax.f32 %v4980_v26, 0.0  ;;  %v4051_v62 = vsel %vm15335_vm4, %v11018_v55, 0.0  ;;  %v4213_v48 = vsel %vm15307_vm9, %v11018_v55, 0.0  ;;  %v4353_v47 = vmul.f32 %v10268_v5, %v11013_v40  ;;  %15336 = vst [vmem:[#allocation77_spill] sm:$0xff] %v11033_v0 }
 0x288   : > { %v11041_v39 = vmul.f32 %v10268_v5, %v4051_v62  ;;  %v4981_v57 = vadd.f32 %v10986_v3, %v4942_v60  ;;  %v4982_v38 = vadd.f32 %v10986_v3, %v4943_v43  ;;  %v11049_v4 = vmul.f32 %v10319_v13, %v11013_v40 }
 0x289   : > { %v5043_v51 = vpack.c.bf16 %v5012_v1, %v5011_v25  ;;  %v11045_v30 = vadd.f32 %v4424_v32, %v4353_v47  ;;  %v11052_v26 = vmul.f32 %v10319_v13, %v4213_v48  ;;  %vm15338_vm13 = vcmask 64512  }
 0x28a   : > { %v5013_v44 = vmax.f32 %v4981_v57, 0.0  ;;  %v5014_v25 = vmax.f32 %v4982_v38, 0.0  ;;  %v11058_v60 = vmul.f32 %v10273_v7, %v11001_v15  ;;  %v14627_v32 = vrot.slane %v11003_v22, 7 }
 0x28b   : > { %15337 = vst [vmem:[#allocation74_spill] sm:$0xff] %v11052_v26  ;;  %8252 = vmatprep.mubr.msk.bf16.mxu1 %vm15338_vm13, %v5043_v51  ;;  %v11063_v43 = vmul.f32 %v10300_v24, %v11001_v15  ;;  %v11067_v1 = vmul.f32 %v10314_v34, %v11001_v15  ;;  %v11070_v48 = vmax.f32 %v3872_v21, 0.0  ;;  %v15342_v51 = vrot.slane %v10886_v12, 7 }
 0x28c   : > { %15339 = vst [vmem:[#allocation18_spill] sm:$0xff] %v11058_v60  ;;  %v5044_v47 = vpack.c.bf16 %v5014_v25, %v5013_v44  ;;  %v15344_v38 = vrot.slane %v10454_v46, 1  ;;  %v15346_v17 = vrot.slane %v15345_v19, 1  ;;  %vm15347_vm13 = vcmask 1046528   ;;  %v15351_v44 = vld [vmem:[#allocation61_spill] sm:$0xff] }
 0x28d   : > { %15340 = vst [vmem:[#allocation19_spill] sm:$0xff] %v11063_v43  ;;  %15341 = vst [vmem:[#allocation43_spill] sm:$0xff] %v11067_v1  ;;  %v11077_v57 = vsel %vm15311_vm12, %v15342_v51, %v14627_v32  ;;  %v15348_v43 = vrot.slane %v10590_v18, 1  ;;  %vm15352_vm14 = vnez %v15351_v44  ;;  %v4427_v32 = vmul.f32 %v10273_v7, %v11003_v22 }
 0x28e   : > { %15343 = vst [vmem:[#allocation41_spill] sm:$0xff] %v11077_v57  ;;  %v4079_v58 = vsel %vm15347_vm13, %v15346_v17, %v15344_v38  ;;  %v15349_v62 = vmov %v15344_v38  ;;  %vm15350_vm7 = vmmov %vm15347_vm13  ;;  %v4053_v25 = vsel %vm15352_vm14, %v11077_v57, 0.0  ;;  %v4215_v51 = vsel %vm15335_vm4, %v11077_v57, 0.0 }
 0x28f   : > { %v4081_v21 = vsel %vm15350_vm7, %v15349_v62, %v15348_v43  ;;  %v14629_v19 = vrot.slane %v11070_v48, 7  ;;  %vm15353_vm12 = vcmask 64512   ;;  %v4356_v17 = vmul.f32 %v10268_v5, %v4053_v25 }
 0x290   : > { %8253 = vmatmul.mubr.msk.bf16.vlgmr.msra.gmra.mrb[32].mxu1 %vm15353_vm12, %v5044_v47  ;;  %v11102_v46 = vmul.f32 %v10300_v24, %v11003_v22  ;;  %v11106_v43 = vmul.f32 %v10314_v34, %v11003_v22  ;;  %v11110_v38 = vmul.f32 %v10319_v13, %v4215_v51  ;;  %v15357_v1 = vrot.slane %v11001_v15, 7  ;;  %vm15383_vm12 = vmmov %vm15347_vm13 }
 0x291   : > { %vm15358_vm7 = vcmask 1040384   ;;  %v4430_v25 = vmul.f32 %v10273_v7, %v11070_v48  ;;  %v4165_v10 = vsel %vm15128_vm3, %v4081_v21, 0.0  ;;  %v11123_v60 = vadd.f32 %v4427_v32, %v4356_v17  ;;  %v15367_v17 = vld [vmem:[#allocation73_spill] sm:$0xff] }
 0x292   : > { %15354 = vst [vmem:[#allocation78_spill] sm:$0xff] %v11102_v46  ;;  %15355 = vst [vmem:[#allocation17_spill] sm:$0xff] %v11106_v43  ;;  %v11117_v47 = vsel %vm15358_vm7, %v15357_v1, %v14629_v19  ;;  %v11129_v51 = vmul.f32 %v10300_v24, %v11070_v48  ;;  %v15364_v1 = vld [vmem:[#allocation70_spill] sm:$0xff]  ;;  %v4485_v49 = vmul.f32 %v10281_v6, %v4079_v58  ;;  %v4239_v20 = vsel %vm9509_vm1, %v4081_v21, 0.0 }
 0x293   : > { %15356 = vst [vmem:[#allocation148_spill] sm:$0xff] %v11110_v38  ;;  %15359 = vst [vmem:[#allocation149_spill] sm:$0xff] %v11117_v47  ;;  %v4359_v62 = vmul.f32 %v10268_v5, %v11117_v47  ;;  %v11133_v38 = vmul.f32 %v10314_v34, %v11070_v48  ;;  %v4237_v19 = vsel %vm9442_vm2, %v15364_v1, 0.0  ;;  %v15365_v43 = vld [vmem:[#allocation66_spill] sm:$0xff]  ;;  %v4586_v57 = vadd.f32 %v10572_v11, %v10945_v33 }
 0x294   : > { %15361 = vst [vmem:[#allocation150_spill] sm:$0xff] %v11123_v60  ;;  %15362 = vst [vmem:[#allocation151_spill] sm:$0xff] %v11129_v51  ;;  %v4270_v32 = vsel %vm15194_vm5, %v15365_v43, 0.0  ;;  %v15368_v60 = vld [vmem:[#allocation20_spill] sm:$0xff]  ;;  %v4486_v51 = vmul.f32 %v10281_v6, %v4165_v10  ;;  %v11153_v1 = vmul.f32 %v10319_v13, %v11117_v47  ;;  %v4698_v11 = vmul.f32 %v10396_v16, %v4237_v19  ;;  %v15377_v47 = vld [vmem:[#allocation49_spill] sm:$0xff] }
 0x295   : > { %15363 = vst [vmem:[#allocation152_spill] sm:$0xff] %v11133_v38  ;;  %v4445_v31 = vadd.f32 %v15368_v60, %v15367_v17  ;;  %v11144_v26 = vadd.f32 %v4430_v25, %v4359_v62  ;;  %v4585_v38 = vadd.f32 %v15370_v27, %v10934_v45  ;;  %v15373_v17 = vld [vmem:[#allocation68_spill] sm:$0xff]  ;;  %v15374_v25 = vld [vmem:[#allocation58_spill] sm:$0xff]  ;;  %v4302_v33 = vsel %vm9442_vm2, %v4081_v21, 0.0 }
 0x296   : > { %15371 = vst [vmem:[#allocation66_spill] sm:$0xff] %v11153_v1  ;;  %v4697_v62 = vmul.f32 %v10396_v16, %v15373_v17  ;;  %v11162_v10 = vadd.f32 %v4486_v51, %v15374_v25  ;;  %v15376_v27 = vld [vmem:[#allocation72_spill] sm:$0xff]  ;;  %v4769_v1 = vmul.f32 %v10476_v28, %v4270_v32  ;;  %v15379_v25 = vrot.slane %v10645_v41, 1 }
 0x297   : > { %15369 = vst [vmem:[#allocation70_spill] sm:$0xff] %v11144_v26  ;;  %v11157_v60 = vadd.f32 %v4485_v49, %v4445_v31  ;;  %v15375_v26 = vld [vmem:[#allocation34_spill] sm:$0xff]  ;;  %v4658_v52 = vadd.f32 %v15376_v27, %v4586_v57  ;;  %v4770_v49 = vmul.f32 %v10476_v28, %v15377_v47  ;;  %v15381_v19 = vrot.slane %v10482_v8, 1  ;;  %v11551_v32 = vld [vmem:[%s15176_s2 + $0x3] ss:$0 sm:$0xff] }
 0x298   : > { %v4657_v45 = vadd.f32 %v15375_v26, %v4585_v38  ;;  %v15378_v31 = vld [vmem:[#allocation26_spill] sm:$0xff]  ;;  %v15380_v26 = vrot.slane %v10590_v18, 1  ;;  %v15382_v21 = vmov %v15379_v25  ;;  %v4699_v47 = vmul.f32 %v10396_v16, %v4079_v58 }
 0x299   : > { %v8356_v17 = vadd.f32 %v10619_v36, %v15378_v31  ;;  %v4730_v51 = vadd.f32 %v4698_v11, %v4658_v52  ;;  %v11186_v38 = vsel %vm15383_vm12, %v15382_v21, %v15381_v19  ;;  %v4912_v36 = vmul.f32 %v10565_v63, %v4079_v58  ;;  %v15388_v21 = vld [vmem:[#allocation30_spill] sm:$0xff] }
 0x29a   : > { %v4729_v0 = vadd.f32 %v4697_v62, %v4657_v45  ;;  %v11179_v57 = vsel %vm15347_vm13, %v15380_v26, %v15379_v25  ;;  %v4167_v18 = vsel %vm15132_vm10, %v11186_v38, 0.0  ;;  %v4913_v27 = vmul.f32 %v10565_v63, %v4302_v33  ;;  %v15385_v25 = vld [vmem:[#allocation50_spill] sm:$0xff]  ;;  %v15386_v26 = vld [vmem:[#allocation89_spill] sm:$0xff]  ;;  %vm15396_vm13 = vmmov %vm15358_vm7 }
 0x29b   : > { %v3870_v52 = vadd.f32 %v8356_v17, %v10286_v54  ;;  %v4802_v45 = vadd.f32 %v4770_v49, %v4730_v51  ;;  %v4487_v41 = vmul.f32 %v10281_v6, %v11179_v57  ;;  %v4488_v31 = vmul.f32 %v10281_v6, %v4167_v18  ;;  %v15387_v17 = vld [vmem:[#allocation52_spill] sm:$0xff]  ;;  %v15390_v33 = vld [vmem:[#allocation101_spill] sm:$0xff]  ;;  %v15391_v6 = vld [vmem:[#allocation94_spill] sm:$0xff] }
 0x29c   : > { %v4801_v62 = vadd.f32 %v4769_v1, %v4729_v0  ;;  %v4515_v58 = vadd.f32 %v15386_v26, %v15385_v25  ;;  %v4660_v19 = vadd.f32 %v15387_v17, %v10608_v42  ;;  %v4272_v18 = vsel %vm15208_vm15, %v15391_v6, 0.0 }
 0x29d   : > { %v11197_v11 = vmax.f32 %v3870_v52, 0.0  ;;  %v4873_v0 = vadd.f32 %v15389_v29, %v4802_v45  ;;  %v11210_v49 = vadd.f32 %v4487_v41, %v15390_v33  ;;  %v4304_v42 = vsel %vm9509_vm1, %v11186_v38, 0.0 }
 0x29e   : > { %v4872_v14 = vadd.f32 %v15388_v21, %v4801_v62  ;;  %v4700_v62 = vmul.f32 %v10396_v16, %v4239_v20  ;;  %v11222_v26 = vadd.f32 %v4488_v31, %v10730_v35  ;;  %v15393_v41 = vrot.slane %v11003_v22, 7  ;;  %v15399_v31 = vld [vmem:[#allocation51_spill] sm:$0xff] }
 0x29f   : > { %v3985_v51 = vrot.slane %v11197_v11, 7  ;;  %v4945_v45 = vadd.f32 %v4913_v27, %v4873_v0  ;;  %v15395_v21 = vrot.slane %v11001_v15, 7  ;;  %v4428_v20 = vmul.f32 %v10273_v7, %v11197_v11 }
 0x2a0   : > { %v4944_v29 = vadd.f32 %v4912_v36, %v4872_v14  ;;  %v15398_v14 = vld [vmem:[#allocation90_spill] sm:$0xff]  ;;  %vm15400_vm12 = vnez %v15399_v31  ;;  %v11244_v6 = vmul.f32 %v10300_v24, %v11197_v11  ;;  %v4732_v25 = vadd.f32 %v4700_v62, %v4660_v19  ;;  %v15408_v62 = vld [vmem:[#allocation23_spill] sm:$0xff] }
 0x2a1   : > { %v11227_v17 = vsel %vm15358_vm7, %v15393_v41, %v3985_v51  ;;  %v11232_v33 = vsel %vm15396_vm13, %v3985_v51, %v15395_v21  ;;  %v4587_v36 = vadd.f32 %v15398_v14, %v4515_v58  ;;  %v4984_v35 = vadd.f32 %v10986_v3, %v4945_v45  ;;  %v15403_v21 = vld [vmem:[#allocation25_spill] sm:$0xff] }
 0x2a2   : > { %15394 = vst [vmem:[#allocation73_spill] sm:$0xff] %v11227_v17  ;;  %15397 = vst [vmem:[#allocation20_spill] sm:$0xff] %v11232_v33  ;;  %v4983_v27 = vadd.f32 %v10986_v3, %v4944_v29  ;;  %v4055_v0 = vsel %vm15400_vm12, %v11232_v33, 0.0  ;;  %v4217_v51 = vsel %vm15352_vm14, %v11232_v33, 0.0  ;;  %v4357_v7 = vmul.f32 %v10268_v5, %v11227_v17 }
 0x2a3   : > { %15401 = vst [vmem:[#allocation42_spill] sm:$0xff] %v11244_v6  ;;  %v11253_v58 = vmul.f32 %v10314_v34, %v11197_v11  ;;  %v11257_v29 = vmul.f32 %v10396_v16, %v11179_v57  ;;  %v5016_v41 = vmax.f32 %v4984_v35, 0.0  ;;  %v4659_v14 = vadd.f32 %v15403_v21, %v4587_v36  ;;  %v15406_v35 = vld [vmem:[#allocation27_spill] sm:$0xff] }
 0x2a4   : > { %v5015_v45 = vmax.f32 %v4983_v27, 0.0  ;;  %v11261_v1 = vmul.f32 %v10268_v5, %v4055_v0  ;;  %v11263_v43 = vadd.f32 %v4428_v20, %v4357_v7  ;;  %v11267_v52 = vmul.f32 %v10319_v13, %v11227_v17  ;;  %v15409_v5 = vld [vmem:[#allocation102_spill] sm:$0xff]  ;;  %v15410_v20 = vld [vmem:[#allocation28_spill] sm:$0xff] }
 0x2a5   : > { %15402 = vst [vmem:[#allocation68_spill] sm:$0xff] %v11253_v58  ;;  %v4772_v44 = vmul.f32 %v10476_v28, %v10692_v50  ;;  %v4731_v33 = vadd.f32 %v4699_v47, %v4659_v14  ;;  %v4771_v27 = vmul.f32 %v10476_v28, %v4272_v18  ;;  %v15407_v58 = vld [vmem:[#allocation100_spill] sm:$0xff]  ;;  %v8358_v0 = vadd.f32 %v15409_v5, %v15408_v62  ;;  %v15411_v7 = vld [vmem:[#allocation106_spill] sm:$0xff]  ;;  %v15549_v5 = vld [vmem:[#allocation125_spill] sm:$0xff] }
 0x2a6   : > { %15404 = vst [vmem:[#allocation58_spill] sm:$0xff] %v11261_v1  ;;  %15405 = vst [vmem:[#allocation34_spill] sm:$0xff] %v11267_v52  ;;  %v5045_v6 = vpack.c.bf16 %v5016_v41, %v5015_v45  ;;  %v8357_v36 = vadd.f32 %v15407_v58, %v15406_v35  ;;  %v8359_v21 = vadd.f32 %v15411_v7, %v15410_v20  ;;  %v15412_v1 = vld [vmem:[#allocation95_spill] sm:$0xff]  ;;  %v15414_v52 = vrot.slane %v10482_v8, 1 }
 0x2a7   : > { %v4804_v19 = vadd.f32 %v4772_v44, %v4732_v25  ;;  %v15413_v17 = vrot.slane %v15412_v1, 1  ;;  %vm15415_vm7 = vcmask 1046528   ;;  %vm15416_vm13 = vcmask 64512  }
 0x2a8   : > { %8256 = vmatprep.mubr.msk.bf16.mxu1 %vm15416_vm13, %v5045_v6  ;;  %v11287_v47 = vmul.f32 %v10319_v13, %v4217_v51  ;;  %v4803_v18 = vadd.f32 %v4771_v27, %v4731_v33  ;;  %v3875_v44 = vadd.f32 %v8357_v36, %v10286_v54  ;;  %v15418_v25 = vrot.slane %v10663_v53, 1  ;;  %vm15420_vm1 = vmmov %vm15415_vm7  ;;  %v15421_v51 = vld [vmem:[#allocation97_spill] sm:$0xff]  ;;  %v15423_v27 = vld [vmem:[#allocation107_spill] sm:$0xff] }
 0x2a9   : > { %v11283_v50 = vsel %vm15415_vm7, %v15414_v52, %v15413_v17  ;;  %v15419_v58 = vmov %v15413_v17  ;;  %v4875_v8 = vadd.f32 %v10725_v23, %v4804_v19  ;;  %v4915_v52 = vmul.f32 %v10565_v63, %v4304_v42  ;;  %v15425_v42 = vld [vmem:[#allocation91_spill] sm:$0xff] }
 0x2aa   : > { %15417 = vst [vmem:[#allocation72_spill] sm:$0xff] %v11287_v47  ;;  %v11295_v45 = vsel %vm15420_vm1, %v15419_v58, %v15418_v25  ;;  %v3873_v17 = vadd.f32 %v8358_v0, %v10286_v54  ;;  %v3876_v6 = vadd.f32 %v8359_v21, %v10286_v54  ;;  %v4874_v41 = vadd.f32 %v15421_v51, %v4803_v18  ;;  %v11332_v25 = vld [vmem:[%s15176_s2 + $0x1] ss:$0 sm:$0xff]  ;;  %v15471_v47 = vld [vmem:[#allocation118_spill] sm:$0xff] }
 0x2ab   : > { %v4914_v33 = vmul.f32 %v10565_v63, %v11179_v57  ;;  %v11304_v14 = vmax.f32 %v3875_v44, 0.0  ;;  %v4274_v35 = vsel %vm15219_vm8, %v15423_v27, 0.0  ;;  %v4947_v36 = vadd.f32 %v4915_v52, %v4875_v8 }
 0x2ac   : > { %v11309_v62 = vmax.f32 %v3873_v17, 0.0  ;;  %v11311_v23 = vmax.f32 %v3876_v6, 0.0  ;;  %v4449_v19 = vadd.f32 %v15425_v42, %v10728_v2  ;;  %v4169_v0 = vsel %vm15134_vm0, %v11295_v45, 0.0 }
 0x2ad   : > { %15422 = vst [vmem:[#allocation49_spill] sm:$0xff] %v11304_v14  ;;  %v4946_v54 = vadd.f32 %v4914_v33, %v4874_v41  ;;  %v4306_v20 = vsel %vm15128_vm3, %v11295_v45, 0.0  ;;  %v4986_v7 = vadd.f32 %v10986_v3, %v4947_v36  ;;  %v14643_v21 = vrot.slane %v11304_v14, 7  ;;  %v15433_v36 = vld [vmem:[#allocation80_spill] sm:$0xff] }
 0x2ae   : > { %v14641_v2 = vrot.slane %v11309_v62, 7  ;;  %v11336_v58 = vmul.f32 %v11332_v25, %v11304_v14  ;;  %v11340_v8 = vmul.f32 %v10300_v24, %v11304_v14  ;;  %v11344_v52 = vmul.f32 %v10314_v34, %v11304_v14 }
 0x2af   : > { %v4985_v44 = vadd.f32 %v10986_v3, %v4946_v54  ;;  %v5018_v17 = vmax.f32 %v4986_v7, 0.0  ;;  %v15430_v6 = vrot.slane %v11070_v48, 7  ;;  %vm15431_vm1 = vcmask 1040384  }
 0x2b0   : > { %15427 = vst [vmem:[#allocation26_spill] sm:$0xff] %v11336_v58  ;;  %15428 = vst [vmem:[#allocation50_spill] sm:$0xff] %v11340_v8  ;;  %v14642_v33 = vrot.slane %v11311_v23, 7  ;;  %vm15434_vm7 = vnez %v15433_v36  ;;  %v4431_v7 = vmul.f32 %v11332_v25, %v11309_v62  ;;  %v11375_v41 = vmul.f32 %v10314_v34, %v11309_v62  ;;  %v15492_v36 = vld [vmem:[#allocation35_spill] sm:$0xff] }
 0x2b1   : > { %15429 = vst [vmem:[#allocation89_spill] sm:$0xff] %v11344_v52  ;;  %v11351_v51 = vsel %vm15431_vm1, %v15430_v6, %v14641_v2  ;;  %v5017_v27 = vmax.f32 %v4985_v44, 0.0  ;;  %v11366_v6 = vld [vmem:[%s15176_s2] ss:$0 sm:$0xff]  ;;  %v11371_v44 = vmul.f32 %v10300_v24, %v11309_v62  ;;  %vm15437_vm13 = vmmov %vm15431_vm1  ;;  %v4434_v24 = vmul.f32 %v11332_v25, %v11311_v23  ;;  %v11397_v52 = vld [vmem:[%s15176_s2 + $0x2] ss:$0 sm:$0xff] }
 0x2b2   : > { %15432 = vst [vmem:[#allocation52_spill] sm:$0xff] %v11351_v51  ;;  %v4057_v42 = vsel %vm15434_vm7, %v11351_v51, 0.0  ;;  %v4219_v54 = vsel %vm15400_vm12, %v11351_v51, 0.0  ;;  %15436 = vst [vmem:[#allocation53_spill] sm:$0xff] %v11375_v41  ;;  %v11382_v2 = vsel %vm15437_vm13, %v14643_v21, %v14642_v33  ;;  %vm15441_vm1 = vcmask 64512   ;;  %v15472_v51 = vld [vmem:[#allocation32_spill] sm:$0xff] }
 0x2b3   : > { %v4360_v18 = vmul.f32 %v11366_v6, %v4057_v42  ;;  %15435 = vst [vmem:[#allocation30_spill] sm:$0xff] %v11371_v44  ;;  %15438 = vst [vmem:[#allocation101_spill] sm:$0xff] %v11382_v2  ;;  %v5046_v57 = vpack.c.bf16 %v5018_v17, %v5017_v27  ;;  %v4363_v42 = vmul.f32 %v11366_v6, %v11382_v2  ;;  %v11416_v21 = vld [vmem:[%s15176_s2 + $0x4] ss:$0 sm:$0xff]  ;;  %vm15456_vm13 = vcmask 1046528  }
 0x2b4   : > { %v11392_v34 = vmul.f32 %v10319_v13, %v4219_v54  ;;  %v4489_v17 = vmul.f32 %v11397_v52, %v11283_v50  ;;  %v4490_v27 = vmul.f32 %v11397_v52, %v4169_v0  ;;  %v15444_v54 = vld [vmem:[#allocation98_spill] sm:$0xff]  ;;  %v4590_v33 = vadd.f32 %v10721_v56, %v11162_v10 }
 0x2b5   : > { %v11389_v8 = vadd.f32 %v4431_v7, %v4360_v18  ;;  %8257 = vmatmul.mubr.msk.bf16.gmra.mrb[36].mxu1 %vm15441_vm1, %v5046_v57  ;;  %v11403_v1 = vadd.f32 %v4434_v24, %v4363_v42  ;;  %v11407_v18 = vmul.f32 %v10319_v13, %v11382_v2  ;;  %v4589_v7 = vadd.f32 %v15444_v54, %v11157_v60  ;;  %v11425_v13 = vld [vmem:[%s15176_s2 + $0x7] ss:$0 sm:$0xff]  ;;  %v15447_v56 = vld [vmem:[#allocation110_spill] sm:$0xff]  ;;  %v15449_v54 = vld [vmem:[#allocation109_spill] sm:$0xff] }
 0x2b6   : > { %15440 = vst [vmem:[#allocation90_spill] sm:$0xff] %v11392_v34  ;;  %v11420_v0 = vmul.f32 %v11416_v21, %v11311_v23  ;;  %v11429_v60 = vmul.f32 %v11425_v13, %v11311_v23  ;;  %v11431_v57 = vadd.f32 %v4489_v17, %v4449_v19  ;;  %v11434_v10 = vadd.f32 %v4490_v27, %v15447_v56  ;;  %v15448_v42 = vld [vmem:[#allocation96_spill] sm:$0xff]  ;;  %v15451_v19 = vld [vmem:[#allocation33_spill] sm:$0xff]  ;;  %v15453_v27 = vld [vmem:[#allocation126_spill] sm:$0xff] }
 0x2b7   : > { %15439 = vst [vmem:[#allocation94_spill] sm:$0xff] %v11389_v8  ;;  %15442 = vst [vmem:[#allocation25_spill] sm:$0xff] %v11403_v1  ;;  %v4661_v24 = vadd.f32 %v15448_v42, %v4589_v7  ;;  %v4703_v44 = vmul.f32 %v10396_v16, %v11283_v50  ;;  %v15452_v17 = vld [vmem:[#allocation108_spill] sm:$0xff]  ;;  %v15454_v56 = vrot.slane %v15453_v27, 1  ;;  %v15455_v7 = vrot.slane %v10663_v53, 1  ;;  %v15457_v42 = vld [vmem:[#allocation99_spill] sm:$0xff] }
 0x2b8   : > { %15443 = vst [vmem:[#allocation27_spill] sm:$0xff] %v11407_v18  ;;  %15445 = vst [vmem:[#allocation100_spill] sm:$0xff] %v11420_v0  ;;  %v4662_v18 = vadd.f32 %v15449_v54, %v4590_v33  ;;  %v15450_v0 = vsel %vm15128_vm3, %v11186_v38, 0.0  ;;  %v8360_v1 = vadd.f32 %v15452_v17, %v15451_v19  ;;  %v15458_v54 = vrot.slane %v15457_v42, 1  ;;  %v15462_v19 = vld [vmem:[#allocation83_spill] sm:$0xff]  ;;  %v15467_v8 = vld [vmem:[#allocation93_spill] sm:$0xff] }
 0x2b9   : > { %15446 = vst [vmem:[#allocation23_spill] sm:$0xff] %v11429_v60  ;;  %v4702_v2 = vmul.f32 %v10396_v16, %v15450_v0  ;;  %v4773_v60 = vmul.f32 %v10476_v28, %v4274_v35  ;;  %v4091_v33 = vsel %vm15456_vm13, %v15455_v7, %v15454_v56  ;;  %v15459_v38 = vmov %v15454_v56  ;;  %vm15460_vm1 = vmmov %vm15456_vm13  ;;  %v15461_v35 = vld [vmem:[#allocation103_spill] sm:$0xff] }
 0x2ba   : > { %v11458_v0 = vsel %vm15460_vm1, %v15459_v38, %v15458_v54  ;;  %v4733_v46 = vadd.f32 %v11257_v29, %v4661_v24  ;;  %v4774_v31 = vmul.f32 %v10476_v28, %v15461_v35  ;;  %vm15463_vm3 = vnez %v15462_v19  ;;  %v11472_v27 = vld [vmem:[%s15178_s27] ss:$0 sm:$0xff]  ;;  %v15464_v54 = vld [vmem:[#allocation112_spill] sm:$0xff] }
 0x2bb   : > { %v4734_v34 = vadd.f32 %v4702_v2, %v4662_v18  ;;  %v4171_v17 = vsel %vm15463_vm3, %v11458_v0, 0.0  ;;  %v4916_v53 = vmul.f32 %v10565_v63, %v11283_v50  ;;  %v4917_v56 = vmul.f32 %v10565_v63, %v4306_v20  ;;  %v15465_v20 = vld [vmem:[#allocation127_spill] sm:$0xff] }
 0x2bc   : > { %v3874_v29 = vadd.f32 %v11472_v27, %v8360_v1  ;;  %v4491_v2 = vmul.f32 %v11397_v52, %v4091_v33  ;;  %v4805_v18 = vadd.f32 %v4773_v60, %v4733_v46  ;;  %v4492_v7 = vmul.f32 %v11397_v52, %v4171_v17  ;;  %v15466_v1 = vld [vmem:[#allocation111_spill] sm:$0xff]  ;;  %v15469_v60 = vld [vmem:[#allocation137_spill] sm:$0xff] }
 0x2bd   : > { %v4806_v24 = vadd.f32 %v4774_v31, %v4734_v34  ;;  %v4591_v38 = vadd.f32 %v15464_v54, %v11210_v49  ;;  %v4592_v58 = vadd.f32 %v15466_v1, %v11222_v26  ;;  %v15468_v31 = vld [vmem:[#allocation105_spill] sm:$0xff]  ;;  %v15470_v49 = vld [vmem:[#allocation92_spill] sm:$0xff]  ;;  %vm15473_vm13 = vnez %v15472_v51 }
 0x2be   : > { %v11479_v35 = vmax.f32 %v3874_v29, 0.0  ;;  %v11485_v41 = vadd.f32 %v4491_v2, %v15465_v20  ;;  %v4876_v46 = vadd.f32 %v15467_v8, %v4805_v18  ;;  %v11492_v17 = vadd.f32 %v4492_v7, %v15469_v60 }
 0x2bf   : > { %v4877_v34 = vadd.f32 %v15468_v31, %v4806_v24  ;;  %v4663_v29 = vadd.f32 %v15470_v49, %v4591_v38  ;;  %v4276_v50 = vsel %vm15473_vm13, %v15471_v47, 0.0  ;;  %v4308_v2 = vsel %vm15132_vm10, %v11458_v0, 0.0  ;;  %v15475_v38 = vld [vmem:[#allocation104_spill] sm:$0xff] }
 0x2c0   : > { %v3993_v54 = vrot.slane %v11479_v35, 7  ;;  %v15474_v26 = vsel %vm15132_vm10, %v11295_v45, 0.0  ;;  %v4948_v18 = vadd.f32 %v4916_v53, %v4876_v46  ;;  %v4664_v20 = vadd.f32 %v15475_v38, %v4592_v58  ;;  %v15482_v58 = vld [vmem:[#allocation81_spill] sm:$0xff] }
 0x2c1   : > { %v4704_v8 = vmul.f32 %v10396_v16, %v15474_v26  ;;  %v4949_v24 = vadd.f32 %v4917_v56, %v4877_v34  ;;  %v15476_v1 = vrot.slane %v11309_v62, 7  ;;  %vm15477_vm1 = vcmask 1040384  }
 0x2c2   : > { %v15479_v31 = vrot.slane %v11304_v14, 7  ;;  %vm15480_vm13 = vmmov %vm15477_vm1  ;;  %v4432_v45 = vmul.f32 %v11332_v25, %v11479_v35  ;;  %v4735_v49 = vadd.f32 %v4703_v44, %v4663_v29  ;;  %v4987_v53 = vadd.f32 %v10986_v3, %v4948_v18 }
 0x2c3   : > { %v11512_v47 = vsel %vm15477_vm1, %v15476_v1, %v3993_v54  ;;  %v4988_v56 = vadd.f32 %v10986_v3, %v4949_v24  ;;  %vm15483_vm10 = vnez %v15482_v58  ;;  %v11528_v34 = vmul.f32 %v11416_v21, %v11479_v35  ;;  %v15545_v58 = vld [vmem:[#allocation40_spill] sm:$0xff] }
 0x2c4   : > { %15478 = vst [vmem:[#allocation102_spill] sm:$0xff] %v11512_v47  ;;  %v11517_v60 = vsel %vm15480_vm13, %v3993_v54, %v15479_v31  ;;  %v4361_v26 = vmul.f32 %v11366_v6, %v11512_v47  ;;  %v11537_v44 = vmul.f32 %v11425_v13, %v11479_v35  ;;  %v11540_v29 = vmul.f32 %v10396_v16, %v4091_v33  ;;  %v15489_v16 = vld [vmem:[#allocation132_spill] sm:$0xff] }
 0x2c5   : > { %15481 = vst [vmem:[#allocation28_spill] sm:$0xff] %v11517_v60  ;;  %v4059_v46 = vsel %vm15483_vm10, %v11517_v60, 0.0  ;;  %15484 = vst [vmem:[#allocation106_spill] sm:$0xff] %v11528_v34  ;;  %v4221_v54 = vsel %vm15434_vm7, %v11517_v60, 0.0  ;;  %v5019_v18 = vmax.f32 %v4987_v53, 0.0  ;;  %v5020_v24 = vmax.f32 %v4988_v56, 0.0 }
 0x2c6   : > { %15485 = vst [vmem:[#allocation95_spill] sm:$0xff] %v11537_v44  ;;  %v4736_v38 = vadd.f32 %v4704_v8, %v4664_v20  ;;  %v4775_v1 = vmul.f32 %v10476_v28, %v4276_v50  ;;  %v11544_v31 = vmul.f32 %v11366_v6, %v4059_v46  ;;  %v11546_v7 = vadd.f32 %v4432_v45, %v4361_v26  ;;  %v15490_v50 = vld [vmem:[#allocation29_spill] sm:$0xff]  ;;  %v15493_v45 = vld [vmem:[#allocation119_spill] sm:$0xff]  ;;  %v15494_v60 = vld [vmem:[#allocation36_spill] sm:$0xff] }
 0x2c7   : > { %v11555_v51 = vmul.f32 %v11551_v32, %v11512_v47  ;;  %v4776_v53 = vmul.f32 %v10476_v28, %v15489_v16  ;;  %v5047_v8 = vpack.c.bf16 %v5020_v24, %v5019_v18  ;;  %v15491_v56 = vld [vmem:[#allocation117_spill] sm:$0xff]  ;;  %v8362_v26 = vadd.f32 %v15493_v45, %v15492_v36  ;;  %v15495_v44 = vld [vmem:[#allocation120_spill] sm:$0xff]  ;;  %v15504_v36 = vld [vmem:[#allocation122_spill] sm:$0xff] }
 0x2c8   : > { %15486 = vst [vmem:[#allocation97_spill] sm:$0xff] %v11544_v31  ;;  %15487 = vst [vmem:[#allocation107_spill] sm:$0xff] %v11546_v7  ;;  %v4807_v20 = vadd.f32 %v4775_v1, %v4735_v49  ;;  %v8361_v46 = vadd.f32 %v15491_v56, %v15490_v50  ;;  %v8363_v31 = vadd.f32 %v15495_v44, %v15494_v60  ;;  %v15496_v7 = vld [vmem:[#allocation116_spill] sm:$0xff]  ;;  %v15498_v47 = vrot.slane %v15457_v42, 1  ;;  %v15512_v45 = vld [vmem:[#allocation38_spill] sm:$0xff] }
 0x2c9   : > { %15488 = vst [vmem:[#allocation91_spill] sm:$0xff] %v11555_v51  ;;  %v4808_v34 = vadd.f32 %v4776_v53, %v4736_v38  ;;  %v15497_v14 = vrot.slane %v15496_v7, 1  ;;  %vm15499_vm13 = vcmask 1046528   ;;  %v15500_v28 = vrot.slane %v10832_v9, 1 }
 0x2ca   : > { %vm15502_vm1 = vmmov %vm15499_vm13  ;;  %vm15503_vm8 = vcmask 64512   ;;  %v4878_v24 = vadd.f32 %v15504_v36, %v4807_v20  ;;  %v4918_v60 = vmul.f32 %v10565_v63, %v4091_v33  ;;  %v3879_v44 = vadd.f32 %v11472_v27, %v8361_v46  ;;  %v15506_v33 = vld [vmem:[#allocation84_spill] sm:$0xff]  ;;  %v15511_v46 = vld [vmem:[#allocation133_spill] sm:$0xff] }
 0x2cb   : > { %v11570_v51 = vsel %vm15499_vm13, %v15498_v47, %v15497_v14  ;;  %v15501_v49 = vmov %v15497_v14  ;;  %8260 = vmatprep.mubr.msk.bf16.mxu1 %vm15503_vm8, %v5047_v8  ;;  %v3877_v42 = vadd.f32 %v11472_v27, %v8362_v26  ;;  %v11585_v14 = vmul.f32 %v11551_v32, %v4221_v54  ;;  %v15505_v47 = vld [vmem:[#allocation136_spill] sm:$0xff]  ;;  %v15509_v54 = vld [vmem:[#allocation37_spill] sm:$0xff] }
 0x2cc   : > { %v11577_v18 = vsel %vm15502_vm1, %v15501_v49, %v15500_v28  ;;  %v4879_v38 = vadd.f32 %v15505_v47, %v4808_v34  ;;  %v4919_v7 = vmul.f32 %v10565_v63, %v4308_v2  ;;  %v3880_v1 = vadd.f32 %v11472_v27, %v8363_v31  ;;  %v15510_v63 = vld [vmem:[#allocation113_spill] sm:$0xff] }
 0x2cd   : > { %v4950_v16 = vadd.f32 %v4918_v60, %v4878_v24  ;;  %v11590_v53 = vmax.f32 %v3879_v44, 0.0  ;;  %v11592_v8 = vmax.f32 %v3877_v42, 0.0  ;;  %vm15507_vm8 = vnez %v15506_v33 }
 0x2ce   : > { %v4173_v20 = vsel %vm15507_vm8, %v11577_v18, 0.0  ;;  %v4951_v50 = vadd.f32 %v4919_v7, %v4879_v38  ;;  %v11597_v56 = vmax.f32 %v3880_v1, 0.0  ;;  %v4453_v2 = vadd.f32 %v15510_v63, %v15509_v54 }
 0x2cf   : > { %v4989_v31 = vadd.f32 %v10986_v3, %v4950_v16  ;;  %vm15513_vm13 = vnez %v15512_v45  ;;  %v4310_v28 = vsel %vm15134_vm0, %v11577_v18, 0.0  ;;  %v4493_v49 = vmul.f32 %v11397_v52, %v11570_v51  ;;  %v15522_v45 = vld [vmem:[#allocation22_spill] sm:$0xff] }
 0x2d0   : > { %15508 = vst [vmem:[#allocation98_spill] sm:$0xff] %v11597_v56  ;;  %v4278_v26 = vsel %vm15513_vm13, %v15511_v46, 0.0  ;;  %v4990_v36 = vadd.f32 %v10986_v3, %v4951_v50  ;;  %v14662_v60 = vrot.slane %v11590_v53, 7  ;;  %v14657_v44 = vrot.slane %v11592_v8, 7 }
 0x2d1   : > { %v5021_v42 = vmax.f32 %v4989_v31, 0.0  ;;  %v11619_v47 = vmul.f32 %v11416_v21, %v11590_v53  ;;  %v11623_v38 = vmul.f32 %v11425_v13, %v11590_v53  ;;  %v15516_v16 = vrot.slane %v11311_v23, 7  ;;  %v15518_v31 = vld [vmem:[#allocation82_spill] sm:$0xff] }
 0x2d2   : > { %v5022_v1 = vmax.f32 %v4990_v36, 0.0  ;;  %vm15517_vm1 = vcmask 1040384   ;;  %v4191_v54 = vrot.slane %v11597_v56, 7  ;;  %vm15519_vm13 = vnez %v15518_v31  ;;  %v15558_v31 = vld [vmem:[#allocation115_spill] sm:$0xff] }
 0x2d3   : > { %15514 = vst [vmem:[#allocation110_spill] sm:$0xff] %v11619_v47  ;;  %15515 = vst [vmem:[#allocation96_spill] sm:$0xff] %v11623_v38  ;;  %v11631_v50 = vsel %vm15517_vm1, %v15516_v16, %v14657_v44  ;;  %v4435_v24 = vmul.f32 %v11332_v25, %v11592_v8  ;;  %v11642_v36 = vmul.f32 %v11416_v21, %v11592_v8  ;;  %v15523_v38 = vrot.slane %v11597_v56, 1 }
 0x2d4   : > { %v4061_v46 = vsel %vm15519_vm13, %v11631_v50, 0.0  ;;  %v11646_v7 = vmul.f32 %v11425_v13, %v11592_v8  ;;  %v5048_v16 = vpack.c.bf16 %v5022_v1, %v5021_v42  ;;  %v4223_v44 = vsel %vm15483_vm10, %v11631_v50, 0.0  ;;  %vm15527_vm15 = vmmov %vm15517_vm1 }
 0x2d5   : > { %15520 = vst [vmem:[#allocation109_spill] sm:$0xff] %v11642_v36  ;;  %v4364_v34 = vmul.f32 %v11366_v6, %v4061_v46  ;;  %v4192_v63 = vsel %vm15517_vm1, %v14662_v60, %v4191_v54  ;;  %vm15524_vm2 = vcmask 1046528   ;;  %v15526_v36 = vld [vmem:[#allocation11_spill] sm:$0xff]  ;;  %v11665_v42 = vmul.f32 %v11416_v21, %v11597_v56  ;;  %v15532_v60 = vld [vmem:[#allocation76_spill] sm:$0xff] }
 0x2d6   : > { %15521 = vst [vmem:[#allocation33_spill] sm:$0xff] %v11646_v7  ;;  %v11659_v47 = vsel %vm15524_vm2, %v15523_v38, %v15522_v45  ;;  %v4264_v7 = vsel %vm15527_vm15, %v4191_v54, %v15526_v36  ;;  %v11669_v1 = vmul.f32 %v11425_v13, %v11597_v56  ;;  %vm15530_vm5 = vcmask 64512   ;;  %v15556_v56 = vld [vmem:[#allocation138_spill] sm:$0xff] }
 0x2d7   : > { %15525 = vst [vmem:[#allocation108_spill] sm:$0xff] %v11659_v47  ;;  %15528 = vst [vmem:[#allocation126_spill] sm:$0xff] %v11665_v42  ;;  %8261 = vmatmul.mubr.msk.bf16.gmra.mrb[40].mxu1 %vm15530_vm5, %v5048_v16  ;;  %v11672_v46 = vadd.f32 %v4435_v24, %v4364_v34  ;;  %vm15533_vm1 = vnez %v15532_v60  ;;  %v4296_v45 = vsel %vm15519_vm13, %v4264_v7, 0.0  ;;  %v4494_v54 = vmul.f32 %v11397_v52, %v4173_v20  ;;  %v15536_v34 = vld [vmem:[#allocation124_spill] sm:$0xff] }
 0x2d8   : > { %15529 = vst [vmem:[#allocation99_spill] sm:$0xff] %v11669_v1  ;;  %v4263_v38 = vsel %vm15533_vm1, %v11659_v47, 0.0  ;;  %v11681_v36 = vmul.f32 %v11551_v32, %v4223_v44  ;;  %v11684_v42 = vmul.f32 %v11551_v32, %v4192_v63  ;;  %v11686_v1 = vadd.f32 %v4493_v49, %v4453_v2  ;;  %v11693_v16 = vld [vmem:[%s15176_s2 + $0x5] ss:$0 sm:$0xff]  ;;  %v11701_v20 = vld [vmem:[%s15176_s2 + $0x6] ss:$0 sm:$0xff]  ;;  %vm15552_vm5 = vmmov %vm15524_vm2 }
 0x2d9   : > { %15531 = vst [vmem:[#allocation103_spill] sm:$0xff] %v11672_v46  ;;  %v4593_v24 = vadd.f32 %v15536_v34, %v11431_v57  ;;  %v11696_v7 = vmul.f32 %v11693_v16, %v4263_v38  ;;  %v11704_v44 = vmul.f32 %v11701_v20, %v4192_v63  ;;  %v15539_v2 = vld [vmem:[#allocation131_spill] sm:$0xff]  ;;  %v15540_v57 = vld [vmem:[#allocation134_spill] sm:$0xff]  ;;  %v15542_v47 = vld [vmem:[#allocation121_spill] sm:$0xff]  ;;  %v4707_v63 = vmul.f32 %v11693_v16, %v11570_v51 }
 0x2da   : > { %15534 = vst [vmem:[#allocation112_spill] sm:$0xff] %v11681_v36  ;;  %15535 = vst [vmem:[#allocation127_spill] sm:$0xff] %v11684_v42  ;;  %v11707_v49 = vadd.f32 %v4494_v54, %v15539_v2  ;;  %v4594_v34 = vadd.f32 %v15540_v57, %v11434_v10  ;;  %v11712_v42 = vmul.f32 %v11701_v20, %v4296_v45  ;;  %v15546_v10 = vld [vmem:[#allocation123_spill] sm:$0xff]  ;;  %v15547_v45 = vrot.slane %v10988_v37, 1 }
 0x2db   : > { %15537 = vst [vmem:[#allocation111_spill] sm:$0xff] %v11696_v7  ;;  %15538 = vst [vmem:[#allocation93_spill] sm:$0xff] %v11704_v44  ;;  %v4665_v38 = vadd.f32 %v15542_v47, %v4593_v24  ;;  %v15543_v7 = vsel %vm15134_vm0, %v11458_v0, 0.0  ;;  %v15544_v44 = vld [vmem:[#allocation135_spill] sm:$0xff]  ;;  %v4777_v2 = vmul.f32 %v11701_v20, %v4278_v26  ;;  %v8364_v57 = vadd.f32 %v15546_v10, %v15545_v58 }
 0x2dc   : > { %15541 = vst [vmem:[#allocation105_spill] sm:$0xff] %v11712_v42  ;;  %v4706_v36 = vmul.f32 %v11693_v16, %v15543_v7  ;;  %v4666_v54 = vadd.f32 %v15544_v44, %v4594_v34  ;;  %v15548_v47 = vrot.slane %v10832_v9, 1  ;;  %v4778_v7 = vmul.f32 %v11701_v20, %v15549_v5  ;;  %v11745_v9 = vld [vmem:[%s15176_s2 + $0x8] ss:$0 sm:$0xff]  ;;  %s8684_s2 = scalar_lea.vmem %s14299_s25, 16 }
 0x2dd   : > { %v4737_v0 = vadd.f32 %v11540_v29, %v4665_v38  ;;  %v15550_v42 = vrot.slane %v10824_v61, 1  ;;  %v15551_v44 = vmov %v15547_v45  ;;  %v4920_v29 = vmul.f32 %v11745_v9, %v11570_v51  ;;  %v15553_v38 = vld [vmem:[#allocation62_spill] sm:$0xff]  ;;  %p8685_p11 = scmp.ne.s32.totalorder %s14299_s25, %s8684_s2 }
 0x2de   : > { %v4099_v24 = vsel %vm15524_vm2, %v15548_v47, %v15547_v45  ;;  %v4738_v34 = vadd.f32 %v4706_v36, %v4666_v54  ;;  %v3878_v5 = vadd.f32 %v11472_v27, %v8364_v57  ;;  %vm15554_vm15 = vnez %v15553_v38  ;;  %v15555_v36 = vld [vmem:[#allocation147_spill] sm:$0xff]  ;;  %v15557_v27 = vld [vmem:[#allocation128_spill] sm:$0xff] }
 0x2df   : > { %v11739_v26 = vsel %vm15552_vm5, %v15551_v44, %v15550_v42  ;;  %v4495_v58 = vmul.f32 %v11397_v52, %v4099_v24  ;;  %v4809_v10 = vadd.f32 %v4777_v2, %v4737_v0  ;;  %v4921_v42 = vmul.f32 %v11745_v9, %v4310_v28  ;;  %v15559_v2 = vld [vmem:[#allocation142_spill] sm:$0xff]  ;;  %p8686_p12 = pnand %p8685_p11, %p8890_p5 }
 0x2e0   : > { %v4175_v37 = vsel %vm15554_vm15, %v11739_v26, 0.0  ;;  %v4810_v47 = vadd.f32 %v4778_v7, %v4738_v34  ;;  %v11758_v44 = vmax.f32 %v3878_v5, 0.0  ;;  %v4595_v51 = vadd.f32 %v15556_v56, %v11485_v41  ;;  %v15561_v34 = vld [vmem:[#allocation130_spill] sm:$0xff] }
 0x2e1   : > { %v4496_v45 = vmul.f32 %v11397_v52, %v4175_v37  ;;  %v11756_v54 = vadd.f32 %v4495_v58, %v15555_v36  ;;  %v4596_v57 = vadd.f32 %v15557_v27, %v11492_v17  ;;  %v4880_v46 = vadd.f32 %v15558_v31, %v4809_v10  ;;  %v15563_v36 = vld [vmem:[#allocation114_spill] sm:$0xff]  ;;  %p8687_p13 = pneg %p8686_p12 }
 0x2e2   : > { %v4249_v28 = vsel %vm15507_vm8, %v11739_v26, 0.0  ;;  %v4280_v58 = vsel %vm15267_vm11, %v15559_v2, 0.0  ;;  %v4881_v5 = vadd.f32 %v15561_v34, %v4810_v47  ;;  %v14671_v41 = vrot.slane %v11758_v44, 7  ;;  %v15566_v2 = vld [vmem:[#allocation129_spill] sm:$0xff] }
 0x2e3   : > { %v11772_v7 = vadd.f32 %v4496_v45, %v11045_v30  ;;  %v4312_v17 = vsel %vm15463_vm3, %v11739_v26, 0.0  ;;  %v15562_v56 = vsel %vm15463_vm3, %v11577_v18, 0.0  ;;  %v4952_v37 = vadd.f32 %v4920_v29, %v4880_v46 }
 0x2e4   : > { %v4708_v31 = vmul.f32 %v11693_v16, %v15562_v56  ;;  %v4667_v30 = vadd.f32 %v15563_v36, %v4595_v51  ;;  %v4709_v45 = vmul.f32 %v11693_v16, %v4099_v24  ;;  %v4953_v47 = vadd.f32 %v4921_v42, %v4881_v5 }
 0x2e5   : > { %v15564_v27 = vrot.slane %v11592_v8, 7  ;;  %vm15565_vm2 = vcmask 1040384   ;;  %v4436_v18 = vmul.f32 %v11332_v25, %v11758_v44  ;;  %v4668_v34 = vadd.f32 %v15566_v2, %v4596_v57 }
 0x2e6   : > { %v4991_v46 = vadd.f32 %v10986_v3, %v4952_v37  ;;  %v4739_v51 = vadd.f32 %v4707_v63, %v4667_v30  ;;  %v4779_v42 = vmul.f32 %v11701_v20, %v4280_v58  ;;  %v4992_v5 = vadd.f32 %v10986_v3, %v4953_v47 }
 0x2e7   : > { %v11792_v26 = vsel %vm15565_vm2, %v15564_v27, %v14671_v41  ;;  %v11804_v56 = vmul.f32 %v11416_v21, %v11758_v44  ;;  %v4740_v36 = vadd.f32 %v4708_v31, %v4668_v34  ;;  %v4780_v25 = vmul.f32 %v11701_v20, %v11013_v40  ;;  %vm15571_vm2 = vmmov %vm15552_vm5  ;;  %v15572_v34 = vld [vmem:[#allocation144_spill] sm:$0xff] }
 0x2e8   : > { %v4365_v29 = vmul.f32 %v11366_v6, %v11792_v26  ;;  %v5023_v27 = vmax.f32 %v4991_v46, 0.0  ;;  %v11812_v37 = vmul.f32 %v11425_v13, %v11758_v44  ;;  %v4811_v6 = vadd.f32 %v4779_v42, %v4739_v51  ;;  %v15573_v51 = vld [vmem:[#allocation8_spill] sm:$0xff] }
 0x2e9   : > { %v5024_v63 = vmax.f32 %v4992_v5, 0.0  ;;  %v4812_v58 = vadd.f32 %v4780_v25, %v4740_v36  ;;  %v15567_v30 = vrot.slane %v10886_v12, 1  ;;  %v15568_v47 = vrot.slane %v10824_v61, 1  ;;  %v15575_v12 = vld [vmem:[#allocation139_spill] sm:$0xff] }
 0x2ea   : > { %v11808_v57 = vadd.f32 %v4436_v18, %v4365_v29  ;;  %v15569_v31 = vrot.slane %v11003_v22, 1  ;;  %v11826_v2 = vmul.f32 %v11551_v32, %v11792_v26  ;;  %v4882_v46 = vadd.f32 %v15572_v34, %v4811_v6  ;;  %v15576_v6 = vld [vmem:[#allocation145_spill] sm:$0xff]  ;;  %v15579_v34 = vld [vmem:[#allocation44_spill] sm:$0xff] }
 0x2eb   : > { %v4103_v21 = vsel %vm15552_vm5, %v15568_v47, %v15567_v30  ;;  %v15570_v40 = vmov %v15567_v30  ;;  %v4922_v29 = vmul.f32 %v11745_v9, %v4099_v24  ;;  %vm15574_vm3 = vnez %v15573_v51 }
 0x2ec   : > { %v4105_v18 = vsel %vm15571_vm2, %v15570_v40, %v15569_v31  ;;  %v5049_v61 = vpack.c.bf16 %v5024_v63, %v5023_v27  ;;  %v4883_v5 = vadd.f32 %v11037_v59, %v4812_v58  ;;  %v4923_v36 = vmul.f32 %v11745_v9, %v4312_v17 }
 0x2ed   : > { %v4177_v42 = vsel %vm15574_vm3, %v4105_v18, 0.0  ;;  %v4457_v25 = vadd.f32 %v15575_v12, %v11041_v39  ;;  %v4954_v30 = vadd.f32 %v4922_v29, %v4882_v46  ;;  %v4497_v47 = vmul.f32 %v11397_v52, %v4103_v21  ;;  %v15580_v29 = vld [vmem:[#allocation143_spill] sm:$0xff] }
 0x2ee   : > { %v4498_v31 = vmul.f32 %v11397_v52, %v4177_v42  ;;  %v4597_v40 = vadd.f32 %v15576_v6, %v11686_v1  ;;  %vm15577_vm5 = vcmask 64512   ;;  %v4955_v24 = vadd.f32 %v4923_v36, %v4883_v5  ;;  %v15581_v5 = vld [vmem:[#allocation77_spill] sm:$0xff] }
 0x2ef   : > { %8264 = vmatprep.mubr.msk.bf16.mxu1 %vm15577_vm5, %v5049_v61  ;;  %v4251_v27 = vsel %vm15554_vm15, %v4105_v18, 0.0  ;;  %v4282_v17 = vsel %vm15288_vm6, %v11018_v55, 0.0  ;;  %v4598_v39 = vadd.f32 %v11049_v4, %v11707_v49  ;;  %v4993_v63 = vadd.f32 %v10986_v3, %v4954_v30  ;;  %v15582_v49 = vld [vmem:[#allocation146_spill] sm:$0xff]  ;;  %vm15587_vm5 = vmmov %vm15571_vm2 }
 0x2f0   : > { %v4529_v58 = vadd.f32 %v4497_v47, %v4457_v25  ;;  %v4530_v46 = vadd.f32 %v4498_v31, %v15579_v34  ;;  %v4669_v1 = vadd.f32 %v15580_v29, %v4597_v40  ;;  %v4994_v42 = vadd.f32 %v10986_v3, %v4955_v24  ;;  %v15588_v34 = vld [vmem:[#allocation85_spill] sm:$0xff] }
 0x2f1   : > { %v4314_v61 = vsel %vm15507_vm8, %v4105_v18, 0.0  ;;  %v4670_v36 = vadd.f32 %v15581_v5, %v4598_v39  ;;  %v4710_v12 = vmul.f32 %v11693_v16, %v4249_v28  ;;  %v5025_v55 = vmax.f32 %v4993_v63, 0.0  ;;  %v15590_v5 = vld [vmem:[#allocation41_spill] sm:$0xff] }
 0x2f2   : > { %v4741_v6 = vadd.f32 %v4709_v45, %v4669_v1  ;;  %v4781_v4 = vmul.f32 %v11701_v20, %v4282_v17  ;;  %v4782_v25 = vmul.f32 %v11701_v20, %v15582_v49  ;;  %v5026_v30 = vmax.f32 %v4994_v42, 0.0  ;;  %v15592_v49 = vld [vmem:[#allocation141_spill] sm:$0xff] }
 0x2f3   : > { %v4742_v47 = vadd.f32 %v4710_v12, %v4670_v36  ;;  %v15583_v31 = vrot.slane %v11197_v11, 1  ;;  %v15584_v40 = vrot.slane %v11003_v22, 1  ;;  %v15585_v18 = vrot.slane %v11001_v15, 1 }
 0x2f4   : > { %v4711_v45 = vmul.f32 %v11693_v16, %v4103_v21  ;;  %v4813_v17 = vadd.f32 %v4781_v4, %v4741_v6  ;;  %v4924_v63 = vmul.f32 %v11745_v9, %v4103_v21  ;;  %vm15589_vm8 = vnez %v15588_v34  ;;  %v15594_v21 = vld [vmem:[#allocation63_spill] sm:$0xff] }
 0x2f5   : > { %v4107_v24 = vsel %vm15571_vm2, %v15584_v40, %v15583_v31  ;;  %v15586_v39 = vmov %v15583_v31  ;;  %v5050_v1 = vpack.c.bf16 %v5026_v30, %v5025_v55  ;;  %v4814_v42 = vadd.f32 %v4782_v25, %v4742_v47  ;;  %v15593_v40 = vld [vmem:[#allocation74_spill] sm:$0xff]  ;;  %v15596_v55 = vld [vmem:[#allocation48_spill] sm:$0xff] }
 0x2f6   : > { %v4109_v28 = vsel %vm15587_vm5, %v15586_v39, %v15585_v18  ;;  %v4284_v36 = vsel %vm15307_vm9, %v15590_v5, 0.0  ;;  %v4499_v12 = vmul.f32 %v11397_v52, %v4107_v24  ;;  %v4884_v11 = vadd.f32 %v15592_v49, %v4813_v17  ;;  %v15597_v47 = vld [vmem:[#allocation150_spill] sm:$0xff]  ;;  %v15598_v5 = vld [vmem:[#allocation140_spill] sm:$0xff] }
 0x2f7   : > { %v4179_v29 = vsel %vm15589_vm8, %v4109_v28, 0.0  ;;  %v4599_v6 = vadd.f32 %v15593_v40, %v11756_v54  ;;  %v4600_v4 = vadd.f32 %v15594_v21, %v11772_v7  ;;  %vm15595_vm2 = vcmask 64512   ;;  %v15599_v49 = vld [vmem:[#allocation46_spill] sm:$0xff] }
 0x2f8   : > { %v4500_v31 = vmul.f32 %v11397_v52, %v4179_v29  ;;  %8265 = vmatmul.mubr.msk.bf16.gmra.mrb[44].mxu1 %vm15595_vm2, %v5050_v1  ;;  %v4885_v25 = vadd.f32 %v15596_v55, %v4814_v42  ;;  %v4925_v30 = vmul.f32 %v11745_v9, %v4314_v61  ;;  %v11887_v18 = vadd.f32 %v4499_v12, %v15597_v47  ;;  %vm15605_vm2 = vmmov %vm15587_vm5 }
 0x2f9   : > { %v4712_v39 = vmul.f32 %v11693_v16, %v4251_v27  ;;  %v4956_v17 = vadd.f32 %v4924_v63, %v4884_v11  ;;  %v4671_v54 = vadd.f32 %v15598_v5, %v4599_v6  ;;  %v4672_v40 = vadd.f32 %v15599_v49, %v4600_v4  ;;  %v15600_v11 = vld [vmem:[#allocation73_spill] sm:$0xff] }
 0x2fa   : > { %v11891_v29 = vadd.f32 %v4500_v31, %v11263_v43  ;;  %v4957_v7 = vadd.f32 %v4925_v30, %v4885_v25  ;;  %v4253_v1 = vsel %vm15574_vm3, %v4109_v28, 0.0  ;;  %v4316_v61 = vsel %vm15554_vm15, %v4109_v28, 0.0 }
 0x2fb   : > { %v4783_v42 = vmul.f32 %v11701_v20, %v4284_v36  ;;  %v4995_v12 = vadd.f32 %v10986_v3, %v4956_v17  ;;  %v4743_v27 = vadd.f32 %v4711_v45, %v4671_v54  ;;  %v4744_v63 = vadd.f32 %v4712_v39, %v4672_v40  ;;  %v15606_v39 = vld [vmem:[#allocation86_spill] sm:$0xff] }
 0x2fc   : > { %v4784_v43 = vmul.f32 %v11701_v20, %v15600_v11  ;;  %v4996_v31 = vadd.f32 %v10986_v3, %v4957_v7  ;;  %v4713_v6 = vmul.f32 %v11693_v16, %v4107_v24  ;;  %v15601_v21 = vrot.slane %v11070_v48, 1  ;;  %v15609_v40 = vld [vmem:[#allocation18_spill] sm:$0xff]  ;;  %v15610_v11 = vld [vmem:[#allocation17_spill] sm:$0xff] }
 0x2fd   : > { %v15602_v4 = vrot.slane %v11001_v15, 1  ;;  %v15603_v28 = vrot.slane %v11309_v62, 1  ;;  %v4815_v25 = vadd.f32 %v4783_v42, %v4743_v27  ;;  %v4926_v47 = vmul.f32 %v11745_v9, %v4107_v24  ;;  %v15608_v15 = vld [vmem:[#allocation58_spill] sm:$0xff]  ;;  %v15612_v24 = vld [vmem:[#allocation20_spill] sm:$0xff] }
 0x2fe   : > { %v15604_v36 = vmov %v15601_v21  ;;  %v4816_v30 = vadd.f32 %v4784_v43, %v4744_v63  ;;  %vm15607_vm15 = vnez %v15606_v39  ;;  %v5027_v5 = vmax.f32 %v4995_v12, 0.0  ;;  %v15614_v12 = vld [vmem:[#allocation148_spill] sm:$0xff] }
 0x2ff   : > { %v4111_v55 = vsel %vm15587_vm5, %v15602_v4, %v15601_v21  ;;  %v4113_v45 = vsel %vm15605_vm2, %v15604_v36, %v15603_v28  ;;  %v5028_v54 = vmax.f32 %v4996_v31, 0.0  ;;  %v4927_v49 = vmul.f32 %v11745_v9, %v4316_v61  ;;  %v15611_v4 = vld [vmem:[#allocation68_spill] sm:$0xff]  ;;  %v15615_v36 = vld [vmem:[#allocation34_spill] sm:$0xff] }
 0x300   : > { %v4181_v17 = vsel %vm15607_vm15, %v4113_v45, 0.0  ;;  %v4461_v7 = vadd.f32 %v15609_v40, %v15608_v15  ;;  %v4886_v21 = vadd.f32 %v15610_v11, %v4815_v25  ;;  %v4887_v48 = vadd.f32 %v15611_v4, %v4816_v30  ;;  %v15616_v25 = vld [vmem:[#allocation70_spill] sm:$0xff] }
 0x301   : > { %v4501_v28 = vmul.f32 %v11397_v52, %v4111_v55  ;;  %v4502_v42 = vmul.f32 %v11397_v52, %v4181_v17  ;;  %v5051_v27 = vpack.c.bf16 %v5028_v54, %v5027_v5  ;;  %v4286_v43 = vsel %vm15335_vm4, %v15612_v24, 0.0  ;;  %v15618_v17 = vld [vmem:[#allocation78_spill] sm:$0xff] }
 0x302   : > { %v4601_v31 = vadd.f32 %v15614_v12, %v4529_v58  ;;  %v4602_v61 = vadd.f32 %v15615_v36, %v4530_v46  ;;  %v4958_v41 = vadd.f32 %v4926_v47, %v4886_v21  ;;  %v4959_v10 = vadd.f32 %v4927_v49, %v4887_v48  ;;  %v15619_v54 = vld [vmem:[#allocation42_spill] sm:$0xff]  ;;  %v15620_v48 = vld [vmem:[#allocation149_spill] sm:$0xff] }
 0x303   : > { %v11930_v15 = vadd.f32 %v4501_v28, %v4461_v7  ;;  %v11933_v40 = vadd.f32 %v4502_v42, %v15616_v25  ;;  %vm15617_vm5 = vcmask 64512   ;;  %v4255_v30 = vsel %vm15589_vm8, %v4113_v45, 0.0  ;;  %v15623_v12 = vld [vmem:[#allocation49_spill] sm:$0xff]  ;;  %v15627_v25 = vld [vmem:[#allocation87_spill] sm:$0xff] }
 0x304   : > { %8268 = vmatprep.mubr.msk.bf16.mxu1 %vm15617_vm5, %v5051_v27  ;;  %v4673_v5 = vadd.f32 %v15618_v17, %v4601_v31  ;;  %v4674_v11 = vadd.f32 %v15619_v54, %v4602_v61  ;;  %v4714_v58 = vmul.f32 %v11693_v16, %v4253_v1  ;;  %v4997_v46 = vadd.f32 %v10986_v3, %v4958_v41  ;;  %vm15626_vm5 = vmmov %vm15605_vm2 }
 0x305   : > { %v4998_v47 = vadd.f32 %v10986_v3, %v4959_v10  ;;  %v4318_v49 = vsel %vm15574_vm3, %v4113_v45, 0.0  ;;  %v4785_v7 = vmul.f32 %v11701_v20, %v4286_v43  ;;  %v4786_v28 = vmul.f32 %v11701_v20, %v15620_v48  ;;  %v15632_v48 = vld [vmem:[#allocation152_spill] sm:$0xff] }
 0x306   : > { %v4745_v21 = vadd.f32 %v4713_v6, %v4673_v5  ;;  %v4746_v4 = vadd.f32 %v4714_v58, %v4674_v11  ;;  %v15621_v42 = vrot.slane %v11479_v35, 1  ;;  %v15622_v27 = vrot.slane %v11309_v62, 1  ;;  %v15629_v5 = vld [vmem:[#allocation52_spill] sm:$0xff] }
 0x307   : > { %v5029_v24 = vmax.f32 %v4997_v46, 0.0  ;;  %v5030_v41 = vmax.f32 %v4998_v47, 0.0  ;;  %v4928_v10 = vmul.f32 %v11745_v9, %v4111_v55  ;;  %v15624_v31 = vrot.slane %v15623_v12, 1  ;;  %v15631_v47 = vld [vmem:[#allocation43_spill] sm:$0xff] }
 0x308   : > { %v4115_v1 = vsel %vm15605_vm2, %v15622_v27, %v15621_v42  ;;  %v15625_v45 = vmov %v15621_v42  ;;  %v4817_v43 = vadd.f32 %v4785_v7, %v4745_v21  ;;  %v4818_v36 = vadd.f32 %v4786_v28, %v4746_v4  ;;  %v15633_v7 = vld [vmem:[#allocation72_spill] sm:$0xff]  ;;  %v15636_v27 = vld [vmem:[#allocation94_spill] sm:$0xff] }
 0x309   : > { %v4117_v6 = vsel %vm15626_vm5, %v15625_v45, %v15624_v31  ;;  %v4929_v61 = vmul.f32 %v11745_v9, %v4318_v49  ;;  %vm15628_vm3 = vnez %v15627_v25  ;;  %v5052_v62 = vpack.c.bf16 %v5030_v41, %v5029_v24  ;;  %v15634_v49 = vld [vmem:[#allocation66_spill] sm:$0xff]  ;;  %v15637_v41 = vld [vmem:[#allocation107_spill] sm:$0xff] }
 0x30a   : > { %v4183_v17 = vsel %vm15628_vm3, %v4117_v6, 0.0  ;;  %v4288_v11 = vsel %vm15352_vm14, %v15629_v5, 0.0  ;;  %v4503_v58 = vmul.f32 %v11397_v52, %v4115_v1  ;;  %v4888_v35 = vadd.f32 %v15631_v47, %v4817_v43 }
 0x30b   : > { %v4504_v46 = vmul.f32 %v11397_v52, %v4183_v17  ;;  %v4889_v42 = vadd.f32 %v15632_v48, %v4818_v36  ;;  %v4603_v21 = vadd.f32 %v15633_v7, %v11887_v18  ;;  %v4604_v4 = vadd.f32 %v15634_v49, %v11891_v29  ;;  %v15638_v17 = vld [vmem:[#allocation19_spill] sm:$0xff] }
 0x30c   : > { %vm15635_vm2 = vcmask 64512   ;;  %v4715_v28 = vmul.f32 %v11693_v16, %v4111_v55  ;;  %v11976_v24 = vadd.f32 %v4503_v58, %v15636_v27  ;;  %v4716_v45 = vmul.f32 %v11693_v16, %v4255_v30  ;;  %v15639_v18 = vld [vmem:[#allocation151_spill] sm:$0xff]  ;;  %v15640_v58 = vld [vmem:[#allocation102_spill] sm:$0xff] }
 0x30d   : > { %8269 = vmatmul.mubr.msk.bf16.gmra.mrb[48].mxu1 %vm15635_vm2, %v5052_v62  ;;  %v11979_v31 = vadd.f32 %v4504_v46, %v15637_v41  ;;  %v4960_v43 = vadd.f32 %v4928_v10, %v4888_v35  ;;  %v4961_v36 = vadd.f32 %v4929_v61, %v4889_v42  ;;  %v4675_v5 = vadd.f32 %v15638_v17, %v4603_v21  ;;  %vm15645_vm2 = vmmov %vm15626_vm5  ;;  %v15647_v27 = vld [vmem:[#allocation26_spill] sm:$0xff] }
 0x30e   : > { %v4676_v47 = vadd.f32 %v15639_v18, %v4604_v4  ;;  %v4257_v29 = vsel %vm15607_vm15, %v4117_v6, 0.0  ;;  %v4320_v55 = vsel %vm15589_vm8, %v4117_v6, 0.0  ;;  %v4787_v62 = vmul.f32 %v11701_v20, %v4288_v11  ;;  %v15646_v4 = vld [vmem:[#allocation97_spill] sm:$0xff] }
 0x30f   : > { %v4788_v46 = vmul.f32 %v11701_v20, %v15640_v58  ;;  %v4999_v48 = vadd.f32 %v10986_v3, %v4960_v43  ;;  %v5000_v30 = vadd.f32 %v10986_v3, %v4961_v36  ;;  %v4747_v10 = vadd.f32 %v4715_v28, %v4675_v5 }
 0x310   : > { %v4748_v61 = vadd.f32 %v4716_v45, %v4676_v47  ;;  %v4717_v35 = vmul.f32 %v11693_v16, %v4115_v1  ;;  %v15641_v42 = vrot.slane %v11311_v23, 1  ;;  %v15642_v7 = vrot.slane %v15623_v12, 1  ;;  %v15648_v12 = vld [vmem:[#allocation88_spill] sm:$0xff]  ;;  %v15650_v23 = vld [vmem:[#allocation53_spill] sm:$0xff] }
 0x311   : > { %v15643_v6 = vrot.slane %v11592_v8, 1  ;;  %v4465_v41 = vadd.f32 %v15647_v27, %v15646_v4  ;;  %v5031_v3 = vmax.f32 %v4999_v48, 0.0  ;;  %v5032_v28 = vmax.f32 %v5000_v30, 0.0  ;;  %v15652_v48 = vld [vmem:[#allocation28_spill] sm:$0xff]  ;;  %v15729_v30 = vld [vmem:[#allocation31_spill] sm:$0xff] }
 0x312   : > { %v4119_v21 = vsel %vm15626_vm5, %v15642_v7, %v15641_v42  ;;  %v15644_v11 = vmov %v15641_v42  ;;  %v4819_v45 = vadd.f32 %v4787_v62, %v4747_v10  ;;  %v4820_v43 = vadd.f32 %v4788_v46, %v4748_v61  ;;  %v15651_v42 = vld [vmem:[#allocation95_spill] sm:$0xff] }
 0x313   : > { %v4121_v49 = vsel %vm15645_vm2, %v15644_v11, %v15643_v6  ;;  %v4930_v36 = vmul.f32 %v11745_v9, %v4115_v1  ;;  %v4931_v17 = vmul.f32 %v11745_v9, %v4320_v55  ;;  %vm15649_vm8 = vnez %v15648_v12  ;;  %v15654_v1 = vld [vmem:[#allocation90_spill] sm:$0xff]  ;;  %v15655_v10 = vld [vmem:[#allocation91_spill] sm:$0xff] }
 0x314   : > { %v4185_v5 = vsel %vm15649_vm8, %v4121_v49, 0.0  ;;  %v4505_v18 = vmul.f32 %v11397_v52, %v4119_v21  ;;  %v5053_v47 = vpack.c.bf16 %v5032_v28, %v5031_v3  ;;  %v4890_v58 = vadd.f32 %v15650_v23, %v4819_v45  ;;  %v15657_v3 = vld [vmem:[#allocation25_spill] sm:$0xff] }
 0x315   : > { %v4891_v7 = vadd.f32 %v15651_v42, %v4820_v43  ;;  %v4506_v6 = vmul.f32 %v11397_v52, %v4185_v5  ;;  %v4290_v62 = vsel %vm15400_vm12, %v15652_v48, 0.0  ;;  %v4605_v55 = vadd.f32 %v15654_v1, %v11930_v15  ;;  %v15659_v5 = vld [vmem:[#allocation106_spill] sm:$0xff]  ;;  %v15660_v23 = vld [vmem:[#allocation101_spill] sm:$0xff] }
 0x316   : > { %v12017_v46 = vadd.f32 %v4505_v18, %v4465_v41  ;;  %v4606_v61 = vadd.f32 %v15655_v10, %v11933_v40  ;;  %vm15656_vm5 = vcmask 64512   ;;  %v4962_v11 = vadd.f32 %v4930_v36, %v4890_v58  ;;  %v15658_v41 = vld [vmem:[#allocation30_spill] sm:$0xff]  ;;  %v12035_v40 = vld [vmem:[%s15326_s4] ss:$0 sm:$0xff] }
 0x317   : > { %8272 = vmatprep.mubr.msk.bf16.mxu1 %vm15656_vm5, %v5053_v47  ;;  %v4963_v4 = vadd.f32 %v4931_v17, %v4891_v7  ;;  %v4259_v27 = vsel %vm15628_vm3, %v4121_v49, 0.0  ;;  %v4538_v28 = vadd.f32 %v4506_v6, %v15657_v3  ;;  %v4322_v45 = vsel %vm15607_vm15, %v4121_v49, 0.0  ;;  %vm15665_vm5 = vmmov %vm15645_vm2 }
 0x318   : > { %v4677_v43 = vadd.f32 %v15658_v41, %v4605_v55  ;;  %v4678_v18 = vadd.f32 %v15659_v5, %v4606_v61  ;;  %v4718_v15 = vmul.f32 %v11693_v16, %v4257_v29  ;;  %v5001_v36 = vadd.f32 %v12035_v40, %v4962_v11 }
 0x319   : > { %v5002_v17 = vadd.f32 %v12035_v40, %v4963_v4  ;;  %v4789_v47 = vmul.f32 %v11701_v20, %v4290_v62  ;;  %v4790_v49 = vmul.f32 %v11701_v20, %v15660_v23  ;;  %v15661_v7 = vrot.slane %v11758_v44, 1  ;;  %v15668_v23 = vld [vmem:[#allocation23_spill] sm:$0xff] }
 0x31a   : > { %v4749_v58 = vadd.f32 %v4717_v35, %v4677_v43  ;;  %v4750_v42 = vadd.f32 %v4718_v15, %v4678_v18  ;;  %v15662_v29 = vrot.slane %v11592_v8, 1  ;;  %v15663_v48 = vrot.slane %v11590_v53, 1 }
 0x31b   : > { %v15664_v1 = vmov %v15661_v7  ;;  %v5033_v10 = vmax.f32 %v5001_v36, 0.0  ;;  %v5034_v61 = vmax.f32 %v5002_v17, 0.0  ;;  %v4932_v62 = vmul.f32 %v11745_v9, %v4119_v21  ;;  %v15667_v36 = vld [vmem:[#allocation89_spill] sm:$0xff] }
 0x31c   : > { %v4123_v6 = vsel %vm15645_vm2, %v15662_v29, %v15661_v7  ;;  %v4125_v55 = vsel %vm15665_vm5, %v15664_v1, %v15663_v48  ;;  %v4821_v11 = vadd.f32 %v4789_v47, %v4749_v58  ;;  %v4822_v4 = vadd.f32 %v4790_v49, %v4750_v42  ;;  %v15669_v47 = vld [vmem:[#allocation27_spill] sm:$0xff]  ;;  %v15672_v29 = vld [vmem:[#allocation50_spill] sm:$0xff] }
 0x31d   : > { %v4187_v35 = vsel %vm15533_vm1, %v4125_v55, 0.0  ;;  %v4933_v3 = vmul.f32 %v11745_v9, %v4322_v45  ;;  %v4292_v41 = vsel %vm15434_vm7, %v11631_v50, 0.0  ;;  %v5054_v43 = vpack.c.bf16 %v5034_v61, %v5033_v10  ;;  %v15671_v58 = vld [vmem:[#allocation103_spill] sm:$0xff]  ;;  %v15673_v10 = vld [vmem:[#allocation100_spill] sm:$0xff] }
 0x31e   : > { %v4507_v5 = vmul.f32 %v11397_v52, %v4123_v6  ;;  %v4508_v18 = vmul.f32 %v11397_v52, %v4187_v35  ;;  %v4607_v15 = vadd.f32 %v11585_v14, %v11976_v24  ;;  %v4892_v17 = vadd.f32 %v15667_v36, %v4821_v11 }
 0x31f   : > { %v4893_v7 = vadd.f32 %v15668_v23, %v4822_v4  ;;  %v4608_v49 = vadd.f32 %v15669_v47, %v11979_v31  ;;  %v4720_v45 = vmul.f32 %v11693_v16, %v4259_v27  ;;  %vm15670_vm2 = vcmask 64512  }
 0x320   : > { %8273 = vmatmul.mubr.msk.bf16.gmra.mrb[52].mxu1 %vm15670_vm2, %v5054_v43  ;;  %v4719_v50 = vmul.f32 %v11693_v16, %v4119_v21  ;;  %v4539_v42 = vadd.f32 %v4507_v5, %v15671_v58  ;;  %v4540_v52 = vadd.f32 %v4508_v18, %v11808_v57  ;;  %v4679_v48 = vadd.f32 %v15672_v29, %v4607_v15  ;;  %v15678_v15 = vld [vmem:[#allocation98_spill] sm:$0xff]  ;;  %v15684_v29 = vld [vmem:[#allocation112_spill] sm:$0xff] }
 0x321   : > { %v4964_v14 = vadd.f32 %v4932_v62, %v4892_v17  ;;  %v4965_v24 = vadd.f32 %v4933_v3, %v4893_v7  ;;  %v4261_v1 = vsel %vm15649_vm8, %v4125_v55, 0.0  ;;  %v4680_v61 = vadd.f32 %v15673_v10, %v4608_v49 }
 0x322   : > { %v4324_v31 = vsel %vm15628_vm3, %v4125_v55, 0.0  ;;  %v4751_v27 = vadd.f32 %v4719_v50, %v4679_v48  ;;  %v4791_v35 = vmul.f32 %v11701_v20, %v4292_v41  ;;  %v4792_v21 = vmul.f32 %v11701_v20, %v11792_v26 }
 0x323   : > { %v5003_v57 = vadd.f32 %v12035_v40, %v4964_v14  ;;  %v5004_v11 = vadd.f32 %v12035_v40, %v4965_v24  ;;  %v4752_v62 = vadd.f32 %v4720_v45, %v4680_v61  ;;  %v15674_v4 = vrot.slane %v11590_v53, 7 }
 0x324   : > { %v15675_v3 = vrot.slane %v11758_v44, 7  ;;  %vm15676_vm5 = vcmask 1040384   ;;  %v4721_v5 = vmul.f32 %v11693_v16, %v4123_v6  ;;  %v4823_v55 = vadd.f32 %v4791_v35, %v4751_v27  ;;  %v15682_v44 = vld [vmem:[#allocation33_spill] sm:$0xff] }
 0x325   : > { %v15679_v36 = vrot.slane %v15678_v15, 1  ;;  %v15680_v26 = vrot.slane %v11590_v53, 1  ;;  %vm15681_vm2 = vcmask 1046528   ;;  %v5035_v23 = vmax.f32 %v5003_v57, 0.0  ;;  %v15685_v35 = vld [vmem:[#allocation109_spill] sm:$0xff] }
 0x326   : > { %v4190_v43 = vsel %vm15676_vm5, %v15675_v3, %v15674_v4  ;;  %v5036_v7 = vmax.f32 %v5004_v11, 0.0  ;;  %v4824_v47 = vadd.f32 %v4792_v21, %v4752_v62  ;;  %v4934_v49 = vmul.f32 %v11745_v9, %v4123_v6  ;;  %v15688_v4 = vld [vmem:[#allocation127_spill] sm:$0xff] }
 0x327   : > { %v4225_v41 = vsel %vm15519_vm13, %v4190_v43, 0.0  ;;  %v4228_v17 = vsel %vm15681_vm2, %v15680_v26, %v15679_v36  ;;  %v4894_v45 = vadd.f32 %v15682_v44, %v4823_v55  ;;  %v4294_v58 = vsel %vm15483_vm10, %v4190_v43, 0.0  ;;  %v15689_v43 = vld [vmem:[#allocation110_spill] sm:$0xff] }
 0x328   : > { %v4609_v48 = vadd.f32 %v15684_v29, %v12017_v46  ;;  %v4610_v14 = vadd.f32 %v11826_v2, %v4538_v28  ;;  %v5055_v24 = vpack.c.bf16 %v5036_v7, %v5035_v23  ;;  %v4895_v53 = vadd.f32 %v11812_v37, %v4824_v47  ;;  %v15687_v46 = vld [vmem:[#allocation108_spill] sm:$0xff]  ;;  %v15691_v23 = vld [vmem:[#allocation93_spill] sm:$0xff] }
 0x329   : > { %v4935_v10 = vmul.f32 %v11745_v9, %v4324_v31  ;;  %v4579_v61 = vmul.f32 %v11551_v32, %v4225_v41  ;;  %v4966_v27 = vadd.f32 %v4934_v49, %v4894_v45  ;;  %v4722_v57 = vmul.f32 %v11693_v16, %v4261_v1  ;;  %v15690_v41 = vld [vmem:[#allocation11_spill] sm:$0xff]  ;;  %v15693_v45 = vld [vmem:[#allocation96_spill] sm:$0xff] }
 0x32a   : > { %v4681_v6 = vadd.f32 %v15685_v35, %v4609_v48  ;;  %v4682_v21 = vadd.f32 %v11804_v56, %v4610_v14  ;;  %vm15686_vm5 = vcmask 64512   ;;  %v4326_v2 = vsel %vm15649_vm8, %v15687_v46, 0.0  ;;  %v15695_v14 = vld [vmem:[#allocation111_spill] sm:$0xff] }
 0x32b   : > { %8276 = vmatprep.mubr.msk.bf16.mxu1 %vm15686_vm5, %v5055_v24  ;;  %v4967_v11 = vadd.f32 %v4935_v10, %v4895_v53  ;;  %v4793_v37 = vmul.f32 %v11701_v20, %v4294_v58  ;;  %v4611_v28 = vadd.f32 %v4579_v61, %v4539_v42  ;;  %v5005_v31 = vadd.f32 %v12035_v40, %v4966_v27  ;;  %v15692_v42 = vld [vmem:[#allocation126_spill] sm:$0xff]  ;;  %v15696_v53 = vld [vmem:[#allocation105_spill] sm:$0xff]  ;;  %v15698_v35 = vld [vmem:[#allocation75_spill] sm:$0xff] }
 0x32c   : > { %v4753_v32 = vadd.f32 %v4721_v5, %v4681_v6  ;;  %v4754_v62 = vadd.f32 %v4722_v57, %v4682_v21  ;;  %v4612_v3 = vadd.f32 %v15688_v4, %v4540_v52  ;;  %v4723_v1 = vmul.f32 %v11693_v16, %v4228_v17  ;;  %v15694_v16 = vld [vmem:[#allocation99_spill] sm:$0xff]  ;;  %v15697_v61 = vld [vmem:[#allocation22_spill] sm:$0xff]  ;;  %vm15699_vm2 = vmmov %vm15686_vm5 }
 0x32d   : > { %v5006_v56 = vadd.f32 %v12035_v40, %v4967_v11  ;;  %v4683_v55 = vadd.f32 %v15689_v43, %v4611_v28  ;;  %v4796_v15 = vmul.f32 %v11701_v20, %v15690_v41  ;;  %v5037_v36 = vmax.f32 %v5005_v31, 0.0  ;;  %vm15700_vm5 = vmmov %vm15699_vm2  ;;  %v12144_v43 = vld [vmem:[%s15701_s7] ss:$0 sm:$0xff] }
 0x32e   : > { %v4825_v26 = vadd.f32 %v4793_v37, %v4753_v32  ;;  %v4826_v7 = vadd.f32 %v15691_v23, %v4754_v62  ;;  %v4684_v47 = vadd.f32 %v15692_v42, %v4612_v3  ;;  %v4936_v5 = vmul.f32 %v11745_v9, %v4228_v17 }
 0x32f   : > { %v5038_v49 = vmax.f32 %v5006_v56, 0.0  ;;  %v4755_v44 = vadd.f32 %v4723_v1, %v4683_v55  ;;  %v4867_v52 = vmul.f32 0.0, %v11425_v13  ;;  %v4937_v48 = vmul.f32 %v11745_v9, %v4326_v2  ;;  %v12149_v55 = vld [vmem:[%s15701_s7 + $0x1] ss:$0 sm:$0xff] }
 0x330   : > { %v4896_v58 = vadd.f32 %v15693_v45, %v4825_v26  ;;  %v4897_v29 = vadd.f32 %v15694_v16, %v4826_v7  ;;  %v4756_v20 = vadd.f32 %v15695_v14, %v4684_v47  ;;  %v4938_v27 = vmul.f32 %v11745_v9, %v15697_v61  ;;  %v12157_v26 = vld [vmem:[%s15703_s6] ss:$0 sm:$0xff]  ;;  %v12162_v7 = vld [vmem:[%s15701_s7 + $0x2] ss:$0 sm:$0xff] }
 0x331   : > { %v5056_v24 = vpack.c.bf16 %v5038_v49, %v5037_v36  ;;  %v4827_v10 = vadd.f32 %v15696_v53, %v4755_v44  ;;  %v4939_v17 = vmul.f32 %v11745_v9, %v15698_v35  ;;  %v5804_v36 = vmul.f32 0.0, %v12149_v55 }
 0x332   : > { %v4968_v6 = vadd.f32 %v4936_v5, %v4896_v58  ;;  %v4969_v21 = vadd.f32 %v4937_v48, %v4897_v29  ;;  %v4828_v13 = vadd.f32 %v4796_v15, %v4756_v20  ;;  %v15702_v15 = vld [vmem:[#allocation65_spill] sm:$0xff]  ;;  %v5875_v45 = vmul.f32 %v12162_v7, %v15697_v61 }
 0x333   : > { %8277 = vmatmul.mubr.msk.bf16.gmra.mrb[56].mxu1 %vm15699_vm2, %v5056_v24  ;;  %v4898_v57 = vadd.f32 %v4867_v52, %v4827_v10  ;;  %v5733_v29 = vmul.f32 %v12144_v43, %v15690_v41  ;;  %vm15713_vm15 = vcmask 1046528  }
 0x334   : > { %v5007_v11 = vadd.f32 %v12035_v40, %v4968_v6  ;;  %v5008_v46 = vadd.f32 %v12035_v40, %v4969_v21  ;;  %v4899_v2 = vadd.f32 %v4867_v52, %v4828_v13  ;;  %v12186_v13 = vld [vmem:[%s15701_s7 + $0x4] ss:$0 sm:$0xff]  ;;  %vm15714_vm10 = vmmov %vm15713_vm15 }
 0x335   : > { %v4970_v37 = vadd.f32 %v4938_v27, %v4898_v57  ;;  %v12178_v27 = vld [vmem:[%s15701_s7 + $0x3] ss:$0 sm:$0xff]  ;;  %v5836_v6 = vadd.f32 %v5804_v36, %v5733_v29 }
 0x336   : > { %v5039_v28 = vmax.f32 %v5007_v11, 0.0  ;;  %v5040_v31 = vmax.f32 %v5008_v46, 0.0  ;;  %v4971_v32 = vadd.f32 %v4939_v17, %v4899_v2  ;;  %v15706_v2 = vld [vmem:[#allocation16_spill] sm:$0xff] }
 0x337   : > { %v5009_v62 = vadd.f32 %v12035_v40, %v4970_v37  ;;  %vm15707_vm1 = vnez %v15706_v2 }
 0x338   : > { %v5057_v4 = vpack.c.bf16 %v5040_v31, %v5039_v28  ;;  %v5010_v9 = vadd.f32 %v12035_v40, %v4971_v32  ;;  %v5732_v40 = vmul.f32 %v12144_v43, %v15702_v15  ;;  %v15708_v28 = vld [vmem:[#allocation57_spill] sm:$0xff]  ;;  %v15710_v32 = vld [vmem:[#allocation14_spill] sm:$0xff] }
 0x339   : > { %v5041_v3 = vmax.f32 %v5009_v62, 0.0  ;;  %vm15709_vm8 = vnez %v15708_v28  ;;  %vm15711_vm3 = vnez %v15710_v32  ;;  %v12250_v32 = vld [vmem:[%s15701_s7 + $0x7] ss:$0 sm:$0xff] }
 0x33a   : > { %8280 = vmatprep.mubr.msk.bf16.mxu1 %vm15700_vm5, %v5057_v4  ;;  %v5042_v56 = vmax.f32 %v5010_v9, 0.0  ;;  %v5835_v49 = vadd.f32 %v5804_v36, %v5732_v40  ;;  %vm15704_vm5 = vcmask 1040384  }
 0x33c   : > { %v5058_v1 = vpack.c.bf16 %v5042_v56, %v5041_v3  ;;  %v5907_v10 = vadd.f32 %v5875_v45, %v5835_v49 }
 0x33e   : > { %8281 = vmatmul.mubr.msk.bf16.gmra.mrb[60].mxu1 %vm15699_vm2, %v5058_v1  ;;  %vm15705_vm2 = vcmask 1046528  }
 0x363   : > { %v8254_v23 = vpop.f32.mrb[32].mxu1 }
 0x364   : > { %v5161_v42 = vadd.f32 %v8254_v23, %v12157_v26  ;;  %v5152_v47 = vpop.f32.mrb[33].mxu1 }
 0x365   : > { %v5153_v5 = vadd.f32 %v12157_v26, %v5152_v47  ;;  %v8255_v44 = vpop.f32.mrb[34].mxu1 }
 0x366   : > { %v12166_v52 = vmax.f32 %v5161_v42, 0.0  ;;  %v5164_v58 = vadd.f32 %v8255_v44, %v12157_v26  ;;  %v5155_v16 = vpop.f32.mrb[35].mxu1 }
 0x367   : > { %v5279_v48 = vmax.f32 %v5153_v5, 0.0  ;;  %v5156_v14 = vadd.f32 %v12157_v26, %v5155_v16 }
 0x368   : > { %v5345_v53 = vrot.slane %v12166_v52, 7  ;;  %v12180_v17 = vmax.f32 %v5164_v58, 0.0  ;;  %v5466_v21 = vrot.slane %v12166_v52, 1  ;;  %v5807_v9 = vmul.f32 %v12149_v55, %v12166_v52 }
 0x369   : > { %v5341_v20 = vrot.slane %v5279_v48, 7  ;;  %v5462_v24 = vrot.slane %v5279_v48, 1  ;;  %v5280_v46 = vmax.f32 %v5156_v14, 0.0  ;;  %v5805_v15 = vmul.f32 %v12149_v55, %v5279_v48 }
 0x36a   : > { %v14683_v4 = vrot.slane %v12180_v17, 7  ;;  %v14682_v1 = vrot.slane %v12180_v17, 1  ;;  %v6019_v36 = vmul.f32 %v12186_v13, %v5279_v48  ;;  %v5808_v5 = vmul.f32 %v12149_v55, %v12180_v17 }
 0x36b   : > { %v5342_v57 = vsel %vm15704_vm5, %v15690_v41, %v5341_v20  ;;  %v5463_v11 = vsel %vm15705_vm2, %v15697_v61, %v5462_v24  ;;  %v6021_v44 = vmul.f32 %v12186_v13, %v12166_v52  ;;  %v5343_v58 = vrot.slane %v5280_v46, 7 }
 0x36c   : > { %v5431_v37 = vsel %vm15707_vm1, %v5342_v57, 0.0  ;;  %v5555_v31 = vsel %vm15709_vm8, %v5463_v11, 0.0  ;;  %v5593_v62 = vsel %vm15711_vm3, %v5342_v57, 0.0  ;;  %v5348_v23 = vsel %vm15704_vm5, %v5345_v53, %v14683_v4 }
 0x36d   : > { %v5734_v3 = vmul.f32 %v12144_v43, %v5431_v37  ;;  %v5947_v56 = vmul.f32 %v12178_v27, %v5593_v62  ;;  %v5876_v40 = vmul.f32 %v12162_v7, %v5555_v31  ;;  %v5469_v47 = vsel %vm15705_vm2, %v5466_v21, %v14682_v1  ;;  %vm15712_vm2 = vmmov %vm15704_vm5  ;;  %v15715_v62 = vld [vmem:[#allocation21_spill] sm:$0xff] }
 0x36e   : > { %v5737_v49 = vmul.f32 %v12144_v43, %v5348_v23  ;;  %v5464_v16 = vrot.slane %v5280_v46, 1  ;;  %v5879_v14 = vmul.f32 %v12162_v7, %v5469_v47  ;;  %v5344_v57 = vsel %vm15704_vm5, %v5341_v20, %v5343_v58  ;;  %v12235_v20 = vld [vmem:[%s15701_s7 + $0x5] ss:$0 sm:$0xff]  ;;  %vm15728_vm7 = vmmov %vm15712_vm2 }
 0x36f   : > { %v5979_v42 = vadd.f32 %v5947_v56, %v5907_v10  ;;  %v5837_v45 = vadd.f32 %v5805_v15, %v5734_v3  ;;  %v5806_v10 = vmul.f32 %v12149_v55, %v5280_v46  ;;  %v5346_v11 = vsel %vm15712_vm2, %v5343_v58, %v5345_v53  ;;  %v15717_v56 = vld [vmem:[#allocation59_spill] sm:$0xff] }
 0x370   : > { %v12218_v48 = vadd.f32 %v5808_v5, %v5737_v49  ;;  %v5465_v37 = vsel %vm15713_vm15, %v5462_v24, %v5464_v16  ;;  %v5467_v31 = vsel %vm15714_vm10, %v5464_v16, %v5466_v21  ;;  %vm15716_vm13 = vnez %v15715_v62 }
 0x371   : > { %v6051_v29 = vadd.f32 %v6019_v36, %v5979_v42  ;;  %v5433_v3 = vsel %vm15716_vm13, %v5346_v11, 0.0  ;;  %vm15718_vm12 = vnez %v15717_v56  ;;  %v5595_v36 = vsel %vm15707_vm1, %v5346_v11, 0.0 }
 0x372   : > { %v5557_v15 = vsel %vm15718_vm12, %v5467_v31, 0.0  ;;  %v5908_v42 = vadd.f32 %v5876_v40, %v5836_v6  ;;  %v5664_v24 = vsel %vm15711_vm3, %v5346_v11, 0.0  ;;  %v5735_v53 = vmul.f32 %v12144_v43, %v5344_v57  ;;  %vm15720_vm3 = vmmov %vm15712_vm2 }
 0x373   : > { %v5736_v21 = vmul.f32 %v12144_v43, %v5433_v3  ;;  %v5877_v49 = vmul.f32 %v12162_v7, %v5465_v37  ;;  %v5631_v5 = vsel %vm15709_vm8, %v5467_v31, 0.0  ;;  %v5878_v58 = vmul.f32 %v12162_v7, %v5557_v15  ;;  %v12256_v31 = vld [vmem:[%s15701_s7 + $0x6] ss:$0 sm:$0xff] }
 0x374   : > { %v5948_v6 = vmul.f32 %v12178_v27, %v5344_v57  ;;  %v5949_v40 = vmul.f32 %v12178_v27, %v5595_v36  ;;  %v5838_v16 = vadd.f32 %v5806_v10, %v5735_v53  ;;  %v6091_v3 = vmul.f32 %v12235_v20, %v5465_v37 }
 0x375   : > { %v5839_v11 = vadd.f32 %v5807_v9, %v5736_v21  ;;  %v5909_v1 = vadd.f32 %v5877_v49, %v5837_v45  ;;  %v5950_v15 = vmul.f32 %v12178_v27, %v5348_v23  ;;  %v6020_v36 = vmul.f32 %v12186_v13, %v5280_v46 }
 0x376   : > { %v5980_v57 = vadd.f32 %v5948_v6, %v5908_v42  ;;  %v6163_v4 = vmul.f32 %v12256_v31, %v5664_v24  ;;  %v5910_v35 = vadd.f32 %v5878_v58, %v5838_v16  ;;  %v6123_v60 = vadd.f32 %v6091_v3, %v6051_v29  ;;  %v12269_v42 = vld [vmem:[%s15701_s7 + $0x8] ss:$0 sm:$0xff] }
 0x377   : > { %v5981_v61 = vadd.f32 %v5949_v40, %v5909_v1  ;;  %v5911_v10 = vadd.f32 %v5879_v14, %v5839_v11  ;;  %v6235_v9 = vmul.f32 %v12250_v32, %v12166_v52  ;;  %v6022_v45 = vmul.f32 %v12186_v13, %v12180_v17 }
 0x378   : > { %v6052_v37 = vadd.f32 %v6020_v36, %v5980_v57  ;;  %v6092_v53 = vmul.f32 %v12235_v20, %v5631_v5  ;;  %v5982_v46 = vadd.f32 %v5950_v15, %v5910_v35  ;;  %v6195_v24 = vadd.f32 %v6163_v4, %v6123_v60  ;;  %v12285_v60 = vld [vmem:[%s14348_s8] ss:$0 sm:$0xff] }
 0x379   : > { %v6053_v21 = vadd.f32 %v6021_v44, %v5981_v61  ;;  %v6093_v1 = vmul.f32 %v12235_v20, %v5469_v47  ;;  %v6164_v14 = vmul.f32 %v12256_v31, %v5348_v23  ;;  %v6306_v58 = vmul.f32 %v12269_v42, %v5469_v47 }
 0x37a   : > { %v6124_v29 = vadd.f32 %v6092_v53, %v6052_v37  ;;  %v12273_v52 = vadd.f32 %v6022_v45, %v5982_v46  ;;  %v6266_v49 = vadd.f32 %v6235_v9, %v6195_v24  ;;  %v6236_v5 = vmul.f32 %v12250_v32, %v12180_v17 }
 0x37b   : > { %v12276_v6 = vadd.f32 %v6093_v1, %v6053_v21 }
 0x37c   : > { %v6196_v40 = vadd.f32 %v6164_v14, %v6124_v29  ;;  %v6338_v16 = vadd.f32 %v6306_v58, %v6266_v49  ;;  %v15719_v49 = vrot.slane %v12180_v17, 7 }
 0x37e   : > { %v12280_v35 = vadd.f32 %v6236_v5, %v6196_v40  ;;  %v12289_v47 = vadd.f32 %v12285_v60, %v6338_v16  ;;  %v15721_v5 = vrot.slane %v12180_v17, 1 }
 0x388   : > { %v8258_v61 = vpop.f32.mrb[36].mxu1 }
 0x389   : > { %v5177_v4 = vadd.f32 %v8258_v61, %v12157_v26  ;;  %v5168_v23 = vpop.f32.mrb[37].mxu1 }
 0x38a   : > { %v5169_v44 = vadd.f32 %v12157_v26, %v5168_v23  ;;  %v8259_v11 = vpop.f32.mrb[38].mxu1 }
 0x38b   : > { %v5285_v3 = vmax.f32 %v5177_v4, 0.0  ;;  %v5180_v15 = vadd.f32 %v8259_v11, %v12157_v26  ;;  %v5171_v57 = vpop.f32.mrb[39].mxu1  ;;  %v15722_v4 = vld [vmem:[#allocation24_spill] sm:$0xff] }
 0x38c   : > { %v5283_v36 = vmax.f32 %v5169_v44, 0.0  ;;  %v5172_v9 = vadd.f32 %v12157_v26, %v5171_v57  ;;  %vm15723_vm15 = vnez %v15722_v4  ;;  %v15724_v44 = vld [vmem:[#allocation67_spill] sm:$0xff] }
 0x38d   : > { %v5353_v37 = vrot.slane %v5285_v3, 7  ;;  %v5474_v53 = vrot.slane %v5285_v3, 1  ;;  %v5811_v21 = vmul.f32 %v12149_v55, %v5285_v3  ;;  %v12297_v1 = vmul.f32 %v12186_v13, %v5285_v3 }
 0x38e   : > { %v5349_v46 = vrot.slane %v5283_v36, 7  ;;  %v5470_v24 = vrot.slane %v5283_v36, 1  ;;  %v12300_v29 = vmul.f32 %v12250_v32, %v5285_v3  ;;  %v12302_v14 = vmax.f32 %v5180_v15, 0.0 }
 0x38f   : > { %v5809_v16 = vmul.f32 %v12149_v55, %v5283_v36  ;;  %v5284_v61 = vmax.f32 %v5172_v9, 0.0  ;;  %vm15725_vm5 = vnez %v15724_v44  ;;  %v6023_v15 = vmul.f32 %v12186_v13, %v5283_v36 }
 0x390   : > { %v5350_v58 = vsel %vm15720_vm3, %v15719_v49, %v5349_v46  ;;  %v5471_v40 = vsel %vm15714_vm10, %v15721_v5, %v5470_v24  ;;  %v12321_v49 = vmul.f32 %v12250_v32, %v5283_v36  ;;  %v14691_v9 = vrot.slane %v12302_v14, 7  ;;  %vm15726_vm3 = vmmov %vm15714_vm10 }
 0x391   : > { %v5435_v23 = vsel %vm15723_vm15, %v5350_v58, 0.0  ;;  %v5559_v11 = vsel %vm15725_vm5, %v5471_v40, 0.0  ;;  %v5597_v3 = vsel %vm15716_vm13, %v5350_v58, 0.0  ;;  %v5633_v5 = vsel %vm15718_vm12, %v5471_v40, 0.0  ;;  %vm15727_vm10 = vmmov %vm15712_vm2 }
 0x392   : > { %v5738_v57 = vmul.f32 %v12144_v43, %v5435_v23  ;;  %v5951_v17 = vmul.f32 %v12178_v27, %v5597_v3  ;;  %v5880_v45 = vmul.f32 %v12162_v7, %v5559_v11  ;;  %v14692_v12 = vrot.slane %v12302_v14, 1 }
 0x393   : > { %v5812_v25 = vmul.f32 %v12149_v55, %v12302_v14  ;;  %v5356_v23 = vsel %vm15712_vm2, %v5353_v37, %v14691_v9  ;;  %v5351_v36 = vrot.slane %v5284_v61, 7  ;;  %v12342_v18 = vmul.f32 %v12186_v13, %v12302_v14 }
 0x394   : > { %v5841_v39 = vadd.f32 %v5809_v16, %v5738_v57  ;;  %v5983_v50 = vadd.f32 %v5951_v17, %v5911_v10  ;;  %v12336_v3 = vsel %vm15726_vm3, %v5474_v53, %v14692_v12  ;;  %v5741_v41 = vmul.f32 %v12144_v43, %v5356_v23 }
 0x395   : > { %v5954_v11 = vmul.f32 %v12178_v27, %v5356_v23  ;;  %v5352_v10 = vsel %vm15727_vm10, %v5349_v46, %v5351_v36  ;;  %v5354_v57 = vsel %vm15728_vm7, %v5351_v36, %v5353_v37  ;;  %v5472_v17 = vrot.slane %v5284_v61, 1  ;;  %vm15731_vm7 = vmmov %vm15726_vm3 }
 0x396   : > { %v6055_v16 = vadd.f32 %v6023_v15, %v5983_v50  ;;  %v12346_v9 = vadd.f32 %v5812_v25, %v5741_v41  ;;  %vm15730_vm2 = vnez %v15729_v30  ;;  %v5599_v8 = vsel %vm15723_vm15, %v5354_v57, 0.0 }
 0x397   : > { %v5437_v12 = vsel %vm15730_vm2, %v5354_v57, 0.0  ;;  %v5739_v34 = vmul.f32 %v12144_v43, %v5352_v10  ;;  %v5810_v54 = vmul.f32 %v12149_v55, %v5284_v61  ;;  %v5912_v50 = vadd.f32 %v5880_v45, %v12218_v48 }
 0x398   : > { %v5740_v51 = vmul.f32 %v12144_v43, %v5437_v12  ;;  %v5952_v46 = vmul.f32 %v12178_v27, %v5352_v10  ;;  %v5883_v25 = vmul.f32 %v12162_v7, %v12336_v3  ;;  %v5953_v41 = vmul.f32 %v12178_v27, %v5599_v8 }
 0x399   : > { %v6024_v37 = vmul.f32 %v12186_v13, %v5284_v61  ;;  %v5696_v15 = vsel %vm15709_vm8, %v5471_v40, 0.0  ;;  %v5842_v36 = vadd.f32 %v5810_v54, %v5739_v34  ;;  %v5473_v19 = vsel %vm15731_vm7, %v5470_v24, %v5472_v17  ;;  %v15732_v40 = vld [vmem:[#allocation71_spill] sm:$0xff] }
 0x39a   : > { %v5984_v63 = vadd.f32 %v5952_v46, %v5912_v50  ;;  %v5843_v38 = vadd.f32 %v5811_v21, %v5740_v51  ;;  %v6307_v12 = vmul.f32 %v12269_v42, %v5696_v15  ;;  %v5475_v48 = vsel %vm15726_vm3, %v5472_v17, %v5474_v53 }
 0x39b   : > { %v5666_v45 = vsel %vm15707_vm1, %v5350_v58, 0.0  ;;  %v6094_v33 = vmul.f32 %v12235_v20, %v5633_v5  ;;  %vm15733_vm8 = vnez %v15732_v40  ;;  %v6238_v51 = vmul.f32 %v12250_v32, %v5284_v61 }
 0x39c   : > { %v6056_v8 = vadd.f32 %v6024_v37, %v5984_v63  ;;  %v12369_v22 = vadd.f32 %v5883_v25, %v5843_v38  ;;  %v6339_v28 = vadd.f32 %v6307_v12, %v12280_v35  ;;  %v5561_v34 = vsel %vm15733_vm8, %v5475_v48, 0.0 }
 0x39d   : > { %v5635_v54 = vsel %vm15725_vm5, %v5475_v48, 0.0  ;;  %v5881_v53 = vmul.f32 %v12162_v7, %v5473_v19  ;;  %v5882_v2 = vmul.f32 %v12162_v7, %v5561_v34  ;;  %v5698_v38 = vsel %vm15718_vm12, %v5475_v48, 0.0  ;;  %vm15736_vm12 = vmmov %vm15727_vm10 }
 0x39e   : > { %v6378_v24 = vadd.f32 %v12285_v60, %v6339_v28  ;;  %v6126_v63 = vadd.f32 %v6094_v33, %v12273_v52  ;;  %v6165_v35 = vmul.f32 %v12256_v31, %v5666_v45  ;;  %v6095_v61 = vmul.f32 %v12235_v20, %v5473_v19  ;;  %vm15744_vm7 = vmmov %vm15736_vm12 }
 0x39f   : > { %v5913_v21 = vadd.f32 %v5881_v53, %v5841_v39  ;;  %v5914_v58 = vadd.f32 %v5882_v2, %v5842_v36  ;;  %v6166_v5 = vmul.f32 %v12256_v31, %v5352_v10  ;;  %v6308_v46 = vmul.f32 %v12269_v42, %v5473_v19 }
 0x3a0   : > { %v6410_v17 = vmax.f32 %v6378_v24, 0.0  ;;  %v6197_v50 = vadd.f32 %v6165_v35, %v12276_v6  ;;  %v5668_v25 = vsel %vm15716_vm13, %v5354_v57, 0.0  ;;  %v6096_v37 = vmul.f32 %v12235_v20, %v5635_v54  ;;  %vm15738_vm13 = vmmov %vm15726_vm3 }
 0x3a1   : > { %v6198_v56 = vadd.f32 %v6166_v5, %v6126_v63  ;;  %v6127_v33 = vadd.f32 %v6095_v61, %v6055_v16  ;;  %v6167_v52 = vmul.f32 %v12256_v31, %v5668_v25  ;;  %v15734_v39 = vmax.f32 %v12289_v47, 0.0 }
 0x3a2   : > { %v6268_v10 = vadd.f32 %v12321_v49, %v6197_v50  ;;  %v6309_v36 = vmul.f32 %v12269_v42, %v5698_v38  ;;  %v6168_v6 = vmul.f32 %v12256_v31, %v5356_v23  ;;  %v6128_v12 = vadd.f32 %v6096_v37, %v6056_v8 }
 0x3a3   : > { %v12394_v15 = vpack.c.bf16 %v6410_v17, %v15734_v39  ;;  %v6269_v19 = vadd.f32 %v6238_v51, %v6198_v56  ;;  %v6199_v62 = vadd.f32 %v6167_v52, %v6127_v33  ;;  %v5985_v57 = vadd.f32 %v5953_v41, %v5913_v21 }
 0x3a4   : > { %v6240_v48 = vmul.f32 %v12250_v32, %v12302_v14  ;;  %v6340_v16 = vadd.f32 %v6308_v46, %v6268_v10  ;;  %v6310_v45 = vmul.f32 %v12269_v42, %v12336_v3  ;;  %v5986_v47 = vadd.f32 %v5954_v11, %v5914_v58 }
 0x3a5   : > { %v6341_v34 = vadd.f32 %v6309_v36, %v6269_v19  ;;  %v6200_v54 = vadd.f32 %v6168_v6, %v6128_v12  ;;  %v6270_v49 = vadd.f32 %v12300_v29, %v6199_v62  ;;  %v6057_v53 = vadd.f32 %v12297_v1, %v5985_v57 }
 0x3a6   : > { %v6379_v41 = vadd.f32 %v12285_v60, %v6340_v16  ;;  %v12408_v51 = vadd.f32 %v12342_v18, %v5986_v47  ;;  %v6097_v2 = vmul.f32 %v12235_v20, %v12336_v3  ;;  %v15735_v6 = vrot.slane %v12302_v14, 7  ;;  %v15740_v16 = vld [vmem:[#allocation32_spill] sm:$0xff] }
 0x3a7   : > { %v6380_v38 = vadd.f32 %v12285_v60, %v6341_v34  ;;  %v12414_v63 = vadd.f32 %v6240_v48, %v6200_v54  ;;  %v6342_v29 = vadd.f32 %v6310_v45, %v6270_v49  ;;  %v15737_v12 = vrot.slane %v12302_v14, 1  ;;  %v15742_v47 = vld [vmem:[#allocation56_spill] sm:$0xff] }
 0x3a8   : > { %v12419_v58 = vadd.f32 %v6097_v2, %v6057_v53  ;;  %v6411_v5 = vmax.f32 %v6379_v41, 0.0  ;;  %vm15741_vm1 = vnez %v15740_v16  ;;  %vm15743_vm10 = vnez %v15742_v47 }
 0x3a9   : > { %v6412_v3 = vmax.f32 %v6380_v38, 0.0  ;;  %v12425_v46 = vadd.f32 %v12285_v60, %v6342_v29 }
 0x3aa   : > { %v8262_v28 = vpop.f32.mrb[40].mxu1 }
 0x3ab   : > { %v5193_v23 = vadd.f32 %v8262_v28, %v12157_v26  ;;  %v5184_v8 = vpop.f32.mrb[41].mxu1  ;;  %v12447_v48 = vpack.c.bf16 %v6412_v3, %v6411_v5 }
 0x3ac   : > { %v5185_v11 = vadd.f32 %v12157_v26, %v5184_v8  ;;  %v8263_v24 = vpop.f32.mrb[42].mxu1 }
 0x3ad   : > { %v12416_v1 = vmax.f32 %v5193_v23, 0.0  ;;  %v5196_v35 = vadd.f32 %v8263_v24, %v12157_v26  ;;  %v5187_v21 = vpop.f32.mrb[43].mxu1  ;;  %15739 = vst [vmem:[#allocation137_spill] sm:$0xff] %v12447_v48  ;;  %v6413_v23 = vmax.f32 %v12425_v46, 0.0 }
 0x3ae   : > { %v5287_v18 = vmax.f32 %v5185_v11, 0.0  ;;  %v5188_v61 = vadd.f32 %v12157_v26, %v5187_v21 }
 0x3af   : > { %v5361_v17 = vrot.slane %v12416_v1, 7  ;;  %v5482_v50 = vrot.slane %v12416_v1, 1  ;;  %v5815_v25 = vmul.f32 %v12149_v55, %v12416_v1  ;;  %v12431_v56 = vmul.f32 %v12186_v13, %v12416_v1 }
 0x3b0   : > { %v5357_v37 = vrot.slane %v5287_v18, 7  ;;  %v5478_v33 = vrot.slane %v5287_v18, 1  ;;  %v12435_v52 = vmul.f32 %v12250_v32, %v12416_v1  ;;  %v5813_v39 = vmul.f32 %v12149_v55, %v5287_v18 }
 0x3b1   : > { %v6027_v10 = vmul.f32 %v12186_v13, %v5287_v18  ;;  %v12439_v36 = vmax.f32 %v5196_v35, 0.0  ;;  %v5288_v57 = vmax.f32 %v5188_v61, 0.0  ;;  %v12456_v54 = vmul.f32 %v12250_v32, %v5287_v18 }
 0x3b2   : > { %v5358_v19 = vsel %vm15736_vm12, %v15735_v6, %v5357_v37  ;;  %v5479_v62 = vsel %vm15738_vm13, %v15737_v12, %v5478_v33  ;;  %vm15745_vm12 = vmmov %vm15744_vm7  ;;  %v15747_v6 = vld [vmem:[#allocation38_spill] sm:$0xff] }
 0x3b3   : > { %v5439_v45 = vsel %vm15741_vm1, %v5358_v19, 0.0  ;;  %v5563_v28 = vsel %vm15743_vm10, %v5479_v62, 0.0  ;;  %v5601_v34 = vsel %vm15730_vm2, %v5358_v19, 0.0  ;;  %v14699_v53 = vrot.slane %v12439_v36, 7  ;;  %vm15746_vm13 = vmmov %vm15744_vm7 }
 0x3b4   : > { %v5742_v49 = vmul.f32 %v12144_v43, %v5439_v45  ;;  %v5955_v14 = vmul.f32 %v12178_v27, %v5601_v34  ;;  %v5637_v8 = vsel %vm15733_vm8, %v5479_v62, 0.0  ;;  %v5884_v41 = vmul.f32 %v12162_v7, %v5563_v28 }
 0x3b5   : > { %v14698_v2 = vrot.slane %v12439_v36, 1  ;;  %v5816_v11 = vmul.f32 %v12149_v55, %v12439_v36  ;;  %v5364_v29 = vsel %vm15744_vm7, %v5361_v17, %v14699_v53  ;;  %v5359_v1 = vrot.slane %v5288_v57, 7 }
 0x3b6   : > { %v5845_v24 = vadd.f32 %v5813_v39, %v5742_v49  ;;  %v5987_v38 = vadd.f32 %v5955_v14, %v12369_v22  ;;  %v5745_v21 = vmul.f32 %v12144_v43, %v5364_v29  ;;  %v5958_v18 = vmul.f32 %v12178_v27, %v5364_v29 }
 0x3b7   : > { %v12475_v35 = vsel %vm15726_vm3, %v5482_v50, %v14698_v2  ;;  %v12481_v61 = vmul.f32 %v12186_v13, %v12439_v36  ;;  %v5360_v22 = vsel %vm15745_vm12, %v5357_v37, %v5359_v1  ;;  %v5362_v3 = vsel %vm15746_vm13, %v5359_v1, %v5361_v17  ;;  %vm15749_vm12 = vmmov %vm15726_vm3 }
 0x3b8   : > { %v6059_v5 = vadd.f32 %v6027_v10, %v5987_v38  ;;  %v5480_v46 = vrot.slane %v5288_v57, 1  ;;  %v12485_v39 = vadd.f32 %v5816_v11, %v5745_v21  ;;  %vm15748_vm7 = vnez %v15747_v6 }
 0x3b9   : > { %v5441_v12 = vsel %vm15748_vm7, %v5362_v3, 0.0  ;;  %v5603_v45 = vsel %vm15741_vm1, %v5362_v3, 0.0  ;;  %v5743_v28 = vmul.f32 %v12144_v43, %v5360_v22  ;;  %v5814_v49 = vmul.f32 %v12149_v55, %v5288_v57 }
 0x3ba   : > { %v5744_v34 = vmul.f32 %v12144_v43, %v5441_v12  ;;  %v5916_v10 = vadd.f32 %v5884_v41, %v12346_v9  ;;  %v5956_v37 = vmul.f32 %v12178_v27, %v5360_v22  ;;  %v5887_v17 = vmul.f32 %v12162_v7, %v12475_v35 }
 0x3bb   : > { %v5957_v14 = vmul.f32 %v12178_v27, %v5603_v45  ;;  %v6028_v11 = vmul.f32 %v12186_v13, %v5288_v57  ;;  %v5700_v38 = vsel %vm15725_vm5, %v5479_v62, 0.0  ;;  %v5846_v1 = vadd.f32 %v5814_v49, %v5743_v28  ;;  %v15750_v62 = vld [vmem:[#allocation60_spill] sm:$0xff] }
 0x3bc   : > { %v5988_v21 = vadd.f32 %v5956_v37, %v5916_v10  ;;  %v5847_v2 = vadd.f32 %v5815_v25, %v5744_v34  ;;  %v6311_v12 = vmul.f32 %v12269_v42, %v5700_v38  ;;  %v5481_v53 = vsel %vm15726_vm3, %v5478_v33, %v5480_v46 }
 0x3bd   : > { %v5483_v9 = vsel %vm15749_vm12, %v5480_v46, %v5482_v50  ;;  %v5670_v41 = vsel %vm15723_vm15, %v5358_v19, 0.0  ;;  %v6098_v16 = vmul.f32 %v12235_v20, %v5637_v8  ;;  %vm15751_vm5 = vnez %v15750_v62  ;;  %vm15759_vm15 = vmmov %vm15746_vm13 }
 0x3be   : > { %v6060_v45 = vadd.f32 %v6028_v11, %v5988_v21  ;;  %v12508_v48 = vadd.f32 %v5887_v17, %v5847_v2  ;;  %v6343_v44 = vadd.f32 %v6311_v12, %v12414_v63  ;;  %v5565_v28 = vsel %vm15751_vm5, %v5483_v9, 0.0 }
 0x3bf   : > { %v6242_v25 = vmul.f32 %v12250_v32, %v5288_v57  ;;  %v5639_v33 = vsel %vm15743_vm10, %v5483_v9, 0.0  ;;  %v5885_v50 = vmul.f32 %v12162_v7, %v5481_v53  ;;  %v5886_v4 = vmul.f32 %v12162_v7, %v5565_v28 }
 0x3c0   : > { %v6382_v19 = vadd.f32 %v12285_v60, %v6343_v44  ;;  %v5702_v8 = vsel %vm15733_vm8, %v5483_v9, 0.0  ;;  %v6130_v2 = vadd.f32 %v6098_v16, %v12408_v51  ;;  %v6169_v63 = vmul.f32 %v12256_v31, %v5670_v41  ;;  %vm15768_vm8 = vmmov %vm15746_vm13 }
 0x3c1   : > { %v5917_v46 = vadd.f32 %v5885_v50, %v5845_v24  ;;  %v5918_v34 = vadd.f32 %v5886_v4, %v5846_v1  ;;  %v6099_v57 = vmul.f32 %v12235_v20, %v5481_v53  ;;  %v6170_v49 = vmul.f32 %v12256_v31, %v5360_v22 }
 0x3c2   : > { %v6414_v10 = vmax.f32 %v6382_v19, 0.0  ;;  %v6201_v37 = vadd.f32 %v6169_v63, %v12419_v58  ;;  %v6312_v17 = vmul.f32 %v12269_v42, %v5481_v53  ;;  %v5672_v11 = vsel %vm15730_vm2, %v5362_v3, 0.0  ;;  %vm15762_vm2 = vmmov %vm15726_vm3 }
 0x3c3   : > { %v6202_v40 = vadd.f32 %v6170_v49, %v6130_v2  ;;  %v6100_v38 = vmul.f32 %v12235_v20, %v5639_v33  ;;  %v6131_v51 = vadd.f32 %v6099_v57, %v6059_v5  ;;  %v6171_v16 = vmul.f32 %v12256_v31, %v5672_v11  ;;  %vm15770_vm13 = vmmov %vm15762_vm2 }
 0x3c4   : > { %v12531_v24 = vpack.c.bf16 %v6414_v10, %v6413_v23  ;;  %v6272_v1 = vadd.f32 %v12456_v54, %v6201_v37  ;;  %v6313_v22 = vmul.f32 %v12269_v42, %v5702_v8  ;;  %v6172_v21 = vmul.f32 %v12256_v31, %v5364_v29  ;;  %vm15775_vm3 = vmmov %vm15768_vm8 }
 0x3c5   : > { %v6273_v58 = vadd.f32 %v6242_v25, %v6202_v40  ;;  %v6132_v12 = vadd.f32 %v6100_v38, %v6060_v45  ;;  %v6203_v53 = vadd.f32 %v6171_v16, %v6131_v51  ;;  %v5989_v9 = vadd.f32 %v5957_v14, %v5917_v46  ;;  %vm15777_vm12 = vmmov %vm15775_vm3 }
 0x3c6   : > { %15752 = vst [vmem:[#allocation92_spill] sm:$0xff] %v12531_v24  ;;  %v6244_v30 = vmul.f32 %v12250_v32, %v12439_v36  ;;  %v6344_v41 = vadd.f32 %v6312_v17, %v6272_v1  ;;  %v6314_v5 = vmul.f32 %v12269_v42, %v12475_v35  ;;  %v5990_v23 = vadd.f32 %v5958_v18, %v5918_v34 }
 0x3c7   : > { %v6345_v28 = vadd.f32 %v6313_v22, %v6273_v58  ;;  %v6204_v33 = vadd.f32 %v6172_v21, %v6132_v12  ;;  %v6274_v29 = vadd.f32 %v12435_v52, %v6203_v53  ;;  %v12547_v50 = vadd.f32 %v12431_v56, %v5989_v9 }
 0x3c8   : > { %v12544_v14 = vadd.f32 %v12285_v60, %v6344_v41  ;;  %v12550_v4 = vadd.f32 %v12481_v61, %v5990_v23  ;;  %v12565_v61 = vmul.f32 %v12235_v20, %v12475_v35  ;;  %v15758_v51 = vrot.slane %v12439_v36, 7 }
 0x3c9   : > { %15753 = vst [vmem:[#allocation118_spill] sm:$0xff] %v12547_v50  ;;  %v12555_v2 = vadd.f32 %v6244_v30, %v6204_v33  ;;  %v6346_v46 = vadd.f32 %v6314_v5, %v6274_v29  ;;  %v6384_v56 = vadd.f32 %v12285_v60, %v6345_v28  ;;  %v15761_v1 = vrot.slane %v12439_v36, 1 }
 0x3ca   : > { %15754 = vst [vmem:[#allocation104_spill] sm:$0xff] %v12550_v4  ;;  %v6415_v57 = vmax.f32 %v12544_v14, 0.0  ;;  %15755 = vst [vmem:[#allocation132_spill] sm:$0xff] %v12565_v61 }
 0x3cb   : > { %v8266_v3 = vpop.f32.mrb[44].mxu1  ;;  %v6416_v23 = vmax.f32 %v6384_v56, 0.0  ;;  %v12618_v33 = vadd.f32 %v12285_v60, %v6346_v46 }
 0x3cc   : > { %v5209_v44 = vadd.f32 %v8266_v3, %v12157_v26  ;;  %v5200_v54 = vpop.f32.mrb[45].mxu1 }
 0x3cd   : > { %v5201_v45 = vadd.f32 %v12157_v26, %v5200_v54  ;;  %v8267_v25 = vpop.f32.mrb[46].mxu1  ;;  %15766 = vst [vmem:[#allocation120_spill] sm:$0xff] %v12618_v33 }
 0x3ce   : > { %v12552_v18 = vmax.f32 %v5209_v44, 0.0  ;;  %v5212_v19 = vadd.f32 %v8267_v25, %v12157_v26  ;;  %v5203_v8 = vpop.f32.mrb[47].mxu1  ;;  %v12673_v44 = vpack.c.bf16 %v6416_v23, %v6415_v57 }
 0x3cf   : > { %v12557_v52 = vmax.f32 %v5201_v45, 0.0  ;;  %v5204_v63 = vadd.f32 %v12157_v26, %v5203_v8 }
 0x3d0   : > { %v5369_v34 = vrot.slane %v12552_v18, 7  ;;  %v14702_v49 = vrot.slane %v12552_v18, 1  ;;  %v5819_v10 = vmul.f32 %v12149_v55, %v12552_v18  ;;  %v12574_v11 = vmul.f32 %v12186_v13, %v12552_v18  ;;  %15780 = vst [vmem:[#allocation121_spill] sm:$0xff] %v12673_v44 }
 0x3d1   : > { %v5365_v37 = vrot.slane %v12557_v52, 7  ;;  %v5486_v17 = vrot.slane %v12557_v52, 1  ;;  %v12578_v40 = vmul.f32 %v12250_v32, %v12552_v18  ;;  %v5817_v35 = vmul.f32 %v12149_v55, %v12557_v52 }
 0x3d2   : > { %15756 = vst [vmem:[#allocation29_spill] sm:$0xff] %v12574_v11  ;;  %v12582_v38 = vmax.f32 %v5212_v19, 0.0  ;;  %v6031_v21 = vmul.f32 %v12186_v13, %v12557_v52  ;;  %v5292_v58 = vmax.f32 %v5204_v63, 0.0  ;;  %v12607_v36 = vmul.f32 %v12250_v32, %v12557_v52 }
 0x3d3   : > { %15757 = vst [vmem:[#allocation117_spill] sm:$0xff] %v12578_v40  ;;  %v12587_v16 = vsel %vm15759_vm15, %v15758_v51, %v5365_v37  ;;  %v12592_v22 = vsel %vm15762_vm2, %v15761_v1, %v5486_v17  ;;  %vm15782_vm15 = vmmov %vm15762_vm2 }
 0x3d4   : > { %15760 = vst [vmem:[#allocation35_spill] sm:$0xff] %v12587_v16  ;;  %15763 = vst [vmem:[#allocation119_spill] sm:$0xff] %v12592_v22  ;;  %v5443_v12 = vsel %vm15267_vm11, %v12587_v16, 0.0  ;;  %v5567_v9 = vsel %vm15134_vm0, %v12592_v22, 0.0  ;;  %v5605_v30 = vsel %vm15748_vm7, %v12587_v16, 0.0  ;;  %v14701_v5 = vrot.slane %v12582_v38, 7 }
 0x3d5   : > { %15765 = vst [vmem:[#allocation36_spill] sm:$0xff] %v12607_v36  ;;  %v5746_v3 = vmul.f32 %v12144_v43, %v5443_v12  ;;  %v5959_v41 = vmul.f32 %v12178_v27, %v5605_v30  ;;  %v5888_v54 = vmul.f32 %v12162_v7, %v5567_v9  ;;  %v5492_v28 = vrot.slane %v12582_v38, 1  ;;  %v12944_v16 = vld [vmem:[%s15701_s7 + $0x2] ss:$0 sm:$0xff] }
 0x3d6   : > { %v12626_v25 = vsel %vm15768_vm8, %v5369_v34, %v14701_v5  ;;  %v5367_v14 = vrot.slane %v5292_v58, 7  ;;  %v5820_v8 = vmul.f32 %v12149_v55, %v12582_v38  ;;  %v12637_v52 = vmul.f32 %v12186_v13, %v12582_v38 }
 0x3d7   : > { %v12620_v29 = vadd.f32 %v5817_v35, %v5746_v3  ;;  %v5991_v45 = vadd.f32 %v5959_v41, %v12508_v48  ;;  %15769 = vst [vmem:[#allocation122_spill] sm:$0xff] %v12626_v25  ;;  %v12631_v19 = vsel %vm15770_vm13, %v14702_v49, %v5492_v28  ;;  %v12641_v48 = vmul.f32 %v12250_v32, %v12582_v38 }
 0x3d8   : > { %15771 = vst [vmem:[#allocation136_spill] sm:$0xff] %v12631_v19  ;;  %15772 = vst [vmem:[#allocation37_spill] sm:$0xff] %v12637_v52  ;;  %v5749_v46 = vmul.f32 %v12144_v43, %v12626_v25  ;;  %v12648_v56 = vsel %vm15775_vm3, %v5365_v37, %v5367_v14  ;;  %v12651_v35 = vsel %vm15777_vm12, %v5367_v14, %v5369_v34  ;;  %v5488_v12 = vrot.slane %v5292_v58, 1 }
 0x3d9   : > { %15767 = vst [vmem:[#allocation116_spill] sm:$0xff] %v12620_v29  ;;  %15773 = vst [vmem:[#allocation113_spill] sm:$0xff] %v12641_v48  ;;  %v12643_v63 = vadd.f32 %v6031_v21, %v5991_v45  ;;  %v12655_v51 = vmul.f32 %v12178_v27, %v12626_v25  ;;  %v5445_v1 = vsel %vm15288_vm6, %v12651_v35, 0.0  ;;  %v5747_v21 = vmul.f32 %v12144_v43, %v12648_v56 }
 0x3da   : > { %15776 = vst [vmem:[#allocation124_spill] sm:$0xff] %v12648_v56  ;;  %15778 = vst [vmem:[#allocation131_spill] sm:$0xff] %v12651_v35  ;;  %v5748_v9 = vmul.f32 %v12144_v43, %v5445_v1  ;;  %v5818_v37 = vmul.f32 %v12149_v55, %v5292_v58  ;;  %v5920_v30 = vadd.f32 %v5888_v54, %v12485_v39  ;;  %v5607_v41 = vsel %vm15267_vm11, %v12651_v35, 0.0 }
 0x3db   : > { %15774 = vst [vmem:[#allocation133_spill] sm:$0xff] %v12643_v63  ;;  %15779 = vst [vmem:[#allocation134_spill] sm:$0xff] %v12655_v51  ;;  %v5960_v34 = vmul.f32 %v12178_v27, %v12648_v56  ;;  %v5891_v3 = vmul.f32 %v12162_v7, %v12631_v19  ;;  %v6032_v45 = vmul.f32 %v12186_v13, %v5292_v58  ;;  %v5704_v0 = vsel %vm15743_vm10, %v12592_v22, 0.0 }
 0x3dc   : > { %v12675_v1 = vadd.f32 %v5818_v37, %v5747_v21  ;;  %v5851_v49 = vadd.f32 %v5819_v10, %v5748_v9  ;;  %v5852_v52 = vadd.f32 %v5820_v8, %v5749_v46  ;;  %v12683_v48 = vsel %vm15782_vm15, %v5486_v17, %v5488_v12  ;;  %vm15789_vm10 = vmmov %vm15762_vm2 }
 0x3dd   : > { %v5992_v5 = vadd.f32 %v5960_v34, %v5920_v30  ;;  %15783 = vst [vmem:[#allocation40_spill] sm:$0xff] %v12683_v48  ;;  %v12686_v57 = vmul.f32 %v12178_v27, %v5607_v41  ;;  %v12692_v8 = vmul.f32 %v12250_v32, %v5292_v58  ;;  %v15788_v9 = vrot.slane %v12552_v18, 1  ;;  %vm15793_vm2 = vmmov %vm15775_vm3  ;;  %v15801_v41 = vld [vmem:[#allocation83_spill] sm:$0xff] }
 0x3de   : > { %15781 = vst [vmem:[#allocation135_spill] sm:$0xff] %v12675_v1  ;;  %v5923_v34 = vadd.f32 %v5891_v3, %v5851_v49  ;;  %vm15795_vm8 = vmmov %vm15789_vm10  ;;  %vm15802_vm3 = vnez %v15801_v41 }
 0x3df   : > { %15784 = vst [vmem:[#allocation123_spill] sm:$0xff] %v12686_v57  ;;  %v12688_v23 = vadd.f32 %v6032_v45, %v5992_v5  ;;  %15786 = vst [vmem:[#allocation147_spill] sm:$0xff] %v12692_v8  ;;  %v12700_v17 = vsel %vm15789_vm10, %v5488_v12, %v15788_v9  ;;  %v6315_v5 = vmul.f32 %v12269_v42, %v5704_v0  ;;  %v15792_v0 = vrot.slane %v12582_v38, 7 }
 0x3e0   : > { %v8270_v14 = vpop.f32.mrb[48].mxu1  ;;  %15790 = vst [vmem:[#allocation128_spill] sm:$0xff] %v12700_v17  ;;  %vm15803_vm12 = vmmov %vm15793_vm2 }
 0x3e1   : > { %v5225_v39 = vadd.f32 %v8270_v14, %v12157_v26  ;;  %v5216_v54 = vpop.f32.mrb[49].mxu1  ;;  %15785 = vst [vmem:[#allocation125_spill] sm:$0xff] %v12688_v23  ;;  %vm15804_vm15 = vmmov %vm15793_vm2 }
 0x3e2   : > { %v5217_v11 = vadd.f32 %v12157_v26, %v5216_v54  ;;  %v8271_v51 = vpop.f32.mrb[50].mxu1  ;;  %vm15806_vm10 = vmmov %vm15795_vm8 }
 0x3e3   : > { %v5297_v21 = vmax.f32 %v5225_v39, 0.0  ;;  %v5228_v37 = vadd.f32 %v8271_v51, %v12157_v26  ;;  %v5219_v10 = vpop.f32.mrb[51].mxu1 }
 0x3e4   : > { %v12694_v46 = vmax.f32 %v5217_v11, 0.0  ;;  %v5220_v47 = vadd.f32 %v12157_v26, %v5219_v10  ;;  %v12729_v10 = vadd.f32 %v6315_v5, %v12555_v2 }
 0x3e5   : > { %v5377_v30 = vrot.slane %v5297_v21, 7  ;;  %v5498_v51 = vrot.slane %v5297_v21, 1  ;;  %v12705_v45 = vmul.f32 %v12149_v55, %v5297_v21  ;;  %v12710_v14 = vmul.f32 %v12186_v13, %v5297_v21 }
 0x3e6   : > { %15787 = vst [vmem:[#allocation138_spill] sm:$0xff] %v12694_v46  ;;  %v5373_v11 = vrot.slane %v12694_v46, 7  ;;  %v5494_v58 = vrot.slane %v12694_v46, 1  ;;  %v5821_v18 = vmul.f32 %v12149_v55, %v12694_v46  ;;  %v12714_v12 = vmax.f32 %v5228_v37, 0.0  ;;  %15797 = vst [vmem:[#allocation114_spill] sm:$0xff] %v12729_v10  ;;  %v15841_v10 = vld [vmem:[#allocation80_spill] sm:$0xff] }
 0x3e7   : > { %v12716_v49 = vmax.f32 %v5220_v47, 0.0  ;;  %v6035_v54 = vmul.f32 %v12186_v13, %v12694_v46  ;;  %v15799_v47 = vld [vmem:[#allocation84_spill] sm:$0xff] }
 0x3e8   : > { %v12721_v3 = vsel %vm15793_vm2, %v15792_v0, %v5373_v11  ;;  %v12724_v39 = vsel %vm15795_vm8, %v5492_v28, %v5494_v58  ;;  %vm15800_vm13 = vnez %v15799_v47  ;;  %v12741_v28 = vmul.f32 %v12250_v32, %v5297_v21  ;;  %vm15808_vm2 = vmmov %vm15795_vm8 }
 0x3e9   : > { %15791 = vst [vmem:[#allocation115_spill] sm:$0xff] %v12716_v49  ;;  %15794 = vst [vmem:[#allocation142_spill] sm:$0xff] %v12721_v3  ;;  %v5447_v37 = vsel %vm15307_vm9, %v12721_v3, 0.0  ;;  %v5571_v38 = vsel %vm15800_vm13, %v12724_v39, 0.0  ;;  %v5609_v0 = vsel %vm15288_vm6, %v12721_v3, 0.0  ;;  %v14709_v46 = vrot.slane %v12714_v12, 7 }
 0x3ea   : > { %15796 = vst [vmem:[#allocation130_spill] sm:$0xff] %v12724_v39  ;;  %v5963_v5 = vmul.f32 %v12178_v27, %v5609_v0  ;;  %v5750_v40 = vmul.f32 %v12144_v43, %v5447_v37  ;;  %v5892_v19 = vmul.f32 %v12162_v7, %v5571_v38  ;;  %v5500_v3 = vrot.slane %v12714_v12, 1 }
 0x3eb   : > { %v5375_v21 = vrot.slane %v12716_v49, 7  ;;  %v12758_v2 = vsel %vm15803_vm12, %v5377_v30, %v14709_v46  ;;  %v5824_v0 = vmul.f32 %v12149_v55, %v12714_v12  ;;  %v5496_v23 = vrot.slane %v12716_v49, 1 }
 0x3ec   : > { %v5995_v25 = vadd.f32 %v5963_v5, %v5923_v34  ;;  %v5753_v37 = vmul.f32 %v12144_v43, %v12758_v2  ;;  %v12767_v38 = vmul.f32 %v12186_v13, %v12714_v12  ;;  %v5822_v34 = vmul.f32 %v12149_v55, %v12716_v49 }
 0x3ed   : > { %v12770_v57 = vsel %vm15804_vm15, %v5373_v11, %v5375_v21  ;;  %v12775_v46 = vsel %vm15806_vm10, %v5494_v58, %v5496_v23  ;;  %v12778_v63 = vsel %vm15808_vm2, %v5496_v23, %v5498_v51  ;;  %v12782_v6 = vadd.f32 %v5821_v18, %v5750_v40  ;;  %v15810_v11 = vld [vmem:[#allocation62_spill] sm:$0xff]  ;;  %v8644_v40 = vld [vmem:[%s14349_s9 + $0x4] ss:$8 sps:$4 sm:$0xff]   ;;  %vm15812_vm15 = vmmov %vm15808_vm2 }
 0x3ee   : > { %15805 = vst [vmem:[#allocation129_spill] sm:$0xff] %v12770_v57  ;;  %v6067_v5 = vadd.f32 %v6035_v54, %v5995_v25  ;;  %15807 = vst [vmem:[#allocation144_spill] sm:$0xff] %v12775_v46  ;;  %v5751_v39 = vmul.f32 %v12144_v43, %v12770_v57  ;;  %v12784_v35 = vadd.f32 %v5824_v0, %v5753_v37  ;;  %vm15811_vm8 = vnez %v15810_v11 }
 0x3ef   : > { %15809 = vst [vmem:[#allocation139_spill] sm:$0xff] %v12778_v63  ;;  %v5573_v8 = vsel %vm15811_vm8, %v12778_v63, 0.0  ;;  %v5924_v36 = vadd.f32 %v5892_v19, %v5852_v52  ;;  %v12791_v25 = vmul.f32 %v12178_v27, %v12758_v2  ;;  %v5964_v54 = vmul.f32 %v12178_v27, %v12770_v57  ;;  %6537 = vmatprep.mubr.bf16.mxu1 %v8644_v40  ;;  %vm15817_vm10 = vmmov %vm15808_vm2 }
 0x3f0   : > { %v5854_v58 = vadd.f32 %v5822_v34, %v5751_v39  ;;  %v5894_v23 = vmul.f32 %v12162_v7, %v5573_v8  ;;  %v12801_v18 = vmul.f32 %v12162_v7, %v12775_v46  ;;  %v6036_v19 = vmul.f32 %v12186_v13, %v12716_v49 }
 0x3f1   : > { %v12806_v0 = vsel %vm15803_vm12, %v5375_v21, %v5377_v30  ;;  %v12809_v8 = vsel %vm15812_vm15, %v5498_v51, %v5500_v3  ;;  %v5996_v39 = vadd.f32 %v5964_v54, %v5924_v36  ;;  %v5647_v4 = vsel %vm15800_vm13, %v12778_v63, 0.0  ;;  %v12893_v63 = vld [vmem:[%s15701_s7 + $0x1] ss:$0 sm:$0xff] }
 0x3f2   : > { %v5449_v56 = vsel %vm15335_vm4, %v12806_v0, 0.0  ;;  %v12818_v49 = vadd.f32 %v5894_v23, %v5854_v58  ;;  %v5680_v58 = vsel %vm15288_vm6, %v12806_v0, 0.0  ;;  %v5895_v36 = vmul.f32 %v12162_v7, %v12809_v8  ;;  %vm15816_vm6 = vmmov %vm15803_vm12 }
 0x3f3   : > { %v8274_v52 = vpop.f32.mrb[52].mxu1  ;;  %v5752_v51 = vmul.f32 %v12144_v43, %v5449_v56  ;;  %v6068_v54 = vadd.f32 %v6036_v19, %v5996_v39  ;;  %v6107_v59 = vmul.f32 %v12235_v20, %v12775_v46  ;;  %v12874_v46 = vmul.f32 %v12235_v20, %v12809_v8  ;;  %vm15821_vm2 = vmmov %vm15816_vm6 }
 0x3f4   : > { %v5241_v37 = vadd.f32 %v8274_v52, %v12157_v26  ;;  %v5232_v34 = vpop.f32.mrb[53].mxu1  ;;  %vm15824_vm12 = vmmov %vm15821_vm2  ;;  %v6252_v33 = vmul.f32 %v12250_v32, %v12714_v12  ;;  %v12972_v32 = vld [vmem:[%s15703_s6] ss:$0 sm:$0xff]  ;;  %s7712_s6 = sshll.u32 %s8873_s1, 4  ;;  %s8751_s1 = smov [#allocation2]  }
 0x3f5   : > { %v5233_v30 = vadd.f32 %v12157_v26, %v5232_v34  ;;  %v8275_v21 = vpop.f32.mrb[54].mxu1  ;;  %v5855_v34 = vadd.f32 %v12705_v45, %v5752_v51  ;;  %v15815_v51 = vrot.slane %v12714_v12, 7  ;;  %v15831_v12 = vld [vmem:[#allocation85_spill] sm:$0xff]  ;;  %s14297_s23 = scalar_lea.hbm %s14359_s19, %s7712_s6  ;;  %s8688_s4 = sshll.u32 %s8751_s1, 4  ;;  %s8689_s4 = int_to_ptr.vmem [resolvable:$false] %s8688_s4 }
 0x3f6   : > { %v12825_v52 = vmax.f32 %v5241_v37, 0.0  ;;  %v5244_v61 = vadd.f32 %v8275_v21, %v12157_v26  ;;  %v5235_v50 = vpop.f32.mrb[55].mxu1  ;;  %p8691_p0 = scmp.lt.s32.totalorder %s14299_s25, %s8689_s4 }
 0x3f7   : > { %v12831_v23 = vmax.f32 %v5233_v30, 0.0  ;;  %v5236_v40 = vadd.f32 %v12157_v26, %v5235_v50  ;;  %v12861_v21 = vadd.f32 %v5895_v36, %v5855_v34 }
 0x3f8   : > { %v12841_v19 = vmul.f32 %v12149_v55, %v12825_v52  ;;  %v12847_v39 = vmul.f32 %v12186_v13, %v12825_v52  ;;  %v12857_v37 = vmax.f32 %v5244_v61, 0.0  ;;  %v15829_v44 = vrot.slane %v12825_v52, 1 }
 0x3f9   : > { %v5381_v26 = vrot.slane %v12831_v23, 7  ;;  %v5502_v50 = vrot.slane %v12831_v23, 1  ;;  %v5825_v7 = vmul.f32 %v12149_v55, %v12831_v23  ;;  %v12855_v45 = vmul.f32 %v12186_v13, %v12831_v23 }
 0x3fa   : > { %15814 = vst [vmem:[#allocation145_spill] sm:$0xff] %v12847_v39  ;;  %v12859_v30 = vmax.f32 %v5236_v40, 0.0  ;;  %v6108_v55 = vmul.f32 %v12235_v20, %v5647_v4  ;;  %v5828_v36 = vmul.f32 %v12893_v63, %v12857_v37 }
 0x3fb   : > { %v12866_v56 = vsel %vm15816_vm6, %v15815_v51, %v5381_v26  ;;  %v12869_v43 = vsel %vm15817_vm10, %v5500_v3, %v5502_v50  ;;  %v6139_v51 = vadd.f32 %v6107_v59, %v6067_v5  ;;  %v12886_v3 = vld [vmem:[%s15701_s7] ss:$0 sm:$0xff]  ;;  %v15819_v5 = vrot.slane %v12857_v37, 7  ;;  %vm15830_vm6 = vmmov %vm15817_vm10 }
 0x3fc   : > { %v5451_v40 = vsel %vm15352_vm14, %v12866_v56, 0.0  ;;  %v15820_v59 = vrot.slane %v12825_v52, 7  ;;  %v5504_v20 = vrot.slane %v12859_v30, 1  ;;  %v5826_v29 = vmul.f32 %v12893_v63, %v12859_v30 }
 0x3fd   : > { %v5754_v4 = vmul.f32 %v12886_v3, %v5451_v40  ;;  %v12907_v40 = vmul.f32 %v12186_v13, %v12857_v37  ;;  %v15823_v62 = vrot.slane %v12859_v30, 7  ;;  %v6140_v17 = vadd.f32 %v6108_v55, %v6068_v54 }
 0x3fe   : > { %v12903_v1 = vsel %vm15821_vm2, %v15820_v59, %v15819_v5  ;;  %v12921_v5 = vmul.f32 %v12186_v13, %v12859_v30  ;;  %v5712_v13 = vsel %vm15800_vm13, %v12869_v43, 0.0  ;;  %vm15828_vm13 = vmmov %vm15817_vm10  ;;  %vm15832_vm10 = vnez %v15831_v12 }
 0x3ff   : > { %15822 = vst [vmem:[#allocation45_spill] sm:$0xff] %v12907_v40  ;;  %v5857_v22 = vadd.f32 %v5825_v7, %v5754_v4  ;;  %v5757_v34 = vmul.f32 %v12886_v3, %v12903_v1  ;;  %v12917_v41 = vsel %vm15824_vm12, %v5381_v26, %v15823_v62  ;;  %v12925_v59 = vmul.f32 %v12178_v27, %v12903_v1  ;;  %v15826_v4 = vld [vmem:[#allocation8_spill] sm:$0xff] }
 0x400   : > { %v5755_v48 = vmul.f32 %v12886_v3, %v12917_v41  ;;  %v12931_v7 = vmul.f32 %v12178_v27, %v12917_v41  ;;  %vm15827_vm15 = vnez %v15826_v4  ;;  %vm15842_vm12 = vnez %v15841_v10 }
 0x401   : > { %15825 = vst [vmem:[#allocation44_spill] sm:$0xff] %v12925_v59  ;;  %v5575_v62 = vsel %vm15827_vm15, %v12869_v43, 0.0  ;;  %v12936_v26 = vadd.f32 %v5828_v36, %v5757_v34  ;;  %v6179_v36 = vmul.f32 %v12256_v31, %v5680_v58  ;;  %v6180_v34 = vmul.f32 %v12256_v31, %v12758_v2 }
 0x402   : > { %v5896_v53 = vmul.f32 %v12944_v16, %v5575_v62  ;;  %v5858_v27 = vadd.f32 %v5826_v29, %v5755_v48  ;;  %v6322_v62 = vmul.f32 %v12269_v42, %v12809_v8  ;;  %v12961_v29 = vsel %vm15828_vm13, %v5502_v50, %v5504_v20 }
 0x403   : > { %v6211_v54 = vadd.f32 %v6179_v36, %v6139_v51  ;;  %v6212_v55 = vadd.f32 %v6180_v34, %v6140_v17  ;;  %v6323_v58 = vmul.f32 %v12269_v42, %v5712_v13  ;;  %v12967_v31 = vsel %vm15830_vm6, %v5504_v20, %v15829_v44  ;;  %vm15847_vm6 = vmmov %vm15821_vm2 }
 0x404   : > { %v12954_v47 = vadd.f32 %v5896_v53, %v12784_v35  ;;  %v5577_v2 = vsel %vm15832_vm10, %v12967_v31, 0.0 }
 0x405   : > { %v6282_v50 = vadd.f32 %v12741_v28, %v6211_v54  ;;  %v6283_v51 = vadd.f32 %v6252_v33, %v6212_v55  ;;  %v5898_v42 = vmul.f32 %v12944_v16, %v5577_v2  ;;  %v13009_v2 = vld [vmem:[%s15701_s7 + $0x4] ss:$0 sm:$0xff]  ;;  %v15837_v55 = vrot.slane %v12857_v37, 7 }
 0x406   : > { %v8278_v48 = vpop.f32.mrb[56].mxu1 }
 0x407   : > { %v5257_v53 = vadd.f32 %v12972_v32, %v8278_v48  ;;  %v5248_v35 = vpop.f32.mrb[57].mxu1  ;;  %v5897_v48 = vmul.f32 %v12944_v16, %v12961_v29  ;;  %v6354_v28 = vadd.f32 %v6322_v62, %v6282_v50  ;;  %v6355_v33 = vadd.f32 %v6323_v58, %v6283_v51 }
 0x408   : > { %v5249_v17 = vadd.f32 %v12972_v32, %v5248_v35  ;;  %v8279_v8 = vpop.f32.mrb[58].mxu1 }
 0x409   : > { %v12989_v13 = vmax.f32 %v5257_v53, 0.0  ;;  %v5260_v36 = vadd.f32 %v12972_v32, %v8279_v8  ;;  %v5251_v34 = vpop.f32.mrb[59].mxu1  ;;  %v5925_v8 = vadd.f32 %v12801_v18, %v12782_v6  ;;  %v13034_v54 = vadd.f32 %v5897_v48, %v5857_v22 }
 0x40a   : > { %v12995_v44 = vmax.f32 %v5249_v17, 0.0  ;;  %v5252_v35 = vadd.f32 %v12972_v32, %v5251_v34  ;;  %v6393_v34 = vadd.f32 %v12285_v60, %v6354_v28  ;;  %v6394_v17 = vadd.f32 %v12285_v60, %v6355_v33 }
 0x40b   : > { %v13002_v53 = vmul.f32 %v12893_v63, %v12989_v13  ;;  %v13013_v62 = vmul.f32 %v13009_v2, %v12989_v13  ;;  %v13023_v6 = vmax.f32 %v5260_v36, 0.0  ;;  %15839 = vst [vmem:[#allocation74_spill] sm:$0xff] %v13034_v54  ;;  %v15845_v60 = vsel %vm15307_vm9, %v12806_v0, 0.0 }
 0x40c   : > { %v5389_v58 = vrot.slane %v12995_v44, 7  ;;  %v5829_v50 = vmul.f32 %v12893_v63, %v12995_v44  ;;  %v13021_v51 = vmul.f32 %v13009_v2, %v12995_v44  ;;  %v13025_v18 = vmax.f32 %v5252_v35, 0.0  ;;  %v15843_v35 = vld [vmem:[#allocation51_spill] sm:$0xff] }
 0x40d   : > { %15833 = vst [vmem:[#allocation143_spill] sm:$0xff] %v13002_v53  ;;  %15834 = vst [vmem:[#allocation77_spill] sm:$0xff] %v13013_v62  ;;  %v13036_v62 = vadd.f32 %v5898_v42, %v5858_v27  ;;  %vm15844_vm13 = vnez %v15843_v35  ;;  %v5395_v28 = vrot.slane %v13023_v6, 7  ;;  %v5832_v48 = vmul.f32 %v12893_v63, %v13023_v6 }
 0x40e   : > { %15835 = vst [vmem:[#allocation146_spill] sm:$0xff] %v13021_v51  ;;  %15836 = vst [vmem:[#allocation41_spill] sm:$0xff] %v13023_v6  ;;  %v13031_v20 = vsel %vm15821_vm2, %v15837_v55, %v5389_v58  ;;  %v13048_v55 = vld [vmem:[%s15701_s7 + $0x3] ss:$0 sm:$0xff]  ;;  %v15846_v51 = vrot.slane %v12989_v13, 7  ;;  %v13067_v53 = vmul.f32 %v13009_v2, %v13023_v6  ;;  %v15851_v10 = vrot.slane %v13025_v18, 7 }
 0x40f   : > { %15838 = vst [vmem:[#allocation141_spill] sm:$0xff] %v13031_v20  ;;  %15840 = vst [vmem:[#allocation63_spill] sm:$0xff] %v13036_v62  ;;  %v5455_v36 = vsel %vm15842_vm12, %v13031_v20, 0.0  ;;  %v5965_v22 = vmul.f32 %v13048_v55, %v15845_v60  ;;  %v13083_v6 = vmul.f32 %v13009_v2, %v13025_v18 }
 0x410   : > { %v5758_v27 = vmul.f32 %v12886_v3, %v5455_v36  ;;  %v13063_v24 = vsel %vm15847_vm6, %v15846_v51, %v5395_v28  ;;  %15849 = vst [vmem:[#allocation150_spill] sm:$0xff] %v13067_v53  ;;  %v5830_v36 = vmul.f32 %v12893_v63, %v13025_v18  ;;  %v13079_v51 = vsel %vm15821_vm2, %v5389_v58, %v15851_v10  ;;  %vm15858_vm6 = vmmov %vm15821_vm2 }
 0x411   : > { %15848 = vst [vmem:[#allocation48_spill] sm:$0xff] %v13063_v24  ;;  %v8282_v60 = vpop.f32.mrb[60].mxu1  ;;  %v5761_v33 = vmul.f32 %v12886_v3, %v13063_v24  ;;  %15852 = vst [vmem:[#allocation46_spill] sm:$0xff] %v13083_v6  ;;  %v13087_v0 = vmul.f32 %v13048_v55, %v13063_v24  ;;  %v6426_v6 = vmax.f32 %v6394_v17, 0.0 }
 0x412   : > { %v13072_v42 = vadd.f32 %v5829_v50, %v5758_v27  ;;  %v5264_v53 = vpop.f32.mrb[61].mxu1  ;;  %v5759_v50 = vmul.f32 %v12886_v3, %v13079_v51  ;;  %v5273_v27 = vadd.f32 %v12972_v32, %v8282_v60  ;;  %vm15861_vm11 = vmmov %vm15858_vm6 }
 0x413   : > { %15853 = vst [vmem:[#allocation73_spill] sm:$0xff] %v13087_v0  ;;  %v5265_v39 = vadd.f32 %v12972_v32, %v5264_v53  ;;  %v8283_v40 = vpop.f32.mrb[62].mxu1  ;;  %v13093_v54 = vadd.f32 %v5832_v48, %v5761_v33  ;;  %v5997_v53 = vadd.f32 %v5965_v22, %v5925_v8  ;;  %v5998_v48 = vadd.f32 %v12791_v25, %v12818_v49  ;;  %v15863_v8 = vld [vmem:[#allocation11_spill] sm:$0xff]  ;;  %vm15864_vm7 = vmmov %vm15858_vm6 }
 0x414   : > { %15850 = vst [vmem:[#allocation140_spill] sm:$0xff] %v13072_v42  ;;  %v5276_v10 = vadd.f32 %v12972_v32, %v8283_v40  ;;  %v5267_v58 = vpop.f32.mrb[63].mxu1  ;;  %v6425_v42 = vmax.f32 %v6393_v34, 0.0  ;;  %v13096_v59 = vadd.f32 %v5830_v36, %v5759_v50  ;;  %v13098_v62 = vmax.f32 %v5273_v27, 0.0 }
 0x415   : > { %v13100_v0 = vmax.f32 %v5265_v39, 0.0  ;;  %v5268_v24 = vadd.f32 %v12972_v32, %v5267_v58  ;;  %v13109_v40 = vmul.f32 %v13048_v55, %v13079_v51  ;;  %v13120_v32 = vld [vmem:[%s15701_s7 + $0x7] ss:$0 sm:$0xff]  ;;  %v6070_v58 = vadd.f32 %v12767_v38, %v5998_v48  ;;  %v13182_v38 = vld [vmem:[%s15701_s7 + $0x5] ss:$0 sm:$0xff] }
 0x416   : > { %v13103_v20 = vmax.f32 %v5276_v10, 0.0  ;;  %v6449_v60 = vpack.c.bf16 %v6426_v6, %v6425_v42  ;;  %v14734_v34 = vrot.slane %v13098_v62, 7  ;;  %v13115_v39 = vmul.f32 %v13009_v2, %v13098_v62 }
 0x417   : > { %v13124_v49 = vmul.f32 %v13120_v32, %v13098_v62  ;;  %v5397_v25 = vrot.slane %v13100_v0, 7  ;;  %v5833_v6 = vmul.f32 %v12893_v63, %v13100_v0  ;;  %v13132_v22 = vmul.f32 %v13009_v2, %v13100_v0 }
 0x418   : > { %15854 = vst [vmem:[#allocation58_spill] sm:$0xff] %v13115_v39  ;;  %7886 = vmatprep.subr.bf16.mxu1 %v6449_v60  ;;  %v5589_v42 = vrot.slane %v13103_v20, 7  ;;  %v13138_v36 = vmul.f32 %v13009_v2, %v13103_v20  ;;  %v13144_v27 = vmax.f32 %v5268_v24, 0.0  ;;  %v6069_v10 = vadd.f32 %v12710_v14, %v5997_v53  ;;  %v15859_v60 = vld [vmem:[#allocation82_spill] sm:$0xff]  ;;  %v15867_v14 = vld [vmem:[#allocation81_spill] sm:$0xff] }
 0x419   : > { %15855 = vst [vmem:[#allocation18_spill] sm:$0xff] %v13124_v49  ;;  %15856 = vst [vmem:[#allocation17_spill] sm:$0xff] %v13132_v22  ;;  %7887 = vmatpush3.bf16.msra.mxu1 %v12394_v15  ;;  %v13142_v50 = vsel %vm15858_vm6, %v5395_v28, %v5397_v25  ;;  %vm15860_vm2 = vnez %v15859_v60  ;;  %v13162_v24 = vmul.f32 %v13120_v32, %v13103_v20  ;;  %vm15868_vm6 = vnez %v15867_v14 }
 0x41a   : > { %15857 = vst [vmem:[#allocation68_spill] sm:$0xff] %v13138_v36  ;;  %v5459_v17 = vsel %vm15860_vm2, %v13142_v50, 0.0  ;;  %v13154_v33 = vsel %vm15861_vm11, %v14734_v34, %v5589_v42  ;;  %v13158_v15 = vsel %vm15864_vm7, %v5589_v42, %v15863_v8  ;;  %v5834_v8 = vmul.f32 %v12893_v63, %v13144_v27  ;;  %vm15872_vm11 = vmmov %vm15864_vm7 }
 0x41b   : > { %15862 = vst [vmem:[#allocation20_spill] sm:$0xff] %v13154_v33  ;;  %15865 = vst [vmem:[#allocation148_spill] sm:$0xff] %v13158_v15  ;;  %v5762_v28 = vmul.f32 %v12886_v3, %v5459_v17  ;;  %v13174_v42 = vmul.f32 %v13048_v55, %v13154_v33  ;;  %v15870_v17 = vsel %vm15811_vm8, %v12869_v43, 0.0  ;;  %v15871_v36 = vrot.slane %v13144_v27, 7  ;;  %v15902_v61 = vld [vmem:[#allocation140_spill] sm:$0xff] }
 0x41c   : > { %15866 = vst [vmem:[#allocation34_spill] sm:$0xff] %v13162_v24  ;;  %v6110_v53 = vmul.f32 %v13182_v38, %v15870_v17  ;;  %v13198_v63 = vmul.f32 %v13009_v2, %v13144_v27  ;;  %v6141_v15 = vadd.f32 %v12874_v46, %v6069_v10  ;;  %v6111_v43 = vmul.f32 %v13182_v38, %v12961_v29 }
 0x41d   : > { %15869 = vst [vmem:[#allocation70_spill] sm:$0xff] %v13174_v42  ;;  %v13189_v48 = vadd.f32 %v5833_v6, %v5762_v28  ;;  %v13194_v34 = vsel %vm15872_vm11, %v5397_v25, %v15871_v36  ;;  %v13208_v6 = vld [vmem:[%s15701_s7 + $0x6] ss:$0 sm:$0xff]  ;;  %v15874_v25 = vsel %vm15307_vm9, %v12866_v56, 0.0  ;;  %v6253_v10 = vmul.f32 %v13120_v32, %v12831_v23  ;;  %vm15878_vm9 = vmmov %vm15864_vm7 }
 0x41e   : > { %15873 = vst [vmem:[#allocation78_spill] sm:$0xff] %v13198_v63  ;;  %v5763_v39 = vmul.f32 %v12886_v3, %v13194_v34  ;;  %v6142_v17 = vadd.f32 %v6110_v53, %v6070_v58  ;;  %v6181_v2 = vmul.f32 %v13208_v6, %v15874_v25  ;;  %v13217_v46 = vmul.f32 %v13048_v55, %v13194_v34  ;;  %v13230_v53 = vld [vmem:[%s15701_s7 + $0x8] ss:$0 sm:$0xff]  ;;  %s8690_s7 = scalar_lea.vmem %s8689_s4, 32 }
 0x41f   : > { %v6182_v36 = vmul.f32 %v13208_v6, %v12917_v41  ;;  %v6254_v58 = vmul.f32 %v13120_v32, %v12859_v30  ;;  %v6324_v25 = vmul.f32 %v13230_v53, %v12961_v29  ;;  %v15876_v42 = vrot.slane %v12825_v52, 7  ;;  %p8692_p1 = scmp.lt.s32.totalorder %s8690_s7, %s8684_s2 }
 0x420   : > { %15875 = vst [vmem:[#allocation42_spill] sm:$0xff] %v13217_v46  ;;  %v13225_v28 = vadd.f32 %v5834_v8, %v5763_v39  ;;  %v6213_v9 = vadd.f32 %v6181_v2, %v6141_v15  ;;  %v15877_v41 = vrot.slane %v12859_v30, 7  ;;  %v15879_v8 = vrot.slane %v12857_v37, 1 }
 0x421   : > { %v6214_v49 = vadd.f32 %v6182_v36, %v6142_v17  ;;  %v15880_v15 = vrot.slane %v12825_v52, 1  ;;  %vm15881_vm7 = vcmask 1046528   ;;  %v15882_v24 = vrot.slane %v12995_v44, 1  ;;  %v15886_v17 = vld [vmem:[#allocation86_spill] sm:$0xff]  ;;  %p8693_p2 = por %p8692_p1, %p8691_p0 }
 0x422   : > { %v5386_v23 = vsel %vm15878_vm9, %v15877_v41, %v15876_v42  ;;  %v15883_v29 = vmov %v15879_v8  ;;  %vm15884_vm11 = vmmov %vm15881_vm7  ;;  %v6284_v22 = vadd.f32 %v6253_v10, %v6213_v9  ;;  %v15885_v30 = vsel %vm15811_vm8, %v12967_v31, 0.0 }
 0x423   : > { %v5453_v39 = vsel %vm15844_vm13, %v5386_v23, 0.0  ;;  %v5509_v2 = vsel %vm15881_vm7, %v15880_v15, %v15879_v8  ;;  %v5511_v33 = vsel %vm15884_vm11, %v15883_v29, %v15882_v24  ;;  %v6325_v42 = vmul.f32 %v13230_v53, %v15885_v30  ;;  %p8694_p3 = pnand %p8693_p2, %p8687_p13 }
 0x424   : > { %vm15887_vm9 = vnez %v15886_v17  ;;  %v5615_v41 = vsel %vm15352_vm14, %v5386_v23, 0.0  ;;  %v6285_v8 = vadd.f32 %v6254_v58, %v6214_v49  ;;  %v5653_v15 = vsel %vm15832_vm10, %v5511_v33, 0.0 }
 0x425   : > { %v5579_v36 = vsel %vm15887_vm9, %v5511_v33, 0.0  ;;  %v5684_v24 = vsel %vm15335_vm4, %v5386_v23, 0.0  ;;  %v5756_v10 = vmul.f32 %v12886_v3, %v5453_v39  ;;  %v6356_v11 = vadd.f32 %v6324_v25, %v6284_v22  ;;  %v13280_v22 = vld [vmem:[%s14348_s8] ss:$0 sm:$0xff] }
 0x426   : > { %v5716_v9 = vsel %vm15827_vm15, %v5511_v33, 0.0  ;;  %v5900_v29 = vmul.f32 %v12944_v16, %v5579_v36  ;;  %v15888_v30 = vsel %vm15335_vm4, %v12866_v56, 0.0  ;;  %v6357_v58 = vadd.f32 %v6325_v42, %v6285_v8  ;;  %vm15892_vm4 = vmmov %vm15881_vm7 }
 0x427   : > { %v5967_v49 = vmul.f32 %v13048_v55, %v15888_v30  ;;  %v5859_v63 = vadd.f32 %v12841_v19, %v5756_v10  ;;  %v5899_v46 = vmul.f32 %v12944_v16, %v5509_v2  ;;  %v6000_v23 = vadd.f32 %v12931_v7, %v12954_v47  ;;  %vm15895_vm8 = vmmov %vm15892_vm4 }
 0x428   : > { %v6395_v33 = vadd.f32 %v13280_v22, %v6356_v11  ;;  %v13284_v57 = vadd.f32 %v5900_v29, %v12936_v26  ;;  %v15889_v19 = vsel %vm15827_vm15, %v12967_v31, 0.0  ;;  %v6396_v7 = vadd.f32 %v13280_v22, %v6357_v58  ;;  %vm15915_vm7 = vmmov %vm15892_vm4 }
 0x429   : > { %v5999_v56 = vadd.f32 %v5967_v49, %v12861_v21  ;;  %v6112_v25 = vmul.f32 %v13182_v38, %v15889_v19  ;;  %v13293_v47 = vadd.f32 %v5899_v46, %v5859_v63  ;;  %v6072_v39 = vadd.f32 %v12921_v5, %v6000_v23 }
 0x42a   : > { %v6113_v42 = vmul.f32 %v13182_v38, %v5509_v2  ;;  %v6427_v36 = vmax.f32 %v6395_v33, 0.0  ;;  %v6183_v8 = vmul.f32 %v13208_v6, %v5684_v24  ;;  %v6184_v21 = vmul.f32 %v13208_v6, %v12903_v1  ;;  %v15898_v33 = vld [vmem:[#allocation141_spill] sm:$0xff] }
 0x42b   : > { %v6071_v26 = vadd.f32 %v12855_v45, %v5999_v56  ;;  %v6428_v4 = vmax.f32 %v6396_v7, 0.0  ;;  %v6144_v31 = vadd.f32 %v6112_v25, %v6072_v39  ;;  %v6255_v10 = vmul.f32 %v13120_v32, %v12825_v52  ;;  %v15899_v39 = vld [vmem:[#allocation63_spill] sm:$0xff] }
 0x42c   : > { %v6256_v63 = vmul.f32 %v13120_v32, %v12857_v37  ;;  %v6326_v5 = vmul.f32 %v13230_v53, %v5509_v2  ;;  %v15890_v11 = vrot.slane %v13025_v18, 1  ;;  %v15891_v45 = vrot.slane %v12995_v44, 1 }
 0x42d   : > { %v6143_v46 = vadd.f32 %v6111_v43, %v6071_v26  ;;  %v15893_v29 = vrot.slane %v12989_v13, 1  ;;  %v6450_v52 = vpack.c.bf16 %v6428_v4, %v6427_v36  ;;  %v6216_v49 = vadd.f32 %v6184_v21, %v6144_v31  ;;  %v15896_v43 = vld [vmem:[#allocation87_spill] sm:$0xff]  ;;  %v15900_v36 = vld [vmem:[#allocation44_spill] sm:$0xff] }
 0x42e   : > { %v5513_v24 = vsel %vm15892_vm4, %v15891_v45, %v15890_v11  ;;  %v15894_v1 = vmov %v15890_v11  ;;  %v6327_v37 = vmul.f32 %v13230_v53, %v5716_v9  ;;  %vm15897_vm15 = vnez %v15896_v43 }
 0x42f   : > { %v13316_v30 = vsel %vm15895_vm8, %v15894_v1, %v15893_v29  ;;  %v6215_v58 = vadd.f32 %v6183_v8, %v6143_v46  ;;  %v5686_v56 = vsel %vm15352_vm14, %v15898_v33, 0.0  ;;  %v5901_v19 = vmul.f32 %v12944_v16, %v5513_v24  ;;  %7888 = vmatprep.subr.bf16.mxu1 %v6450_v52  ;;  %v15901_v8 = vld [vmem:[#allocation137_spill] sm:$0xff] }
 0x430   : > { %v5581_v2 = vsel %vm15897_vm15, %v13316_v30, 0.0  ;;  %v5655_v23 = vsel %vm15887_vm9, %v13316_v30, 0.0  ;;  %v6287_v25 = vadd.f32 %v6256_v63, %v6216_v49  ;;  %v5969_v9 = vmul.f32 %v13048_v55, %v5615_v41  ;;  %7889 = vmatpush3.bf16.msra.mxu1 %v15901_v8  ;;  %v15903_v41 = vld [vmem:[#allocation74_spill] sm:$0xff]  ;;  %v15904_v29 = vld [vmem:[#allocation45_spill] sm:$0xff] }
 0x431   : > { %v5902_v7 = vmul.f32 %v12944_v16, %v5581_v2  ;;  %v6002_v26 = vadd.f32 %v15900_v36, %v15899_v39  ;;  %v6286_v21 = vadd.f32 %v6255_v10, %v6215_v58  ;;  %v5718_v4 = vsel %vm15832_vm10, %v13316_v30, 0.0  ;;  %v15905_v2 = vld [vmem:[#allocation145_spill] sm:$0xff]  ;;  %vm15912_vm10 = vmmov %vm15892_vm4 }
 0x432   : > { %v13338_v31 = vadd.f32 %v5901_v19, %v15902_v61  ;;  %v6114_v46 = vmul.f32 %v13182_v38, %v5653_v15  ;;  %v6359_v63 = vadd.f32 %v6327_v37, %v6287_v25  ;;  %v6001_v45 = vadd.f32 %v5969_v9, %v15903_v41  ;;  %v15909_v8 = vld [vmem:[#allocation41_spill] sm:$0xff] }
 0x433   : > { %v13342_v11 = vadd.f32 %v5902_v7, %v13096_v59  ;;  %v6074_v1 = vadd.f32 %v15904_v29, %v6002_v26  ;;  %v6358_v52 = vadd.f32 %v6326_v5, %v6286_v21  ;;  %v6115_v10 = vmul.f32 %v13182_v38, %v5513_v24 }
 0x434   : > { %v6185_v49 = vmul.f32 %v13208_v6, %v5686_v56  ;;  %v6186_v12 = vmul.f32 %v13208_v6, %v13079_v51  ;;  %v6398_v30 = vadd.f32 %v13280_v22, %v6359_v63  ;;  %v6073_v15 = vadd.f32 %v15905_v2, %v6001_v45  ;;  %v15916_v45 = vld [vmem:[#allocation88_spill] sm:$0xff] }
 0x435   : > { %v6146_v37 = vadd.f32 %v6114_v46, %v6074_v1  ;;  %v6257_v59 = vmul.f32 %v13120_v32, %v12995_v44  ;;  %v6397_v58 = vadd.f32 %v13280_v22, %v6358_v52  ;;  %v6258_v5 = vmul.f32 %v13120_v32, %v13025_v18 }
 0x436   : > { %v6328_v19 = vmul.f32 %v13230_v53, %v5513_v24  ;;  %v15906_v56 = vrot.slane %v12989_v13, 7  ;;  %v15907_v25 = vrot.slane %v13025_v18, 7  ;;  %vm15908_vm14 = vcmask 1040384  }
 0x437   : > { %v6430_v7 = vmax.f32 %v6398_v30, 0.0  ;;  %v6145_v9 = vadd.f32 %v6113_v42, %v6073_v15  ;;  %v6218_v39 = vadd.f32 %v6186_v12, %v6146_v37  ;;  %v6429_v36 = vmax.f32 %v6397_v58, 0.0 }
 0x438   : > { %v13363_v51 = vsel %vm15908_vm14, %v15907_v25, %v15906_v56  ;;  %v6329_v26 = vmul.f32 %v13230_v53, %v5718_v4  ;;  %v15910_v21 = vrot.slane %v15909_v8, 1  ;;  %v15911_v24 = vrot.slane %v12989_v13, 1 }
 0x439   : > { %v5457_v44 = vsel %vm15868_vm6, %v13363_v51, 0.0  ;;  %v15913_v18 = vrot.slane %v13100_v0, 1  ;;  %v6217_v63 = vadd.f32 %v6185_v49, %v6145_v9  ;;  %v6289_v41 = vadd.f32 %v6258_v5, %v6218_v39  ;;  %v15919_v5 = vld [vmem:[#allocation143_spill] sm:$0xff] }
 0x43a   : > { %v5517_v61 = vsel %vm15912_vm10, %v15911_v24, %v15910_v21  ;;  %v15914_v46 = vmov %v15910_v21  ;;  %vm15917_vm11 = vnez %v15916_v45  ;;  %v5619_v4 = vsel %vm15842_vm12, %v13363_v51, 0.0  ;;  %v15923_v24 = vld [vmem:[#allocation48_spill] sm:$0xff] }
 0x43b   : > { %v5519_v42 = vsel %vm15915_vm7, %v15914_v46, %v15913_v18  ;;  %v6451_v52 = vpack.c.bf16 %v6430_v7, %v6429_v36  ;;  %v5688_v30 = vsel %vm15844_vm13, %v13363_v51, 0.0  ;;  %v5760_v2 = vmul.f32 %v12886_v3, %v5457_v44  ;;  %v15971_v45 = vld [vmem:[#allocation20_spill] sm:$0xff] }
 0x43c   : > { %v5583_v29 = vsel %vm15917_vm11, %v5519_v42, 0.0  ;;  %v5657_v12 = vsel %vm15897_vm15, %v5519_v42, 0.0  ;;  %v6288_v15 = vadd.f32 %v6257_v59, %v6217_v63  ;;  %v6361_v49 = vadd.f32 %v6329_v26, %v6289_v41  ;;  %v15921_v59 = vld [vmem:[#allocation92_spill] sm:$0xff] }
 0x43d   : > { %v5720_v37 = vsel %vm15887_vm9, %v5519_v42, 0.0  ;;  %v5904_v58 = vmul.f32 %v12944_v16, %v5583_v29  ;;  %7890 = vmatprep.subr.bf16.mxu1 %v6451_v52  ;;  %v5863_v56 = vadd.f32 %v15919_v5, %v5760_v2  ;;  %v5903_v25 = vmul.f32 %v12944_v16, %v5517_v61  ;;  %v15925_v29 = vld [vmem:[#allocation114_spill] sm:$0xff]  ;;  %vm15931_vm9 = vmmov %vm15892_vm4 }
 0x43e   : > { %v15920_v7 = vsel %vm15844_vm13, %v15898_v33, 0.0  ;;  %v6004_v3 = vadd.f32 %v13109_v40, %v13284_v57  ;;  %7891 = vmatpush3.bf16.msra.mxu1 %v15921_v59  ;;  %v6360_v17 = vadd.f32 %v6328_v19, %v6288_v15  ;;  %v6400_v9 = vadd.f32 %v13280_v22, %v6361_v49  ;;  %v15922_v33 = vld [vmem:[#allocation46_spill] sm:$0xff]  ;;  %vm15928_vm13 = vmmov %vm15892_vm4 }
 0x43f   : > { %v5971_v51 = vmul.f32 %v13048_v55, %v15920_v7  ;;  %v13405_v39 = vadd.f32 %v5904_v58, %v13093_v54  ;;  %v6116_v44 = vmul.f32 %v13182_v38, %v5655_v23  ;;  %v13408_v36 = vadd.f32 %v5903_v25, %v5863_v56  ;;  %v15924_v54 = vld [vmem:[#allocation146_spill] sm:$0xff]  ;;  %v15932_v7 = vld [vmem:[#allocation76_spill] sm:$0xff] }
 0x440   : > { %v6076_v26 = vadd.f32 %v15922_v33, %v6004_v3  ;;  %v6117_v21 = vmul.f32 %v13182_v38, %v5517_v61  ;;  %v6399_v40 = vadd.f32 %v13280_v22, %v6360_v17  ;;  %v6432_v57 = vmax.f32 %v6400_v9, 0.0  ;;  %v15934_v9 = vld [vmem:[#allocation120_spill] sm:$0xff] }
 0x441   : > { %v6003_v35 = vadd.f32 %v5971_v51, %v13293_v47  ;;  %v6187_v19 = vmul.f32 %v13208_v6, %v5688_v30  ;;  %v6188_v18 = vmul.f32 %v13208_v6, %v15923_v24  ;;  %v6259_v23 = vmul.f32 %v13120_v32, %v12989_v13 }
 0x442   : > { %v6148_v42 = vadd.f32 %v6116_v44, %v6076_v26  ;;  %v6260_v47 = vmul.f32 %v13120_v32, %v15909_v8  ;;  %v6431_v63 = vmax.f32 %v6399_v40, 0.0  ;;  %v6330_v41 = vmul.f32 %v13230_v53, %v5517_v61  ;;  %v15936_v40 = vld [vmem:[#allocation73_spill] sm:$0xff] }
 0x443   : > { %v6075_v46 = vadd.f32 %v15924_v54, %v6003_v35  ;;  %v6386_v52 = vadd.f32 %v13280_v22, %v15925_v29  ;;  %v15926_v30 = vrot.slane %v13144_v27, 1  ;;  %v15927_v2 = vrot.slane %v13100_v0, 1 }
 0x444   : > { %v6220_v58 = vadd.f32 %v6188_v18, %v6148_v42  ;;  %v6331_v5 = vmul.f32 %v13230_v53, %v5720_v37  ;;  %v15929_v13 = vrot.slane %v13098_v62, 1  ;;  %v6452_v61 = vpack.c.bf16 %v6432_v57, %v6431_v63  ;;  %v15937_v57 = vld [vmem:[#allocation121_spill] sm:$0xff] }
 0x445   : > { %v5521_v15 = vsel %vm15928_vm13, %v15927_v2, %v15926_v30  ;;  %v6147_v49 = vadd.f32 %v6115_v10, %v6075_v46  ;;  %v15930_v8 = vmov %v15926_v30  ;;  %v6418_v25 = vmax.f32 %v6386_v52, 0.0 }
 0x446   : > { %v13436_v56 = vsel %vm15931_vm9, %v15930_v8, %v15929_v13  ;;  %vm15933_vm4 = vnez %v15932_v7  ;;  %v5690_v10 = vsel %vm15842_vm12, %v13142_v50, 0.0  ;;  %v6291_v59 = vadd.f32 %v6260_v47, %v6220_v58  ;;  %7892 = vmatprep.subr.bf16.mxu1 %v6452_v61  ;;  %v15938_v47 = vld [vmem:[#allocation150_spill] sm:$0xff]  ;;  %v15940_v8 = vld [vmem:[#allocation128_spill] sm:$0xff] }
 0x447   : > { %v5585_v51 = vsel %vm15933_vm4, %v13436_v56, 0.0  ;;  %v6219_v3 = vadd.f32 %v6187_v19, %v6147_v49  ;;  %v5659_v37 = vsel %vm15917_vm11, %v13436_v56, 0.0  ;;  %v5905_v17 = vmul.f32 %v12944_v16, %v5521_v15  ;;  %7893 = vmatpush3.bf16.msra.mxu1 %v15937_v57 }
 0x448   : > { %v15935_v44 = vmax.f32 %v15934_v9, 0.0  ;;  %v5906_v33 = vmul.f32 %v12944_v16, %v5585_v51  ;;  %v5973_v26 = vmul.f32 %v13048_v55, %v5619_v4  ;;  %v6006_v1 = vadd.f32 %v15936_v40, %v13342_v11  ;;  %v15942_v51 = vld [vmem:[#allocation35_spill] sm:$0xff] }
 0x449   : > { %v6290_v19 = vadd.f32 %v6259_v23, %v6219_v3  ;;  %v6363_v24 = vadd.f32 %v6331_v5, %v6291_v59  ;;  %v13456_v18 = vadd.f32 %v5905_v17, %v13189_v48  ;;  %v6118_v54 = vmul.f32 %v13182_v38, %v5657_v12  ;;  %v15939_v12 = vld [vmem:[#allocation77_spill] sm:$0xff]  ;;  %v15944_v3 = vld [vmem:[#allocation40_spill] sm:$0xff]  ;;  %v15948_v40 = vld [vmem:[#allocation119_spill] sm:$0xff] }
 0x44a   : > { %v6445_v35 = vpack.c.bf16 %v6418_v25, %v15935_v44  ;;  %v5722_v46 = vsel %vm15897_vm15, %v13436_v56, 0.0  ;;  %v13463_v42 = vadd.f32 %v5906_v33, %v13225_v28  ;;  %v6005_v4 = vadd.f32 %v5973_v26, %v13338_v31 }
 0x44b   : > { %v6078_v11 = vadd.f32 %v15938_v47, %v6006_v1  ;;  %v6362_v63 = vadd.f32 %v6330_v41, %v6290_v19  ;;  %v6402_v23 = vadd.f32 %v13280_v22, %v6363_v24  ;;  %v13469_v29 = vmul.f32 %v13182_v38, %v5521_v15  ;;  %v15950_v24 = vld [vmem:[#allocation116_spill] sm:$0xff] }
 0x44c   : > { %v6189_v48 = vmul.f32 %v13208_v6, %v5690_v10  ;;  %v6077_v52 = vadd.f32 %v15939_v12, %v6005_v4  ;;  %v6190_v43 = vmul.f32 %v13208_v6, %v13194_v34  ;;  %v6261_v28 = vmul.f32 %v13120_v32, %v13100_v0  ;;  %v15953_v47 = vld [vmem:[#allocation132_spill] sm:$0xff] }
 0x44d   : > { %v6150_v30 = vadd.f32 %v6118_v54, %v6078_v11  ;;  %v6401_v31 = vadd.f32 %v13280_v22, %v6362_v63  ;;  %v6434_v2 = vmax.f32 %v6402_v23, 0.0  ;;  %v6262_v41 = vmul.f32 %v13120_v32, %v13144_v27 }
 0x44e   : > { %v6332_v49 = vmul.f32 %v13230_v53, %v5521_v15  ;;  %v6149_v58 = vadd.f32 %v6117_v21, %v6077_v52  ;;  %v6333_v13 = vmul.f32 %v13230_v53, %v5722_v46  ;;  %v5643_v25 = vsel %vm15134_vm0, %v15940_v8, 0.0  ;;  %v15951_v46 = vld [vmem:[#allocation135_spill] sm:$0xff] }
 0x44f   : > { %v6222_v5 = vadd.f32 %v6190_v43, %v6150_v30  ;;  %v6433_v34 = vmax.f32 %v6401_v31, 0.0  ;;  %v5674_v0 = vsel %vm15741_vm1, %v15942_v51, 0.0  ;;  %v5889_v59 = vmul.f32 %v12944_v16, %v15944_v3  ;;  %v15955_v43 = vld [vmem:[#allocation124_spill] sm:$0xff]  ;;  %vm15958_vm1 = vmmov %vm15908_vm14 }
 0x450   : > { %v15946_v15 = vsel %vm15802_vm3, %v15940_v8, 0.0  ;;  %v6221_v9 = vadd.f32 %v6189_v48, %v6149_v58  ;;  %v5706_v26 = vsel %vm15751_vm5, %v15940_v8, 0.0  ;;  %v15949_v1 = vsel %vm15751_vm5, %v15948_v40, 0.0  ;;  %v15954_v48 = vld [vmem:[#allocation104_spill] sm:$0xff]  ;;  %vm15961_vm5 = vmmov %vm15915_vm7  ;;  %v15966_v40 = vld [vmem:[#allocation147_spill] sm:$0xff] }
 0x451   : > { %v5890_v21 = vmul.f32 %v12944_v16, %v15946_v15  ;;  %v6293_v44 = vadd.f32 %v6262_v41, %v6222_v5  ;;  %v6102_v57 = vmul.f32 %v13182_v38, %v15949_v1  ;;  %v6453_v19 = vpack.c.bf16 %v6434_v2, %v6433_v34  ;;  %v15952_v16 = vld [vmem:[#allocation118_spill] sm:$0xff]  ;;  %vm15964_vm12 = vmmov %vm15961_vm5 }
 0x452   : > { %v13504_v54 = vadd.f32 %v5889_v59, %v15950_v24  ;;  %v6133_v11 = vadd.f32 %v15953_v47, %v15952_v16  ;;  %v6292_v63 = vadd.f32 %v6261_v28, %v6221_v9  ;;  %v6173_v52 = vmul.f32 %v13208_v6, %v5674_v0  ;;  %v15968_v47 = vld [vmem:[#allocation42_spill] sm:$0xff]  ;;  %vm16029_vm9 = vmmov %vm15958_vm1 }
 0x453   : > { %v13507_v4 = vadd.f32 %v5890_v21, %v15951_v46  ;;  %v6365_v23 = vadd.f32 %v6333_v13, %v6293_v44  ;;  %v6134_v12 = vadd.f32 %v6102_v57, %v15954_v48  ;;  %7894 = vmatprep.subr.bf16.mxu1 %v6453_v19  ;;  %v6103_v30 = vmul.f32 %v13182_v38, %v15944_v3  ;;  %v15965_v44 = vld [vmem:[#allocation36_spill] sm:$0xff] }
 0x454   : > { %v6174_v31 = vmul.f32 %v13208_v6, %v15955_v43  ;;  %v6316_v2 = vmul.f32 %v13230_v53, %v15944_v3  ;;  %v15956_v41 = vrot.slane %v13098_v62, 7  ;;  %v15957_v58 = vrot.slane %v13144_v27, 7  ;;  %7895 = vmatpush3.bf16.msra.mxu1 %v6445_v35  ;;  %v15962_v27 = vld [vmem:[#allocation22_spill] sm:$0xff]  ;;  %v15970_v43 = vld [vmem:[#allocation17_spill] sm:$0xff] }
 0x455   : > { %v6364_v5 = vadd.f32 %v6332_v49, %v6292_v63  ;;  %v6404_v13 = vadd.f32 %v13280_v22, %v6365_v23  ;;  %v6205_v34 = vadd.f32 %v6173_v52, %v6133_v11  ;;  %v6317_v51 = vmul.f32 %v13230_v53, %v5706_v26 }
 0x456   : > { %v5588_v28 = vsel %vm15958_vm1, %v15957_v58, %v15956_v41  ;;  %v6206_v10 = vadd.f32 %v6174_v31, %v6134_v12  ;;  %v15959_v59 = vrot.slane %v13103_v20, 1  ;;  %v15960_v3 = vrot.slane %v13098_v62, 1  ;;  %v15969_v12 = vld [vmem:[#allocation78_spill] sm:$0xff]  ;;  %v15972_v58 = vld [vmem:[#allocation131_spill] sm:$0xff] }
 0x457   : > { %v5623_v0 = vsel %vm15860_vm2, %v5588_v28, 0.0  ;;  %v6403_v49 = vadd.f32 %v13280_v22, %v6364_v5  ;;  %v6436_v9 = vmax.f32 %v6404_v13, 0.0  ;;  %v6276_v33 = vadd.f32 %v15965_v44, %v6205_v34 }
 0x458   : > { %v5626_v15 = vsel %vm15961_vm5, %v15960_v3, %v15959_v59  ;;  %v15963_v21 = vmov %v15959_v59  ;;  %v5692_v26 = vsel %vm15868_vm6, %v5588_v28, 0.0  ;;  %v6277_v1 = vadd.f32 %v15966_v40, %v6206_v10  ;;  %v15973_v28 = vld [vmem:[#allocation38_spill] sm:$0xff] }
 0x459   : > { %v5627_v35 = vsel %vm15964_vm12, %v15963_v21, %v15962_v27  ;;  %v15967_v20 = vsel %vm15868_vm6, %v13142_v50, 0.0  ;;  %v6435_v24 = vmax.f32 %v6403_v49, 0.0  ;;  %v6348_v46 = vadd.f32 %v6316_v2, %v6276_v33  ;;  %v15975_v59 = vld [vmem:[#allocation130_spill] sm:$0xff]  ;;  %vm16033_vm12 = vmmov %vm15958_vm1 }
 0x45a   : > { %v5661_v62 = vsel %vm15933_vm4, %v5627_v35, 0.0  ;;  %v5724_v57 = vsel %vm15917_vm11, %v5627_v35, 0.0  ;;  %v5975_v19 = vmul.f32 %v13048_v55, %v15967_v20  ;;  %v5977_v16 = vmul.f32 %v13048_v55, %v5623_v0  ;;  %v15978_v33 = vld [vmem:[#allocation122_spill] sm:$0xff]  ;;  %vm16030_vm4 = vmmov %vm15961_vm5 }
 0x45b   : > { %v6008_v11 = vadd.f32 %v15968_v47, %v13405_v39  ;;  %v6349_v63 = vadd.f32 %v6317_v51, %v6277_v1  ;;  %v6120_v14 = vmul.f32 %v13182_v38, %v5659_v37  ;;  %v6121_v50 = vmul.f32 %v13182_v38, %v5626_v15  ;;  %v15979_v40 = vld [vmem:[#allocation34_spill] sm:$0xff]  ;;  %vm16032_vm5 = vmmov %vm15958_vm1 }
 0x45c   : > { %v6007_v7 = vadd.f32 %v5975_v19, %v13408_v36  ;;  %v6454_v23 = vpack.c.bf16 %v6436_v9, %v6435_v24  ;;  %v6387_v48 = vadd.f32 %v13280_v22, %v6348_v46  ;;  %v6122_v55 = vmul.f32 %v13182_v38, %v5661_v62  ;;  %v15982_v24 = vld [vmem:[#allocation70_spill] sm:$0xff] }
 0x45d   : > { %v6080_v52 = vadd.f32 %v15969_v12, %v6008_v11  ;;  %v6388_v39 = vadd.f32 %v13280_v22, %v6349_v63  ;;  %v6191_v36 = vmul.f32 %v13208_v6, %v5692_v26  ;;  %v6192_v56 = vmul.f32 %v13208_v6, %v15971_v45  ;;  %v15983_v11 = vld [vmem:[#allocation117_spill] sm:$0xff] }
 0x45e   : > { %v6079_v31 = vadd.f32 %v15970_v43, %v6007_v7  ;;  %7896 = vmatprep.subr.bf16.mxu1 %v6454_v23  ;;  %v6419_v37 = vmax.f32 %v6387_v48, 0.0  ;;  %v6334_v41 = vmul.f32 %v13230_v53, %v5626_v15  ;;  %vm15974_vm6 = vnez %v15973_v28  ;;  %v15976_v15 = vld [vmem:[#allocation133_spill] sm:$0xff]  ;;  %v15984_v7 = vld [vmem:[#allocation58_spill] sm:$0xff]  ;;  %v15985_v23 = vld [vmem:[#allocation148_spill] sm:$0xff] }
 0x45f   : > { %v6152_v2 = vadd.f32 %v6120_v14, %v6080_v52  ;;  %v5676_v5 = vsel %vm15974_vm6, %v15972_v58, 0.0  ;;  %v6420_v13 = vmax.f32 %v6388_v39, 0.0  ;;  %v6335_v51 = vmul.f32 %v13230_v53, %v5724_v57  ;;  %v15981_v57 = vld [vmem:[#allocation18_spill] sm:$0xff]  ;;  %v15987_v12 = vld [vmem:[#allocation113_spill] sm:$0xff]  ;;  %v15988_v39 = vld [vmem:[#allocation68_spill] sm:$0xff] }
 0x460   : > { %v6151_v34 = vadd.f32 %v13469_v29, %v6079_v31  ;;  %v6104_v10 = vmul.f32 %v13182_v38, %v5643_v25  ;;  %v5708_v3 = vsel %vm15134_vm0, %v15975_v59, 0.0  ;;  %v6135_v21 = vadd.f32 %v6103_v30, %v15976_v15  ;;  %v15977_v29 = vld [vmem:[#allocation125_spill] sm:$0xff]  ;;  %v15980_v25 = vld [vmem:[#allocation136_spill] sm:$0xff]  ;;  %v15989_v31 = vld [vmem:[#allocation11_spill] sm:$0xff] }
 0x461   : > { %v6224_v0 = vadd.f32 %v6192_v56, %v6152_v2  ;;  %v6175_v35 = vmul.f32 %v13208_v6, %v5676_v5  ;;  %v6446_v49 = vpack.c.bf16 %v6420_v13, %v6419_v37  ;;  %v6176_v26 = vmul.f32 %v13208_v6, %v15978_v33  ;;  %v15992_v15 = vld [vmem:[#allocation39_spill] sm:$0xff]  ;;  %vm16034_vm6 = vmmov %vm16030_vm4 }
 0x462   : > { %v6223_v9 = vadd.f32 %v6191_v36, %v6151_v34  ;;  %v6136_v44 = vadd.f32 %v6104_v10, %v15977_v29  ;;  %v6318_v62 = vmul.f32 %v13230_v53, %v15980_v25  ;;  %v6009_v61 = vadd.f32 %v5977_v16, %v13456_v18  ;;  %v15990_v34 = vld [vmem:[#allocation75_spill] sm:$0xff]  ;;  %v15995_v29 = vld [vmem:[#allocation134_spill] sm:$0xff] }
 0x463   : > { %v6295_v8 = vadd.f32 %v15979_v40, %v6224_v0  ;;  %v6207_v1 = vadd.f32 %v6175_v35, %v6135_v21  ;;  %7897 = vmatpush3.bf16.msra.mxu1 %v6446_v49  ;;  %v6319_v19 = vmul.f32 %v13230_v53, %v5708_v3  ;;  %v6010_v46 = vadd.f32 %v15982_v24, %v13463_v42  ;;  %v15991_v3 = vld [vmem:[#allocation142_spill] sm:$0xff]  ;;  %v15994_v49 = vld [vmem:[#allocation123_spill] sm:$0xff] }
 0x464   : > { %v6294_v30 = vadd.f32 %v15981_v57, %v6223_v9  ;;  %v6208_v20 = vadd.f32 %v6176_v26, %v6136_v44  ;;  %v6081_v14 = vadd.f32 %v15984_v7, %v6009_v61  ;;  %v15986_v48 = vsel %vm15860_vm2, %v15985_v23, 0.0  ;;  %v15997_v57 = vld [vmem:[#allocation37_spill] sm:$0xff]  ;;  %v16000_v7 = vld [vmem:[#allocation138_spill] sm:$0xff]  ;;  %v16001_v23 = vld [vmem:[#allocation139_spill] sm:$0xff] }
 0x465   : > { %v6367_v47 = vadd.f32 %v6335_v51, %v6295_v8  ;;  %v6278_v63 = vadd.f32 %v15983_v11, %v6207_v1  ;;  %v6193_v18 = vmul.f32 %v13208_v6, %v15986_v48  ;;  %v6082_v43 = vadd.f32 %v15988_v39, %v6010_v46  ;;  %v15999_v11 = vld [vmem:[#allocation129_spill] sm:$0xff]  ;;  %v16002_v48 = vld [vmem:[#allocation115_spill] sm:$0xff] }
 0x466   : > { %v6366_v16 = vadd.f32 %v6334_v41, %v6294_v30  ;;  %v6279_v52 = vadd.f32 %v15987_v12, %v6208_v20  ;;  %v6194_v36 = vmul.f32 %v13208_v6, %v15989_v31  ;;  %v6153_v56 = vadd.f32 %v6121_v50, %v6081_v14 }
 0x467   : > { %v6406_v42 = vadd.f32 %v13280_v22, %v6367_v47  ;;  %v6350_v45 = vadd.f32 %v6318_v62, %v6278_v63  ;;  %v6265_v37 = vmul.f32 0.0, %v13120_v32  ;;  %v6154_v58 = vadd.f32 %v6122_v55, %v6082_v43  ;;  %v15996_v62 = vld [vmem:[#allocation29_spill] sm:$0xff] }
 0x468   : > { %v6405_v60 = vadd.f32 %v13280_v22, %v6366_v16  ;;  %v6351_v2 = vadd.f32 %v6319_v19, %v6279_v52  ;;  %v6336_v41 = vmul.f32 %v13230_v53, %v15962_v27  ;;  %v6225_v13 = vadd.f32 %v6193_v18, %v6153_v56 }
 0x469   : > { %v6438_v28 = vmax.f32 %v6406_v42, 0.0  ;;  %v6389_v5 = vadd.f32 %v13280_v22, %v6350_v45  ;;  %v6337_v51 = vmul.f32 %v13230_v53, %v15990_v34  ;;  %v6226_v50 = vadd.f32 %v6194_v36, %v6154_v58  ;;  %v8651_v34 = vld [vmem:[%s14349_s9 + $0x34] ss:$8 sps:$4 sm:$0xff]  }
 0x46a   : > { %v6437_v10 = vmax.f32 %v6405_v60, 0.0  ;;  %v6390_v0 = vadd.f32 %v13280_v22, %v6351_v2  ;;  %vm15993_vm0 = vnez %v15992_v15  ;;  %v6296_v55 = vadd.f32 %v6265_v37, %v6225_v13  ;;  %v8650_v13 = vld [vmem:[%s14349_s9 + $0x20] ss:$8 sps:$4 sm:$0xff]  }
 0x46b   : > { %v5678_v21 = vsel %vm15993_vm0, %v15991_v3, 0.0  ;;  %v6421_v35 = vmax.f32 %v6389_v5, 0.0  ;;  %v5993_v9 = vadd.f32 %v15994_v49, %v13504_v54  ;;  %v5994_v44 = vadd.f32 %v15995_v29, %v13507_v4  ;;  %v8647_v5 = vld [vmem:[%s14349_s9 + $0x10] ss:$8 sps:$4 sm:$0xff]  }
 0x46c   : > { %v6455_v33 = vpack.c.bf16 %v6438_v28, %v6437_v10  ;;  %v6422_v26 = vmax.f32 %v6390_v0, 0.0  ;;  %v6297_v40 = vadd.f32 %v6265_v37, %v6226_v50  ;;  %v6105_v8 = vmul.f32 %v13182_v38, %v15980_v25  ;;  %v8642_v28 = vld [vmem:[%s14349_s9] ss:$8 sps:$4 sm:$0xff]  }
 0x46d   : > { %v6368_v1 = vadd.f32 %v6336_v41, %v6296_v55  ;;  %v6065_v61 = vadd.f32 %v15996_v62, %v5993_v9  ;;  %v6066_v30 = vadd.f32 %v15997_v57, %v5994_v44  ;;  %v15998_v20 = vsel %vm15802_vm3, %v15975_v59, 0.0  ;;  %v8654_v10 = vld [vmem:[%s14350_s10] sm:$0xff]  }
 0x46e   : > { %v6106_v54 = vmul.f32 %v13182_v38, %v15998_v20  ;;  %7898 = vmatprep.subr.bf16.mxu1 %v6455_v33  ;;  %v6447_v19 = vpack.c.bf16 %v6422_v26, %v6421_v35  ;;  %v6369_v4 = vadd.f32 %v6337_v51, %v6297_v40  ;;  %v6177_v24 = vmul.f32 %v13208_v6, %v5678_v21  ;;  %v8653_v51 = vld [vmem:[%s14349_s9 + $0x30] ss:$8 sps:$4 sm:$0xff]  }
 0x46f   : > { %v6407_v46 = vadd.f32 %v13280_v22, %v6368_v1  ;;  %v6137_v47 = vadd.f32 %v6105_v8, %v6065_v61  ;;  %v6178_v63 = vmul.f32 %v13208_v6, %v15999_v11  ;;  %v6249_v14 = vmul.f32 %v13120_v32, %v16000_v7  ;;  %v16003_v6 = vld [vmem:[#allocation144_spill] sm:$0xff] }
 0x470   : > { %v6138_v25 = vadd.f32 %v6106_v54, %v6066_v30  ;;  %7899 = vmatpush3.bf16.msra.mxu1 %v6447_v19  ;;  %v6408_v59 = vadd.f32 %v13280_v22, %v6369_v4  ;;  %v5710_v38 = vsel %vm15802_vm3, %v16001_v23, 0.0  ;;  %v6250_v18 = vmul.f32 %v13120_v32, %v16002_v48  ;;  %v13691_v23 = vld [vmem:[%s14352_s12] ss:$0 sm:$0xff]  ;;  %v13701_v48 = vld [vmem:[%s14352_s12 + $0x1] ss:$0 sm:$0xff] }
 0x471   : > { %v6439_v16 = vmax.f32 %v6407_v46, 0.0  ;;  %v6209_v12 = vadd.f32 %v6177_v24, %v6137_v47  ;;  %v6320_v42 = vmul.f32 %v13230_v53, %v16003_v6  ;;  %v6321_v45 = vmul.f32 %v13230_v53, %v5710_v38  ;;  %v8645_v53 = vld [vmem:[%s14349_s9 + $0x14] ss:$8 sps:$4 sm:$0xff]   ;;  %v13696_v38 = vld [vmem:[%s14351_s11] ss:$0 sm:$0xff]  ;;  %v16009_v6 = vld [vmem:[#allocation12_spill] sm:$0xff] }
 0x472   : > { %v6210_v52 = vadd.f32 %v6178_v63, %v6138_v25  ;;  %v6440_v39 = vmax.f32 %v6408_v59, 0.0  ;;  %v16004_v0 = vmov 0.0   ;;  %vm6589_vm3 = vcmask 130048   ;;  %v16005_v63 = vld [vmem:[#allocation9_spill] sm:$0xff] }
 0x473   : > { %v6280_v43 = vadd.f32 %v6249_v14, %v6209_v12  ;;  %vm14744_vm2 = vmmov 0   ;;  %v6679_v7 = vand.u32 7, %v16005_v63 }
 0x474   : > { %v6281_v36 = vadd.f32 %v6250_v18, %v6210_v52  ;;  %v6456_v56 = vpack.c.bf16 %v6440_v39, %v6439_v16  ;;  %v16008_v18 = vld [vmem:[#allocation54_spill] sm:$0xff]  ;;  %v6958_v39 = vmul.f32 0.0, %v13701_v48 }
 0x475   : > { %v6352_v37 = vadd.f32 %v6320_v42, %v6280_v43  ;;  %vm13681_vm8 = vcmp.ge.s32.totalorder %v6679_v7, 1  ;;  %v6686_v16 = vand.u32 7, %v16008_v18  ;;  %v6707_v42 = vand.u32 7, %v16009_v6 }
 0x476   : > { %v6353_v60 = vadd.f32 %v6321_v45, %v6281_v36  ;;  %7900 = vmatprep.subr.bf16.mxu1 %v6456_v56  ;;  %v6823_v59 = vsel %vm13681_vm8, %v15989_v31, 0.0  ;;  %v16010_v45 = vld [vmem:[#allocation10_spill] sm:$0xff]  ;;  %vm13716_vm14 = vcmp.lt.s32.totalorder %v6679_v7, 7  ;;  %v13799_v7 = vld [vmem:[%s14352_s12 + $0x3] ss:$0 sm:$0xff] }
 0x477   : > { %v6391_v17 = vadd.f32 %v13280_v22, %v6352_v37  ;;  %v6934_v52 = vmul.f32 %v13691_v23, %v6823_v59  ;;  %v14737_v56 = vand.u32 7, %v16010_v45  ;;  %vm13711_vm15 = vcmp.ge.s32.totalorder %v6686_v16, 1 }
 0x478   : > { %v6392_v2 = vadd.f32 %v13280_v22, %v6353_v60  ;;  %v8648_v22 = vld [vmem:[%s14349_s9 + $0x24] ss:$8 sps:$4 sm:$0xff]   ;;  %vm13728_vm10 = vcmp.ge.s32.totalorder %v6707_v42, 1  ;;  %vm13738_vm11 = vcmp.lt.s32.totalorder %v6686_v16, 7 }
 0x479   : > { %v6423_v32 = vmax.f32 %v6391_v17, 0.0  ;;  %v16011_v17 = vld [vmem:[#allocation69_spill] sm:$0xff]  ;;  %vm13734_vm7 = vcmp.ge.s32.totalorder %v14737_v56, 1 }
 0x47a   : > { %v6424_v58 = vmax.f32 %v6392_v2, 0.0  ;;  %v6728_v2 = vand.u32 7, %v16011_v17 }
 0x47c   : > { %v6448_v41 = vpack.c.bf16 %v6424_v58, %v6423_v32  ;;  %vm13750_vm13 = vcmp.lt.s32.totalorder %v6728_v2, 7 }
 0x47e   : > { %7901 = vmatpush3.bf16.msra.mxu1 %v6448_v41 }
 0x47f   : > { %8284 = vmatprep.subr.bf16.mxu1 %v8654_v10 }
 0x481   : > { %6538 = vmatmul.mubr.bf16.vlgmr.msra.gmra.mrb[64].mxu1 %v8642_v28 }
 0x482   : > { %6545 = vmatprep.mubr.bf16.mxu1 %v8645_v53  ;;  %8285 = vmatpush3.bf16.msra.mxu1 %v8654_v10 }
 0x483   : > { %8294 = vmatprep.subr.bf16.mxu1 %v16004_v0 }
 0x489   : > { %6546 = vmatmul.mubr.bf16.gmra.mrb[68].mxu1 %v8647_v5  ;;  %v6966_v5 = vadd.f32 %v6958_v39, %v6934_v52 }
 0x48a   : > { %6553 = vmatprep.mubr.bf16.mxu1 %v8648_v22 }
 0x491   : > { %6554 = vmatmul.mubr.bf16.gmra.mrb[72].mxu1 %v8650_v13 }
 0x492   : > { %6561 = vmatprep.mubr.bf16.mxu1 %v8651_v34  ;;  %v13726_v34 = vld [vmem:[%s14352_s12 + $0x4] ss:$0 sm:$0xff] }
 0x499   : > { %6562 = vmatmul.mubr.bf16.gmra.mrb[76].mxu1 %v8653_v51  ;;  %v16016_v51 = vmov 0 }
 0x49a   : > { %v16017_v51 = vsel %vm13728_vm10, 4294967295, %v16016_v51 }
 0x554   : > { %v7902_v50 = vpop.f32.mrb[64].mxu1 }
 0x555   : > { %v7903_v3 = vpop.f32.mrb[65].mxu1 }
 0x556   : > { %v7904_v15 = vadd.f32 %v7903_v3, %v7902_v50  ;;  %v7905_v21 = vpop.f32.mrb[66].mxu1  ;;  %v13745_v3 = vld [vmem:[%s14352_s12 + $0x7] ss:$0 sm:$0xff] }
 0x557   : > { %v7906_v35 = vpop.f32.mrb[67].mxu1  ;;  %16022 = vst [vmem:[#allocation149_spill] sm:$0xff] %v13745_v3 }
 0x558   : > { %v7907_v55 = vadd.f32 %v7906_v35, %v7905_v21  ;;  %v16023_v35 = vld [vmem:[#allocation64_spill] sm:$0xff] }
 0x55a   : > { %v6570_v49 = vpack.c.bf16 %v7907_v55, %v7904_v15  ;;  %v6714_v55 = vand.u32 7, %v16023_v35 }
 0x55c   : > { %v7908_v9 = vpop.f32.mrb[68].mxu1  ;;  %8286 = vmatprep.mubr.msk.bf16.mxu1 %vm6589_vm3, %v6570_v49  ;;  %v16024_v49 = vmov 0  ;;  %vm13832_vm0 = vcmp.ge.s32.totalorder %v6714_v55, 1 }
 0x55d   : > { %v7909_v29 = vpop.f32.mrb[69].mxu1  ;;  %v16025_v49 = vsel %vm13750_vm13, 4294967295, %v16024_v49 }
 0x55e   : > { %v7910_v44 = vadd.f32 %v7909_v29, %v7908_v9  ;;  %v7911_v33 = vpop.f32.mrb[70].mxu1  ;;  %16026 = vst [vmem:[#allocation49_spill] sm:$0xff] %v16025_v49  ;;  %v13757_v9 = vld [vmem:[%s14352_s12 + $0x2] ss:$0 sm:$0xff]  ;;  %v16095_v17 = vld [vmem:[#allocation149_spill] sm:$0xff] }
 0x55f   : > { %v7912_v26 = vpop.f32.mrb[71].mxu1 }
 0x560   : > { %v7913_v40 = vadd.f32 %v7912_v26, %v7911_v33  ;;  %v16028_v26 = vld [vmem:[#allocation55_spill] sm:$0xff] }
 0x562   : > { %v6571_v8 = vpack.c.bf16 %v7913_v40, %v7910_v44  ;;  %v16027_v44 = vld [vmem:[#allocation15_spill] sm:$0xff] }
 0x563   : > { %v6721_v33 = vand.u32 7, %v16027_v44 }
 0x564   : > { %v7914_v1 = vpop.f32.mrb[72].mxu1  ;;  %8287 = vmatmul.mubr.msk.bf16.vlgmr.msra.gmra.mrb[80].mxu1 %vm6589_vm3, %v6571_v8 }
 0x565   : > { %v7915_v62 = vpop.f32.mrb[73].mxu1 }
 0x566   : > { %v7916_v61 = vadd.f32 %v7915_v62, %v7914_v1  ;;  %v7917_v57 = vpop.f32.mrb[74].mxu1 }
 0x567   : > { %v7918_v30 = vpop.f32.mrb[75].mxu1 }
 0x568   : > { %v7919_v20 = vadd.f32 %v7918_v30, %v7917_v57  ;;  %v13771_v57 = vmul.f32 0.0, %v13745_v3 }
 0x56a   : > { %v6572_v54 = vpack.c.bf16 %v7919_v20, %v7916_v61  ;;  %16031 = vst [vmem:[#allocation52_spill] sm:$0xff] %v13771_v57 }
 0x56c   : > { %v7920_v19 = vpop.f32.mrb[76].mxu1  ;;  %8290 = vmatprep.mubr.msk.bf16.mxu1 %vm6589_vm3, %v6572_v54 }
 0x56d   : > { %v7921_v4 = vpop.f32.mrb[77].mxu1 }
 0x56e   : > { %v7922_v24 = vadd.f32 %v7921_v4, %v7920_v19  ;;  %v7923_v46 = vpop.f32.mrb[78].mxu1 }
 0x56f   : > { %v7924_v47 = vpop.f32.mrb[79].mxu1 }
 0x570   : > { %v7925_v25 = vadd.f32 %v7924_v47, %v7923_v46 }
 0x572   : > { %v6573_v11 = vpack.c.bf16 %v7925_v25, %v7922_v24 }
 0x574   : > { %8291 = vmatmul.mubr.msk.bf16.gmra.mrb[84].mxu1 %vm6589_vm3, %v6573_v11  ;;  %vm13836_vm3 = vcmp.lt.s32.totalorder %v6707_v42, 7 }
 0x575   : > { %8302 = vmatprep.mubr.msk.bf16.mxu1 %vm14744_vm2, %v16004_v0  ;;  %vm16073_vm2 = vcmask 1040384  }
 0x637   : > { %v8288_v12 = vpop.f32.mrb[80].mxu1 }
 0x638   : > { %v6645_v43 = vadd.f32 %v8288_v12, %v13696_v38  ;;  %v6636_v36 = vpop.f32.mrb[81].mxu1 }
 0x639   : > { %v6637_v37 = vadd.f32 %v13696_v38, %v6636_v36  ;;  %v8289_v60 = vpop.f32.mrb[82].mxu1 }
 0x63a   : > { %v6648_v58 = vadd.f32 %v8289_v60, %v13696_v38  ;;  %v6639_v41 = vpop.f32.mrb[83].mxu1  ;;  %v13721_v13 = vmax.f32 %v6645_v43, 0.0 }
 0x63b   : > { %v6667_v28 = vmax.f32 %v6637_v37, 0.0  ;;  %v6640_v22 = vadd.f32 %v13696_v38, %v6639_v41 }
 0x63c   : > { %v13759_v29 = vmax.f32 %v6648_v58, 0.0  ;;  %v6806_v30 = vrot.slane %v13721_v13, 7  ;;  %v6860_v4 = vrot.slane %v13721_v13, 1  ;;  %v13782_v24 = vmul.f32 %v13701_v48, %v13721_v13 }
 0x63d   : > { %v6802_v15 = vrot.slane %v6667_v28, 7  ;;  %v6856_v21 = vrot.slane %v6667_v28, 1  ;;  %v6668_v61 = vmax.f32 %v6640_v22, 0.0  ;;  %v13786_v46 = vmul.f32 %v13726_v34, %v13721_v13 }
 0x63e   : > { %v6808_v19 = vrot.slane %v13759_v29, 7  ;;  %v13791_v25 = vmul.f32 %v13745_v3, %v13721_v13  ;;  %v6959_v18 = vmul.f32 %v13701_v48, %v6667_v28  ;;  %v7030_v16 = vmul.f32 %v13726_v34, %v6667_v28 }
 0x63f   : > { %v6803_v1 = vsel %vm16029_vm9, %v15989_v31, %v6802_v15  ;;  %v6857_v62 = vsel %vm16030_vm4, %v15962_v27, %v6856_v21  ;;  %v6804_v52 = vrot.slane %v6668_v61, 7  ;;  %v6962_v36 = vmul.f32 %v13701_v48, %v13759_v29  ;;  %vm16040_vm9 = vmmov %vm16030_vm4 }
 0x640   : > { %v6824_v20 = vsel %vm13711_vm15, %v6803_v1, 0.0  ;;  %v6880_v54 = vsel %vm13716_vm14, %v6857_v62, 0.0  ;;  %v6891_v11 = vsel %vm13681_vm8, %v6803_v1, 0.0  ;;  %v13804_v59 = vsel %vm15958_vm1, %v6806_v30, %v6808_v19 }
 0x641   : > { %v6982_v47 = vmul.f32 %v13757_v9, %v6880_v54  ;;  %v6935_v63 = vmul.f32 %v13691_v23, %v6824_v20  ;;  %v6827_v12 = vsel %vm13728_vm10, %v13804_v59, 0.0  ;;  %v6858_v6 = vrot.slane %v6668_v61, 1 }
 0x642   : > { %v6938_v43 = vmul.f32 %v13691_v23, %v6827_v12  ;;  %v7006_v37 = vmul.f32 %v13799_v7, %v6891_v11  ;;  %v6862_v60 = vrot.slane %v13759_v29, 1  ;;  %v13817_v58 = vsel %vm16032_vm5, %v6802_v15, %v6804_v52 }
 0x643   : > { %v6990_v39 = vadd.f32 %v6982_v47, %v6966_v5  ;;  %v13820_v41 = vsel %vm16033_vm12, %v6804_v52, %v6806_v30  ;;  %v6967_v28 = vadd.f32 %v6959_v18, %v6935_v63  ;;  %v6825_v5 = vsel %vm13734_vm7, %v13817_v58, 0.0 }
 0x644   : > { %v13822_v22 = vadd.f32 %v6962_v36, %v6938_v43  ;;  %v13828_v13 = vsel %vm16034_vm6, %v6856_v21, %v6858_v6  ;;  %v13842_v62 = vmul.f32 %v13726_v34, %v13759_v29  ;;  %v6892_v21 = vsel %vm13711_vm15, %v13817_v58, 0.0 }
 0x645   : > { %v6881_v30 = vsel %vm13738_vm11, %v13828_v13, 0.0  ;;  %v6960_v20 = vmul.f32 %v13701_v48, %v6668_v61  ;;  %v7014_v47 = vadd.f32 %v7006_v37, %v6990_v39  ;;  %v6893_v42 = vsel %vm13734_vm7, %v13820_v41, 0.0 }
 0x646   : > { %16039 = vst [vmem:[#allocation43_spill] sm:$0xff] %v13842_v62  ;;  %v6936_v11 = vmul.f32 %v13691_v23, %v6825_v5  ;;  %v6983_v63 = vmul.f32 %v13757_v9, %v6881_v30  ;;  %v13859_v36 = vsel %vm16040_vm9, %v6858_v6, %v6860_v4  ;;  %v13862_v8 = vsel %vm16030_vm4, %v6860_v4, %v6862_v60  ;;  %vm16052_vm9 = vmmov %vm16030_vm4 }
 0x647   : > { %v8292_v54 = vpop.f32.mrb[84].mxu1  ;;  %v7007_v56 = vmul.f32 %v13799_v7, %v6892_v21  ;;  %vm13879_vm1 = vcmp.ge.s32.totalorder %v6728_v2, 1  ;;  %v16042_v4 = vmov 0  ;;  %vm13885_vm5 = vcmp.lt.s32.totalorder %v6721_v33, 7 }
 0x648   : > { %v6652_v18 = vpop.f32.mrb[85].mxu1  ;;  %v6661_v12 = vadd.f32 %v8292_v54, %v13696_v38  ;;  %v13864_v39 = vadd.f32 %v6960_v20, %v6936_v11  ;;  %v6991_v37 = vadd.f32 %v6983_v63, %v6967_v28  ;;  %v13870_v54 = vmul.f32 %v13745_v3, %v13759_v29 }
 0x649   : > { %v6653_v52 = vadd.f32 %v13696_v38, %v6652_v18  ;;  %v8293_v43 = vpop.f32.mrb[86].mxu1  ;;  %v7031_v18 = vmul.f32 %v13726_v34, %v6668_v61  ;;  %v16043_v4 = vsel %vm13879_vm1, 4294967295, %v16042_v4  ;;  %v13889_v21 = vadd.f32 %v7030_v16, %v7014_v47 }
 0x64a   : > { %v6664_v5 = vadd.f32 %v8293_v43, %v13696_v38  ;;  %v6655_v30 = vpop.f32.mrb[87].mxu1  ;;  %16041 = vst [vmem:[#allocation152_spill] sm:$0xff] %v13870_v54  ;;  %v13873_v40 = vmax.f32 %v6661_v12, 0.0  ;;  %16044 = vst [vmem:[#allocation72_spill] sm:$0xff] %v16043_v4  ;;  %v7015_v20 = vadd.f32 %v7007_v56, %v6991_v37  ;;  %v13892_v11 = vmul.f32 %v13745_v3, %v6668_v61 }
 0x64b   : > { %v13875_v6 = vmax.f32 %v6653_v52, 0.0  ;;  %vm13898_vm12 = vcmp.ge.s32.totalorder %v6721_v33, 1  ;;  %v6901_v2 = vsel %vm13716_vm14, %v13828_v13, 0.0  ;;  %v13906_v12 = vmul.f32 %v13799_v7, %v6893_v42 }
 0x64c   : > { %v13894_v63 = vmax.f32 %v6664_v5, 0.0  ;;  %v6656_v56 = vadd.f32 %v13696_v38, %v6655_v30  ;;  %v6902_v61 = vsel %vm13738_vm11, %v13859_v36, 0.0  ;;  %v7039_v16 = vadd.f32 %v7031_v18, %v7015_v20 }
 0x64d   : > { %v6810_v44 = vrot.slane %v13875_v6, 7  ;;  %v6864_v33 = vrot.slane %v13875_v6, 1  ;;  %v6911_v47 = vsel %vm13681_vm8, %v13817_v58, 0.0  ;;  %v14738_v13 = vrot.slane %v13873_v40, 1  ;;  %vm16051_vm8 = vmmov %vm16030_vm4 }
 0x64e   : > { %16047 = vst [vmem:[#allocation66_spill] sm:$0xff] %v13894_v63  ;;  %v6870_v42 = vrot.slane %v13894_v63, 1  ;;  %v6814_v43 = vrot.slane %v13873_v40, 7  ;;  %vm16050_vm6 = vcmask 1040384   ;;  %v6888_v58 = vrot.slane %v13894_v63, 7 }
 0x64f   : > { %v13929_v37 = vsel %vm16050_vm6, %v6808_v19, %v6810_v44  ;;  %v13932_v14 = vsel %vm16051_vm8, %v6862_v60, %v6864_v33  ;;  %vm13951_vm4 = vcmp.lt.s32.totalorder %v6714_v55, 7  ;;  %v6965_v18 = vmul.f32 %v13701_v48, %v13873_v40 }
 0x650   : > { %v6828_v5 = vsel %vm13832_vm0, %v13929_v37, 0.0  ;;  %v6884_v30 = vsel %vm13836_vm3, %v13932_v14, 0.0  ;;  %v6895_v29 = vsel %vm13728_vm10, %v13929_v37, 0.0  ;;  %v13947_v19 = vsel %vm16052_vm9, %v14738_v13, %v6870_v42  ;;  %vm16059_vm9 = vmmov %vm16050_vm6 }
 0x651   : > { %v6939_v20 = vmul.f32 %v13691_v23, %v6828_v5  ;;  %v6963_v52 = vmul.f32 %v13701_v48, %v13875_v6  ;;  %v6986_v38 = vmul.f32 %v13757_v9, %v6884_v30  ;;  %v13963_v13 = vmul.f32 %v13726_v34, %v13873_v40 }
 0x652   : > { %v13967_v35 = vmul.f32 %v13745_v3, %v13873_v40  ;;  %v13970_v55 = vsel %vm16050_vm6, %v6814_v43, %v6888_v58  ;;  %v13974_v57 = vsel %vm16051_vm8, %v6870_v42, %v15962_v27  ;;  %v7010_v30 = vmul.f32 %v13799_v7, %v6895_v29 }
 0x653   : > { %16055 = vst [vmem:[#allocation94_spill] sm:$0xff] %v13963_v13  ;;  %16057 = vst [vmem:[#allocation19_spill] sm:$0xff] %v13970_v55  ;;  %v6971_v5 = vadd.f32 %v6963_v52, %v6939_v20  ;;  %v6994_v54 = vadd.f32 %v6986_v38, %v13822_v22  ;;  %v13980_v62 = vsel %vm16059_vm9, %v6888_v58, %v15989_v31  ;;  %v6887_v42 = vsel %vm13750_vm13, %v13947_v19, 0.0  ;;  %v13998_v31 = vld [vmem:[%s14352_s12 + $0x5] ss:$0 sm:$0xff] }
 0x654   : > { %16056 = vst [vmem:[#allocation107_spill] sm:$0xff] %v13967_v35  ;;  %16058 = vst [vmem:[#allocation151_spill] sm:$0xff] %v13974_v57  ;;  %v7034_v13 = vmul.f32 %v13726_v34, %v13875_v6  ;;  %v13986_v35 = vmul.f32 %v13745_v3, %v13875_v6  ;;  %v13993_v22 = vmul.f32 %v13726_v34, %v13894_v63  ;;  %v6898_v52 = vsel %vm13879_vm1, %v13970_v55, 0.0 }
 0x655   : > { %16060 = vst [vmem:[#allocation102_spill] sm:$0xff] %v13980_v62  ;;  %v7018_v38 = vadd.f32 %v7010_v30, %v6994_v54  ;;  %v6907_v6 = vsel %vm13885_vm5, %v13947_v19, 0.0  ;;  %v6908_v58 = vsel %vm13750_vm13, %v13974_v57, 0.0  ;;  %v16062_v29 = vand.u32 7, %v16028_v26  ;;  %vm16074_vm13 = vmmov %vm16073_vm2 }
 0x656   : > { %16061 = vst [vmem:[#allocation97_spill] sm:$0xff] %v13993_v22  ;;  %v14024_v49 = vmax.f32 %v6656_v56, 0.0  ;;  %v16065_v63 = vand.u32 7, %v16010_v45  ;;  %v14035_v54 = vmul.f32 %v13757_v9, %v6887_v42  ;;  %v7054_v55 = vmul.f32 %v13998_v31, %v6901_v2 }
 0x657   : > { %vm14011_vm6 = vcmp.ge.s32.totalorder %v16062_v29, 1  ;;  %v14032_v22 = vadd.f32 %v7034_v13, %v7018_v38  ;;  %v7055_v30 = vmul.f32 %v13998_v31, %v6902_v61  ;;  %v16068_v62 = vand.u32 7, %v16028_v26  ;;  %v14054_v13 = vld [vmem:[%s14352_s12 + $0x6] ss:$0 sm:$0xff] }
 0x658   : > { %vm14028_vm8 = vcmp.lt.s32.totalorder %v16065_v63, 7  ;;  %v14046_v45 = vmul.f32 %v13799_v7, %v6898_v52  ;;  %v14049_v63 = vmul.f32 %v13998_v31, %v6907_v6  ;;  %v6812_v2 = vrot.slane %v14024_v49, 7 }
 0x659   : > { %vm14041_vm9 = vcmp.lt.s32.totalorder %v16068_v62, 7  ;;  %v14748_v61 = vrot.slane %v14024_v49, 1  ;;  %v14059_v26 = vmul.f32 %v13998_v31, %v6908_v58  ;;  %v6920_v62 = vsel %vm13738_vm11, %v13862_v8, 0.0 }
 0x65a   : > { %16071 = vst [vmem:[#allocation26_spill] sm:$0xff] %v14049_v63  ;;  %v7062_v42 = vadd.f32 %v7054_v55, %v13889_v21  ;;  %v7063_v38 = vadd.f32 %v7055_v30, %v7039_v16  ;;  %v14066_v52 = vsel %vm16073_vm2, %v6810_v44, %v6812_v2  ;;  %v14069_v6 = vsel %vm16074_vm13, %v6812_v2, %v6814_v43  ;;  %v14101_v2 = vld [vmem:[%s14352_s12 + $0x8] ss:$0 sm:$0xff] }
 0x65b   : > { %16072 = vst [vmem:[#allocation53_spill] sm:$0xff] %v14059_v26  ;;  %vm16075_vm10 = vcmask 1046528   ;;  %v6964_v58 = vmul.f32 %v13701_v48, %v14024_v49  ;;  %v6829_v50 = vsel %vm13898_vm12, %v14066_v52, 0.0  ;;  %v6830_v21 = vsel %vm13879_vm1, %v14069_v6, 0.0  ;;  %v16085_v60 = vld [vmem:[#allocation107_spill] sm:$0xff] }
 0x65c   : > { %v14074_v27 = vsel %vm16075_vm10, %v6864_v33, %v14748_v61  ;;  %v7078_v44 = vmul.f32 %v14054_v13, %v6911_v47  ;;  %v6896_v33 = vsel %vm13832_vm0, %v14066_v52, 0.0  ;;  %v6940_v48 = vmul.f32 %v13691_v23, %v6829_v50  ;;  %vm16080_vm2 = vmmov %vm16075_vm10 }
 0x65d   : > { %v6885_v16 = vsel %vm13951_vm4, %v14074_v27, 0.0  ;;  %v6941_v43 = vmul.f32 %v13691_v23, %v6830_v21  ;;  %v16076_v55 = vsel %vm13711_vm15, %v13820_v41, 0.0  ;;  %v7035_v61 = vmul.f32 %v13726_v34, %v14024_v49 }
 0x65e   : > { %v7079_v30 = vmul.f32 %v14054_v13, %v16076_v55  ;;  %v6987_v47 = vmul.f32 %v13757_v9, %v6885_v16  ;;  %v14108_v50 = vmul.f32 %v13745_v3, %v14024_v49  ;;  %v7086_v21 = vadd.f32 %v7078_v44, %v7062_v42 }
 0x65f   : > { %v6897_v32 = vsel %vm13898_vm12, %v14069_v6, 0.0  ;;  %v6972_v55 = vadd.f32 %v6964_v58, %v6940_v48  ;;  %v14113_v57 = vadd.f32 %v6965_v18, %v6941_v43  ;;  %v7011_v63 = vmul.f32 %v13799_v7, %v6896_v33 }
 0x660   : > { %v7087_v26 = vadd.f32 %v7079_v30, %v7063_v38  ;;  %v6995_v4 = vadd.f32 %v6987_v47, %v6971_v5  ;;  %v7110_v16 = vadd.f32 %v13892_v11, %v7086_v21  ;;  %v16077_v34 = vsel %vm13716_vm14, %v13859_v36, 0.0  ;;  %v14130_v5 = vld [vmem:[%s14353_s13] ss:$0 sm:$0xff] }
 0x661   : > { %v7126_v3 = vmul.f32 %v14101_v2, %v16077_v34  ;;  %v6905_v42 = vsel %vm13836_vm3, %v14074_v27, 0.0  ;;  %v7127_v18 = vmul.f32 %v14101_v2, %v6920_v62  ;;  %v6826_v53 = vsel %vm14011_vm6, %v13820_v41, 0.0 }
 0x662   : > { %v7111_v58 = vadd.f32 %v13791_v25, %v7087_v26  ;;  %v7012_v11 = vmul.f32 %v13799_v7, %v6897_v32  ;;  %v7019_v38 = vadd.f32 %v7011_v63, %v6995_v4  ;;  %v6882_v33 = vsel %vm14028_vm8, %v13859_v36, 0.0 }
 0x663   : > { %v7134_v44 = vadd.f32 %v7126_v3, %v7110_v16  ;;  %v6883_v26 = vsel %vm14041_vm9, %v13862_v8, 0.0  ;;  %v6894_v62 = vsel %vm14011_vm6, %v13804_v59, 0.0  ;;  %v6903_v41 = vsel %vm14028_vm8, %v13862_v8, 0.0 }
 0x664   : > { %v7135_v25 = vadd.f32 %v7127_v18, %v7111_v58  ;;  %v7043_v48 = vadd.f32 %v7035_v61, %v7019_v38  ;;  %v6904_v36 = vsel %vm14041_vm9, %v13932_v14, 0.0  ;;  %v6937_v4 = vmul.f32 %v13691_v23, %v6826_v53 }
 0x665   : > { %v7149_v3 = vadd.f32 %v14130_v5, %v7134_v44  ;;  %v6913_v43 = vsel %vm13734_vm7, %v13804_v59, 0.0  ;;  %v6914_v30 = vsel %vm14011_vm6, %v13929_v37, 0.0  ;;  %v6984_v8 = vmul.f32 %v13757_v9, %v6882_v33  ;;  %v16082_v33 = vld [vmem:[#allocation43_spill] sm:$0xff] }
 0x666   : > { %v7150_v63 = vadd.f32 %v14130_v5, %v7135_v25  ;;  %v6921_v61 = vsel %vm14028_vm8, %v13932_v14, 0.0  ;;  %v6922_v23 = vsel %vm14041_vm9, %v14074_v27, 0.0  ;;  %v6969_v47 = vadd.f32 %v13782_v24, %v6937_v4 }
 0x667   : > { %v6985_v21 = vmul.f32 %v13757_v9, %v6883_v26  ;;  %v7157_v10 = vmax.f32 %v7149_v3, 0.0  ;;  %v6992_v32 = vadd.f32 %v6984_v8, %v13864_v39  ;;  %v7009_v37 = vmul.f32 %v13799_v7, %v6894_v62 }
 0x668   : > { %v7158_v59 = vmax.f32 %v7150_v63, 0.0  ;;  %v7056_v16 = vmul.f32 %v13998_v31, %v6903_v41  ;;  %v7057_v29 = vmul.f32 %v13998_v31, %v6904_v36  ;;  %v16078_v14 = vrot.slane %v13873_v40, 1 }
 0x669   : > { %v6993_v20 = vadd.f32 %v6985_v21, %v6969_v47  ;;  %v16079_v56 = vrot.slane %v14024_v49, 1  ;;  %v7016_v34 = vadd.f32 %v13906_v12, %v6992_v32  ;;  %v7080_v18 = vmul.f32 %v14054_v13, %v6913_v43  ;;  %v16086_v21 = vld [vmem:[#allocation97_spill] sm:$0xff] }
 0x66a   : > { %v7165_v24 = vpack.c.bf16 %v7158_v59, %v7157_v10  ;;  %v7081_v53 = vmul.f32 %v14054_v13, %v6914_v30  ;;  %vm16081_vm15 = vnez %v16017_v51  ;;  %v6916_v12 = vsel %vm13832_vm0, %v14069_v6, 0.0  ;;  %v16083_v30 = vld [vmem:[#allocation152_spill] sm:$0xff] }
 0x66b   : > { %v6869_v27 = vsel %vm16080_vm2, %v16079_v56, %v16078_v14  ;;  %v7017_v39 = vadd.f32 %v7009_v37, %v6993_v20  ;;  %v6915_v49 = vsel %vm16081_vm15, %v14066_v52, 0.0  ;;  %v7040_v40 = vadd.f32 %v13786_v46, %v7016_v34  ;;  %v16089_v37 = vld [vmem:[#allocation26_spill] sm:$0xff] }
 0x66c   : > { %v6886_v58 = vsel %vm13885_vm5, %v6869_v27, 0.0  ;;  %v6906_v7 = vsel %vm13951_vm4, %v6869_v27, 0.0  ;;  %8295 = vmatpush3.bf16.msra.mxu1 %v7165_v24  ;;  %v7058_v44 = vmul.f32 %v13998_v31, %v6905_v42  ;;  %v7128_v26 = vmul.f32 %v14101_v2, %v6921_v61  ;;  %v16093_v24 = vld [vmem:[#allocation53_spill] sm:$0xff] }
 0x66d   : > { %v6988_v38 = vmul.f32 %v13757_v9, %v6886_v58  ;;  %8296 = vmatprep.subr.bf16.mxu1 %v16004_v0  ;;  %v7041_v25 = vadd.f32 %v16082_v33, %v7017_v39  ;;  %v6923_v51 = vsel %vm13836_vm3, %v6869_v27, 0.0  ;;  %v7059_v52 = vmul.f32 %v13998_v31, %v6906_v7  ;;  %v16094_v58 = vld [vmem:[#allocation66_spill] sm:$0xff] }
 0x66e   : > { %v7064_v46 = vadd.f32 %v7056_v16, %v7040_v40  ;;  %v7066_v1 = vadd.f32 %v7058_v44, %v14032_v22  ;;  %v7082_v6 = vmul.f32 %v14054_v13, %v6915_v49  ;;  %v7083_v42 = vmul.f32 %v14054_v13, %v6916_v12 }
 0x66f   : > { %v6996_v62 = vadd.f32 %v6988_v38, %v6972_v55  ;;  %v7065_v9 = vadd.f32 %v7057_v29, %v7041_v25  ;;  %v7067_v41 = vadd.f32 %v7059_v52, %v7043_v48  ;;  %v6997_v3 = vadd.f32 %v14035_v54, %v14113_v57  ;;  %v16084_v57 = vld [vmem:[#allocation94_spill] sm:$0xff]  ;;  %v16096_v38 = vld [vmem:[#allocation49_spill] sm:$0xff] }
 0x670   : > { %v7088_v36 = vadd.f32 %v7080_v18, %v7064_v46  ;;  %v6924_v15 = vsel %vm13951_vm4, %v13947_v19, 0.0  ;;  %v7090_v4 = vadd.f32 %v7082_v6, %v7066_v1  ;;  %v7129_v55 = vmul.f32 %v14101_v2, %v6922_v23  ;;  %v16087_v23 = vld [vmem:[#allocation19_spill] sm:$0xff]  ;;  %v16091_v29 = vld [vmem:[#allocation102_spill] sm:$0xff] }
 0x671   : > { %v7020_v31 = vadd.f32 %v7012_v11, %v6996_v62  ;;  %v7089_v63 = vadd.f32 %v7081_v53, %v7065_v9  ;;  %v7091_v22 = vadd.f32 %v7083_v42, %v7067_v41  ;;  %v7021_v43 = vadd.f32 %v14046_v45, %v6997_v3  ;;  %v16102_v9 = vld [vmem:[#allocation52_spill] sm:$0xff] }
 0x672   : > { %v7112_v48 = vadd.f32 %v16083_v30, %v7088_v36  ;;  %v7114_v8 = vadd.f32 %v14108_v50, %v7090_v4  ;;  %v7130_v61 = vmul.f32 %v14101_v2, %v6923_v51  ;;  %v7131_v11 = vmul.f32 %v14101_v2, %v6924_v15  ;;  %v16100_v51 = vld [vmem:[#allocation151_spill] sm:$0xff] }
 0x673   : > { %v7044_v54 = vadd.f32 %v16084_v57, %v7020_v31  ;;  %v7113_v47 = vadd.f32 %v13986_v35, %v7089_v63  ;;  %v7115_v19 = vadd.f32 %v16085_v60, %v7091_v22  ;;  %v7045_v10 = vadd.f32 %v16086_v21, %v7021_v43  ;;  %v8656_v22 = vld [vmem:[%s14355_s15] sm:$0xff]   ;;  %v7305_v60 = vld [vmem:[%s14357_s17 + $0x10] sm:$0xff] }
 0x674   : > { %v16088_v45 = vsel %vm13898_vm12, %v16087_v23, 0.0  ;;  %v7136_v32 = vadd.f32 %v7128_v26, %v7112_v48  ;;  %v7138_v50 = vadd.f32 %v7130_v61, %v7114_v8  ;;  %v16092_v35 = vsel %vm13879_vm1, %v16091_v29, 0.0 }
 0x675   : > { %v7084_v59 = vmul.f32 %v14054_v13, %v16088_v45  ;;  %v7068_v20 = vadd.f32 %v16089_v37, %v7044_v54  ;;  %v7085_v14 = vmul.f32 %v14054_v13, %v16092_v35  ;;  %v7137_v56 = vadd.f32 %v7129_v55, %v7113_v47  ;;  %v16098_v13 = vld [vmem:[#allocation22_spill] sm:$0xff]  ;;  %v8655_v55 = vld [vmem:[%s14354_s14] sm:$0xff]   ;;  %v7304_v47 = vld [vmem:[%s14357_s17 + $0x8] sm:$0xff] }
 0x676   : > { %v7139_v27 = vadd.f32 %v7131_v11, %v7115_v19  ;;  %v7069_v34 = vadd.f32 %v16093_v24, %v7045_v10  ;;  %v7108_v7 = vmul.f32 %v16095_v17, %v16094_v58  ;;  %v7151_v39 = vadd.f32 %v14130_v5, %v7136_v32  ;;  %v7303_v54 = vld [vmem:[%s14357_s17] sm:$0xff]  ;;  %v7306_v11 = vld [vmem:[%s14357_s17 + $0x18] sm:$0xff] }
 0x677   : > { %v7153_v18 = vadd.f32 %v14130_v5, %v7138_v50  ;;  %v7092_v53 = vadd.f32 %v7084_v59, %v7068_v20  ;;  %v7152_v49 = vadd.f32 %v14130_v5, %v7137_v56  ;;  %vm16097_vm14 = vnez %v16096_v38 }
 0x678   : > { %v7154_v40 = vadd.f32 %v14130_v5, %v7139_v27  ;;  %v7093_v12 = vadd.f32 %v7085_v14, %v7069_v34  ;;  %v16099_v44 = vsel %vm16097_vm14, %v16098_v13, 0.0  ;;  %v7159_v25 = vmax.f32 %v7151_v39, 0.0 }
 0x679   : > { %v7133_v33 = vmul.f32 %v14101_v2, %v16099_v44  ;;  %v7116_v26 = vadd.f32 %v7108_v7, %v7092_v53  ;;  %v16101_v52 = vsel %vm13885_vm5, %v16100_v51, 0.0  ;;  %v7160_v62 = vmax.f32 %v7152_v49, 0.0  ;;  %v7307_v7 = vld [vmem:[%s14358_s18] sm:$0x1] }
 0x67a   : > { %v7132_v46 = vmul.f32 %v14101_v2, %v16101_v52  ;;  %v7161_v1 = vmax.f32 %v7153_v18, 0.0  ;;  %v7162_v6 = vmax.f32 %v7154_v40, 0.0  ;;  %v7117_v41 = vadd.f32 %v16102_v9, %v7093_v12 }
 0x67b   : > { %v7166_v3 = vpack.c.bf16 %v7160_v62, %v7159_v25  ;;  %vm7176_vm10 = vcmask 523264   ;;  %vm16103_vm7 = vmmov 0   ;;  %v16104_v43 = vmov 0.0|0.0  }
 0x67c   : > { %v7140_v42 = vadd.f32 %v7132_v46, %v7116_v26  ;;  %v7167_v36 = vpack.c.bf16 %v7162_v6, %v7161_v1  ;;  %v7141_v15 = vadd.f32 %v7133_v33, %v7117_v41  ;;  %vm7245_vm11 = vcmask 261120  }
 0x67d   : > { %8297 = vmatpush3.bf16.msra.mxu1 %v7166_v3  ;;  %v8326_v19 = vpack.c.bf16 %v7304_v47, %v7303_v54  ;;  %v8329_v21 = vpack.c.bf16 %v7306_v11, %v7305_v60  ;;  %vm7381_vm13 = vcmask 8192  }
 0x67e   : > { %v7155_v4 = vadd.f32 %v14130_v5, %v7140_v42  ;;  %v7156_v31 = vadd.f32 %v14130_v5, %v7141_v15  ;;  %8298 = vmatprep.subr.bf16.mxu1 %v16004_v0  ;;  %v8657_v5 = vld [vmem:[%s14355_s15 + $0x8] sm:$0xff]  }
 0x680   : > { %v7163_v28 = vmax.f32 %v7155_v4, 0.0  ;;  %v7164_v63 = vmax.f32 %v7156_v31, 0.0 }
 0x681   : > { %8299 = vmatpush3.bf16.msra.mxu1 %v7167_v36 }
 0x682   : > { %v7168_v2 = vpack.c.bf16 %v7164_v63, %v7163_v28  ;;  %8300 = vmatprep.subr.bf16.mxu1 %v16004_v0 }
 0x685   : > { %8301 = vmatpush3.bf16.msra.mxu1 %v7168_v2 }
 0x686   : > { %8306 = vmatprep.subr.bf16.mxu1 %v16004_v0 }
 0x688   : > { %8303 = vmatmul.mubr.msk.bf16.vlgmr.msra.gmra.mrb[88].mxu1 %vm7176_vm10, %v8655_v55 }
 0x689   : > { %8307 = vmatpush3.bf16.msra.mxu1 %v8656_v22  ;;  %8310 = vmatprep.mubr.msk.bf16.mxu1 %vm16103_vm7, %v16004_v0 }
 0x68a   : > { %8308 = vmatprep.subr.bf16.mxu1 %v16004_v0 }
 0x68d   : > { %8309 = vmatpush3.bf16.msra.mxu1 %v8657_v5 }
 0x68e   : > { %8325 = vmatprep.subr.bf16.mxu1 %v16104_v43 }
 0x75b   : > { %v7214_v30 = vpop.f32.mrb[88].mxu1 }
 0x75c   : > { %v8304_v48 = vpop.f32.mrb[89].mxu1 }
 0x75d   : > { %v7217_v8 = vpop.f32.mrb[90].mxu1 }
 0x75e   : > { %v7221_v61 = vpack.c.bf16 %v7217_v8, %v7214_v30  ;;  %v8305_v57 = vpop.f32.mrb[91].mxu1 }
 0x760   : > { %8311 = vmatmul.mubr.msk.bf16.vlgmr.msra.gmra.mrb[92].mxu1 %vm7245_vm11, %v7221_v61 }
 0x761   : > { %8322 = vmatprep.mubr.msk.f32.mxu1 %vm16103_vm7, %v16004_v0  ;;  %8327 = vmatpush3.bf16.msra.mxu1 %v8326_v19  ;;  %v7707_v0 = vld [vmem:[%s14356_s16] ss:$0 sm:$0xff] }
 0x762   : > { %8328 = vmatprep.subr.bf16.mxu1 %v16104_v43 }
 0x765   : > { %8330 = vmatpush3.bf16.msra.mxu1 %v8329_v21 }
 0x833   : > { %v7283_v10 = vpop.f32.mrb[92].mxu1 }
 0x834   : > { %v7284_v23 = vadd.f32 %v7707_v0, %v7283_v10  ;;  %v8312_v45 = vpop.f32.mrb[93].mxu1 }
 0x835   : > { %v7286_v59 = vpop.f32.mrb[94].mxu1 }
 0x836   : > { %v7290_v32 = vmax.f32 %v7284_v23, 0.0  ;;  %v7287_v50 = vadd.f32 %v7707_v0, %v7286_v59  ;;  %v8313_v37 = vpop.f32.mrb[95].mxu1 }
 0x838   : > { %v7291_v20 = vmax.f32 %v7287_v50, 0.0  ;;  %v7292_v16 = vsel %vm7245_vm11, %v7290_v32, 0.0 }
 0x83a   : > { %v7293_v29 = vsel %vm7245_vm11, %v7291_v20, 0.0 }
 0x83b   : > { %v7294_v35 = vadd.f32 %v7293_v29, %v7292_v16 }
 0x83d   : > { %v7295_v14 = vrot.slane %v7294_v35, 4 }
 0x83f   : > { %v7296_v56 = vadd.f32 %v7295_v14, %v7294_v35 }
 0x841   : > { %v7297_v27 = vrot.slane %v7296_v56, 2 }
 0x843   : > { %v7298_v24 = vadd.f32 %v7297_v27, %v7296_v56 }
 0x845   : > { %v7299_v34 = vrot.slane %v7298_v24, 1 }
 0x847   : > { %v7300_v58 = vadd.f32 %v7299_v34, %v7298_v24 }
 0x849   : > { %v7302_v17 = vmul.f32 0.0625, %v7300_v58 }
 0x84b   : > { %8323 = vmatmul.mubr.msk.f32.vlgmr.msra.gmra.mrb[96].mxu1 %vm7245_vm11, %v7302_v17 }
 0x91e   : > { %v7377_v39 = vpop.f32.mrb[96].mxu1 }
 0x91f   : > { %v7378_v18 = vadd.f32 %v7377_v39, %v7307_v7  ;;  %v8324_v53 = vpop.f32.mrb[97].mxu1 }
 0x921   : > { %v7382_v49 = vsel %vm7381_vm13, %v7378_v18, -inf }
 0x922   : > { %7383 = vmax.xlane.f32.xlu0 %v7382_v49 }
 0x9af   : > { %v7384_v40 = vpop.xlane.xlu0 %7383 }
 0x9b0   : > { %v7385_v12 = vsub.f32 %v7378_v18, %v7384_v40 }
 0x9b2   : > { %v7386_v38 = vmul.f32 1.442695, %v7385_v12 }
 0x9b4   : > { %8658 = vpow2.f32 %v7386_v38 }
 0x9be   : > { %v8659_v13 = vpop.eup %8658 }
 0x9bf   : > { %v7388_v44 = vsel %vm7381_vm13, %v8659_v13, 0.0 }
 0x9c0   : > { %7389 = vadd.xlane.f32.xlu0 %v7388_v44 }
 0xa4d   : > { %v7390_v33 = vpop.xlane.xlu0 %7389 }
 0xa4e   : > { %8660 = vlog2.f32 %v7390_v33 }
 0xa58   : > { %v8661_v25 = vpop.eup %8660 }
 0xa59   : > { %v7392_v26 = vmul.f32 0.6931472, %v8661_v25 }
 0xa5b   : > { %v7393_v51 = vsub.f32 %v7385_v12, %v7392_v26 }
 0xa5d   : > { %7394 = vst.msk [vmem:[%s594_s20] sm:$0x1] %vm7381_vm13, %v7393_v51 }
 0xa5e   : > { %8697 = shalt.err (!%p8694_p3)
}
 0xa5f   : > { %s8698_s5 = scalar_lea.hbm %s14297_s23, 16  ;;  %s8702_s24 = scalar_lea.hbm %s14359_s19, 32 }
 0xa60   : > { %p8699_p4 = scmp.ne.s32.totalorder %s14297_s23, %s8698_s5  ;;  %p8703_p9 = scmp.lt.u32.totalorder %s14297_s23, %s14359_s19 }
 0xa61   : > { %p8704_p10 = scmp.lt.u32.totalorder %s8702_s24, %s8698_s5  ;;  %p8706_p12 = scmp.lt.u32.totalorder %s8698_s5, %s14297_s23 }
 0xa62   : > { %p8700_p7 = pnand %p8699_p4, %p8890_p5 }
 0xa63   : > { %p8705_p11 = por %p8704_p10, %p8703_p9 }
 0xa64   : > { %p8701_p8 = pneg %p8700_p7 }
 0xa65   : > { %p8707_p13 = por %p8706_p12, %p8705_p11 }
 0xa67   : > { %p8708_p0 = pnand %p8707_p13, %p8701_p8 }
 0xa69   : > { %8711 = shalt.err (!%p8708_p0)
}
 0xa6a   : > { %8600 = dma.vmem_to_hbm [thread:$0]  (%p8890_p5), %s14299_s25, 16, %s14297_s23, %s7396_s28  }
 0xa6b PF: > { %p8606_p1 = scmp.ge.s32.totalorder %s8746_s21, 2  ;;  %s7420_s7 = sand.u32 1, %s8734_s0  }
 0xa6c   : > { %s7421_s2 = scalar_lea.sflag [#allocation3], %s7420_s7 }
 0xa6d   : > { %p8603_p2 = pnand %p8606_p1, %p8894_p6 }
 0xa6f   : > { %8729 = dma.done.wait (!%p8603_p2), %s7421_s2, 16  }
 0xa70   : > { %8731 = vsyncadd (!%p8603_p2), %s7421_s2, 4294967280  ;;  %s16105_s21 = sld [smem:[#allocation6_spill]]  ;;  %s16106_s4 = sld [smem:[#allocation5_spill]] }
 0xa71   : > { %s16107_s20 = sld [smem:[#allocation7_spill]]  ;;  %s16108_s0 = smov %s8738_s30 }
 0xa76   : > { %p29_p3 = scmp.ge.s32.totalorder %s16105_s21, 4   ;;  %s16109_s30 = smov %s16106_s4 }
 0xa78   :  { %31 = sbr.rel (!%p29_p3) target bundleno = 12 (0xc), region = 163 }
 0xa7f   :  { %7425 = vsyncpa [#allocation3], 1 }
 0xa80   :  { %7427 = vsyncpa [#allocation3 + $0x1], 1 }

</bundles_post_ra>
